<compile_context>
chip_gen: v7x
topology: tpu7x:2x2x1
jax: 0.10.0
libtpu: 0.0.40
codegen_flags: <defaults>
</compile_context>

<pallas_src>
import numpy as np
import jax
import jax.numpy as jnp
from jax import lax
from jax.experimental import pallas as pl
from jax.experimental.pallas import tpu as pltpu


def _gelu(v):
    # exact GELU (matches torch.nn.GELU() default, erf-based)
    return 0.5 * v * (1.0 + lax.erf(v * 0.7071067811865476))


def _ceil_to(v, m):
    return ((v + m - 1) // m) * m


def _pick_group(B, HW, target_lanes=2048):
    """Samples folded onto the lane axis per grid step (divisor of B)."""
    bb = max(1, min(B, max(1, target_lanes // HW)))
    while B % bb:
        bb -= 1
    # keep >=2 grid steps (one per v7x TensorCore) if lanes stay >= 1024 wide
    if B // bb < 2:
        for cand in range(bb - 1, 0, -1):
            if B % cand == 0 and cand * HW >= 1024:
                bb = cand
                break
    return bb


def _make_kernel(H, W, Bb, C_real, C_pad, Cmid_real, Cmid_pad, Cout_pad, matmul_dtype):
    HW = H * W
    LW = Bb * HW
    eps = 1e-5
    CENTER = 3 * 7 + 3  # centre tap of the 7x7 depthwise kernel

    def kernel(x_ref, t_ref, mask_ref, sel_ref, selT_ref, dw_ref, mlpw_ref,
               vec_ref, w1_ref, w2_ref, rw_ref, o_ref, patch_ref):
        x = x_ref[0]                       # (C_pad, LW) f32, spatial*batch on lanes
        sel = sel_ref[...]                 # (Bb, LW)  one-hot per-sample lane blocks
        selT = selT_ref[...]               # (LW, Bb)
        vec = vec_ref[...]                 # (Cmax, 9) packed per-channel vectors

        dw_b = vec[0:C_pad, 0:1]
        mlp_b = vec[0:C_pad, 1:2]
        g1 = vec[0:C_pad, 2:3]
        be1 = vec[0:C_pad, 3:4]
        b1 = vec[0:Cmid_pad, 4:5]
        g2 = vec[0:Cmid_pad, 5:6]
        be2 = vec[0:Cmid_pad, 6:7]
        b2 = vec[0:Cout_pad, 7:8]
        res_b = vec[0:Cout_pad, 8:9]

        def tap(v, sy, sx):
            """v shifted by (sy, sx); zero outside each sample's image (precomputed
            masks also kill any cross-sample roll wrap)."""
            k = (sy + 3) * 7 + (sx + 3)
            s = sy * W + sx
            r = v if s == 0 else pltpu.roll(v, shift=(-s) % LW, axis=1)
            return r * mask_ref[pl.ds(k, 1), :]

        # ---- depthwise 7x7, padding=3, groups=C: centre tap init + 48 masked taps
        dw = dw_ref[...]                   # (C_pad, 49)
        h = dw[:, CENTER:CENTER + 1] * x
        for dy in range(7):
            for dx in range(7):
                k = dy * 7 + dx
                if k == CENTER:
                    continue
                h = h + dw[:, k:k + 1] * tap(x, dy - 3, dx - 3)
        h = h + dw_b

        # ---- time conditioning: Linear(GELU(t)), broadcast to each sample's lanes
        gt = _gelu(t_ref[0])                                            # (T, Bb)
        cond = jnp.dot(mlpw_ref[...], gt,
                       preferred_element_type=jnp.float32) + mlp_b      # (C_pad, Bb)
        h = h + jnp.dot(cond, sel, preferred_element_type=jnp.float32)  # (C_pad, LW)

        # ---- per-sample GroupNorm(1, .): single-pass mean / var via sel matmuls
        def per_sample_bcast(v1lw):        # (1, LW) -> (1, LW) per-sample totals
            per = jnp.dot(v1lw, selT, preferred_element_type=jnp.float32)  # (1, Bb)
            return jnp.dot(per, sel, preferred_element_type=jnp.float32)   # (1, LW)

        def groupnorm(v, g, b, n_real):
            inv_n = 1.0 / float(n_real)
            mu = per_sample_bcast(jnp.sum(v, axis=0, keepdims=True)) * inv_n
            m2 = per_sample_bcast(jnp.sum(v * v, axis=0, keepdims=True)) * inv_n
            var = jnp.maximum(m2 - mu * mu, 0.0)
            rstd = lax.rsqrt(var + eps)
            return (v - mu) * rstd * g + b

        h = groupnorm(h, g1, be1, C_real * HW)

        # ---- 3x3 convs as ONE im2col matmul each; patch staged in VMEM scratch
        def conv3x3(v, w, b, cin):
            for dy in range(3):
                for dx in range(3):
                    kk = dy * 3 + dx
                    patch_ref[pl.ds(kk * cin, cin), :] = (
                        tap(v, dy - 1, dx - 1).astype(matmul_dtype))
            patch = patch_ref[pl.ds(0, 9 * cin), :]
            return jnp.dot(w, patch, preferred_element_type=jnp.float32) + b

        h = _gelu(conv3x3(h, w1_ref[...], b1, C_pad))                   # (Cmid_pad, LW)
        h = groupnorm(h, g2, be2, Cmid_real * HW)
        h = conv3x3(h, w2_ref[...], b2, Cmid_pad)                       # (Cout_pad, LW)

        # ---- residual 1x1 conv
        res = jnp.dot(rw_ref[...], x.astype(matmul_dtype),
                      preferred_element_type=jnp.float32) + res_b
        o_ref[...] = (h + res)[None].astype(o_ref.dtype)

    return kernel


def convnext_block(x_nchw, time_emb, params, *, matmul_dtype=jnp.float32):
    """Pallas ConvNextBlock.  x_nchw: (B, C, H, W); time_emb: (B, T) or None.
    params use PyTorch layouts (Conv2d OIHW, Linear (out,in), per-channel norm)."""
    f32 = jnp.float32
    x_nchw = x_nchw.astype(f32)
    B, C, H, W = x_nchw.shape
    HW = H * W
    Cmid = params["w1"].shape[0]
    Cout = params["w2"].shape[0]

    if time_emb is None:                               # time_emb_dim=None path
        time_emb = jnp.zeros((B, 1), f32)
        mlp_w = jnp.zeros((C, 1), f32)
        mlp_b = jnp.zeros((C,), f32)
    else:
        time_emb = time_emb.astype(f32)
        mlp_w = params["mlp_w"].astype(f32)
        mlp_b = params["mlp_b"].astype(f32)
    T = time_emb.shape[1]

    if params.get("res_w") is None:                    # dim == dim_out -> Identity
        res_w = jnp.eye(Cout, C, dtype=f32)
        res_b = jnp.zeros((Cout,), f32)
    else:
        res_w = params["res_w"].reshape(Cout, C).astype(f32)
        res_b = params["res_b"].astype(f32)

    C_pad = _ceil_to(C, 8)
    Cmid_pad = _ceil_to(Cmid, 8)
    Cout_pad = _ceil_to(Cout, 8)
    Cmax = max(C_pad, Cmid_pad, Cout_pad)

    Bb = _pick_group(B, HW)
    G = B // Bb
    LW = Bb * HW

    def pad_rows(a, n):
        return jnp.pad(a, ((0, n - a.shape[0]),) + ((0, 0),) * (a.ndim - 1))

    # x: (B, C, H, W) -> (G, C_pad, Bb*HW): channels on sublanes, Bb samples folded
    # onto the lane axis (wrapper-side layout plumbing only).
    x = x_nchw.reshape(B, C, HW)
    x = jnp.pad(x, ((0, 0), (0, C_pad - C), (0, 0)))
    x = x.reshape(G, Bb, C_pad, HW).transpose(0, 2, 1, 3).reshape(G, C_pad, LW)

    # time_emb: (B, T) -> (G, T, Bb) so the kernel's matmuls are all plain jnp.dot
    t = time_emb.reshape(G, Bb, T).transpose(0, 2, 1)

    # loop-invariant edge masks for all 7x7 shifts (the 3x3 convs use the centre 3x3)
    q = jnp.arange(HW, dtype=jnp.int32)
    hh, ww = q // W, q % W
    mask_rows = []
    for sy in range(-3, 4):
        for sx in range(-3, 4):
            ok = (hh + sy >= 0) & (hh + sy < H) & (ww + sx >= 0) & (ww + sx < W)
            mask_rows.append(ok)
    mask7 = jnp.tile(jnp.stack(mask_rows).astype(f32), (1, Bb))          # (49, LW)

    sel = jnp.repeat(jnp.eye(Bb, dtype=f32), HW, axis=1)                 # (Bb, LW)
    selT = sel.T                                                         # (LW, Bb)

    # parameters in kernel layouts (channel dims zero-padded to sublane multiples)
    dw_w = pad_rows(params["dw_w"].reshape(C, 49).astype(f32), C_pad)    # (C_pad, 49)
    mlp_wp = pad_rows(mlp_w, C_pad)                                      # (C_pad, T)

    def im2col_w(w_oihw, cin_pad, cout_pad):
        co, ci = w_oihw.shape[0], w_oihw.shape[1]
        w = jnp.transpose(w_oihw.astype(f32), (0, 2, 3, 1))              # (co,3,3,ci)
        w = jnp.pad(w, ((0, cout_pad - co), (0, 0), (0, 0), (0, cin_pad - ci)))
        return w.reshape(cout_pad, 9 * cin_pad)

    w1 = im2col_w(params["w1"], C_pad, Cmid_pad).astype(matmul_dtype)    # (Cmid_pad, 9*C_pad)
    w2 = im2col_w(params["w2"], Cmid_pad, Cout_pad).astype(matmul_dtype)  # (Cout_pad, 9*Cmid_pad)
    rw = pad_rows(jnp.pad(res_w, ((0, 0), (0, C_pad - C))), Cout_pad).astype(matmul_dtype)

    def col(v):                                   # pack a per-channel vector column
        v = v.reshape(-1, 1).astype(f32)
        return jnp.pad(v, ((0, Cmax - v.shape[0]), (0, 0)))

    vecs = jnp.concatenate(
        [col(params["dw_b"]), col(mlp_b), col(params["g1"]), col(params["be1"]),
         col(params["b1"]), col(params["g2"]), col(params["be2"]),
         col(params["b2"]), col(res_b)], axis=1)                         # (Cmax, 9)

    const_arrays = [mask7, sel, selT, dw_w, mlp_wp, vecs, w1, w2, rw]

    def full_spec(a):
        nd = a.ndim
        return pl.BlockSpec(a.shape, lambda g, _nd=nd: (0,) * _nd)

    in_specs = ([pl.BlockSpec((1, C_pad, LW), lambda g: (g, 0, 0)),      # x slab
                 pl.BlockSpec((1, T, Bb), lambda g: (g, 0, 0))]          # time_emb
                + [full_spec(a) for a in const_arrays])

    patch_rows = 9 * max(C_pad, Cmid_pad)

    # advisory cost estimate for the XLA scheduler
    flops = 2 * B * HW * (49 * C + 9 * C_pad * Cmid_pad
                          + 9 * Cmid_pad * Cout_pad + C_pad * Cout_pad)
    transcendentals = B * (HW * Cmid + T + 4 * HW)
    bytes_accessed = 4 * (int(x.size) + int(t.size) + G * Cout_pad * LW
                          + sum(int(a.size) for a in const_arrays))

    kernel = _make_kernel(H, W, Bb, C, C_pad, Cmid, Cmid_pad, Cout_pad, matmul_dtype)

    out = pl.pallas_call(
        kernel,
        out_shape=jax.ShapeDtypeStruct((G, Cout_pad, LW), jnp.float32),
        grid_spec=pltpu.PrefetchScalarGridSpec(
            num_scalar_prefetch=0,
            grid=(G,),
            in_specs=in_specs,
            out_specs=pl.BlockSpec((1, Cout_pad, LW), lambda g: (g, 0, 0)),
            scratch_shapes=[pltpu.VMEM((patch_rows, LW), matmul_dtype)],
        ),
        compiler_params=pltpu.CompilerParams(
            dimension_semantics=("parallel",)),                   # batch groups on 2 TCs
        cost_estimate=pl.CostEstimate(
            flops=int(flops), transcendentals=int(transcendentals),
            bytes_accessed=int(bytes_accessed)),
    )(x, t, *const_arrays)

    out = out.reshape(G, Cout_pad, Bb, HW).transpose(0, 2, 1, 3)
    return out.reshape(B, Cout_pad, H, W)[:, :Cout]


def convnext_ref(x, time_emb, params):
    """Pure-JAX NCHW reference with the same semantics as the PyTorch module."""
    x = x.astype(jnp.float32)
    B, C, H, W = x.shape
    dn = ('NCHW', 'OIHW', 'NCHW')
    hp = lax.Precision.HIGHEST

    h = lax.conv_general_dilated(x, params["dw_w"].astype(jnp.float32), (1, 1), 'SAME',
                                 dimension_numbers=dn, feature_group_count=C,
                                 precision=hp)
    h = h + params["dw_b"].reshape(1, C, 1, 1)

    cond = jnp.dot(_gelu(time_emb.astype(jnp.float32)),
                   params["mlp_w"].T, precision=hp) + params["mlp_b"]
    h = h + cond[:, :, None, None]

    def gn(v, g, b):
        mu = jnp.mean(v, axis=(1, 2, 3), keepdims=True)
        var = jnp.mean((v - mu) ** 2, axis=(1, 2, 3), keepdims=True)
        vn = (v - mu) * lax.rsqrt(var + 1e-5)
        return vn * g.reshape(1, -1, 1, 1) + b.reshape(1, -1, 1, 1)

    h = gn(h, params["g1"], params["be1"])
    h = lax.conv_general_dilated(h, params["w1"], (1, 1), 'SAME',
                                 dimension_numbers=dn, precision=hp)
    h = h + params["b1"].reshape(1, -1, 1, 1)
    h = _gelu(h)
    h = gn(h, params["g2"], params["be2"])
    h = lax.conv_general_dilated(h, params["w2"], (1, 1), 'SAME',
                                 dimension_numbers=dn, precision=hp)
    h = h + params["b2"].reshape(1, -1, 1, 1)

    res = lax.conv_general_dilated(x, params["res_w"], (1, 1), 'SAME',
                                   dimension_numbers=dn, precision=hp)
    res = res + params["res_b"].reshape(1, -1, 1, 1)
    return h + res


if __name__ == "__main__":
    # ConvNextBlock(dim=4, dim_out=8, time_emb_dim=8, mult=2, norm=True)
    B, dim, dim_out, mult, H, W, T = 2, 4, 8, 2, 16, 16, 8
    Cmid = dim_out * mult

    key = jax.random.PRNGKey(0)
    ks = jax.random.split(key, 16)
    params = {
        # PyTorch parameter layouts
        "dw_w": jax.random.normal(ks[0], (dim, 1, 7, 7), jnp.float32) * 0.1,
        "dw_b": jax.random.normal(ks[1], (dim,), jnp.float32) * 0.05,
        "mlp_w": jax.random.normal(ks[2], (dim, T), jnp.float32) * 0.1,
        "mlp_b": jax.random.normal(ks[3], (dim,), jnp.float32) * 0.05,
        "g1": 1.0 + 0.1 * jax.random.normal(ks[4], (dim,), jnp.float32),
        "be1": 0.05 * jax.random.normal(ks[5], (dim,), jnp.float32),
        "w1": jax.random.normal(ks[6], (Cmid, dim, 3, 3), jnp.float32) * 0.1,
        "b1": jax.random.normal(ks[7], (Cmid,), jnp.float32) * 0.05,
        "g2": 1.0 + 0.1 * jax.random.normal(ks[8], (Cmid,), jnp.float32),
        "be2": 0.05 * jax.random.normal(ks[9], (Cmid,), jnp.float32),
        "w2": jax.random.normal(ks[10], (dim_out, Cmid, 3, 3), jnp.float32) * 0.1,
        "b2": jax.random.normal(ks[11], (dim_out,), jnp.float32) * 0.05,
        "res_w": jax.random.normal(ks[12], (dim_out, dim, 1, 1), jnp.float32) * 0.1,
        "res_b": jax.random.normal(ks[13], (dim_out,), jnp.float32) * 0.05,
    }

    x = jax.random.normal(ks[14], (B, dim, H, W), jnp.float32)
    time_emb = jax.random.normal(ks[15], (B, T), jnp.float32)

    out = convnext_block(x, time_emb, params)
    out = jax.block_until_ready(out)
    assert out.shape == (B, dim_out, H, W)

    ref = convnext_ref(x, time_emb, params)
    np.testing.assert_allclose(np.asarray(out), np.asarray(ref), atol=2e-3, rtol=2e-3)

    print("KERNEL_OK")
</pallas_src>

<mosaic_0001>
module attributes {stable_mosaic.version = 11 : i64} {
  func.func @kernel(%arg0: i32, %arg1: memref<1x8x512xf32, #tpu.memory_space<vmem>>, %arg2: memref<1x8x2xf32, #tpu.memory_space<vmem>>, %arg3: memref<49x512xf32, #tpu.memory_space<vmem>>, %arg4: memref<2x512xf32, #tpu.memory_space<vmem>>, %arg5: memref<512x2xf32, #tpu.memory_space<vmem>>, %arg6: memref<8x49xf32, #tpu.memory_space<vmem>>, %arg7: memref<8x8xf32, #tpu.memory_space<vmem>>, %arg8: memref<16x9xf32, #tpu.memory_space<vmem>>, %arg9: memref<16x72xf32, #tpu.memory_space<vmem>>, %arg10: memref<8x144xf32, #tpu.memory_space<vmem>>, %arg11: memref<8x8xf32, #tpu.memory_space<vmem>>, %arg12: memref<1x8x512xf32, #tpu.memory_space<vmem>>, %arg13: memref<144x512xf32, #tpu.memory_space<vmem>>) attributes {dimension_semantics = [#tpu.dimension_semantics<parallel>], iteration_bounds = array<i64: 1>, scalar_prefetch = 0 : i64, scratch_operands = 1 : i64, tpu.core_type = #tpu.core_type<tc>, window_params = [{transform_indices = @transform_0, window_bounds = array<i64: 1, 8, 512>}, {transform_indices = @transform_1, window_bounds = array<i64: 1, 8, 2>}, {pipeline_mode = #tpu.pipeline_mode<synchronous>, transform_indices = @transform_2, window_bounds = array<i64: 49, 512>}, {pipeline_mode = #tpu.pipeline_mode<synchronous>, transform_indices = @transform_3, window_bounds = array<i64: 2, 512>}, {pipeline_mode = #tpu.pipeline_mode<synchronous>, transform_indices = @transform_4, window_bounds = array<i64: 512, 2>}, {pipeline_mode = #tpu.pipeline_mode<synchronous>, transform_indices = @transform_5, window_bounds = array<i64: 8, 49>}, {pipeline_mode = #tpu.pipeline_mode<synchronous>, transform_indices = @transform_6, window_bounds = array<i64: 8, 8>}, {pipeline_mode = #tpu.pipeline_mode<synchronous>, transform_indices = @transform_7, window_bounds = array<i64: 16, 9>}, {pipeline_mode = #tpu.pipeline_mode<synchronous>, transform_indices = @transform_8, window_bounds = array<i64: 16, 72>}, {pipeline_mode = #tpu.pipeline_mode<synchronous>, transform_indices = @transform_9, window_bounds = array<i64: 8, 144>}, {pipeline_mode = #tpu.pipeline_mode<synchronous>, transform_indices = @transform_10, window_bounds = array<i64: 8, 8>}, {transform_indices = @transform_11, window_bounds = array<i64: 1, 8, 512>}]} {
    %c0 = arith.constant 0 : index
    %c0_0 = arith.constant 0 : index
    %c0_1 = arith.constant 0 : index
    %0 = vector.load %arg1[%c0, %c0_0, %c0_1] : memref<1x8x512xf32, #tpu.memory_space<vmem>>, vector<1x8x512xf32>
    %1 = vector.shape_cast %0 : vector<1x8x512xf32> to vector<8x512xf32>
    %c0_2 = arith.constant 0 : index
    %c0_3 = arith.constant 0 : index
    %2 = vector.load %arg4[%c0_2, %c0_3] : memref<2x512xf32, #tpu.memory_space<vmem>>, vector<2x512xf32>
    %c0_4 = arith.constant 0 : index
    %c0_5 = arith.constant 0 : index
    %3 = vector.load %arg5[%c0_4, %c0_5] : memref<512x2xf32, #tpu.memory_space<vmem>>, vector<512x2xf32>
    %c0_6 = arith.constant 0 : index
    %c0_7 = arith.constant 0 : index
    %4 = vector.load %arg8[%c0_6, %c0_7] : memref<16x9xf32, #tpu.memory_space<vmem>>, vector<16x9xf32>
    %5 = vector.extract_strided_slice %4 {offsets = [0, 0], sizes = [8, 1], strides = [1, 1]} : vector<16x9xf32> to vector<8x1xf32>
    %6 = vector.extract_strided_slice %4 {offsets = [0, 1], sizes = [8, 1], strides = [1, 1]} : vector<16x9xf32> to vector<8x1xf32>
    %7 = vector.extract_strided_slice %4 {offsets = [0, 2], sizes = [8, 1], strides = [1, 1]} : vector<16x9xf32> to vector<8x1xf32>
    %8 = vector.extract_strided_slice %4 {offsets = [0, 3], sizes = [8, 1], strides = [1, 1]} : vector<16x9xf32> to vector<8x1xf32>
    %9 = vector.extract_strided_slice %4 {offsets = [0, 4], sizes = [16, 1], strides = [1, 1]} : vector<16x9xf32> to vector<16x1xf32>
    %10 = vector.extract_strided_slice %4 {offsets = [0, 5], sizes = [16, 1], strides = [1, 1]} : vector<16x9xf32> to vector<16x1xf32>
    %11 = vector.extract_strided_slice %4 {offsets = [0, 6], sizes = [16, 1], strides = [1, 1]} : vector<16x9xf32> to vector<16x1xf32>
    %12 = vector.extract_strided_slice %4 {offsets = [0, 7], sizes = [8, 1], strides = [1, 1]} : vector<16x9xf32> to vector<8x1xf32>
    %13 = vector.extract_strided_slice %4 {offsets = [0, 8], sizes = [8, 1], strides = [1, 1]} : vector<16x9xf32> to vector<8x1xf32>
    %c0_8 = arith.constant 0 : index
    %c0_9 = arith.constant 0 : index
    %14 = vector.load %arg6[%c0_8, %c0_9] : memref<8x49xf32, #tpu.memory_space<vmem>>, vector<8x49xf32>
    %15 = vector.extract_strided_slice %14 {offsets = [0, 24], sizes = [8, 1], strides = [1, 1]} : vector<8x49xf32> to vector<8x1xf32>
    %16 = vector.broadcast %15 : vector<8x1xf32> to vector<8x512xf32>
    %17 = arith.mulf %16, %1 : vector<8x512xf32>
    %18 = vector.extract_strided_slice %14 {offsets = [0, 0], sizes = [8, 1], strides = [1, 1]} : vector<8x49xf32> to vector<8x1xf32>
    %c51_i32 = arith.constant 51 : i32
    %19 = tpu.dynamic_rotate %1 by %c51_i32 dim 1 : vector<8x512xf32>, i32 -> vector<8x512xf32>
    %c0_10 = arith.constant 0 : index
    %c0_11 = arith.constant 0 : index
    %20 = vector.load %arg3[%c0_10, %c0_11] : memref<49x512xf32, #tpu.memory_space<vmem>>, vector<1x512xf32>
    %21 = vector.broadcast %20 : vector<1x512xf32> to vector<8x512xf32>
    %22 = arith.mulf %19, %21 : vector<8x512xf32>
    %23 = vector.broadcast %18 : vector<8x1xf32> to vector<8x512xf32>
    %24 = arith.mulf %23, %22 : vector<8x512xf32>
    %25 = arith.addf %17, %24 : vector<8x512xf32>
    %26 = vector.extract_strided_slice %14 {offsets = [0, 1], sizes = [8, 1], strides = [1, 1]} : vector<8x49xf32> to vector<8x1xf32>
    %c50_i32 = arith.constant 50 : i32
    %27 = tpu.dynamic_rotate %1 by %c50_i32 dim 1 : vector<8x512xf32>, i32 -> vector<8x512xf32>
    %c1 = arith.constant 1 : index
    %c0_12 = arith.constant 0 : index
    %28 = vector.load %arg3[%c1, %c0_12] : memref<49x512xf32, #tpu.memory_space<vmem>>, vector<1x512xf32>
    %29 = vector.broadcast %28 : vector<1x512xf32> to vector<8x512xf32>
    %30 = arith.mulf %27, %29 : vector<8x512xf32>
    %31 = vector.broadcast %26 : vector<8x1xf32> to vector<8x512xf32>
    %32 = arith.mulf %31, %30 : vector<8x512xf32>
    %33 = arith.addf %25, %32 : vector<8x512xf32>
    %34 = vector.extract_strided_slice %14 {offsets = [0, 2], sizes = [8, 1], strides = [1, 1]} : vector<8x49xf32> to vector<8x1xf32>
    %c49_i32 = arith.constant 49 : i32
    %35 = tpu.dynamic_rotate %1 by %c49_i32 dim 1 : vector<8x512xf32>, i32 -> vector<8x512xf32>
    %c2 = arith.constant 2 : index
    %c0_13 = arith.constant 0 : index
    %36 = vector.load %arg3[%c2, %c0_13] : memref<49x512xf32, #tpu.memory_space<vmem>>, vector<1x512xf32>
    %37 = vector.broadcast %36 : vector<1x512xf32> to vector<8x512xf32>
    %38 = arith.mulf %35, %37 : vector<8x512xf32>
    %39 = vector.broadcast %34 : vector<8x1xf32> to vector<8x512xf32>
    %40 = arith.mulf %39, %38 : vector<8x512xf32>
    %41 = arith.addf %33, %40 : vector<8x512xf32>
    %42 = vector.extract_strided_slice %14 {offsets = [0, 3], sizes = [8, 1], strides = [1, 1]} : vector<8x49xf32> to vector<8x1xf32>
    %c48_i32 = arith.constant 48 : i32
    %43 = tpu.dynamic_rotate %1 by %c48_i32 dim 1 : vector<8x512xf32>, i32 -> vector<8x512xf32>
    %c3 = arith.constant 3 : index
    %c0_14 = arith.constant 0 : index
    %44 = vector.load %arg3[%c3, %c0_14] : memref<49x512xf32, #tpu.memory_space<vmem>>, vector<1x512xf32>
    %45 = vector.broadcast %44 : vector<1x512xf32> to vector<8x512xf32>
    %46 = arith.mulf %43, %45 : vector<8x512xf32>
    %47 = vector.broadcast %42 : vector<8x1xf32> to vector<8x512xf32>
    %48 = arith.mulf %47, %46 : vector<8x512xf32>
    %49 = arith.addf %41, %48 : vector<8x512xf32>
    %50 = vector.extract_strided_slice %14 {offsets = [0, 4], sizes = [8, 1], strides = [1, 1]} : vector<8x49xf32> to vector<8x1xf32>
    %c47_i32 = arith.constant 47 : i32
    %51 = tpu.dynamic_rotate %1 by %c47_i32 dim 1 : vector<8x512xf32>, i32 -> vector<8x512xf32>
    %c4 = arith.constant 4 : index
    %c0_15 = arith.constant 0 : index
    %52 = vector.load %arg3[%c4, %c0_15] : memref<49x512xf32, #tpu.memory_space<vmem>>, vector<1x512xf32>
    %53 = vector.broadcast %52 : vector<1x512xf32> to vector<8x512xf32>
    %54 = arith.mulf %51, %53 : vector<8x512xf32>
    %55 = vector.broadcast %50 : vector<8x1xf32> to vector<8x512xf32>
    %56 = arith.mulf %55, %54 : vector<8x512xf32>
    %57 = arith.addf %49, %56 : vector<8x512xf32>
    %58 = vector.extract_strided_slice %14 {offsets = [0, 5], sizes = [8, 1], strides = [1, 1]} : vector<8x49xf32> to vector<8x1xf32>
    %c46_i32 = arith.constant 46 : i32
    %59 = tpu.dynamic_rotate %1 by %c46_i32 dim 1 : vector<8x512xf32>, i32 -> vector<8x512xf32>
    %c5 = arith.constant 5 : index
    %c0_16 = arith.constant 0 : index
    %60 = vector.load %arg3[%c5, %c0_16] : memref<49x512xf32, #tpu.memory_space<vmem>>, vector<1x512xf32>
    %61 = vector.broadcast %60 : vector<1x512xf32> to vector<8x512xf32>
    %62 = arith.mulf %59, %61 : vector<8x512xf32>
    %63 = vector.broadcast %58 : vector<8x1xf32> to vector<8x512xf32>
    %64 = arith.mulf %63, %62 : vector<8x512xf32>
    %65 = arith.addf %57, %64 : vector<8x512xf32>
    %66 = vector.extract_strided_slice %14 {offsets = [0, 6], sizes = [8, 1], strides = [1, 1]} : vector<8x49xf32> to vector<8x1xf32>
    %c45_i32 = arith.constant 45 : i32
    %67 = tpu.dynamic_rotate %1 by %c45_i32 dim 1 : vector<8x512xf32>, i32 -> vector<8x512xf32>
    %c6 = arith.constant 6 : index
    %c0_17 = arith.constant 0 : index
    %68 = vector.load %arg3[%c6, %c0_17] : memref<49x512xf32, #tpu.memory_space<vmem>>, vector<1x512xf32>
    %69 = vector.broadcast %68 : vector<1x512xf32> to vector<8x512xf32>
    %70 = arith.mulf %67, %69 : vector<8x512xf32>
    %71 = vector.broadcast %66 : vector<8x1xf32> to vector<8x512xf32>
    %72 = arith.mulf %71, %70 : vector<8x512xf32>
    %73 = arith.addf %65, %72 : vector<8x512xf32>
    %74 = vector.extract_strided_slice %14 {offsets = [0, 7], sizes = [8, 1], strides = [1, 1]} : vector<8x49xf32> to vector<8x1xf32>
    %c35_i32 = arith.constant 35 : i32
    %75 = tpu.dynamic_rotate %1 by %c35_i32 dim 1 : vector<8x512xf32>, i32 -> vector<8x512xf32>
    %c7 = arith.constant 7 : index
    %c0_18 = arith.constant 0 : index
    %76 = vector.load %arg3[%c7, %c0_18] : memref<49x512xf32, #tpu.memory_space<vmem>>, vector<1x512xf32>
    %77 = vector.broadcast %76 : vector<1x512xf32> to vector<8x512xf32>
    %78 = arith.mulf %75, %77 : vector<8x512xf32>
    %79 = vector.broadcast %74 : vector<8x1xf32> to vector<8x512xf32>
    %80 = arith.mulf %79, %78 : vector<8x512xf32>
    %81 = arith.addf %73, %80 : vector<8x512xf32>
    %82 = vector.extract_strided_slice %14 {offsets = [0, 8], sizes = [8, 1], strides = [1, 1]} : vector<8x49xf32> to vector<8x1xf32>
    %c34_i32 = arith.constant 34 : i32
    %83 = tpu.dynamic_rotate %1 by %c34_i32 dim 1 : vector<8x512xf32>, i32 -> vector<8x512xf32>
    %c8 = arith.constant 8 : index
    %c0_19 = arith.constant 0 : index
    %84 = vector.load %arg3[%c8, %c0_19] : memref<49x512xf32, #tpu.memory_space<vmem>>, vector<1x512xf32>
    %85 = vector.broadcast %84 : vector<1x512xf32> to vector<8x512xf32>
    %86 = arith.mulf %83, %85 : vector<8x512xf32>
    %87 = vector.broadcast %82 : vector<8x1xf32> to vector<8x512xf32>
    %88 = arith.mulf %87, %86 : vector<8x512xf32>
    %89 = arith.addf %81, %88 : vector<8x512xf32>
    %90 = vector.extract_strided_slice %14 {offsets = [0, 9], sizes = [8, 1], strides = [1, 1]} : vector<8x49xf32> to vector<8x1xf32>
    %c33_i32 = arith.constant 33 : i32
    %91 = tpu.dynamic_rotate %1 by %c33_i32 dim 1 : vector<8x512xf32>, i32 -> vector<8x512xf32>
    %c9 = arith.constant 9 : index
    %c0_20 = arith.constant 0 : index
    %92 = vector.load %arg3[%c9, %c0_20] : memref<49x512xf32, #tpu.memory_space<vmem>>, vector<1x512xf32>
    %93 = vector.broadcast %92 : vector<1x512xf32> to vector<8x512xf32>
    %94 = arith.mulf %91, %93 : vector<8x512xf32>
    %95 = vector.broadcast %90 : vector<8x1xf32> to vector<8x512xf32>
    %96 = arith.mulf %95, %94 : vector<8x512xf32>
    %97 = arith.addf %89, %96 : vector<8x512xf32>
    %98 = vector.extract_strided_slice %14 {offsets = [0, 10], sizes = [8, 1], strides = [1, 1]} : vector<8x49xf32> to vector<8x1xf32>
    %c32_i32 = arith.constant 32 : i32
    %99 = tpu.dynamic_rotate %1 by %c32_i32 dim 1 : vector<8x512xf32>, i32 -> vector<8x512xf32>
    %c10 = arith.constant 10 : index
    %c0_21 = arith.constant 0 : index
    %100 = vector.load %arg3[%c10, %c0_21] : memref<49x512xf32, #tpu.memory_space<vmem>>, vector<1x512xf32>
    %101 = vector.broadcast %100 : vector<1x512xf32> to vector<8x512xf32>
    %102 = arith.mulf %99, %101 : vector<8x512xf32>
    %103 = vector.broadcast %98 : vector<8x1xf32> to vector<8x512xf32>
    %104 = arith.mulf %103, %102 : vector<8x512xf32>
    %105 = arith.addf %97, %104 : vector<8x512xf32>
    %106 = vector.extract_strided_slice %14 {offsets = [0, 11], sizes = [8, 1], strides = [1, 1]} : vector<8x49xf32> to vector<8x1xf32>
    %c31_i32 = arith.constant 31 : i32
    %107 = tpu.dynamic_rotate %1 by %c31_i32 dim 1 : vector<8x512xf32>, i32 -> vector<8x512xf32>
    %c11 = arith.constant 11 : index
    %c0_22 = arith.constant 0 : index
    %108 = vector.load %arg3[%c11, %c0_22] : memref<49x512xf32, #tpu.memory_space<vmem>>, vector<1x512xf32>
    %109 = vector.broadcast %108 : vector<1x512xf32> to vector<8x512xf32>
    %110 = arith.mulf %107, %109 : vector<8x512xf32>
    %111 = vector.broadcast %106 : vector<8x1xf32> to vector<8x512xf32>
    %112 = arith.mulf %111, %110 : vector<8x512xf32>
    %113 = arith.addf %105, %112 : vector<8x512xf32>
    %114 = vector.extract_strided_slice %14 {offsets = [0, 12], sizes = [8, 1], strides = [1, 1]} : vector<8x49xf32> to vector<8x1xf32>
    %c30_i32 = arith.constant 30 : i32
    %115 = tpu.dynamic_rotate %1 by %c30_i32 dim 1 : vector<8x512xf32>, i32 -> vector<8x512xf32>
    %c12 = arith.constant 12 : index
    %c0_23 = arith.constant 0 : index
    %116 = vector.load %arg3[%c12, %c0_23] : memref<49x512xf32, #tpu.memory_space<vmem>>, vector<1x512xf32>
    %117 = vector.broadcast %116 : vector<1x512xf32> to vector<8x512xf32>
    %118 = arith.mulf %115, %117 : vector<8x512xf32>
    %119 = vector.broadcast %114 : vector<8x1xf32> to vector<8x512xf32>
    %120 = arith.mulf %119, %118 : vector<8x512xf32>
    %121 = arith.addf %113, %120 : vector<8x512xf32>
    %122 = vector.extract_strided_slice %14 {offsets = [0, 13], sizes = [8, 1], strides = [1, 1]} : vector<8x49xf32> to vector<8x1xf32>
    %c29_i32 = arith.constant 29 : i32
    %123 = tpu.dynamic_rotate %1 by %c29_i32 dim 1 : vector<8x512xf32>, i32 -> vector<8x512xf32>
    %c13 = arith.constant 13 : index
    %c0_24 = arith.constant 0 : index
    %124 = vector.load %arg3[%c13, %c0_24] : memref<49x512xf32, #tpu.memory_space<vmem>>, vector<1x512xf32>
    %125 = vector.broadcast %124 : vector<1x512xf32> to vector<8x512xf32>
    %126 = arith.mulf %123, %125 : vector<8x512xf32>
    %127 = vector.broadcast %122 : vector<8x1xf32> to vector<8x512xf32>
    %128 = arith.mulf %127, %126 : vector<8x512xf32>
    %129 = arith.addf %121, %128 : vector<8x512xf32>
    %130 = vector.extract_strided_slice %14 {offsets = [0, 14], sizes = [8, 1], strides = [1, 1]} : vector<8x49xf32> to vector<8x1xf32>
    %c19_i32 = arith.constant 19 : i32
    %131 = tpu.dynamic_rotate %1 by %c19_i32 dim 1 : vector<8x512xf32>, i32 -> vector<8x512xf32>
    %c14 = arith.constant 14 : index
    %c0_25 = arith.constant 0 : index
    %132 = vector.load %arg3[%c14, %c0_25] : memref<49x512xf32, #tpu.memory_space<vmem>>, vector<1x512xf32>
    %133 = vector.broadcast %132 : vector<1x512xf32> to vector<8x512xf32>
    %134 = arith.mulf %131, %133 : vector<8x512xf32>
    %135 = vector.broadcast %130 : vector<8x1xf32> to vector<8x512xf32>
    %136 = arith.mulf %135, %134 : vector<8x512xf32>
    %137 = arith.addf %129, %136 : vector<8x512xf32>
    %138 = vector.extract_strided_slice %14 {offsets = [0, 15], sizes = [8, 1], strides = [1, 1]} : vector<8x49xf32> to vector<8x1xf32>
    %c18_i32 = arith.constant 18 : i32
    %139 = tpu.dynamic_rotate %1 by %c18_i32 dim 1 : vector<8x512xf32>, i32 -> vector<8x512xf32>
    %c15 = arith.constant 15 : index
    %c0_26 = arith.constant 0 : index
    %140 = vector.load %arg3[%c15, %c0_26] : memref<49x512xf32, #tpu.memory_space<vmem>>, vector<1x512xf32>
    %141 = vector.broadcast %140 : vector<1x512xf32> to vector<8x512xf32>
    %142 = arith.mulf %139, %141 : vector<8x512xf32>
    %143 = vector.broadcast %138 : vector<8x1xf32> to vector<8x512xf32>
    %144 = arith.mulf %143, %142 : vector<8x512xf32>
    %145 = arith.addf %137, %144 : vector<8x512xf32>
    %146 = vector.extract_strided_slice %14 {offsets = [0, 16], sizes = [8, 1], strides = [1, 1]} : vector<8x49xf32> to vector<8x1xf32>
    %c17_i32 = arith.constant 17 : i32
    %147 = tpu.dynamic_rotate %1 by %c17_i32 dim 1 : vector<8x512xf32>, i32 -> vector<8x512xf32>
    %c16 = arith.constant 16 : index
    %c0_27 = arith.constant 0 : index
    %148 = vector.load %arg3[%c16, %c0_27] : memref<49x512xf32, #tpu.memory_space<vmem>>, vector<1x512xf32>
    %149 = vector.broadcast %148 : vector<1x512xf32> to vector<8x512xf32>
    %150 = arith.mulf %147, %149 : vector<8x512xf32>
    %151 = vector.broadcast %146 : vector<8x1xf32> to vector<8x512xf32>
    %152 = arith.mulf %151, %150 : vector<8x512xf32>
    %153 = arith.addf %145, %152 : vector<8x512xf32>
    %154 = vector.extract_strided_slice %14 {offsets = [0, 17], sizes = [8, 1], strides = [1, 1]} : vector<8x49xf32> to vector<8x1xf32>
    %c16_i32 = arith.constant 16 : i32
    %155 = tpu.dynamic_rotate %1 by %c16_i32 dim 1 : vector<8x512xf32>, i32 -> vector<8x512xf32>
    %c17 = arith.constant 17 : index
    %c0_28 = arith.constant 0 : index
    %156 = vector.load %arg3[%c17, %c0_28] : memref<49x512xf32, #tpu.memory_space<vmem>>, vector<1x512xf32>
    %157 = vector.broadcast %156 : vector<1x512xf32> to vector<8x512xf32>
    %158 = arith.mulf %155, %157 : vector<8x512xf32>
    %159 = vector.broadcast %154 : vector<8x1xf32> to vector<8x512xf32>
    %160 = arith.mulf %159, %158 : vector<8x512xf32>
    %161 = arith.addf %153, %160 : vector<8x512xf32>
    %162 = vector.extract_strided_slice %14 {offsets = [0, 18], sizes = [8, 1], strides = [1, 1]} : vector<8x49xf32> to vector<8x1xf32>
    %c15_i32 = arith.constant 15 : i32
    %163 = tpu.dynamic_rotate %1 by %c15_i32 dim 1 : vector<8x512xf32>, i32 -> vector<8x512xf32>
    %c18 = arith.constant 18 : index
    %c0_29 = arith.constant 0 : index
    %164 = vector.load %arg3[%c18, %c0_29] : memref<49x512xf32, #tpu.memory_space<vmem>>, vector<1x512xf32>
    %165 = vector.broadcast %164 : vector<1x512xf32> to vector<8x512xf32>
    %166 = arith.mulf %163, %165 : vector<8x512xf32>
    %167 = vector.broadcast %162 : vector<8x1xf32> to vector<8x512xf32>
    %168 = arith.mulf %167, %166 : vector<8x512xf32>
    %169 = arith.addf %161, %168 : vector<8x512xf32>
    %170 = vector.extract_strided_slice %14 {offsets = [0, 19], sizes = [8, 1], strides = [1, 1]} : vector<8x49xf32> to vector<8x1xf32>
    %c14_i32 = arith.constant 14 : i32
    %171 = tpu.dynamic_rotate %1 by %c14_i32 dim 1 : vector<8x512xf32>, i32 -> vector<8x512xf32>
    %c19 = arith.constant 19 : index
    %c0_30 = arith.constant 0 : index
    %172 = vector.load %arg3[%c19, %c0_30] : memref<49x512xf32, #tpu.memory_space<vmem>>, vector<1x512xf32>
    %173 = vector.broadcast %172 : vector<1x512xf32> to vector<8x512xf32>
    %174 = arith.mulf %171, %173 : vector<8x512xf32>
    %175 = vector.broadcast %170 : vector<8x1xf32> to vector<8x512xf32>
    %176 = arith.mulf %175, %174 : vector<8x512xf32>
    %177 = arith.addf %169, %176 : vector<8x512xf32>
    %178 = vector.extract_strided_slice %14 {offsets = [0, 20], sizes = [8, 1], strides = [1, 1]} : vector<8x49xf32> to vector<8x1xf32>
    %c13_i32 = arith.constant 13 : i32
    %179 = tpu.dynamic_rotate %1 by %c13_i32 dim 1 : vector<8x512xf32>, i32 -> vector<8x512xf32>
    %c20 = arith.constant 20 : index
    %c0_31 = arith.constant 0 : index
    %180 = vector.load %arg3[%c20, %c0_31] : memref<49x512xf32, #tpu.memory_space<vmem>>, vector<1x512xf32>
    %181 = vector.broadcast %180 : vector<1x512xf32> to vector<8x512xf32>
    %182 = arith.mulf %179, %181 : vector<8x512xf32>
    %183 = vector.broadcast %178 : vector<8x1xf32> to vector<8x512xf32>
    %184 = arith.mulf %183, %182 : vector<8x512xf32>
    %185 = arith.addf %177, %184 : vector<8x512xf32>
    %186 = vector.extract_strided_slice %14 {offsets = [0, 21], sizes = [8, 1], strides = [1, 1]} : vector<8x49xf32> to vector<8x1xf32>
    %c3_i32 = arith.constant 3 : i32
    %187 = tpu.dynamic_rotate %1 by %c3_i32 dim 1 : vector<8x512xf32>, i32 -> vector<8x512xf32>
    %c21 = arith.constant 21 : index
    %c0_32 = arith.constant 0 : index
    %188 = vector.load %arg3[%c21, %c0_32] : memref<49x512xf32, #tpu.memory_space<vmem>>, vector<1x512xf32>
    %189 = vector.broadcast %188 : vector<1x512xf32> to vector<8x512xf32>
    %190 = arith.mulf %187, %189 : vector<8x512xf32>
    %191 = vector.broadcast %186 : vector<8x1xf32> to vector<8x512xf32>
    %192 = arith.mulf %191, %190 : vector<8x512xf32>
    %193 = arith.addf %185, %192 : vector<8x512xf32>
    %194 = vector.extract_strided_slice %14 {offsets = [0, 22], sizes = [8, 1], strides = [1, 1]} : vector<8x49xf32> to vector<8x1xf32>
    %c2_i32 = arith.constant 2 : i32
    %195 = tpu.dynamic_rotate %1 by %c2_i32 dim 1 : vector<8x512xf32>, i32 -> vector<8x512xf32>
    %c22 = arith.constant 22 : index
    %c0_33 = arith.constant 0 : index
    %196 = vector.load %arg3[%c22, %c0_33] : memref<49x512xf32, #tpu.memory_space<vmem>>, vector<1x512xf32>
    %197 = vector.broadcast %196 : vector<1x512xf32> to vector<8x512xf32>
    %198 = arith.mulf %195, %197 : vector<8x512xf32>
    %199 = vector.broadcast %194 : vector<8x1xf32> to vector<8x512xf32>
    %200 = arith.mulf %199, %198 : vector<8x512xf32>
    %201 = arith.addf %193, %200 : vector<8x512xf32>
    %202 = vector.extract_strided_slice %14 {offsets = [0, 23], sizes = [8, 1], strides = [1, 1]} : vector<8x49xf32> to vector<8x1xf32>
    %c1_i32 = arith.constant 1 : i32
    %203 = tpu.dynamic_rotate %1 by %c1_i32 dim 1 : vector<8x512xf32>, i32 -> vector<8x512xf32>
    %c23 = arith.constant 23 : index
    %c0_34 = arith.constant 0 : index
    %204 = vector.load %arg3[%c23, %c0_34] : memref<49x512xf32, #tpu.memory_space<vmem>>, vector<1x512xf32>
    %205 = vector.broadcast %204 : vector<1x512xf32> to vector<8x512xf32>
    %206 = arith.mulf %203, %205 : vector<8x512xf32>
    %207 = vector.broadcast %202 : vector<8x1xf32> to vector<8x512xf32>
    %208 = arith.mulf %207, %206 : vector<8x512xf32>
    %209 = arith.addf %201, %208 : vector<8x512xf32>
    %210 = vector.extract_strided_slice %14 {offsets = [0, 25], sizes = [8, 1], strides = [1, 1]} : vector<8x49xf32> to vector<8x1xf32>
    %c511_i32 = arith.constant 511 : i32
    %211 = tpu.dynamic_rotate %1 by %c511_i32 dim 1 : vector<8x512xf32>, i32 -> vector<8x512xf32>
    %c25 = arith.constant 25 : index
    %c0_35 = arith.constant 0 : index
    %212 = vector.load %arg3[%c25, %c0_35] : memref<49x512xf32, #tpu.memory_space<vmem>>, vector<1x512xf32>
    %213 = vector.broadcast %212 : vector<1x512xf32> to vector<8x512xf32>
    %214 = arith.mulf %211, %213 : vector<8x512xf32>
    %215 = vector.broadcast %210 : vector<8x1xf32> to vector<8x512xf32>
    %216 = arith.mulf %215, %214 : vector<8x512xf32>
    %217 = arith.addf %209, %216 : vector<8x512xf32>
    %218 = vector.extract_strided_slice %14 {offsets = [0, 26], sizes = [8, 1], strides = [1, 1]} : vector<8x49xf32> to vector<8x1xf32>
    %c510_i32 = arith.constant 510 : i32
    %219 = tpu.dynamic_rotate %1 by %c510_i32 dim 1 : vector<8x512xf32>, i32 -> vector<8x512xf32>
    %c26 = arith.constant 26 : index
    %c0_36 = arith.constant 0 : index
    %220 = vector.load %arg3[%c26, %c0_36] : memref<49x512xf32, #tpu.memory_space<vmem>>, vector<1x512xf32>
    %221 = vector.broadcast %220 : vector<1x512xf32> to vector<8x512xf32>
    %222 = arith.mulf %219, %221 : vector<8x512xf32>
    %223 = vector.broadcast %218 : vector<8x1xf32> to vector<8x512xf32>
    %224 = arith.mulf %223, %222 : vector<8x512xf32>
    %225 = arith.addf %217, %224 : vector<8x512xf32>
    %226 = vector.extract_strided_slice %14 {offsets = [0, 27], sizes = [8, 1], strides = [1, 1]} : vector<8x49xf32> to vector<8x1xf32>
    %c509_i32 = arith.constant 509 : i32
    %227 = tpu.dynamic_rotate %1 by %c509_i32 dim 1 : vector<8x512xf32>, i32 -> vector<8x512xf32>
    %c27 = arith.constant 27 : index
    %c0_37 = arith.constant 0 : index
    %228 = vector.load %arg3[%c27, %c0_37] : memref<49x512xf32, #tpu.memory_space<vmem>>, vector<1x512xf32>
    %229 = vector.broadcast %228 : vector<1x512xf32> to vector<8x512xf32>
    %230 = arith.mulf %227, %229 : vector<8x512xf32>
    %231 = vector.broadcast %226 : vector<8x1xf32> to vector<8x512xf32>
    %232 = arith.mulf %231, %230 : vector<8x512xf32>
    %233 = arith.addf %225, %232 : vector<8x512xf32>
    %234 = vector.extract_strided_slice %14 {offsets = [0, 28], sizes = [8, 1], strides = [1, 1]} : vector<8x49xf32> to vector<8x1xf32>
    %c499_i32 = arith.constant 499 : i32
    %235 = tpu.dynamic_rotate %1 by %c499_i32 dim 1 : vector<8x512xf32>, i32 -> vector<8x512xf32>
    %c28 = arith.constant 28 : index
    %c0_38 = arith.constant 0 : index
    %236 = vector.load %arg3[%c28, %c0_38] : memref<49x512xf32, #tpu.memory_space<vmem>>, vector<1x512xf32>
    %237 = vector.broadcast %236 : vector<1x512xf32> to vector<8x512xf32>
    %238 = arith.mulf %235, %237 : vector<8x512xf32>
    %239 = vector.broadcast %234 : vector<8x1xf32> to vector<8x512xf32>
    %240 = arith.mulf %239, %238 : vector<8x512xf32>
    %241 = arith.addf %233, %240 : vector<8x512xf32>
    %242 = vector.extract_strided_slice %14 {offsets = [0, 29], sizes = [8, 1], strides = [1, 1]} : vector<8x49xf32> to vector<8x1xf32>
    %c498_i32 = arith.constant 498 : i32
    %243 = tpu.dynamic_rotate %1 by %c498_i32 dim 1 : vector<8x512xf32>, i32 -> vector<8x512xf32>
    %c29 = arith.constant 29 : index
    %c0_39 = arith.constant 0 : index
    %244 = vector.load %arg3[%c29, %c0_39] : memref<49x512xf32, #tpu.memory_space<vmem>>, vector<1x512xf32>
    %245 = vector.broadcast %244 : vector<1x512xf32> to vector<8x512xf32>
    %246 = arith.mulf %243, %245 : vector<8x512xf32>
    %247 = vector.broadcast %242 : vector<8x1xf32> to vector<8x512xf32>
    %248 = arith.mulf %247, %246 : vector<8x512xf32>
    %249 = arith.addf %241, %248 : vector<8x512xf32>
    %250 = vector.extract_strided_slice %14 {offsets = [0, 30], sizes = [8, 1], strides = [1, 1]} : vector<8x49xf32> to vector<8x1xf32>
    %c497_i32 = arith.constant 497 : i32
    %251 = tpu.dynamic_rotate %1 by %c497_i32 dim 1 : vector<8x512xf32>, i32 -> vector<8x512xf32>
    %c30 = arith.constant 30 : index
    %c0_40 = arith.constant 0 : index
    %252 = vector.load %arg3[%c30, %c0_40] : memref<49x512xf32, #tpu.memory_space<vmem>>, vector<1x512xf32>
    %253 = vector.broadcast %252 : vector<1x512xf32> to vector<8x512xf32>
    %254 = arith.mulf %251, %253 : vector<8x512xf32>
    %255 = vector.broadcast %250 : vector<8x1xf32> to vector<8x512xf32>
    %256 = arith.mulf %255, %254 : vector<8x512xf32>
    %257 = arith.addf %249, %256 : vector<8x512xf32>
    %258 = vector.extract_strided_slice %14 {offsets = [0, 31], sizes = [8, 1], strides = [1, 1]} : vector<8x49xf32> to vector<8x1xf32>
    %c496_i32 = arith.constant 496 : i32
    %259 = tpu.dynamic_rotate %1 by %c496_i32 dim 1 : vector<8x512xf32>, i32 -> vector<8x512xf32>
    %c31 = arith.constant 31 : index
    %c0_41 = arith.constant 0 : index
    %260 = vector.load %arg3[%c31, %c0_41] : memref<49x512xf32, #tpu.memory_space<vmem>>, vector<1x512xf32>
    %261 = vector.broadcast %260 : vector<1x512xf32> to vector<8x512xf32>
    %262 = arith.mulf %259, %261 : vector<8x512xf32>
    %263 = vector.broadcast %258 : vector<8x1xf32> to vector<8x512xf32>
    %264 = arith.mulf %263, %262 : vector<8x512xf32>
    %265 = arith.addf %257, %264 : vector<8x512xf32>
    %266 = vector.extract_strided_slice %14 {offsets = [0, 32], sizes = [8, 1], strides = [1, 1]} : vector<8x49xf32> to vector<8x1xf32>
    %c495_i32 = arith.constant 495 : i32
    %267 = tpu.dynamic_rotate %1 by %c495_i32 dim 1 : vector<8x512xf32>, i32 -> vector<8x512xf32>
    %c32 = arith.constant 32 : index
    %c0_42 = arith.constant 0 : index
    %268 = vector.load %arg3[%c32, %c0_42] : memref<49x512xf32, #tpu.memory_space<vmem>>, vector<1x512xf32>
    %269 = vector.broadcast %268 : vector<1x512xf32> to vector<8x512xf32>
    %270 = arith.mulf %267, %269 : vector<8x512xf32>
    %271 = vector.broadcast %266 : vector<8x1xf32> to vector<8x512xf32>
    %272 = arith.mulf %271, %270 : vector<8x512xf32>
    %273 = arith.addf %265, %272 : vector<8x512xf32>
    %274 = vector.extract_strided_slice %14 {offsets = [0, 33], sizes = [8, 1], strides = [1, 1]} : vector<8x49xf32> to vector<8x1xf32>
    %c494_i32 = arith.constant 494 : i32
    %275 = tpu.dynamic_rotate %1 by %c494_i32 dim 1 : vector<8x512xf32>, i32 -> vector<8x512xf32>
    %c33 = arith.constant 33 : index
    %c0_43 = arith.constant 0 : index
    %276 = vector.load %arg3[%c33, %c0_43] : memref<49x512xf32, #tpu.memory_space<vmem>>, vector<1x512xf32>
    %277 = vector.broadcast %276 : vector<1x512xf32> to vector<8x512xf32>
    %278 = arith.mulf %275, %277 : vector<8x512xf32>
    %279 = vector.broadcast %274 : vector<8x1xf32> to vector<8x512xf32>
    %280 = arith.mulf %279, %278 : vector<8x512xf32>
    %281 = arith.addf %273, %280 : vector<8x512xf32>
    %282 = vector.extract_strided_slice %14 {offsets = [0, 34], sizes = [8, 1], strides = [1, 1]} : vector<8x49xf32> to vector<8x1xf32>
    %c493_i32 = arith.constant 493 : i32
    %283 = tpu.dynamic_rotate %1 by %c493_i32 dim 1 : vector<8x512xf32>, i32 -> vector<8x512xf32>
    %c34 = arith.constant 34 : index
    %c0_44 = arith.constant 0 : index
    %284 = vector.load %arg3[%c34, %c0_44] : memref<49x512xf32, #tpu.memory_space<vmem>>, vector<1x512xf32>
    %285 = vector.broadcast %284 : vector<1x512xf32> to vector<8x512xf32>
    %286 = arith.mulf %283, %285 : vector<8x512xf32>
    %287 = vector.broadcast %282 : vector<8x1xf32> to vector<8x512xf32>
    %288 = arith.mulf %287, %286 : vector<8x512xf32>
    %289 = arith.addf %281, %288 : vector<8x512xf32>
    %290 = vector.extract_strided_slice %14 {offsets = [0, 35], sizes = [8, 1], strides = [1, 1]} : vector<8x49xf32> to vector<8x1xf32>
    %c483_i32 = arith.constant 483 : i32
    %291 = tpu.dynamic_rotate %1 by %c483_i32 dim 1 : vector<8x512xf32>, i32 -> vector<8x512xf32>
    %c35 = arith.constant 35 : index
    %c0_45 = arith.constant 0 : index
    %292 = vector.load %arg3[%c35, %c0_45] : memref<49x512xf32, #tpu.memory_space<vmem>>, vector<1x512xf32>
    %293 = vector.broadcast %292 : vector<1x512xf32> to vector<8x512xf32>
    %294 = arith.mulf %291, %293 : vector<8x512xf32>
    %295 = vector.broadcast %290 : vector<8x1xf32> to vector<8x512xf32>
    %296 = arith.mulf %295, %294 : vector<8x512xf32>
    %297 = arith.addf %289, %296 : vector<8x512xf32>
    %298 = vector.extract_strided_slice %14 {offsets = [0, 36], sizes = [8, 1], strides = [1, 1]} : vector<8x49xf32> to vector<8x1xf32>
    %c482_i32 = arith.constant 482 : i32
    %299 = tpu.dynamic_rotate %1 by %c482_i32 dim 1 : vector<8x512xf32>, i32 -> vector<8x512xf32>
    %c36 = arith.constant 36 : index
    %c0_46 = arith.constant 0 : index
    %300 = vector.load %arg3[%c36, %c0_46] : memref<49x512xf32, #tpu.memory_space<vmem>>, vector<1x512xf32>
    %301 = vector.broadcast %300 : vector<1x512xf32> to vector<8x512xf32>
    %302 = arith.mulf %299, %301 : vector<8x512xf32>
    %303 = vector.broadcast %298 : vector<8x1xf32> to vector<8x512xf32>
    %304 = arith.mulf %303, %302 : vector<8x512xf32>
    %305 = arith.addf %297, %304 : vector<8x512xf32>
    %306 = vector.extract_strided_slice %14 {offsets = [0, 37], sizes = [8, 1], strides = [1, 1]} : vector<8x49xf32> to vector<8x1xf32>
    %c481_i32 = arith.constant 481 : i32
    %307 = tpu.dynamic_rotate %1 by %c481_i32 dim 1 : vector<8x512xf32>, i32 -> vector<8x512xf32>
    %c37 = arith.constant 37 : index
    %c0_47 = arith.constant 0 : index
    %308 = vector.load %arg3[%c37, %c0_47] : memref<49x512xf32, #tpu.memory_space<vmem>>, vector<1x512xf32>
    %309 = vector.broadcast %308 : vector<1x512xf32> to vector<8x512xf32>
    %310 = arith.mulf %307, %309 : vector<8x512xf32>
    %311 = vector.broadcast %306 : vector<8x1xf32> to vector<8x512xf32>
    %312 = arith.mulf %311, %310 : vector<8x512xf32>
    %313 = arith.addf %305, %312 : vector<8x512xf32>
    %314 = vector.extract_strided_slice %14 {offsets = [0, 38], sizes = [8, 1], strides = [1, 1]} : vector<8x49xf32> to vector<8x1xf32>
    %c480_i32 = arith.constant 480 : i32
    %315 = tpu.dynamic_rotate %1 by %c480_i32 dim 1 : vector<8x512xf32>, i32 -> vector<8x512xf32>
    %c38 = arith.constant 38 : index
    %c0_48 = arith.constant 0 : index
    %316 = vector.load %arg3[%c38, %c0_48] : memref<49x512xf32, #tpu.memory_space<vmem>>, vector<1x512xf32>
    %317 = vector.broadcast %316 : vector<1x512xf32> to vector<8x512xf32>
    %318 = arith.mulf %315, %317 : vector<8x512xf32>
    %319 = vector.broadcast %314 : vector<8x1xf32> to vector<8x512xf32>
    %320 = arith.mulf %319, %318 : vector<8x512xf32>
    %321 = arith.addf %313, %320 : vector<8x512xf32>
    %322 = vector.extract_strided_slice %14 {offsets = [0, 39], sizes = [8, 1], strides = [1, 1]} : vector<8x49xf32> to vector<8x1xf32>
    %c479_i32 = arith.constant 479 : i32
    %323 = tpu.dynamic_rotate %1 by %c479_i32 dim 1 : vector<8x512xf32>, i32 -> vector<8x512xf32>
    %c39 = arith.constant 39 : index
    %c0_49 = arith.constant 0 : index
    %324 = vector.load %arg3[%c39, %c0_49] : memref<49x512xf32, #tpu.memory_space<vmem>>, vector<1x512xf32>
    %325 = vector.broadcast %324 : vector<1x512xf32> to vector<8x512xf32>
    %326 = arith.mulf %323, %325 : vector<8x512xf32>
    %327 = vector.broadcast %322 : vector<8x1xf32> to vector<8x512xf32>
    %328 = arith.mulf %327, %326 : vector<8x512xf32>
    %329 = arith.addf %321, %328 : vector<8x512xf32>
    %330 = vector.extract_strided_slice %14 {offsets = [0, 40], sizes = [8, 1], strides = [1, 1]} : vector<8x49xf32> to vector<8x1xf32>
    %c478_i32 = arith.constant 478 : i32
    %331 = tpu.dynamic_rotate %1 by %c478_i32 dim 1 : vector<8x512xf32>, i32 -> vector<8x512xf32>
    %c40 = arith.constant 40 : index
    %c0_50 = arith.constant 0 : index
    %332 = vector.load %arg3[%c40, %c0_50] : memref<49x512xf32, #tpu.memory_space<vmem>>, vector<1x512xf32>
    %333 = vector.broadcast %332 : vector<1x512xf32> to vector<8x512xf32>
    %334 = arith.mulf %331, %333 : vector<8x512xf32>
    %335 = vector.broadcast %330 : vector<8x1xf32> to vector<8x512xf32>
    %336 = arith.mulf %335, %334 : vector<8x512xf32>
    %337 = arith.addf %329, %336 : vector<8x512xf32>
    %338 = vector.extract_strided_slice %14 {offsets = [0, 41], sizes = [8, 1], strides = [1, 1]} : vector<8x49xf32> to vector<8x1xf32>
    %c477_i32 = arith.constant 477 : i32
    %339 = tpu.dynamic_rotate %1 by %c477_i32 dim 1 : vector<8x512xf32>, i32 -> vector<8x512xf32>
    %c41 = arith.constant 41 : index
    %c0_51 = arith.constant 0 : index
    %340 = vector.load %arg3[%c41, %c0_51] : memref<49x512xf32, #tpu.memory_space<vmem>>, vector<1x512xf32>
    %341 = vector.broadcast %340 : vector<1x512xf32> to vector<8x512xf32>
    %342 = arith.mulf %339, %341 : vector<8x512xf32>
    %343 = vector.broadcast %338 : vector<8x1xf32> to vector<8x512xf32>
    %344 = arith.mulf %343, %342 : vector<8x512xf32>
    %345 = arith.addf %337, %344 : vector<8x512xf32>
    %346 = vector.extract_strided_slice %14 {offsets = [0, 42], sizes = [8, 1], strides = [1, 1]} : vector<8x49xf32> to vector<8x1xf32>
    %c467_i32 = arith.constant 467 : i32
    %347 = tpu.dynamic_rotate %1 by %c467_i32 dim 1 : vector<8x512xf32>, i32 -> vector<8x512xf32>
    %c42 = arith.constant 42 : index
    %c0_52 = arith.constant 0 : index
    %348 = vector.load %arg3[%c42, %c0_52] : memref<49x512xf32, #tpu.memory_space<vmem>>, vector<1x512xf32>
    %349 = vector.broadcast %348 : vector<1x512xf32> to vector<8x512xf32>
    %350 = arith.mulf %347, %349 : vector<8x512xf32>
    %351 = vector.broadcast %346 : vector<8x1xf32> to vector<8x512xf32>
    %352 = arith.mulf %351, %350 : vector<8x512xf32>
    %353 = arith.addf %345, %352 : vector<8x512xf32>
    %354 = vector.extract_strided_slice %14 {offsets = [0, 43], sizes = [8, 1], strides = [1, 1]} : vector<8x49xf32> to vector<8x1xf32>
    %c466_i32 = arith.constant 466 : i32
    %355 = tpu.dynamic_rotate %1 by %c466_i32 dim 1 : vector<8x512xf32>, i32 -> vector<8x512xf32>
    %c43 = arith.constant 43 : index
    %c0_53 = arith.constant 0 : index
    %356 = vector.load %arg3[%c43, %c0_53] : memref<49x512xf32, #tpu.memory_space<vmem>>, vector<1x512xf32>
    %357 = vector.broadcast %356 : vector<1x512xf32> to vector<8x512xf32>
    %358 = arith.mulf %355, %357 : vector<8x512xf32>
    %359 = vector.broadcast %354 : vector<8x1xf32> to vector<8x512xf32>
    %360 = arith.mulf %359, %358 : vector<8x512xf32>
    %361 = arith.addf %353, %360 : vector<8x512xf32>
    %362 = vector.extract_strided_slice %14 {offsets = [0, 44], sizes = [8, 1], strides = [1, 1]} : vector<8x49xf32> to vector<8x1xf32>
    %c465_i32 = arith.constant 465 : i32
    %363 = tpu.dynamic_rotate %1 by %c465_i32 dim 1 : vector<8x512xf32>, i32 -> vector<8x512xf32>
    %c44 = arith.constant 44 : index
    %c0_54 = arith.constant 0 : index
    %364 = vector.load %arg3[%c44, %c0_54] : memref<49x512xf32, #tpu.memory_space<vmem>>, vector<1x512xf32>
    %365 = vector.broadcast %364 : vector<1x512xf32> to vector<8x512xf32>
    %366 = arith.mulf %363, %365 : vector<8x512xf32>
    %367 = vector.broadcast %362 : vector<8x1xf32> to vector<8x512xf32>
    %368 = arith.mulf %367, %366 : vector<8x512xf32>
    %369 = arith.addf %361, %368 : vector<8x512xf32>
    %370 = vector.extract_strided_slice %14 {offsets = [0, 45], sizes = [8, 1], strides = [1, 1]} : vector<8x49xf32> to vector<8x1xf32>
    %c464_i32 = arith.constant 464 : i32
    %371 = tpu.dynamic_rotate %1 by %c464_i32 dim 1 : vector<8x512xf32>, i32 -> vector<8x512xf32>
    %c45 = arith.constant 45 : index
    %c0_55 = arith.constant 0 : index
    %372 = vector.load %arg3[%c45, %c0_55] : memref<49x512xf32, #tpu.memory_space<vmem>>, vector<1x512xf32>
    %373 = vector.broadcast %372 : vector<1x512xf32> to vector<8x512xf32>
    %374 = arith.mulf %371, %373 : vector<8x512xf32>
    %375 = vector.broadcast %370 : vector<8x1xf32> to vector<8x512xf32>
    %376 = arith.mulf %375, %374 : vector<8x512xf32>
    %377 = arith.addf %369, %376 : vector<8x512xf32>
    %378 = vector.extract_strided_slice %14 {offsets = [0, 46], sizes = [8, 1], strides = [1, 1]} : vector<8x49xf32> to vector<8x1xf32>
    %c463_i32 = arith.constant 463 : i32
    %379 = tpu.dynamic_rotate %1 by %c463_i32 dim 1 : vector<8x512xf32>, i32 -> vector<8x512xf32>
    %c46 = arith.constant 46 : index
    %c0_56 = arith.constant 0 : index
    %380 = vector.load %arg3[%c46, %c0_56] : memref<49x512xf32, #tpu.memory_space<vmem>>, vector<1x512xf32>
    %381 = vector.broadcast %380 : vector<1x512xf32> to vector<8x512xf32>
    %382 = arith.mulf %379, %381 : vector<8x512xf32>
    %383 = vector.broadcast %378 : vector<8x1xf32> to vector<8x512xf32>
    %384 = arith.mulf %383, %382 : vector<8x512xf32>
    %385 = arith.addf %377, %384 : vector<8x512xf32>
    %386 = vector.extract_strided_slice %14 {offsets = [0, 47], sizes = [8, 1], strides = [1, 1]} : vector<8x49xf32> to vector<8x1xf32>
    %c462_i32 = arith.constant 462 : i32
    %387 = tpu.dynamic_rotate %1 by %c462_i32 dim 1 : vector<8x512xf32>, i32 -> vector<8x512xf32>
    %c47 = arith.constant 47 : index
    %c0_57 = arith.constant 0 : index
    %388 = vector.load %arg3[%c47, %c0_57] : memref<49x512xf32, #tpu.memory_space<vmem>>, vector<1x512xf32>
    %389 = vector.broadcast %388 : vector<1x512xf32> to vector<8x512xf32>
    %390 = arith.mulf %387, %389 : vector<8x512xf32>
    %391 = vector.broadcast %386 : vector<8x1xf32> to vector<8x512xf32>
    %392 = arith.mulf %391, %390 : vector<8x512xf32>
    %393 = arith.addf %385, %392 : vector<8x512xf32>
    %394 = vector.extract_strided_slice %14 {offsets = [0, 48], sizes = [8, 1], strides = [1, 1]} : vector<8x49xf32> to vector<8x1xf32>
    %c461_i32 = arith.constant 461 : i32
    %395 = tpu.dynamic_rotate %1 by %c461_i32 dim 1 : vector<8x512xf32>, i32 -> vector<8x512xf32>
    %c48 = arith.constant 48 : index
    %c0_58 = arith.constant 0 : index
    %396 = vector.load %arg3[%c48, %c0_58] : memref<49x512xf32, #tpu.memory_space<vmem>>, vector<1x512xf32>
    %397 = vector.broadcast %396 : vector<1x512xf32> to vector<8x512xf32>
    %398 = arith.mulf %395, %397 : vector<8x512xf32>
    %399 = vector.broadcast %394 : vector<8x1xf32> to vector<8x512xf32>
    %400 = arith.mulf %399, %398 : vector<8x512xf32>
    %401 = arith.addf %393, %400 : vector<8x512xf32>
    %402 = vector.broadcast %5 : vector<8x1xf32> to vector<8x512xf32>
    %403 = arith.addf %401, %402 : vector<8x512xf32>
    %c0_59 = arith.constant 0 : index
    %c0_60 = arith.constant 0 : index
    %c0_61 = arith.constant 0 : index
    %404 = vector.load %arg2[%c0_59, %c0_60, %c0_61] : memref<1x8x2xf32, #tpu.memory_space<vmem>>, vector<1x8x2xf32>
    %405 = vector.shape_cast %404 : vector<1x8x2xf32> to vector<8x2xf32>
    %cst = arith.constant 5.000000e-01 : f32
    %406 = vector.broadcast %cst : f32 to vector<8x2xf32>
    %407 = arith.mulf %406, %405 : vector<8x2xf32>
    %cst_62 = arith.constant 0.707106769 : f32
    %408 = vector.broadcast %cst_62 : f32 to vector<8x2xf32>
    %409 = arith.mulf %405, %408 : vector<8x2xf32>
    %410 = math.erf %409 : vector<8x2xf32>
    %cst_63 = arith.constant 1.000000e+00 : f32
    %411 = vector.broadcast %cst_63 : f32 to vector<8x2xf32>
    %412 = arith.addf %411, %410 : vector<8x2xf32>
    %413 = arith.mulf %407, %412 : vector<8x2xf32>
    %c0_64 = arith.constant 0 : index
    %c0_65 = arith.constant 0 : index
    %414 = vector.load %arg7[%c0_64, %c0_65] : memref<8x8xf32, #tpu.memory_space<vmem>>, vector<8x8xf32>
    %cst_66 = arith.constant dense<0.000000e+00> : vector<8x2xf32>
    %415 = tpu.matmul %414, %413, %cst_66 {dimension_numbers = #tpu.dot_dimension_numbers<[1], [0], [0], [1], [0, 0, 1, 1], [], []>} : vector<8x8xf32>, vector<8x2xf32>, vector<8x2xf32> -> vector<8x2xf32>
    %416 = vector.broadcast %6 : vector<8x1xf32> to vector<8x2xf32>
    %417 = arith.addf %415, %416 : vector<8x2xf32>
    %cst_67 = arith.constant dense<0.000000e+00> : vector<8x512xf32>
    %418 = tpu.matmul %417, %2, %cst_67 {dimension_numbers = #tpu.dot_dimension_numbers<[1], [0], [0], [1], [0, 0, 1, 1], [], []>} : vector<8x2xf32>, vector<2x512xf32>, vector<8x512xf32> -> vector<8x512xf32>
    %419 = arith.addf %403, %418 : vector<8x512xf32>
    %cst_68 = arith.constant dense<0.000000e+00> : vector<512xf32>
    %420 = vector.multi_reduction <add>, %419, %cst_68 [0] : vector<8x512xf32> to vector<512xf32>
    %421 = vector.shape_cast %420 : vector<512xf32> to vector<1x512xf32>
    %cst_69 = arith.constant dense<0.000000e+00> : vector<1x2xf32>
    %422 = tpu.matmul %421, %3, %cst_69 {dimension_numbers = #tpu.dot_dimension_numbers<[1], [0], [0], [1], [0, 0, 1, 1], [], []>} : vector<1x512xf32>, vector<512x2xf32>, vector<1x2xf32> -> vector<1x2xf32>
    %cst_70 = arith.constant dense<0.000000e+00> : vector<1x512xf32>
    %423 = tpu.matmul %422, %2, %cst_70 {dimension_numbers = #tpu.dot_dimension_numbers<[1], [0], [0], [1], [0, 0, 1, 1], [], []>} : vector<1x2xf32>, vector<2x512xf32>, vector<1x512xf32> -> vector<1x512xf32>
    %cst_71 = arith.constant 9.765625E-4 : f32
    %424 = vector.broadcast %cst_71 : f32 to vector<1x512xf32>
    %425 = arith.mulf %423, %424 : vector<1x512xf32>
    %426 = arith.mulf %419, %419 : vector<8x512xf32>
    %cst_72 = arith.constant dense<0.000000e+00> : vector<512xf32>
    %427 = vector.multi_reduction <add>, %426, %cst_72 [0] : vector<8x512xf32> to vector<512xf32>
    %428 = vector.shape_cast %427 : vector<512xf32> to vector<1x512xf32>
    %cst_73 = arith.constant dense<0.000000e+00> : vector<1x2xf32>
    %429 = tpu.matmul %428, %3, %cst_73 {dimension_numbers = #tpu.dot_dimension_numbers<[1], [0], [0], [1], [0, 0, 1, 1], [], []>} : vector<1x512xf32>, vector<512x2xf32>, vector<1x2xf32> -> vector<1x2xf32>
    %cst_74 = arith.constant dense<0.000000e+00> : vector<1x512xf32>
    %430 = tpu.matmul %429, %2, %cst_74 {dimension_numbers = #tpu.dot_dimension_numbers<[1], [0], [0], [1], [0, 0, 1, 1], [], []>} : vector<1x2xf32>, vector<2x512xf32>, vector<1x512xf32> -> vector<1x512xf32>
    %cst_75 = arith.constant 9.765625E-4 : f32
    %431 = vector.broadcast %cst_75 : f32 to vector<1x512xf32>
    %432 = arith.mulf %430, %431 : vector<1x512xf32>
    %433 = arith.mulf %425, %425 : vector<1x512xf32>
    %434 = arith.subf %432, %433 : vector<1x512xf32>
    %cst_76 = arith.constant 0.000000e+00 : f32
    %435 = vector.broadcast %cst_76 : f32 to vector<1x512xf32>
    %436 = arith.maximumf %434, %435 : vector<1x512xf32>
    %cst_77 = arith.constant 9.99999974E-6 : f32
    %437 = vector.broadcast %cst_77 : f32 to vector<1x512xf32>
    %438 = arith.addf %436, %437 : vector<1x512xf32>
    %439 = math.rsqrt %438 : vector<1x512xf32>
    %440 = vector.broadcast %425 : vector<1x512xf32> to vector<8x512xf32>
    %441 = arith.subf %419, %440 : vector<8x512xf32>
    %442 = vector.broadcast %439 : vector<1x512xf32> to vector<8x512xf32>
    %443 = arith.mulf %441, %442 : vector<8x512xf32>
    %444 = vector.broadcast %7 : vector<8x1xf32> to vector<8x512xf32>
    %445 = arith.mulf %443, %444 : vector<8x512xf32>
    %446 = vector.broadcast %8 : vector<8x1xf32> to vector<8x512xf32>
    %447 = arith.addf %445, %446 : vector<8x512xf32>
    %c0_78 = arith.constant 0 : index
    %c0_79 = arith.constant 0 : index
    %448 = vector.load %arg9[%c0_78, %c0_79] : memref<16x72xf32, #tpu.memory_space<vmem>>, vector<16x72xf32>
    %c17_i32_80 = arith.constant 17 : i32
    %449 = tpu.dynamic_rotate %447 by %c17_i32_80 dim 1 : vector<8x512xf32>, i32 -> vector<8x512xf32>
    %c16_81 = arith.constant 16 : index
    %c0_82 = arith.constant 0 : index
    %450 = vector.load %arg3[%c16_81, %c0_82] : memref<49x512xf32, #tpu.memory_space<vmem>>, vector<1x512xf32>
    %451 = vector.broadcast %450 : vector<1x512xf32> to vector<8x512xf32>
    %452 = arith.mulf %449, %451 : vector<8x512xf32>
    %c0_83 = arith.constant 0 : index
    %c0_84 = arith.constant 0 : index
    %453 = vector.load %arg13[%c0_83, %c0_84] : memref<144x512xf32, #tpu.memory_space<vmem>>, vector<8x512xf32>
    tpu.vector_store %arg13[%c0_83, %c0_84], %452 {strides = array<i32>} : memref<144x512xf32, #tpu.memory_space<vmem>>, vector<8x512xf32>,
    %c16_i32_85 = arith.constant 16 : i32
    %454 = tpu.dynamic_rotate %447 by %c16_i32_85 dim 1 : vector<8x512xf32>, i32 -> vector<8x512xf32>
    %c17_86 = arith.constant 17 : index
    %c0_87 = arith.constant 0 : index
    %455 = vector.load %arg3[%c17_86, %c0_87] : memref<49x512xf32, #tpu.memory_space<vmem>>, vector<1x512xf32>
    %456 = vector.broadcast %455 : vector<1x512xf32> to vector<8x512xf32>
    %457 = arith.mulf %454, %456 : vector<8x512xf32>
    %c8_88 = arith.constant 8 : index
    %c0_89 = arith.constant 0 : index
    %458 = vector.load %arg13[%c8_88, %c0_89] : memref<144x512xf32, #tpu.memory_space<vmem>>, vector<8x512xf32>
    tpu.vector_store %arg13[%c8_88, %c0_89], %457 {strides = array<i32>} : memref<144x512xf32, #tpu.memory_space<vmem>>, vector<8x512xf32>,
    %c15_i32_90 = arith.constant 15 : i32
    %459 = tpu.dynamic_rotate %447 by %c15_i32_90 dim 1 : vector<8x512xf32>, i32 -> vector<8x512xf32>
    %c18_91 = arith.constant 18 : index
    %c0_92 = arith.constant 0 : index
    %460 = vector.load %arg3[%c18_91, %c0_92] : memref<49x512xf32, #tpu.memory_space<vmem>>, vector<1x512xf32>
    %461 = vector.broadcast %460 : vector<1x512xf32> to vector<8x512xf32>
    %462 = arith.mulf %459, %461 : vector<8x512xf32>
    %c16_93 = arith.constant 16 : index
    %c0_94 = arith.constant 0 : index
    %463 = vector.load %arg13[%c16_93, %c0_94] : memref<144x512xf32, #tpu.memory_space<vmem>>, vector<8x512xf32>
    tpu.vector_store %arg13[%c16_93, %c0_94], %462 {strides = array<i32>} : memref<144x512xf32, #tpu.memory_space<vmem>>, vector<8x512xf32>,
    %c1_i32_95 = arith.constant 1 : i32
    %464 = tpu.dynamic_rotate %447 by %c1_i32_95 dim 1 : vector<8x512xf32>, i32 -> vector<8x512xf32>
    %c23_96 = arith.constant 23 : index
    %c0_97 = arith.constant 0 : index
    %465 = vector.load %arg3[%c23_96, %c0_97] : memref<49x512xf32, #tpu.memory_space<vmem>>, vector<1x512xf32>
    %466 = vector.broadcast %465 : vector<1x512xf32> to vector<8x512xf32>
    %467 = arith.mulf %464, %466 : vector<8x512xf32>
    %c24 = arith.constant 24 : index
    %c0_98 = arith.constant 0 : index
    %468 = vector.load %arg13[%c24, %c0_98] : memref<144x512xf32, #tpu.memory_space<vmem>>, vector<8x512xf32>
    tpu.vector_store %arg13[%c24, %c0_98], %467 {strides = array<i32>} : memref<144x512xf32, #tpu.memory_space<vmem>>, vector<8x512xf32>,
    %c24_99 = arith.constant 24 : index
    %c0_100 = arith.constant 0 : index
    %469 = vector.load %arg3[%c24_99, %c0_100] : memref<49x512xf32, #tpu.memory_space<vmem>>, vector<1x512xf32>
    %470 = vector.broadcast %469 : vector<1x512xf32> to vector<8x512xf32>
    %471 = arith.mulf %447, %470 : vector<8x512xf32>
    %c32_101 = arith.constant 32 : index
    %c0_102 = arith.constant 0 : index
    %472 = vector.load %arg13[%c32_101, %c0_102] : memref<144x512xf32, #tpu.memory_space<vmem>>, vector<8x512xf32>
    tpu.vector_store %arg13[%c32_101, %c0_102], %471 {strides = array<i32>} : memref<144x512xf32, #tpu.memory_space<vmem>>, vector<8x512xf32>,
    %c511_i32_103 = arith.constant 511 : i32
    %473 = tpu.dynamic_rotate %447 by %c511_i32_103 dim 1 : vector<8x512xf32>, i32 -> vector<8x512xf32>
    %c25_104 = arith.constant 25 : index
    %c0_105 = arith.constant 0 : index
    %474 = vector.load %arg3[%c25_104, %c0_105] : memref<49x512xf32, #tpu.memory_space<vmem>>, vector<1x512xf32>
    %475 = vector.broadcast %474 : vector<1x512xf32> to vector<8x512xf32>
    %476 = arith.mulf %473, %475 : vector<8x512xf32>
    %c40_106 = arith.constant 40 : index
    %c0_107 = arith.constant 0 : index
    %477 = vector.load %arg13[%c40_106, %c0_107] : memref<144x512xf32, #tpu.memory_space<vmem>>, vector<8x512xf32>
    tpu.vector_store %arg13[%c40_106, %c0_107], %476 {strides = array<i32>} : memref<144x512xf32, #tpu.memory_space<vmem>>, vector<8x512xf32>,
    %c497_i32_108 = arith.constant 497 : i32
    %478 = tpu.dynamic_rotate %447 by %c497_i32_108 dim 1 : vector<8x512xf32>, i32 -> vector<8x512xf32>
    %c30_109 = arith.constant 30 : index
    %c0_110 = arith.constant 0 : index
    %479 = vector.load %arg3[%c30_109, %c0_110] : memref<49x512xf32, #tpu.memory_space<vmem>>, vector<1x512xf32>
    %480 = vector.broadcast %479 : vector<1x512xf32> to vector<8x512xf32>
    %481 = arith.mulf %478, %480 : vector<8x512xf32>
    %c48_111 = arith.constant 48 : index
    %c0_112 = arith.constant 0 : index
    %482 = vector.load %arg13[%c48_111, %c0_112] : memref<144x512xf32, #tpu.memory_space<vmem>>, vector<8x512xf32>
    tpu.vector_store %arg13[%c48_111, %c0_112], %481 {strides = array<i32>} : memref<144x512xf32, #tpu.memory_space<vmem>>, vector<8x512xf32>,
    %c496_i32_113 = arith.constant 496 : i32
    %483 = tpu.dynamic_rotate %447 by %c496_i32_113 dim 1 : vector<8x512xf32>, i32 -> vector<8x512xf32>
    %c31_114 = arith.constant 31 : index
    %c0_115 = arith.constant 0 : index
    %484 = vector.load %arg3[%c31_114, %c0_115] : memref<49x512xf32, #tpu.memory_space<vmem>>, vector<1x512xf32>
    %485 = vector.broadcast %484 : vector<1x512xf32> to vector<8x512xf32>
    %486 = arith.mulf %483, %485 : vector<8x512xf32>
    %c56 = arith.constant 56 : index
    %c0_116 = arith.constant 0 : index
    %487 = vector.load %arg13[%c56, %c0_116] : memref<144x512xf32, #tpu.memory_space<vmem>>, vector<8x512xf32>
    tpu.vector_store %arg13[%c56, %c0_116], %486 {strides = array<i32>} : memref<144x512xf32, #tpu.memory_space<vmem>>, vector<8x512xf32>,
    %c495_i32_117 = arith.constant 495 : i32
    %488 = tpu.dynamic_rotate %447 by %c495_i32_117 dim 1 : vector<8x512xf32>, i32 -> vector<8x512xf32>
    %c32_118 = arith.constant 32 : index
    %c0_119 = arith.constant 0 : index
    %489 = vector.load %arg3[%c32_118, %c0_119] : memref<49x512xf32, #tpu.memory_space<vmem>>, vector<1x512xf32>
    %490 = vector.broadcast %489 : vector<1x512xf32> to vector<8x512xf32>
    %491 = arith.mulf %488, %490 : vector<8x512xf32>
    %c64 = arith.constant 64 : index
    %c0_120 = arith.constant 0 : index
    %492 = vector.load %arg13[%c64, %c0_120] : memref<144x512xf32, #tpu.memory_space<vmem>>, vector<8x512xf32>
    tpu.vector_store %arg13[%c64, %c0_120], %491 {strides = array<i32>} : memref<144x512xf32, #tpu.memory_space<vmem>>, vector<8x512xf32>,
    %c0_121 = arith.constant 0 : index
    %c0_122 = arith.constant 0 : index
    %493 = vector.load %arg13[%c0_121, %c0_122] : memref<144x512xf32, #tpu.memory_space<vmem>>, vector<72x512xf32>
    %cst_123 = arith.constant dense<0.000000e+00> : vector<16x512xf32>
    %494 = tpu.matmul %448, %493, %cst_123 {dimension_numbers = #tpu.dot_dimension_numbers<[1], [0], [0], [1], [0, 0, 1, 1], [], []>} : vector<16x72xf32>, vector<72x512xf32>, vector<16x512xf32> -> vector<16x512xf32>
    %495 = vector.broadcast %9 : vector<16x1xf32> to vector<16x512xf32>
    %496 = arith.addf %494, %495 : vector<16x512xf32>
    %cst_124 = arith.constant 5.000000e-01 : f32
    %497 = vector.broadcast %cst_124 : f32 to vector<16x512xf32>
    %498 = arith.mulf %497, %496 : vector<16x512xf32>
    %cst_125 = arith.constant 0.707106769 : f32
    %499 = vector.broadcast %cst_125 : f32 to vector<16x512xf32>
    %500 = arith.mulf %496, %499 : vector<16x512xf32>
    %501 = math.erf %500 : vector<16x512xf32>
    %cst_126 = arith.constant 1.000000e+00 : f32
    %502 = vector.broadcast %cst_126 : f32 to vector<16x512xf32>
    %503 = arith.addf %502, %501 : vector<16x512xf32>
    %504 = arith.mulf %498, %503 : vector<16x512xf32>
    %cst_127 = arith.constant dense<0.000000e+00> : vector<512xf32>
    %505 = vector.multi_reduction <add>, %504, %cst_127 [0] : vector<16x512xf32> to vector<512xf32>
    %506 = vector.shape_cast %505 : vector<512xf32> to vector<1x512xf32>
    %cst_128 = arith.constant dense<0.000000e+00> : vector<1x2xf32>
    %507 = tpu.matmul %506, %3, %cst_128 {dimension_numbers = #tpu.dot_dimension_numbers<[1], [0], [0], [1], [0, 0, 1, 1], [], []>} : vector<1x512xf32>, vector<512x2xf32>, vector<1x2xf32> -> vector<1x2xf32>
    %cst_129 = arith.constant dense<0.000000e+00> : vector<1x512xf32>
    %508 = tpu.matmul %507, %2, %cst_129 {dimension_numbers = #tpu.dot_dimension_numbers<[1], [0], [0], [1], [0, 0, 1, 1], [], []>} : vector<1x2xf32>, vector<2x512xf32>, vector<1x512xf32> -> vector<1x512xf32>
    %cst_130 = arith.constant 2.44140625E-4 : f32
    %509 = vector.broadcast %cst_130 : f32 to vector<1x512xf32>
    %510 = arith.mulf %508, %509 : vector<1x512xf32>
    %511 = arith.mulf %504, %504 : vector<16x512xf32>
    %cst_131 = arith.constant dense<0.000000e+00> : vector<512xf32>
    %512 = vector.multi_reduction <add>, %511, %cst_131 [0] : vector<16x512xf32> to vector<512xf32>
    %513 = vector.shape_cast %512 : vector<512xf32> to vector<1x512xf32>
    %cst_132 = arith.constant dense<0.000000e+00> : vector<1x2xf32>
    %514 = tpu.matmul %513, %3, %cst_132 {dimension_numbers = #tpu.dot_dimension_numbers<[1], [0], [0], [1], [0, 0, 1, 1], [], []>} : vector<1x512xf32>, vector<512x2xf32>, vector<1x2xf32> -> vector<1x2xf32>
    %cst_133 = arith.constant dense<0.000000e+00> : vector<1x512xf32>
    %515 = tpu.matmul %514, %2, %cst_133 {dimension_numbers = #tpu.dot_dimension_numbers<[1], [0], [0], [1], [0, 0, 1, 1], [], []>} : vector<1x2xf32>, vector<2x512xf32>, vector<1x512xf32> -> vector<1x512xf32>
    %cst_134 = arith.constant 2.44140625E-4 : f32
    %516 = vector.broadcast %cst_134 : f32 to vector<1x512xf32>
    %517 = arith.mulf %515, %516 : vector<1x512xf32>
    %518 = arith.mulf %510, %510 : vector<1x512xf32>
    %519 = arith.subf %517, %518 : vector<1x512xf32>
    %cst_135 = arith.constant 0.000000e+00 : f32
    %520 = vector.broadcast %cst_135 : f32 to vector<1x512xf32>
    %521 = arith.maximumf %519, %520 : vector<1x512xf32>
    %cst_136 = arith.constant 9.99999974E-6 : f32
    %522 = vector.broadcast %cst_136 : f32 to vector<1x512xf32>
    %523 = arith.addf %521, %522 : vector<1x512xf32>
    %524 = math.rsqrt %523 : vector<1x512xf32>
    %525 = vector.broadcast %510 : vector<1x512xf32> to vector<16x512xf32>
    %526 = arith.subf %504, %525 : vector<16x512xf32>
    %527 = vector.broadcast %524 : vector<1x512xf32> to vector<16x512xf32>
    %528 = arith.mulf %526, %527 : vector<16x512xf32>
    %529 = vector.broadcast %10 : vector<16x1xf32> to vector<16x512xf32>
    %530 = arith.mulf %528, %529 : vector<16x512xf32>
    %531 = vector.broadcast %11 : vector<16x1xf32> to vector<16x512xf32>
    %532 = arith.addf %530, %531 : vector<16x512xf32>
    %c0_137 = arith.constant 0 : index
    %c0_138 = arith.constant 0 : index
    %533 = vector.load %arg10[%c0_137, %c0_138] : memref<8x144xf32, #tpu.memory_space<vmem>>, vector<8x144xf32>
    %c17_i32_139 = arith.constant 17 : i32
    %534 = tpu.dynamic_rotate %532 by %c17_i32_139 dim 1 : vector<16x512xf32>, i32 -> vector<16x512xf32>
    %c16_140 = arith.constant 16 : index
    %c0_141 = arith.constant 0 : index
    %535 = vector.load %arg3[%c16_140, %c0_141] : memref<49x512xf32, #tpu.memory_space<vmem>>, vector<1x512xf32>
    %536 = vector.broadcast %535 : vector<1x512xf32> to vector<16x512xf32>
    %537 = arith.mulf %534, %536 : vector<16x512xf32>
    %c0_142 = arith.constant 0 : index
    %c0_143 = arith.constant 0 : index
    %538 = vector.load %arg13[%c0_142, %c0_143] : memref<144x512xf32, #tpu.memory_space<vmem>>, vector<16x512xf32>
    tpu.vector_store %arg13[%c0_142, %c0_143], %537 {strides = array<i32>} : memref<144x512xf32, #tpu.memory_space<vmem>>, vector<16x512xf32>,
    %c16_i32_144 = arith.constant 16 : i32
    %539 = tpu.dynamic_rotate %532 by %c16_i32_144 dim 1 : vector<16x512xf32>, i32 -> vector<16x512xf32>
    %c17_145 = arith.constant 17 : index
    %c0_146 = arith.constant 0 : index
    %540 = vector.load %arg3[%c17_145, %c0_146] : memref<49x512xf32, #tpu.memory_space<vmem>>, vector<1x512xf32>
    %541 = vector.broadcast %540 : vector<1x512xf32> to vector<16x512xf32>
    %542 = arith.mulf %539, %541 : vector<16x512xf32>
    %c16_147 = arith.constant 16 : index
    %c0_148 = arith.constant 0 : index
    %543 = vector.load %arg13[%c16_147, %c0_148] : memref<144x512xf32, #tpu.memory_space<vmem>>, vector<16x512xf32>
    tpu.vector_store %arg13[%c16_147, %c0_148], %542 {strides = array<i32>} : memref<144x512xf32, #tpu.memory_space<vmem>>, vector<16x512xf32>,
    %c15_i32_149 = arith.constant 15 : i32
    %544 = tpu.dynamic_rotate %532 by %c15_i32_149 dim 1 : vector<16x512xf32>, i32 -> vector<16x512xf32>
    %c18_150 = arith.constant 18 : index
    %c0_151 = arith.constant 0 : index
    %545 = vector.load %arg3[%c18_150, %c0_151] : memref<49x512xf32, #tpu.memory_space<vmem>>, vector<1x512xf32>
    %546 = vector.broadcast %545 : vector<1x512xf32> to vector<16x512xf32>
    %547 = arith.mulf %544, %546 : vector<16x512xf32>
    %c32_152 = arith.constant 32 : index
    %c0_153 = arith.constant 0 : index
    %548 = vector.load %arg13[%c32_152, %c0_153] : memref<144x512xf32, #tpu.memory_space<vmem>>, vector<16x512xf32>
    tpu.vector_store %arg13[%c32_152, %c0_153], %547 {strides = array<i32>} : memref<144x512xf32, #tpu.memory_space<vmem>>, vector<16x512xf32>,
    %c1_i32_154 = arith.constant 1 : i32
    %549 = tpu.dynamic_rotate %532 by %c1_i32_154 dim 1 : vector<16x512xf32>, i32 -> vector<16x512xf32>
    %c23_155 = arith.constant 23 : index
    %c0_156 = arith.constant 0 : index
    %550 = vector.load %arg3[%c23_155, %c0_156] : memref<49x512xf32, #tpu.memory_space<vmem>>, vector<1x512xf32>
    %551 = vector.broadcast %550 : vector<1x512xf32> to vector<16x512xf32>
    %552 = arith.mulf %549, %551 : vector<16x512xf32>
    %c48_157 = arith.constant 48 : index
    %c0_158 = arith.constant 0 : index
    %553 = vector.load %arg13[%c48_157, %c0_158] : memref<144x512xf32, #tpu.memory_space<vmem>>, vector<16x512xf32>
    tpu.vector_store %arg13[%c48_157, %c0_158], %552 {strides = array<i32>} : memref<144x512xf32, #tpu.memory_space<vmem>>, vector<16x512xf32>,
    %c24_159 = arith.constant 24 : index
    %c0_160 = arith.constant 0 : index
    %554 = vector.load %arg3[%c24_159, %c0_160] : memref<49x512xf32, #tpu.memory_space<vmem>>, vector<1x512xf32>
    %555 = vector.broadcast %554 : vector<1x512xf32> to vector<16x512xf32>
    %556 = arith.mulf %532, %555 : vector<16x512xf32>
    %c64_161 = arith.constant 64 : index
    %c0_162 = arith.constant 0 : index
    %557 = vector.load %arg13[%c64_161, %c0_162] : memref<144x512xf32, #tpu.memory_space<vmem>>, vector<16x512xf32>
    tpu.vector_store %arg13[%c64_161, %c0_162], %556 {strides = array<i32>} : memref<144x512xf32, #tpu.memory_space<vmem>>, vector<16x512xf32>,
    %c511_i32_163 = arith.constant 511 : i32
    %558 = tpu.dynamic_rotate %532 by %c511_i32_163 dim 1 : vector<16x512xf32>, i32 -> vector<16x512xf32>
    %c25_164 = arith.constant 25 : index
    %c0_165 = arith.constant 0 : index
    %559 = vector.load %arg3[%c25_164, %c0_165] : memref<49x512xf32, #tpu.memory_space<vmem>>, vector<1x512xf32>
    %560 = vector.broadcast %559 : vector<1x512xf32> to vector<16x512xf32>
    %561 = arith.mulf %558, %560 : vector<16x512xf32>
    %c80 = arith.constant 80 : index
    %c0_166 = arith.constant 0 : index
    %562 = vector.load %arg13[%c80, %c0_166] : memref<144x512xf32, #tpu.memory_space<vmem>>, vector<16x512xf32>
    tpu.vector_store %arg13[%c80, %c0_166], %561 {strides = array<i32>} : memref<144x512xf32, #tpu.memory_space<vmem>>, vector<16x512xf32>,
    %c497_i32_167 = arith.constant 497 : i32
    %563 = tpu.dynamic_rotate %532 by %c497_i32_167 dim 1 : vector<16x512xf32>, i32 -> vector<16x512xf32>
    %c30_168 = arith.constant 30 : index
    %c0_169 = arith.constant 0 : index
    %564 = vector.load %arg3[%c30_168, %c0_169] : memref<49x512xf32, #tpu.memory_space<vmem>>, vector<1x512xf32>
    %565 = vector.broadcast %564 : vector<1x512xf32> to vector<16x512xf32>
    %566 = arith.mulf %563, %565 : vector<16x512xf32>
    %c96 = arith.constant 96 : index
    %c0_170 = arith.constant 0 : index
    %567 = vector.load %arg13[%c96, %c0_170] : memref<144x512xf32, #tpu.memory_space<vmem>>, vector<16x512xf32>
    tpu.vector_store %arg13[%c96, %c0_170], %566 {strides = array<i32>} : memref<144x512xf32, #tpu.memory_space<vmem>>, vector<16x512xf32>,
    %c496_i32_171 = arith.constant 496 : i32
    %568 = tpu.dynamic_rotate %532 by %c496_i32_171 dim 1 : vector<16x512xf32>, i32 -> vector<16x512xf32>
    %c31_172 = arith.constant 31 : index
    %c0_173 = arith.constant 0 : index
    %569 = vector.load %arg3[%c31_172, %c0_173] : memref<49x512xf32, #tpu.memory_space<vmem>>, vector<1x512xf32>
    %570 = vector.broadcast %569 : vector<1x512xf32> to vector<16x512xf32>
    %571 = arith.mulf %568, %570 : vector<16x512xf32>
    %c112 = arith.constant 112 : index
    %c0_174 = arith.constant 0 : index
    %572 = vector.load %arg13[%c112, %c0_174] : memref<144x512xf32, #tpu.memory_space<vmem>>, vector<16x512xf32>
    tpu.vector_store %arg13[%c112, %c0_174], %571 {strides = array<i32>} : memref<144x512xf32, #tpu.memory_space<vmem>>, vector<16x512xf32>,
    %c495_i32_175 = arith.constant 495 : i32
    %573 = tpu.dynamic_rotate %532 by %c495_i32_175 dim 1 : vector<16x512xf32>, i32 -> vector<16x512xf32>
    %c32_176 = arith.constant 32 : index
    %c0_177 = arith.constant 0 : index
    %574 = vector.load %arg3[%c32_176, %c0_177] : memref<49x512xf32, #tpu.memory_space<vmem>>, vector<1x512xf32>
    %575 = vector.broadcast %574 : vector<1x512xf32> to vector<16x512xf32>
    %576 = arith.mulf %573, %575 : vector<16x512xf32>
    %c128 = arith.constant 128 : index
    %c0_178 = arith.constant 0 : index
    %577 = vector.load %arg13[%c128, %c0_178] : memref<144x512xf32, #tpu.memory_space<vmem>>, vector<16x512xf32>
    tpu.vector_store %arg13[%c128, %c0_178], %576 {strides = array<i32>} : memref<144x512xf32, #tpu.memory_space<vmem>>, vector<16x512xf32>,
    %c0_179 = arith.constant 0 : index
    %c0_180 = arith.constant 0 : index
    %578 = vector.load %arg13[%c0_179, %c0_180] : memref<144x512xf32, #tpu.memory_space<vmem>>, vector<144x512xf32>
    %cst_181 = arith.constant dense<0.000000e+00> : vector<8x512xf32>
    %579 = tpu.matmul %533, %578, %cst_181 {dimension_numbers = #tpu.dot_dimension_numbers<[1], [0], [0], [1], [0, 0, 1, 1], [], []>} : vector<8x144xf32>, vector<144x512xf32>, vector<8x512xf32> -> vector<8x512xf32>
    %580 = vector.broadcast %12 : vector<8x1xf32> to vector<8x512xf32>
    %581 = arith.addf %579, %580 : vector<8x512xf32>
    %c0_182 = arith.constant 0 : index
    %c0_183 = arith.constant 0 : index
    %582 = vector.load %arg11[%c0_182, %c0_183] : memref<8x8xf32, #tpu.memory_space<vmem>>, vector<8x8xf32>
    %cst_184 = arith.constant dense<0.000000e+00> : vector<8x512xf32>
    %583 = tpu.matmul %582, %1, %cst_184 {dimension_numbers = #tpu.dot_dimension_numbers<[1], [0], [0], [1], [0, 0, 1, 1], [], []>} : vector<8x8xf32>, vector<8x512xf32>, vector<8x512xf32> -> vector<8x512xf32>
    %584 = vector.broadcast %13 : vector<8x1xf32> to vector<8x512xf32>
    %585 = arith.addf %583, %584 : vector<8x512xf32>
    %586 = arith.addf %581, %585 : vector<8x512xf32>
    %587 = vector.shape_cast %586 : vector<8x512xf32> to vector<1x8x512xf32>
    %c0_185 = arith.constant 0 : index
    %c0_186 = arith.constant 0 : index
    %c0_187 = arith.constant 0 : index
    %588 = vector.load %arg12[%c0_185, %c0_186, %c0_187] : memref<1x8x512xf32, #tpu.memory_space<vmem>>, vector<1x8x512xf32>
    tpu.vector_store %arg12[%c0_185, %c0_186, %c0_187], %587 {strides = array<i32>} : memref<1x8x512xf32, #tpu.memory_space<vmem>>, vector<1x8x512xf32>,
    return
  }
  func.func @transform_0(%arg0: i32) -> (i32, i32, i32) {
    %c0_i32 = arith.constant 0 : i32
    %c0_i32_0 = arith.constant 0 : i32
    %c0_i32_1 = arith.constant 0 : i32
    return %arg0, %c0_i32, %c0_i32_0 : i32, i32, i32
  }
  func.func @transform_1(%arg0: i32) -> (i32, i32, i32) {
    %c0_i32 = arith.constant 0 : i32
    %c0_i32_0 = arith.constant 0 : i32
    %c0_i32_1 = arith.constant 0 : i32
    return %arg0, %c0_i32, %c0_i32_0 : i32, i32, i32
  }
  func.func @transform_2(%arg0: i32) -> (i32, i32) {
    %c0_i32 = arith.constant 0 : i32
    %c0_i32_0 = arith.constant 0 : i32
    %c0_i32_1 = arith.constant 0 : i32
    return %c0_i32, %c0_i32_0 : i32, i32
  }
  func.func @transform_3(%arg0: i32) -> (i32, i32) {
    %c0_i32 = arith.constant 0 : i32
    %c0_i32_0 = arith.constant 0 : i32
    %c0_i32_1 = arith.constant 0 : i32
    return %c0_i32, %c0_i32_0 : i32, i32
  }
  func.func @transform_4(%arg0: i32) -> (i32, i32) {
    %c0_i32 = arith.constant 0 : i32
    %c0_i32_0 = arith.constant 0 : i32
    %c0_i32_1 = arith.constant 0 : i32
    return %c0_i32, %c0_i32_0 : i32, i32
  }
  func.func @transform_5(%arg0: i32) -> (i32, i32) {
    %c0_i32 = arith.constant 0 : i32
    %c0_i32_0 = arith.constant 0 : i32
    %c0_i32_1 = arith.constant 0 : i32
    return %c0_i32, %c0_i32_0 : i32, i32
  }
  func.func @transform_6(%arg0: i32) -> (i32, i32) {
    %c0_i32 = arith.constant 0 : i32
    %c0_i32_0 = arith.constant 0 : i32
    %c0_i32_1 = arith.constant 0 : i32
    return %c0_i32, %c0_i32_0 : i32, i32
  }
  func.func @transform_7(%arg0: i32) -> (i32, i32) {
    %c0_i32 = arith.constant 0 : i32
    %c0_i32_0 = arith.constant 0 : i32
    %c0_i32_1 = arith.constant 0 : i32
    return %c0_i32, %c0_i32_0 : i32, i32
  }
  func.func @transform_8(%arg0: i32) -> (i32, i32) {
    %c0_i32 = arith.constant 0 : i32
    %c0_i32_0 = arith.constant 0 : i32
    %c0_i32_1 = arith.constant 0 : i32
    return %c0_i32, %c0_i32_0 : i32, i32
  }
  func.func @transform_9(%arg0: i32) -> (i32, i32) {
    %c0_i32 = arith.constant 0 : i32
    %c0_i32_0 = arith.constant 0 : i32
    %c0_i32_1 = arith.constant 0 : i32
    return %c0_i32, %c0_i32_0 : i32, i32
  }
  func.func @transform_10(%arg0: i32) -> (i32, i32) {
    %c0_i32 = arith.constant 0 : i32
    %c0_i32_0 = arith.constant 0 : i32
    %c0_i32_1 = arith.constant 0 : i32
    return %c0_i32, %c0_i32_0 : i32, i32
  }
  func.func @transform_11(%arg0: i32) -> (i32, i32, i32) {
    %c0_i32 = arith.constant 0 : i32
    %c0_i32_0 = arith.constant 0 : i32
    %c0_i32_1 = arith.constant 0 : i32
    return %arg0, %c0_i32, %c0_i32_0 : i32, i32, i32
  }
}

</mosaic_0001>

<bundles_post_ra>
// kernel: tpu_custom_call.1
= control target key start
LH: loop header
LB: loop body
LE: loop exit
PB: predicated region body
PF: predicated region fallthrough
CT: control target
= control target key end

     0   :  { %v6856_v2 = vmov 1   ;;  %v11490_v3 = vmov 0   ;;  %v11484_v5 = vmov 0.0   ;;  %vm6859_vm0 = vmmov 0   ;;  %s11466_s0 = inlined_call_operand.vmem [shape: f32[1,8,512], index: 0, kind: input, shape index: {}]   ;;  %s11467_s1 = inlined_call_operand.vmem [shape: f32[1,8,2], index: 1, kind: input, shape index: {}]   ;;  %s11468_s2 = inlined_call_operand.vmem [shape: f32[49,512], index: 2, kind: input, shape index: {}]   ;;  %s11469_s3 = inlined_call_operand.vmem [shape: f32[2,512], index: 3, kind: input, shape index: {}]   ;;  %s11470_s4 = inlined_call_operand.vmem [shape: f32[512,2], index: 4, kind: input, shape index: {}]   ;;  %s11471_s5 = inlined_call_operand.vmem [shape: f32[8,49], index: 5, kind: input, shape index: {}]   ;;  %s11472_s6 = inlined_call_operand.vmem [shape: f32[8,8], index: 6, kind: input, shape index: {}]   ;;  %s11473_s7 = inlined_call_operand.vmem [shape: f32[16,9], index: 7, kind: input, shape index: {}]   ;;  %s11474_s8 = inlined_call_operand.vmem [shape: f32[16,72], index: 8, kind: input, shape index: {}]   ;;  %s11475_s9 = inlined_call_operand.vmem [shape: f32[8,144], index: 9, kind: input, shape index: {}]   ;;  %s11476_s10 = inlined_call_operand.vmem [shape: f32[8,8], index: 10, kind: input, shape index: {}]   ;;  %s11477_s11 = inlined_call_operand.hbm [shape: f32[1,8,512], index: 11, kind: output, shape index: {}]  }
   0x1   :  { %v7020_v0 = vld [vmem:[%s11471_s5] sm:$0xff]  ;;  %6722 = vset.pattern.permute.xlu0 %v6856_v2  ;;  %6724 = vset.pattern.permute.xlu1 %v11490_v3  ;;  %v6860_v7 = vmov 24  }
   0x2   :  { %v108_v1 = vld [vmem:[%s11473_s7] sm:$0xff]  ;;  %162 = vperm.xlu1 %6724, %v7020_v0   ;;  %6244 = vmatprep.subr.mxu0 %v11484_v5 }
   0x3   :  { %2634 = vperm.xlu0 %6722, %v108_v1   ;;  %v2626_v4 = vld [vmem:[%s11467_s1] sm:$0xff]  ;;  %2806 = vmatprep.mubr.f32.mxu1 %v11484_v5 }
   0x4   :  { %v2628_v6 = vmul.f32 0.70710677, %v2626_v4  ;;  %6246 = vmatprep.mubr.msk.f32.mxu0 %vm6859_vm0, %v11484_v5 }
   0x6   :  { %6725 = vset.pattern.permute.xlu1 %v6856_v2  ;;  %6783 = verf.f32 %v2628_v6 }
   0x7   :  { %6723 = vset.pattern.permute.xlu0 %v6860_v7 }
   0x8   :  { %16 = vsyncpa [#allocation4], 0  ;;  %214 = vperm.xlu1 %6725, %v7020_v0   ;;  %113 = vperm.xlu0 %6723, %v7020_v0   ;;  %v7038_v8 = vld [vmem:[%s11466_s0] sm:$0xff]  ;;  %v7043_v9 = vld [vmem:[%s11466_s0 + $0x8] sm:$0xff]  ;;  %s6861_s25 = smov 51   ;;  %v6862_v11 = vmov 2   ;;  %v11489_v48 = vlaneseq }
   0x9   :  { %v7050_v10 = vld [vmem:[%s11466_s0 + $0x10] sm:$0xff]  ;;  %v7055_v12 = vld [vmem:[%s11466_s0 + $0x18] sm:$0xff]  ;;  %v11486_v13 = vmov 3   ;;  %v2627_v14 = vmul.f32 0.5, %v2626_v4  ;;  %s6864_s30 = smov 50   ;;  %v2632_v18 = vld [vmem:[%s11472_s6] sm:$0xff] }
   0xa   :  { %vm2637_vm1 = vcmask 64512   ;;  %s6865_s14 = smov 49   ;;  %v11487_v19 = vmov 4   ;;  %s6867_s6 = smov 48   ;;  %v11482_v20 = vmov 5   ;;  %v11480_v21 = vmov 6  }
   0xb   :  { %s6869_s15 = smov 47   ;;  %s6871_s16 = smov 46   ;;  %v11481_v22 = vmov 7   ;;  %v11478_v23 = vmov 8   ;;  %v6876_v24 = vmov 9   ;;  %v6878_v25 = vmov 10  }
   0xc   :  { %120 = vrot.lane.b32.xlu1 %v7038_v8, %s6861_s25  ;;  %122 = vrot.lane.b32.xlu0 %v7043_v9, %s6861_s25  ;;  %s6873_s17 = smov 45   ;;  %s6875_s18 = smov 35   ;;  %v6880_v26 = vmov 11   ;;  %v6882_v27 = vmov 12   ;;  %v6884_v28 = vmov 13   ;;  %v6886_v29 = vmov 14  }
   0xd   :  { %6726 = vset.pattern.permute.xlu1 %v6862_v11  ;;  %6727 = vset.pattern.permute.xlu0 %v11486_v13  ;;  %s6877_s19 = smov 34   ;;  %s6879_s20 = smov 33   ;;  %v6888_v30 = vmov 15   ;;  %v6890_v31 = vmov 16   ;;  %v6892_v34 = vmov 17   ;;  %v6894_v37 = vmov 18  }
   0xe   :  { %s6881_s21 = smov 32   ;;  %s6883_s22 = smov 31   ;;  %v6896_v40 = vmov 19   ;;  %v6898_v43 = vmov 20   ;;  %v6900_v46 = vmov 21   ;;  %v7205_v53 = vshrl.u32 %v11489_v48, 7 }
   0xf   :  { %s6885_s5 = smov 30   ;;  %s6887_s1 = smov 29   ;;  %v6901_v50 = vmov 1983009808   ;;  %v6903_v54 = vmov 22   ;;  %v43_v57 = vld [vmem:[%s11469_s3] sm:$0xff] }
  0x10   :  { %124 = vrot.lane.b32.xlu1 %v7050_v10, %s6861_s25  ;;  %126 = vrot.lane.b32.xlu0 %v7055_v12, %s6861_s25  ;;  %v6784_v15 = vpop.eup %6783  ;;  %s6889_s23 = smov 19   ;;  %s6891_s24 = smov 18   ;;  %v2714_v51 = vunpack.c.l.s4 %v6901_v50  ;;  %v2712_v59 = vcombine.high %v43_v57, %v43_v57  ;;  %vm2733_vm2 = vcmask 1041408   ;;  %v6905_v4 = vmov 23  }
  0x11   :  { %v2630_v16 = vadd.f32 1.0, %v6784_v15  ;;  %s6893_s25 = smov 17   ;;  %s6895_s26 = smov 16   ;;  %v6915_v50 = vmov 29   ;;  %vm2729_vm3 = vcmask 15360  }
  0x12   :  { %s6897_s27 = smov 15   ;;  %s6899_s28 = smov 14   ;;  %v2715_v55 = vunpack.c.0.s8 %v2714_v51 }
  0x13   :  { %v2631_v17 = vmul.f32 %v2630_v16, %v2627_v14  ;;  %s6902_s29 = smov 13   ;;  %s6904_s3 = smov 3   ;;  %v6907_v14 = vmov 25  }
  0x14   :  { %266 = vperm.xlu1 %6726, %v7020_v0   ;;  %173 = vrot.lane.b32.xlu0 %v7038_v8, %s6864_s30  ;;  %v2718_v58 = vsub.s32 %v2715_v55, %v7205_v53  ;;  %s6906_s13 = smov 2   ;;  %s6942_s12 = smov 93  }
  0x15   :  { %6245 = vmatpush3.msra.mxu0 %v2631_v17 }
  0x16   :  { %6247 = vmatmul.mubr.msk.f32.vlgmr.msra.gmra.mrb[0].mxu0 %vm2637_vm1, %v2632_v18  ;;  %v7216_v60 = vrot.slane %v43_v57, %v2718_v58  ;;  %v7218_v61 = vrot.slane %v2712_v59, %v2718_v58  ;;  %v6917_v59 = vmov 30  }
  0x17   :  { %2877 = vmatprep.mubr.f32.mxu0 %v11484_v5  ;;  %v6923_v5 = vmov 33  }
  0x18   :  { %175 = vrot.lane.b32.xlu1 %v7043_v9, %s6864_s30  ;;  %177 = vrot.lane.b32.xlu0 %v7050_v10, %s6864_s30  ;;  %11748 = vst [vmem:[#allocation6_spill] sm:$0xff] %v7216_v60  ;;  %11749 = vst [vmem:[#allocation7_spill] sm:$0xff] %v7218_v61  ;;  %v7228_v1 = vcombine.high %v7216_v60, %v7216_v60  ;;  %v7232_v2 = vcombine.high %v7218_v61, %v7218_v61 }
  0x1a   :  { %11750 = vst [vmem:[#allocation8_spill] sm:$0xff] %v7228_v1  ;;  %11751 = vst [vmem:[#allocation9_spill] sm:$0xff] %v7232_v2  ;;  %5907 = vmatprep.subr.msk.mxu1 %vm2733_vm2, %v7228_v1  ;;  %5910 = vmatprep.subr.msk.mxu0 %vm2733_vm2, %v7232_v2  ;;  %v6927_v2 = vmov 35  }
  0x1b   :  { %5908 = vmatpush1.msk.msra.mxu1 %vm2733_vm2, %v7216_v60  ;;  %5911 = vmatpush1.msk.msra.mxu0 %vm2733_vm2, %v7218_v61 }
  0x1c   :  { %179 = vrot.lane.b32.xlu1 %v7055_v12, %s6864_s30  ;;  %318 = vperm.xlu0 %6727, %v7020_v0   ;;  %s6940_s30 = smov 94  }
  0x20   :  { %225 = vrot.lane.b32.xlu1 %v7038_v8, %s6865_s14  ;;  %229 = vrot.lane.b32.xlu0 %v7050_v10, %s6865_s14 }
  0x21   :  { %6728 = vset.pattern.permute.xlu0 %v11487_v19 }
  0x24   :  { %227 = vrot.lane.b32.xlu1 %v7043_v9, %s6865_s14  ;;  %370 = vperm.xlu0 %6728, %v7020_v0  }
  0x28   :  { %231 = vrot.lane.b32.xlu1 %v7055_v12, %s6865_s14  ;;  %281 = vrot.lane.b32.xlu0 %v7050_v10, %s6867_s6  ;;  %s6908_s14 = smov 1  }
  0x29   :  { %6729 = vset.pattern.permute.xlu0 %v11482_v20 }
  0x2c   :  { %277 = vrot.lane.b32.xlu1 %v7038_v8, %s6867_s6  ;;  %422 = vperm.xlu0 %6729, %v7020_v0  }
  0x30   :  { %279 = vrot.lane.b32.xlu1 %v7043_v9, %s6867_s6  ;;  %333 = vrot.lane.b32.xlu0 %v7050_v10, %s6869_s15 }
  0x31   :  { %6730 = vset.pattern.permute.xlu0 %v11480_v21 }
  0x34   :  { %283 = vrot.lane.b32.xlu1 %v7055_v12, %s6867_s6  ;;  %474 = vperm.xlu0 %6730, %v7020_v0   ;;  %s11579_s6 = smov 127  }
  0x38   :  { %329 = vrot.lane.b32.xlu1 %v7038_v8, %s6869_s15  ;;  %385 = vrot.lane.b32.xlu0 %v7050_v10, %s6871_s16 }
  0x39   :  { %6731 = vset.pattern.permute.xlu0 %v11481_v22 }
  0x3c   :  { %331 = vrot.lane.b32.xlu1 %v7043_v9, %s6869_s15  ;;  %526 = vperm.xlu0 %6731, %v7020_v0  }
  0x40   :  { %335 = vrot.lane.b32.xlu1 %v7055_v12, %s6869_s15  ;;  %437 = vrot.lane.b32.xlu0 %v7050_v10, %s6873_s17  ;;  %s6912_s15 = smov 126  }
  0x41   :  { %6732 = vset.pattern.permute.xlu0 %v11478_v23 }
  0x44   :  { %381 = vrot.lane.b32.xlu1 %v7038_v8, %s6871_s16  ;;  %578 = vperm.xlu0 %6732, %v7020_v0  }
  0x48   :  { %383 = vrot.lane.b32.xlu1 %v7043_v9, %s6871_s16  ;;  %489 = vrot.lane.b32.xlu0 %v7050_v10, %s6875_s18 }
  0x49   :  { %6733 = vset.pattern.permute.xlu0 %v6876_v24  ;;  %v6909_v24 = vmov 26  }
  0x4c   :  { %387 = vrot.lane.b32.xlu1 %v7055_v12, %s6871_s16  ;;  %630 = vperm.xlu0 %6733, %v7020_v0   ;;  %s6914_s16 = smov 125  }
  0x50   :  { %433 = vrot.lane.b32.xlu1 %v7038_v8, %s6873_s17  ;;  %541 = vrot.lane.b32.xlu0 %v7050_v10, %s6877_s19 }
  0x51   :  { %6734 = vset.pattern.permute.xlu0 %v6878_v25 }
  0x54   :  { %435 = vrot.lane.b32.xlu1 %v7043_v9, %s6873_s17  ;;  %682 = vperm.xlu0 %6734, %v7020_v0  }
  0x58   :  { %439 = vrot.lane.b32.xlu1 %v7055_v12, %s6873_s17  ;;  %593 = vrot.lane.b32.xlu0 %v7050_v10, %s6879_s20  ;;  %s6916_s17 = smov 115  }
  0x59   :  { %6735 = vset.pattern.permute.xlu0 %v6880_v26 }
  0x5c   :  { %485 = vrot.lane.b32.xlu1 %v7038_v8, %s6875_s18  ;;  %734 = vperm.xlu0 %6735, %v7020_v0  }
  0x60   :  { %487 = vrot.lane.b32.xlu1 %v7043_v9, %s6875_s18  ;;  %645 = vrot.lane.b32.xlu0 %v7050_v10, %s6881_s21 }
  0x61   :  { %6736 = vset.pattern.permute.xlu0 %v6882_v27 }
  0x64   :  { %491 = vrot.lane.b32.xlu1 %v7055_v12, %s6875_s18  ;;  %786 = vperm.xlu0 %6736, %v7020_v0   ;;  %s6918_s18 = smov 114  }
  0x68   :  { %537 = vrot.lane.b32.xlu1 %v7038_v8, %s6877_s19  ;;  %697 = vrot.lane.b32.xlu0 %v7050_v10, %s6883_s22 }
  0x69   :  { %6737 = vset.pattern.permute.xlu0 %v6884_v28  ;;  %v6911_v28 = vmov 27  }
  0x6c   :  { %539 = vrot.lane.b32.xlu1 %v7043_v9, %s6877_s19  ;;  %838 = vperm.xlu0 %6737, %v7020_v0  }
  0x70   :  { %543 = vrot.lane.b32.xlu1 %v7055_v12, %s6877_s19  ;;  %749 = vrot.lane.b32.xlu0 %v7050_v10, %s6885_s5  ;;  %s11577_s19 = smov 113  }
  0x71   :  { %6738 = vset.pattern.permute.xlu0 %v6886_v29 }
  0x74   :  { %589 = vrot.lane.b32.xlu1 %v7038_v8, %s6879_s20  ;;  %890 = vperm.xlu0 %6738, %v7020_v0  }
  0x78   :  { %591 = vrot.lane.b32.xlu1 %v7043_v9, %s6879_s20  ;;  %801 = vrot.lane.b32.xlu0 %v7050_v10, %s6887_s1 }
  0x79   :  { %6739 = vset.pattern.permute.xlu0 %v6888_v30 }
  0x7c   :  { %595 = vrot.lane.b32.xlu1 %v7055_v12, %s6879_s20  ;;  %942 = vperm.xlu0 %6739, %v7020_v0   ;;  %s11575_s20 = smov 112  }
  0x80   :  { %641 = vrot.lane.b32.xlu1 %v7038_v8, %s6881_s21  ;;  %853 = vrot.lane.b32.xlu0 %v7050_v10, %s6889_s23 }
  0x81   :  { %6740 = vset.pattern.permute.xlu0 %v6890_v31  ;;  %v7136_v32 = vpop.permute.xlu1 %162 }
  0x82   :  { %v7200_v52 = vpop.permute.xlu0 %2634 }
  0x84   :  { %643 = vrot.lane.b32.xlu1 %v7043_v9, %s6881_s21  ;;  %994 = vperm.xlu0 %6740, %v7020_v0  }
  0x87   :  { %v7141_v33 = vpop.permute.xlu1 %214  ;;  %v7220_v62 = vpop.permute.xlu0 %113 }
  0x88   :  { %647 = vrot.lane.b32.xlu1 %v7055_v12, %s6881_s21  ;;  %905 = vrot.lane.b32.xlu0 %v7050_v10, %s6891_s24  ;;  %s11573_s21 = smov 111  }
  0x89   :  { %6741 = vset.pattern.permute.xlu0 %v6892_v34 }
  0x8b   :  { %v7147_v35 = vpop.permute.xlu1 %120  ;;  %v7248_v7 = vpop.permute.xlu0 %122 }
  0x8c   :  { %693 = vrot.lane.b32.xlu1 %v7038_v8, %s6883_s22  ;;  %1046 = vperm.xlu0 %6741, %v7020_v0  }
  0x8f   :  { %v7152_v36 = vpop.permute.xlu1 %124  ;;  %v7257_v15 = vpop.permute.xlu0 %126 }
  0x90   :  { %695 = vrot.lane.b32.xlu1 %v7043_v9, %s6883_s22  ;;  %957 = vrot.lane.b32.xlu0 %v7050_v10, %s6893_s25 }
  0x91   :  { %6742 = vset.pattern.permute.xlu0 %v6894_v37  ;;  %v6913_v37 = vmov 28  }
  0x93   :  { %v7158_v38 = vpop.permute.xlu1 %266  ;;  %v7268_v18 = vpop.permute.xlu0 %173 }
  0x94   :  { %699 = vrot.lane.b32.xlu1 %v7055_v12, %s6883_s22  ;;  %1098 = vperm.xlu0 %6742, %v7020_v0   ;;  %s6926_s22 = smov 110  }
  0x97   :  { %v7163_v39 = vpop.permute.xlu1 %175  ;;  %v7277_v26 = vpop.permute.xlu0 %177 }
  0x98   :  { %745 = vrot.lane.b32.xlu1 %v7038_v8, %s6885_s5  ;;  %1009 = vrot.lane.b32.xlu0 %v7050_v10, %s6895_s26 }
  0x99   :  { %6743 = vset.pattern.permute.xlu0 %v6896_v40 }
  0x9b   :  { %v7169_v41 = vpop.permute.xlu1 %179  ;;  %v7285_v29 = vpop.permute.xlu0 %318 }
  0x9c   :  { %747 = vrot.lane.b32.xlu1 %v7043_v9, %s6885_s5  ;;  %1150 = vperm.xlu0 %6743, %v7020_v0  }
  0x9f   :  { %v7174_v42 = vpop.permute.xlu1 %225  ;;  %v7296_v34 = vpop.permute.xlu0 %229 }
  0xa0   :  { %751 = vrot.lane.b32.xlu1 %v7055_v12, %s6885_s5  ;;  %1061 = vrot.lane.b32.xlu0 %v7050_v10, %s6897_s27  ;;  %s6928_s5 = smov 109  }
  0xa1   :  { %6744 = vset.pattern.permute.xlu0 %v6898_v43 }
  0xa3   :  { %v7180_v44 = vpop.permute.xlu1 %227  ;;  %v7304_v43 = vpop.permute.xlu0 %370 }
  0xa4   :  { %797 = vrot.lane.b32.xlu1 %v7038_v8, %s6887_s1  ;;  %1202 = vperm.xlu0 %6744, %v7020_v0  }
  0xa7   :  { %v7185_v45 = vpop.permute.xlu1 %231  ;;  %v7313_v51 = vpop.permute.xlu0 %281 }
  0xa8   :  { %799 = vrot.lane.b32.xlu1 %v7043_v9, %s6887_s1  ;;  %1113 = vrot.lane.b32.xlu0 %v7050_v10, %s6899_s28 }
  0xa9   :  { %6745 = vset.pattern.permute.xlu0 %v6900_v46 }
  0xab   :  { %v7191_v47 = vpop.permute.xlu1 %277  ;;  %v7320_v55 = vpop.permute.xlu0 %422 }
  0xac   :  { %803 = vrot.lane.b32.xlu1 %v7055_v12, %s6887_s1  ;;  %1254 = vperm.xlu0 %6745, %v7020_v0   ;;  %s6930_s1 = smov 99  }
  0xaf   :  { %v7196_v49 = vpop.permute.xlu1 %279 }
  0xb0   :  { %849 = vrot.lane.b32.xlu1 %v7038_v8, %s6889_s23  ;;  %1165 = vrot.lane.b32.xlu0 %v7050_v10, %s6902_s29 }
  0xb1   :  { %6746 = vset.pattern.permute.xlu0 %v6903_v54 }
  0xb3   :  { %v7207_v56 = vpop.permute.xlu1 %283 }
  0xb4   :  { %851 = vrot.lane.b32.xlu1 %v7043_v9, %s6889_s23  ;;  %1306 = vperm.xlu0 %6746, %v7020_v0  }
  0xb7   :  { %v7222_v63 = vpop.permute.xlu1 %329 }
  0xb8   :  { %855 = vrot.lane.b32.xlu1 %v7055_v12, %s6889_s23  ;;  %1217 = vrot.lane.b32.xlu0 %v7050_v10, %s6904_s3  ;;  %s6932_s23 = smov 98  }
  0xb9   :  { %6747 = vset.pattern.permute.xlu0 %v6905_v4 }
  0xbb   :  { %v7238_v6 = vpop.permute.xlu1 %331 }
  0xbc   :  { %901 = vrot.lane.b32.xlu1 %v7038_v8, %s6891_s24  ;;  %1358 = vperm.xlu0 %6747, %v7020_v0  }
  0xbf   :  { %v7251_v11 = vpop.permute.xlu1 %335 }
  0xc0   :  { %903 = vrot.lane.b32.xlu1 %v7043_v9, %s6891_s24  ;;  %1269 = vrot.lane.b32.xlu0 %v7050_v10, %s6906_s13 }
  0xc1   :  { %6748 = vset.pattern.permute.xlu0 %v6907_v14 }
  0xc3   :  { %v7259_v16 = vpop.permute.xlu1 %381 }
  0xc4   :  { %907 = vrot.lane.b32.xlu1 %v7055_v12, %s6891_s24  ;;  %1410 = vperm.xlu0 %6748, %v7020_v0   ;;  %s6934_s24 = smov 97  }
  0xc7   :  { %v7264_v17 = vpop.permute.xlu1 %383 }
  0xc8   :  { %953 = vrot.lane.b32.xlu1 %v7038_v8, %s6893_s25  ;;  %1321 = vrot.lane.b32.xlu0 %v7050_v10, %s6908_s14 }
  0xc9   :  { %6749 = vset.pattern.permute.xlu0 %v6909_v24 }
  0xcb   :  { %v7272_v25 = vpop.permute.xlu1 %387 }
  0xcc   :  { %955 = vrot.lane.b32.xlu1 %v7043_v9, %s6893_s25  ;;  %1462 = vperm.xlu0 %6749, %v7020_v0  }
  0xcf   :  { %v7279_v27 = vpop.permute.xlu1 %433 }
  0xd0   :  { %959 = vrot.lane.b32.xlu1 %v7055_v12, %s6893_s25  ;;  %1373 = vrot.lane.b32.xlu0 %v7050_v10, %s11579_s6 }
  0xd1   :  { %6750 = vset.pattern.permute.xlu0 %v6911_v28  ;;  %v7333_v28 = vpop.permute.xlu0 %333 }
  0xd3   :  { %v7287_v30 = vpop.permute.xlu1 %435 }
  0xd4   :  { %1005 = vrot.lane.b32.xlu1 %v7038_v8, %s6895_s26  ;;  %1514 = vperm.xlu0 %6750, %v7020_v0  }
  0xd7   :  { %v7292_v31 = vpop.permute.xlu1 %439 }
  0xd8   :  { %1007 = vrot.lane.b32.xlu1 %v7043_v9, %s6895_s26  ;;  %1425 = vrot.lane.b32.xlu0 %v7050_v10, %s6912_s15 }
  0xd9   :  { %6751 = vset.pattern.permute.xlu0 %v6913_v37 }
  0xdb   :  { %v7300_v40 = vpop.permute.xlu1 %485 }
  0xdc   :  { %11752 = vst [vmem:[#allocation10_spill] sm:$0xff] %v7300_v40  ;;  %1011 = vrot.lane.b32.xlu1 %v7055_v12, %s6895_s26  ;;  %1566 = vperm.xlu0 %6751, %v7020_v0  }
  0xdf   :  { %v7307_v46 = vpop.permute.xlu1 %487 }
  0xe0   :  { %11753 = vst [vmem:[#allocation11_spill] sm:$0xff] %v7307_v46  ;;  %1057 = vrot.lane.b32.xlu1 %v7038_v8, %s6897_s27  ;;  %1477 = vrot.lane.b32.xlu0 %v7050_v10, %s6914_s16 }
  0xe1   :  { %6752 = vset.pattern.permute.xlu0 %v6915_v50  ;;  %v7342_v50 = vpop.permute.xlu0 %474 }
  0xe2   :  { %11758 = vst [vmem:[#allocation16_spill] sm:$0xff] %v7342_v50 }
  0xe3   :  { %v7315_v54 = vpop.permute.xlu1 %491 }
  0xe4   :  { %11754 = vst [vmem:[#allocation12_spill] sm:$0xff] %v7315_v54  ;;  %1059 = vrot.lane.b32.xlu1 %v7043_v9, %s6897_s27  ;;  %1618 = vperm.xlu0 %6752, %v7020_v0  }
  0xe7   :  { %v7322_v57 = vpop.permute.xlu1 %537 }
  0xe8   :  { %11755 = vst [vmem:[#allocation13_spill] sm:$0xff] %v7322_v57  ;;  %1063 = vrot.lane.b32.xlu1 %v7055_v12, %s6897_s27  ;;  %1529 = vrot.lane.b32.xlu0 %v7050_v10, %s6916_s17 }
  0xe9   :  { %v2707_v58 = vpop.f32.mrb[0].mxu0  ;;  %6753 = vset.pattern.permute.xlu0 %v6917_v59  ;;  %v7351_v59 = vpop.permute.xlu0 %385 }
  0xea   :  { %v2708_v14 = vadd.f32 %v2707_v58, %v7200_v52  ;;  %v6248_v24 = vpop.f32.mrb[1].mxu0  ;;  %v6919_v58 = vmov 31  }
  0xeb   :  { %v7328_v4 = vpop.permute.xlu1 %539 }
  0xec   :  { %11756 = vst [vmem:[#allocation14_spill] sm:$0xff] %v7328_v4  ;;  %1109 = vrot.lane.b32.xlu1 %v7038_v8, %s6899_s28  ;;  %5909 = vmatmul.mubr.msk.f32.vlgmr.msra.gmra.mrb[0].mxu1 %vm2729_vm3, %v2708_v14 }
  0xed   :  { %5912 = vmatmul.mubr.msk.f32.vlgmr.msra.gmra.mrb[2].mxu0 %vm2729_vm3, %v2708_v14  ;;  %1670 = vperm.xlu0 %6753, %v7020_v0   ;;  %v7359_v24 = vpop.permute.xlu0 %526 }
  0xee   :  { %11761 = vst [vmem:[#allocation19_spill] sm:$0xff] %v7359_v24 }
  0xef   :  { %v7338_v37 = vpop.permute.xlu1 %543 }
  0xf0   :  { %11757 = vst [vmem:[#allocation15_spill] sm:$0xff] %v7338_v37  ;;  %1111 = vrot.lane.b32.xlu1 %v7043_v9, %s6899_s28  ;;  %v7858_v37 = vld [vmem:[%s11468_s2 + $0x21] ss:$8 sm:$0xf] }
  0xf1   :  { %1581 = vrot.lane.b32.xlu0 %v7050_v10, %s6918_s18  ;;  %v7370_v22 = vpop.permute.xlu0 %437  ;;  %11863 = vst [vmem:[#allocation118_spill] sm:$0xff] %v7858_v37 }
  0xf2   :  { %6754 = vset.pattern.permute.xlu0 %v6919_v58  ;;  %v6921_v58 = vmov 32  }
  0xf3   :  { %v7346_v52 = vpop.permute.xlu1 %589 }
  0xf4   :  { %11759 = vst [vmem:[#allocation17_spill] sm:$0xff] %v7346_v52  ;;  %1115 = vrot.lane.b32.xlu1 %v7055_v12, %s6899_s28  ;;  %s6936_s28 = smov 96   ;;  %v7873_v52 = vld [vmem:[%s11468_s2 + $0x22] ss:$8 sm:$0xf] }
  0xf5   :  { %1722 = vperm.xlu0 %6754, %v7020_v0   ;;  %11864 = vst [vmem:[#allocation119_spill] sm:$0xff] %v7873_v52 }
  0xf7   :  { %v7353_v14 = vpop.permute.xlu1 %591 }
  0xf8   :  { %11760 = vst [vmem:[#allocation18_spill] sm:$0xff] %v7353_v14  ;;  %1161 = vrot.lane.b32.xlu1 %v7038_v8, %s6902_s29  ;;  %v7797_v14 = vld [vmem:[%s11468_s2 + $0x6] ss:$8 sm:$0xf] }
  0xf9   :  { %1633 = vrot.lane.b32.xlu0 %v7050_v10, %s11577_s19 }
  0xfa   :  { %6755 = vset.pattern.permute.xlu0 %v6921_v58  ;;  %v7378_v58 = vpop.permute.xlu0 %578 }
  0xfb   :  { %v7361_v23 = vpop.permute.xlu1 %595  ;;  %11765 = vst [vmem:[#allocation23_spill] sm:$0xff] %v7378_v58 }
  0xfc   :  { %11762 = vst [vmem:[#allocation20_spill] sm:$0xff] %v7361_v23  ;;  %1163 = vrot.lane.b32.xlu1 %v7043_v9, %s6902_s29  ;;  %v7750_v23 = vld [vmem:[%s11468_s2 + $0x3] ss:$8 sm:$0xf] }
  0xfd   :  { %1774 = vperm.xlu0 %6755, %v7020_v0  }
  0xfe   :  { %v7387_v19 = vpop.permute.xlu0 %489 }
  0xff   :  { %v7366_v21 = vpop.permute.xlu1 %641 }
 0x100   :  { %11763 = vst [vmem:[#allocation21_spill] sm:$0xff] %v7366_v21  ;;  %1167 = vrot.lane.b32.xlu1 %v7055_v12, %s6902_s29  ;;  %s6938_s29 = smov 95  }
 0x101   :  { %1685 = vrot.lane.b32.xlu0 %v7050_v10, %s11575_s20 }
 0x102   :  { %6756 = vset.pattern.permute.xlu0 %v6923_v5  ;;  %v6925_v5 = vmov 34   ;;  %v7394_v3 = vpop.permute.xlu0 %630 }
 0x103   :  { %v7374_v20 = vpop.permute.xlu1 %643  ;;  %11768 = vst [vmem:[#allocation26_spill] sm:$0xff] %v7394_v3 }
 0x104   :  { %11764 = vst [vmem:[#allocation22_spill] sm:$0xff] %v7374_v20  ;;  %1213 = vrot.lane.b32.xlu1 %v7038_v8, %s6904_s3 }
 0x105   :  { %1826 = vperm.xlu0 %6756, %v7020_v0  }
 0x107   :  { %v7381_v13 = vpop.permute.xlu1 %647 }
 0x108   :  { %11766 = vst [vmem:[#allocation24_spill] sm:$0xff] %v7381_v13  ;;  %1215 = vrot.lane.b32.xlu1 %v7043_v9, %s6904_s3 }
 0x109   :  { %1737 = vrot.lane.b32.xlu0 %v7050_v10, %s11573_s21 }
 0x10a   :  { %6757 = vset.pattern.permute.xlu0 %v6925_v5  ;;  %v7406_v5 = vpop.permute.xlu0 %541 }
 0x10b   :  { %v7389_v48 = vpop.permute.xlu1 %693  ;;  %11771 = vst [vmem:[#allocation29_spill] sm:$0xff] %v7406_v5  ;;  %v7827_v5 = vld [vmem:[%s11468_s2 + $0x20] ss:$8 sm:$0xf] }
 0x10c   :  { %11767 = vst [vmem:[#allocation25_spill] sm:$0xff] %v7389_v48  ;;  %1219 = vrot.lane.b32.xlu1 %v7055_v12, %s6904_s3  ;;  %s6944_s3 = smov 83   ;;  %11862 = vst [vmem:[#allocation117_spill] sm:$0xff] %v7827_v5 }
 0x10d   :  { %1878 = vperm.xlu0 %6757, %v7020_v0  }
 0x10e   :  { %v7413_v48 = vpop.permute.xlu0 %682 }
 0x10f   :  { %v7396_v61 = vpop.permute.xlu1 %695  ;;  %11773 = vst [vmem:[#allocation31_spill] sm:$0xff] %v7413_v48 }
 0x110   :  { %11769 = vst [vmem:[#allocation27_spill] sm:$0xff] %v7396_v61  ;;  %1265 = vrot.lane.b32.xlu1 %v7038_v8, %s6906_s13 }
 0x111   :  { %1789 = vrot.lane.b32.xlu0 %v7050_v10, %s6926_s22 }
 0x112   :  { %6758 = vset.pattern.permute.xlu0 %v6927_v2  ;;  %v6929_v2 = vmov 36   ;;  %v7421_v61 = vpop.permute.xlu0 %593 }
 0x113   :  { %v7402_v60 = vpop.permute.xlu1 %699  ;;  %11775 = vst [vmem:[#allocation33_spill] sm:$0xff] %v7421_v61  ;;  %v7784_v61 = vld [vmem:[%s11468_s2 + $0x5] ss:$8 sm:$0xf] }
 0x114   :  { %11770 = vst [vmem:[#allocation28_spill] sm:$0xff] %v7402_v60  ;;  %1267 = vrot.lane.b32.xlu1 %v7043_v9, %s6906_s13 }
 0x115   :  { %1930 = vperm.xlu0 %6758, %v7020_v0  }
 0x117   :  { %v7409_v1 = vpop.permute.xlu1 %745 }
 0x118   :  { %11772 = vst [vmem:[#allocation30_spill] sm:$0xff] %v7409_v1  ;;  %1271 = vrot.lane.b32.xlu1 %v7055_v12, %s6906_s13  ;;  %v7428_v1 = vpop.permute.xlu0 %734  ;;  %s6946_s13 = smov 82  }
 0x119   :  { %1841 = vrot.lane.b32.xlu0 %v7050_v10, %s6928_s5  ;;  %11777 = vst [vmem:[#allocation35_spill] sm:$0xff] %v7428_v1 }
 0x11a   :  { %6759 = vset.pattern.permute.xlu0 %v6929_v2 }
 0x11b   :  { %v7417_v60 = vpop.permute.xlu1 %747 }
 0x11c   :  { %11774 = vst [vmem:[#allocation32_spill] sm:$0xff] %v7417_v60  ;;  %1317 = vrot.lane.b32.xlu1 %v7038_v8, %s6908_s14  ;;  %v7440_v60 = vpop.permute.xlu0 %645 }
 0x11d   :  { %1982 = vperm.xlu0 %6759, %v7020_v0   ;;  %11780 = vst [vmem:[#allocation38_spill] sm:$0xff] %v7440_v60  ;;  %v7764_v60 = vld [vmem:[%s11468_s2 + $0x4] ss:$8 sm:$0xf] }
 0x11f   :  { %v7423_v13 = vpop.permute.xlu1 %751 }
 0x120   :  { %11776 = vst [vmem:[#allocation34_spill] sm:$0xff] %v7423_v13  ;;  %1319 = vrot.lane.b32.xlu1 %v7043_v9, %s6908_s14  ;;  %v6931_v13 = vmov 37  }
 0x121   :  { %1893 = vrot.lane.b32.xlu0 %v7050_v10, %s6930_s1 }
 0x122   :  { %6760 = vset.pattern.permute.xlu0 %v6931_v13 }
 0x123   :  { %v7430_v48 = vpop.permute.xlu1 %797 }
 0x124   :  { %11778 = vst [vmem:[#allocation36_spill] sm:$0xff] %v7430_v48  ;;  %1323 = vrot.lane.b32.xlu1 %v7055_v12, %s6908_s14  ;;  %v7447_v48 = vpop.permute.xlu0 %786 }
 0x125   :  { %2034 = vperm.xlu0 %6760, %v7020_v0   ;;  %11782 = vst [vmem:[#allocation40_spill] sm:$0xff] %v7447_v48 }
 0x127   :  { %v7436_v2 = vpop.permute.xlu1 %799 }
 0x128   :  { %11779 = vst [vmem:[#allocation37_spill] sm:$0xff] %v7436_v2  ;;  %1369 = vrot.lane.b32.xlu1 %v7038_v8, %s11579_s6  ;;  %v7459_v2 = vpop.permute.xlu0 %697 }
 0x129   :  { %1945 = vrot.lane.b32.xlu0 %v7050_v10, %s6932_s23  ;;  %11785 = vst [vmem:[#allocation43_spill] sm:$0xff] %v7459_v2 }
 0x12b   :  { %v7442_v3 = vpop.permute.xlu1 %803 }
 0x12c   :  { %11781 = vst [vmem:[#allocation39_spill] sm:$0xff] %v7442_v3  ;;  %1371 = vrot.lane.b32.xlu1 %v7043_v9, %s11579_s6  ;;  %v6933_v3 = vmov 38  }
 0x12d   :  { %6761 = vset.pattern.permute.xlu0 %v6933_v3 }
 0x12e   :  { %2086 = vperm.xlu0 %6761, %v7020_v0  }
 0x12f   :  { %v7449_v1 = vpop.permute.xlu1 %849 }
 0x130   :  { %11783 = vst [vmem:[#allocation41_spill] sm:$0xff] %v7449_v1  ;;  %1375 = vrot.lane.b32.xlu1 %v7055_v12, %s11579_s6  ;;  %v7466_v1 = vpop.permute.xlu0 %838 }
 0x131   :  { %11787 = vst [vmem:[#allocation45_spill] sm:$0xff] %v7466_v1 }
 0x132   :  { %1997 = vrot.lane.b32.xlu0 %v7050_v10, %s6934_s24 }
 0x133   :  { %v7455_v13 = vpop.permute.xlu1 %851 }
 0x134   :  { %11784 = vst [vmem:[#allocation42_spill] sm:$0xff] %v7455_v13  ;;  %1421 = vrot.lane.b32.xlu1 %v7038_v8, %s6912_s15  ;;  %v7478_v13 = vpop.permute.xlu0 %749 }
 0x135   :  { %11790 = vst [vmem:[#allocation48_spill] sm:$0xff] %v7478_v13 }
 0x137   :  { %v7461_v21 = vpop.permute.xlu1 %855 }
 0x138   :  { %11786 = vst [vmem:[#allocation44_spill] sm:$0xff] %v7461_v21  ;;  %1423 = vrot.lane.b32.xlu1 %v7043_v9, %s6912_s15  ;;  %v6935_v21 = vmov 39  }
 0x139   :  { %6762 = vset.pattern.permute.xlu0 %v6935_v21 }
 0x13a   :  { %2138 = vperm.xlu0 %6762, %v7020_v0  }
 0x13b   :  { %v7468_v48 = vpop.permute.xlu1 %901 }
 0x13c   :  { %11788 = vst [vmem:[#allocation46_spill] sm:$0xff] %v7468_v48  ;;  %1427 = vrot.lane.b32.xlu1 %v7055_v12, %s6912_s15  ;;  %v7485_v48 = vpop.permute.xlu0 %890  ;;  %s6948_s15 = smov 81  }
 0x13d   :  { %11792 = vst [vmem:[#allocation50_spill] sm:$0xff] %v7485_v48 }
 0x13e   :  { %2049 = vrot.lane.b32.xlu0 %v7050_v10, %s6936_s28 }
 0x13f   :  { %v7474_v3 = vpop.permute.xlu1 %903 }
 0x140   :  { %11789 = vst [vmem:[#allocation47_spill] sm:$0xff] %v7474_v3  ;;  %1473 = vrot.lane.b32.xlu1 %v7038_v8, %s6914_s16  ;;  %v7497_v3 = vpop.permute.xlu0 %801 }
 0x141   :  { %11795 = vst [vmem:[#allocation53_spill] sm:$0xff] %v7497_v3 }
 0x143   :  { %v7480_v2 = vpop.permute.xlu1 %907 }
 0x144   :  { %11791 = vst [vmem:[#allocation49_spill] sm:$0xff] %v7480_v2  ;;  %1475 = vrot.lane.b32.xlu1 %v7043_v9, %s6914_s16  ;;  %v6937_v2 = vmov 40  }
 0x145   :  { %6763 = vset.pattern.permute.xlu0 %v6937_v2 }
 0x146   :  { %2190 = vperm.xlu0 %6763, %v7020_v0  }
 0x147   :  { %v7487_v1 = vpop.permute.xlu1 %953 }
 0x148   :  { %11793 = vst [vmem:[#allocation51_spill] sm:$0xff] %v7487_v1  ;;  %1479 = vrot.lane.b32.xlu1 %v7055_v12, %s6914_s16  ;;  %v7504_v1 = vpop.permute.xlu0 %942  ;;  %s6950_s16 = smov 80  }
 0x149   :  { %11797 = vst [vmem:[#allocation55_spill] sm:$0xff] %v7504_v1 }
 0x14a   :  { %2101 = vrot.lane.b32.xlu0 %v7050_v10, %s6938_s29 }
 0x14b   :  { %v7493_v21 = vpop.permute.xlu1 %955 }
 0x14c   :  { %11794 = vst [vmem:[#allocation52_spill] sm:$0xff] %v7493_v21  ;;  %1525 = vrot.lane.b32.xlu1 %v7038_v8, %s6916_s17  ;;  %v7516_v21 = vpop.permute.xlu0 %853 }
 0x14d   :  { %11800 = vst [vmem:[#allocation58_spill] sm:$0xff] %v7516_v21 }
 0x14f   :  { %v7499_v13 = vpop.permute.xlu1 %959 }
 0x150   :  { %11796 = vst [vmem:[#allocation54_spill] sm:$0xff] %v7499_v13  ;;  %1527 = vrot.lane.b32.xlu1 %v7043_v9, %s6916_s17  ;;  %v6939_v13 = vmov 41  }
 0x151   :  { %6764 = vset.pattern.permute.xlu0 %v6939_v13 }
 0x152   :  { %2242 = vperm.xlu0 %6764, %v7020_v0  }
 0x153   :  { %v7506_v48 = vpop.permute.xlu1 %1005 }
 0x154   :  { %11798 = vst [vmem:[#allocation56_spill] sm:$0xff] %v7506_v48  ;;  %1531 = vrot.lane.b32.xlu1 %v7055_v12, %s6916_s17  ;;  %v7523_v48 = vpop.permute.xlu0 %994  ;;  %s6952_s17 = smov 79  }
 0x155   :  { %11802 = vst [vmem:[#allocation60_spill] sm:$0xff] %v7523_v48 }
 0x156   :  { %2153 = vrot.lane.b32.xlu0 %v7050_v10, %s6940_s30 }
 0x157   :  { %v7512_v2 = vpop.permute.xlu1 %1007 }
 0x158   :  { %11799 = vst [vmem:[#allocation57_spill] sm:$0xff] %v7512_v2  ;;  %1577 = vrot.lane.b32.xlu1 %v7038_v8, %s6918_s18  ;;  %v7535_v2 = vpop.permute.xlu0 %905 }
 0x159   :  { %11805 = vst [vmem:[#allocation63_spill] sm:$0xff] %v7535_v2 }
 0x15b   :  { %v7518_v3 = vpop.permute.xlu1 %1011 }
 0x15c   :  { %11801 = vst [vmem:[#allocation59_spill] sm:$0xff] %v7518_v3  ;;  %1579 = vrot.lane.b32.xlu1 %v7043_v9, %s6918_s18  ;;  %v6941_v3 = vmov 42  }
 0x15d   :  { %6765 = vset.pattern.permute.xlu0 %v6941_v3 }
 0x15e   :  { %2294 = vperm.xlu0 %6765, %v7020_v0  }
 0x15f   :  { %v7525_v1 = vpop.permute.xlu1 %1057 }
 0x160   :  { %11803 = vst [vmem:[#allocation61_spill] sm:$0xff] %v7525_v1  ;;  %1583 = vrot.lane.b32.xlu1 %v7055_v12, %s6918_s18  ;;  %v7542_v1 = vpop.permute.xlu0 %1046  ;;  %s6954_s18 = smov 78  }
 0x161   :  { %11807 = vst [vmem:[#allocation65_spill] sm:$0xff] %v7542_v1 }
 0x162   :  { %2205 = vrot.lane.b32.xlu0 %v7050_v10, %s6942_s12 }
 0x163   :  { %v7531_v13 = vpop.permute.xlu1 %1059 }
 0x164   :  { %11804 = vst [vmem:[#allocation62_spill] sm:$0xff] %v7531_v13  ;;  %1629 = vrot.lane.b32.xlu1 %v7038_v8, %s11577_s19  ;;  %v7554_v13 = vpop.permute.xlu0 %957 }
 0x165   :  { %11810 = vst [vmem:[#allocation68_spill] sm:$0xff] %v7554_v13 }
 0x167   :  { %v7537_v21 = vpop.permute.xlu1 %1063 }
 0x168   :  { %11806 = vst [vmem:[#allocation64_spill] sm:$0xff] %v7537_v21  ;;  %1631 = vrot.lane.b32.xlu1 %v7043_v9, %s11577_s19  ;;  %v6943_v21 = vmov 43  }
 0x169   :  { %6766 = vset.pattern.permute.xlu0 %v6943_v21 }
 0x16a   :  { %2346 = vperm.xlu0 %6766, %v7020_v0  }
 0x16b   :  { %v7544_v48 = vpop.permute.xlu1 %1109 }
 0x16c   :  { %11808 = vst [vmem:[#allocation66_spill] sm:$0xff] %v7544_v48  ;;  %1635 = vrot.lane.b32.xlu1 %v7055_v12, %s11577_s19  ;;  %v7561_v48 = vpop.permute.xlu0 %1098 }
 0x16d   :  { %11812 = vst [vmem:[#allocation70_spill] sm:$0xff] %v7561_v48 }
 0x16e   :  { %2257 = vrot.lane.b32.xlu0 %v7050_v10, %s6944_s3 }
 0x16f   :  { %v7550_v3 = vpop.permute.xlu1 %1111 }
 0x170   :  { %11809 = vst [vmem:[#allocation67_spill] sm:$0xff] %v7550_v3  ;;  %1681 = vrot.lane.b32.xlu1 %v7038_v8, %s11575_s20  ;;  %v7573_v3 = vpop.permute.xlu0 %1009 }
 0x171   :  { %11815 = vst [vmem:[#allocation73_spill] sm:$0xff] %v7573_v3 }
 0x173   :  { %v7556_v2 = vpop.permute.xlu1 %1115 }
 0x174   :  { %11811 = vst [vmem:[#allocation69_spill] sm:$0xff] %v7556_v2  ;;  %1683 = vrot.lane.b32.xlu1 %v7043_v9, %s11575_s20  ;;  %v6945_v2 = vmov 44  }
 0x175   :  { %6767 = vset.pattern.permute.xlu0 %v6945_v2 }
 0x176   :  { %2398 = vperm.xlu0 %6767, %v7020_v0  }
 0x177   :  { %v7563_v1 = vpop.permute.xlu1 %1161 }
 0x178   :  { %11813 = vst [vmem:[#allocation71_spill] sm:$0xff] %v7563_v1  ;;  %1687 = vrot.lane.b32.xlu1 %v7055_v12, %s11575_s20  ;;  %v7580_v1 = vpop.permute.xlu0 %1150 }
 0x179   :  { %11817 = vst [vmem:[#allocation75_spill] sm:$0xff] %v7580_v1 }
 0x17a   :  { %2309 = vrot.lane.b32.xlu0 %v7050_v10, %s6946_s13 }
 0x17b   :  { %v7569_v21 = vpop.permute.xlu1 %1163 }
 0x17c   :  { %11814 = vst [vmem:[#allocation72_spill] sm:$0xff] %v7569_v21  ;;  %1733 = vrot.lane.b32.xlu1 %v7038_v8, %s11573_s21  ;;  %v7592_v21 = vpop.permute.xlu0 %1061 }
 0x17d   :  { %11820 = vst [vmem:[#allocation78_spill] sm:$0xff] %v7592_v21 }
 0x17f   :  { %v7575_v13 = vpop.permute.xlu1 %1167 }
 0x180   :  { %11816 = vst [vmem:[#allocation74_spill] sm:$0xff] %v7575_v13  ;;  %1735 = vrot.lane.b32.xlu1 %v7043_v9, %s11573_s21  ;;  %v6947_v13 = vmov 45  }
 0x181   :  { %6768 = vset.pattern.permute.xlu0 %v6947_v13 }
 0x182   :  { %2450 = vperm.xlu0 %6768, %v7020_v0  }
 0x183   :  { %v7582_v48 = vpop.permute.xlu1 %1213 }
 0x184   :  { %11818 = vst [vmem:[#allocation76_spill] sm:$0xff] %v7582_v48  ;;  %1739 = vrot.lane.b32.xlu1 %v7055_v12, %s11573_s21  ;;  %v7599_v48 = vpop.permute.xlu0 %1202 }
 0x185   :  { %11822 = vst [vmem:[#allocation80_spill] sm:$0xff] %v7599_v48 }
 0x186   :  { %2361 = vrot.lane.b32.xlu0 %v7050_v10, %s6948_s15 }
 0x187   :  { %v7588_v2 = vpop.permute.xlu1 %1215 }
 0x188   :  { %11819 = vst [vmem:[#allocation77_spill] sm:$0xff] %v7588_v2  ;;  %1785 = vrot.lane.b32.xlu1 %v7038_v8, %s6926_s22  ;;  %v6949_v2 = vmov 46  }
 0x189   :  { %6769 = vset.pattern.permute.xlu0 %v6949_v2 }
 0x18b   :  { %v7594_v3 = vpop.permute.xlu1 %1219 }
 0x18c   :  { %11821 = vst [vmem:[#allocation79_spill] sm:$0xff] %v7594_v3  ;;  %1787 = vrot.lane.b32.xlu1 %v7043_v9, %s6926_s22  ;;  %v7611_v3 = vpop.permute.xlu0 %1113  ;;  %2502 = vperm.xlu0 %6769, %v7020_v0  }
 0x18d   :  { %11825 = vst [vmem:[#allocation83_spill] sm:$0xff] %v7611_v3 }
 0x18f   :  { %v7601_v1 = vpop.permute.xlu1 %1265 }
 0x190   :  { %11823 = vst [vmem:[#allocation81_spill] sm:$0xff] %v7601_v1  ;;  %1791 = vrot.lane.b32.xlu1 %v7055_v12, %s6926_s22  ;;  %v7618_v1 = vpop.permute.xlu0 %1254  ;;  %2413 = vrot.lane.b32.xlu0 %v7050_v10, %s6950_s16  ;;  %s6955_s22 = smov 77  }
 0x191   :  { %11827 = vst [vmem:[#allocation85_spill] sm:$0xff] %v7618_v1 }
 0x193   :  { %v7607_v13 = vpop.permute.xlu1 %1267 }
 0x194   :  { %11824 = vst [vmem:[#allocation82_spill] sm:$0xff] %v7607_v13  ;;  %1837 = vrot.lane.b32.xlu1 %v7038_v8, %s6928_s5  ;;  %v6951_v13 = vmov 47   ;;  %v7626_v2 = vpop.permute.xlu0 %1165 }
 0x195   :  { %6770 = vset.pattern.permute.xlu0 %v6951_v13  ;;  %11829 = vst [vmem:[#allocation87_spill] sm:$0xff] %v7626_v2 }
 0x196   :  { %2554 = vperm.xlu0 %6770, %v7020_v0  }
 0x197   :  { %v7613_v21 = vpop.permute.xlu1 %1271 }
 0x198   :  { %11826 = vst [vmem:[#allocation84_spill] sm:$0xff] %v7613_v21  ;;  %1839 = vrot.lane.b32.xlu1 %v7043_v9, %s6928_s5 }
 0x19b   :  { %v7620_v48 = vpop.permute.xlu1 %1317 }
 0x19c   :  { %11828 = vst [vmem:[#allocation86_spill] sm:$0xff] %v7620_v48  ;;  %1843 = vrot.lane.b32.xlu1 %v7055_v12, %s6928_s5  ;;  %v7635_v48 = vpop.permute.xlu0 %1306  ;;  %2465 = vrot.lane.b32.xlu0 %v7050_v10, %s6952_s17  ;;  %s12330_s5 = smov 111  }
 0x19d   :  { %11832 = vst [vmem:[#allocation90_spill] sm:$0xff] %v7635_v48  ;;  %v11836_v48 = vmov 0  }
 0x19f   :  { %v7628_v21 = vpop.permute.xlu1 %1319 }
 0x1a0   :  { %11830 = vst [vmem:[#allocation88_spill] sm:$0xff] %v7628_v21  ;;  %1889 = vrot.lane.b32.xlu1 %v7038_v8, %s6930_s1  ;;  %v6953_v21 = vmov 48   ;;  %v7645_v2 = vpop.permute.xlu0 %1217 }
 0x1a1   :  { %6771 = vset.pattern.permute.xlu0 %v6953_v21  ;;  %11834 = vst [vmem:[#allocation92_spill] sm:$0xff] %v7645_v2  ;;  %v7810_v2 = vld [vmem:[%s11468_s2 + $0x7] ss:$8 sm:$0xf] }
 0x1a2   :  { %2606 = vperm.xlu0 %6771, %v7020_v0   ;;  %11859 = vst [vmem:[#allocation114_spill] sm:$0xff] %v7810_v2 }
 0x1a3   :  { %v7633_v1 = vpop.permute.xlu1 %1323 }
 0x1a4   :  { %11831 = vst [vmem:[#allocation89_spill] sm:$0xff] %v7633_v1  ;;  %1891 = vrot.lane.b32.xlu1 %v7043_v9, %s6930_s1  ;;  %v7655_v20 = vpop.permute.xlu0 %1358 }
 0x1a5   :  { %11838 = vst [vmem:[#allocation95_spill] sm:$0xff] %v7655_v20 }
 0x1a6   :  { %6772 = vset.pattern.permute.xlu0 %v11836_v48 }
 0x1a7   :  { %v7641_v13 = vpop.permute.xlu1 %1369  ;;  %2517 = vrot.lane.b32.xlu0 %v7050_v10, %s6954_s18 }
 0x1a8   :  { %11833 = vst [vmem:[#allocation91_spill] sm:$0xff] %v7641_v13  ;;  %1895 = vrot.lane.b32.xlu1 %v7055_v12, %s6930_s1  ;;  %v7667_v13 = vpop.permute.xlu0 %1269 }
 0x1a9   :  { %11841 = vst [vmem:[#allocation98_spill] sm:$0xff] %v7667_v13 }
 0x1ab   :  { %v7648_v1 = vpop.permute.xlu1 %1371  ;;  %2565 = vrot.lane.b32.xlu0 %v7038_v8, %s6955_s22 }
 0x1ac   :  { %11835 = vst [vmem:[#allocation93_spill] sm:$0xff] %v7648_v1  ;;  %1941 = vrot.lane.b32.xlu1 %v7038_v8, %s6932_s23 }
 0x1af   :  { %v7653_v3 = vpop.permute.xlu1 %1375 }
 0x1b0   :  { %11837 = vst [vmem:[#allocation94_spill] sm:$0xff] %v7653_v3  ;;  %1943 = vrot.lane.b32.xlu1 %v7043_v9, %s6932_s23  ;;  %v7675_v3 = vpop.permute.xlu0 %1410  ;;  %2569 = vrot.lane.b32.xlu0 %v7050_v10, %s6955_s22  ;;  %v6817_v10 = vld [vmem:[%s11473_s7] sm:$0xff] }
 0x1b1   :  { %11843 = vst [vmem:[#allocation100_spill] sm:$0xff] %v7675_v3  ;;  %v11849_v3 = vlaneseq }
 0x1b3   :  { %v7661_v21 = vpop.permute.xlu1 %1421  ;;  %v7694_v1 = vand.u32 127, %v11849_v3 }
 0x1b4   :  { %11839 = vst [vmem:[#allocation96_spill] sm:$0xff] %v7661_v21  ;;  %1947 = vrot.lane.b32.xlu1 %v7055_v12, %s6932_s23  ;;  %s12327_s23 = smov 127  }
 0x1b5   :  { %11850 = vst [vmem:[#allocation106_spill] sm:$0xff] %v7694_v1  ;;  %vm130_vm4 = vcmp.lt.s32.totalorder %v7694_v1, 51  ;;  %vm181_vm5 = vcmp.lt.s32.totalorder %v7694_v1, 50  ;;  %vm233_vm6 = vcmp.lt.s32.totalorder %v7694_v1, 49  ;;  %vm285_vm7 = vcmp.lt.s32.totalorder %v7694_v1, 48 }
 0x1b6   :  { %v134_v24 = vsel %vm130_vm4, %v7257_v15, %v7147_v35  ;;  %vm337_vm8 = vcmp.lt.s32.totalorder %v7694_v1, 47  ;;  %vm389_vm9 = vcmp.lt.s32.totalorder %v7694_v1, 46  ;;  %vm441_vm10 = vcmp.lt.s32.totalorder %v7694_v1, 45 }
 0x1b7   :  { %v7665_v0 = vpop.permute.xlu1 %1423  ;;  %vm493_vm11 = vcmp.lt.s32.totalorder %v7694_v1, 35  ;;  %vm545_vm12 = vcmp.lt.s32.totalorder %v7694_v1, 34  ;;  %vm597_vm13 = vcmp.lt.s32.totalorder %v7694_v1, 33  ;;  %vm649_vm14 = vcmp.lt.s32.totalorder %v7694_v1, 32 }
 0x1b8   :  { %11840 = vst [vmem:[#allocation97_spill] sm:$0xff] %v7665_v0  ;;  %1993 = vrot.lane.b32.xlu1 %v7038_v8, %s6934_s24  ;;  %vm701_vm15 = vcmp.lt.s32.totalorder %v7694_v1, 31  ;;  %vm753_vm0 = vcmp.lt.s32.totalorder %v7694_v1, 30 }
 0x1bb   :  { %v7673_v48 = vpop.permute.xlu1 %1427 }
 0x1bc   :  { %11842 = vst [vmem:[#allocation99_spill] sm:$0xff] %v7673_v48  ;;  %1995 = vrot.lane.b32.xlu1 %v7043_v9, %s6934_s24  ;;  %v7696_v9 = vpop.permute.xlu0 %1321  ;;  %2619 = vperm.xlu0 %6772, %v6817_v10   ;;  %v7723_v10 = vld [vmem:[%s11466_s0] sm:$0xff] }
 0x1bd   :  { %11851 = vst [vmem:[#allocation107_spill] sm:$0xff] %v7696_v9 }
 0x1bf   :  { %v7681_v21 = vpop.permute.xlu1 %1473  ;;  %v7685_v0 = vpop.f32.mrb[0].mxu1 }
 0x1c0   :  { %11844 = vst [vmem:[#allocation101_spill] sm:$0xff] %v7681_v21  ;;  %1999 = vrot.lane.b32.xlu1 %v7055_v12, %s6934_s24  ;;  %11845 = vst [vmem:[#allocation102_spill] sm:$0xff] %v7685_v0  ;;  %v7687_v20 = vpop.f32.mrb[2].mxu0  ;;  %v7689_v8 = vpop.f32.mrb[1].mxu1  ;;  %v7702_v12 = vsub.s32 1, %v7205_v53  ;;  %v7705_v0 = vsub.s32 0, %v7205_v53 }
 0x1c1   :  { %11846 = vst [vmem:[#allocation103_spill] sm:$0xff] %v7687_v20  ;;  %11847 = vst [vmem:[#allocation104_spill] sm:$0xff] %v7689_v8  ;;  %v7691_v48 = vpop.f32.mrb[3].mxu0  ;;  %v7708_v20 = vsub.s32 2, %v7205_v53  ;;  %v7812_v57 = vpop.permute.xlu0 %1462  ;;  %s12328_s24 = smov 113  }
 0x1c2   :  { %11848 = vst [vmem:[#allocation105_spill] sm:$0xff] %v7691_v48  ;;  %11852 = vst [vmem:[#allocation108_spill] sm:$0xff] %v7702_v12  ;;  %v7711_v48 = vsub.s32 3, %v7205_v53  ;;  %v7718_v8 = vld [vmem:[%s11468_s2] ss:$8 sm:$0xf] }
 0x1c3   :  { %11853 = vst [vmem:[#allocation109_spill] sm:$0xff] %v7705_v0  ;;  %11854 = vst [vmem:[#allocation110_spill] sm:$0xff] %v7708_v20  ;;  %v7713_v3 = vpop.permute.xlu1 %1475  ;;  %v7730_v53 = vld [vmem:[%s11468_s2 + $0x1] ss:$8 sm:$0xf]  ;;  %v144_v9 = vrot.slane %v7718_v8, %v7702_v12  ;;  %v140_v13 = vrot.slane %v7718_v8, %v7705_v0 }
 0x1c4   :  { %11855 = vst [vmem:[#allocation111_spill] sm:$0xff] %v7711_v48  ;;  %11856 = vst [vmem:[#allocation112_spill] sm:$0xff] %v7713_v3  ;;  %2045 = vrot.lane.b32.xlu1 %v7723_v10, %s6936_s28  ;;  %v7736_v21 = vld [vmem:[%s11468_s2 + $0x2] ss:$8 sm:$0xf]  ;;  %v11857_v3 = vmov 4   ;;  %v11871_v37 = vrot.slane %v7730_v53, %v7708_v20 }
 0x1c5   :  { %6774 = vset.pattern.permute.xlu0 %v11857_v3  ;;  %11860 = vst [vmem:[#allocation115_spill] sm:$0xff] %v7812_v57  ;;  %v133_v57 = vsel %vm130_vm4, %v7147_v35, %v7248_v7  ;;  %v132_v35 = vsel %vm130_vm4, %v7248_v7, %v7152_v36  ;;  %v7897_v46 = vpop.permute.xlu0 %1373  ;;  %v157_v54 = vmul.f32 %v140_v13, %v134_v24 }
 0x1c6   :  { %v158_v2 = vmul.f32 %v144_v9, %v133_v57  ;;  %11866 = vst [vmem:[#allocation121_spill] sm:$0xff] %v7897_v46  ;;  %v183_v24 = vsel %vm181_vm5, %v7163_v39, %v7277_v26  ;;  %v184_v13 = vsel %vm181_vm5, %v7268_v18, %v7163_v39  ;;  %v7933_v39 = vld [vmem:[%s11468_s2 + $0x23] ss:$8 sm:$0xf]  ;;  %v185_v7 = vsel %vm181_vm5, %v7169_v41, %v7268_v18 }
 0x1c7   :  { %v7752_v58 = vpop.permute.xlu1 %1479  ;;  %v11870_v46 = vrot.slane %v7730_v53, %v7702_v12  ;;  %v211_v5 = vmul.f32 %v11871_v37, %v183_v24 }
 0x1c8   :  { %11858 = vst [vmem:[#allocation113_spill] sm:$0xff] %v7752_v58  ;;  %v7769_v58 = vld [vmem:[%s11466_s0 + $0x8] sm:$0xff] }
 0x1c9   :  { %2047 = vrot.lane.b32.xlu1 %v7769_v58, %s6936_s28  ;;  %v117_v57 = vmul.f32 %v7769_v58, %v7220_v62  ;;  %v7948_v50 = vpop.permute.xlu0 %1514  ;;  %v210_v52 = vmul.f32 %v11870_v46, %v184_v13  ;;  %v7995_v46 = vld [vmem:[%s11468_s2 + $0x24] ss:$8 sm:$0xf] }
 0x1cb   :  { %v7814_v4 = vpop.permute.xlu1 %1525 }
 0x1cc   :  { %11861 = vst [vmem:[#allocation116_spill] sm:$0xff] %v7814_v4  ;;  %v7832_v4 = vld [vmem:[%s11466_s0 + $0x18] sm:$0xff] }
 0x1cd   :  { %2051 = vrot.lane.b32.xlu1 %v7832_v4, %s6936_s28  ;;  %v119_v18 = vmul.f32 %v7832_v4, %v7220_v62 }
 0x1cf   :  { %v7875_v40 = vpop.permute.xlu1 %1527 }
 0x1d0   :  { %11865 = vst [vmem:[#allocation120_spill] sm:$0xff] %v7875_v40  ;;  %v131_v40 = vsel %vm130_vm4, %v7152_v36, %v7257_v15  ;;  %v11867_v15 = vrot.slane %v7718_v8, %v7708_v20  ;;  %v116_v36 = vmul.f32 %v7723_v10, %v7220_v62  ;;  %vm805_vm4 = vcmp.lt.s32.totalorder %v7694_v1, 29 }
 0x1d1   :  { %2097 = vrot.lane.b32.xlu1 %v7723_v10, %s6938_s29 }
 0x1d2   :  { %v159_v9 = vmul.f32 %v11867_v15, %v132_v35  ;;  %v11869_v35 = vrot.slane %v7718_v8, %v7711_v48 }
 0x1d3   :  { %v7919_v3 = vpop.permute.xlu1 %1531 }
 0x1d4   :  { %11868 = vst [vmem:[#allocation122_spill] sm:$0xff] %v7919_v3  ;;  %v160_v15 = vmul.f32 %v11869_v35, %v131_v40  ;;  %v6821_v40 = vld [vmem:[%s11466_s0 + $0x10] sm:$0xff]  ;;  %v166_v35 = vmul.f32 %v7136_v32, %v158_v2  ;;  %v165_v3 = vmul.f32 %v7136_v32, %v157_v54  ;;  %v182_v2 = vsel %vm181_vm5, %v7277_v26, %v7169_v41 }
 0x1d5   :  { %2099 = vrot.lane.b32.xlu1 %v7769_v58, %s6938_s29  ;;  %v118_v8 = vmul.f32 %v6821_v40, %v7220_v62  ;;  %v167_v40 = vmul.f32 %v7136_v32, %v159_v9  ;;  %v11872_v41 = vrot.slane %v7730_v53, %v7705_v0  ;;  %v235_v62 = vsel %vm233_vm6, %v7180_v44, %v7296_v34 }
 0x1d6   :  { %v168_v37 = vmul.f32 %v7136_v32, %v160_v15  ;;  %v236_v9 = vsel %vm233_vm6, %v7174_v42, %v7180_v44  ;;  %v170_v24 = vadd.f32 %v166_v35, %v117_v57  ;;  %v11873_v32 = vrot.slane %v7730_v53, %v7711_v48 }
 0x1d7   :  { %v7969_v13 = vpop.permute.xlu1 %1577  ;;  %v209_v26 = vmul.f32 %v11872_v41, %v185_v7  ;;  %v169_v44 = vadd.f32 %v165_v3, %v116_v36  ;;  %v218_v54 = vmul.f32 %v7141_v33, %v210_v52  ;;  %v219_v57 = vmul.f32 %v7141_v33, %v211_v5  ;;  %v8013_v5 = vpop.permute.xlu0 %1425 }
 0x1d8   :  { %v212_v15 = vmul.f32 %v11873_v32, %v182_v2  ;;  %v237_v53 = vsel %vm233_vm6, %v7185_v45, %v7174_v42  ;;  %v171_v35 = vadd.f32 %v167_v40, %v118_v8  ;;  %v11874_v2 = vrot.slane %v7736_v21, %v7702_v12 }
 0x1d9   :  { %2103 = vrot.lane.b32.xlu1 %v7832_v4, %s6938_s29  ;;  %v11875_v41 = vrot.slane %v7736_v21, %v7708_v20  ;;  %v234_v52 = vsel %vm233_vm6, %v7296_v34, %v7185_v45  ;;  %v172_v36 = vadd.f32 %v168_v37, %v119_v18  ;;  %v217_v42 = vmul.f32 %v7141_v33, %v209_v26 }
 0x1da   :  { %v262_v32 = vmul.f32 %v11874_v2, %v236_v9  ;;  %v220_v45 = vmul.f32 %v7141_v33, %v212_v15  ;;  %v11876_v34 = vrot.slane %v7736_v21, %v7705_v0  ;;  %v287_v18 = vsel %vm285_vm7, %v7196_v49, %v7313_v51 }
 0x1db   :  { %v263_v7 = vmul.f32 %v11875_v41, %v235_v62  ;;  %v8015_v3 = vpop.permute.xlu1 %1579  ;;  %v288_v37 = vsel %vm285_vm7, %v7191_v47, %v7196_v49  ;;  %v222_v26 = vadd.f32 %v218_v54, %v170_v24  ;;  %v223_v9 = vadd.f32 %v219_v57, %v171_v35  ;;  %v8055_v54 = vpop.permute.xlu0 %1566 }
 0x1dc   :  { %v261_v62 = vmul.f32 %v11876_v34, %v237_v53  ;;  %v11877_v41 = vrot.slane %v7736_v21, %v7711_v48  ;;  %v8045_v53 = vld [vmem:[%s11468_s2 + $0x25] ss:$8 sm:$0xf]  ;;  %v270_v2 = vmul.f32 %v7158_v38, %v262_v32  ;;  %v289_v49 = vsel %vm285_vm7, %v7207_v56, %v7191_v47 }
 0x1dd   :  { %2149 = vrot.lane.b32.xlu1 %v7723_v10, %s6940_s30  ;;  %v271_v34 = vmul.f32 %v7158_v38, %v263_v7  ;;  %v221_v57 = vadd.f32 %v217_v42, %v169_v44  ;;  %v11878_v35 = vrot.slane %v7750_v23, %v7702_v12  ;;  %v11879_v7 = vrot.slane %v7750_v23, %v7708_v20 }
 0x1de   :  { %v264_v33 = vmul.f32 %v11877_v41, %v234_v52  ;;  %v286_v47 = vsel %vm285_vm7, %v7313_v51, %v7207_v56  ;;  %v224_v41 = vadd.f32 %v220_v45, %v172_v36  ;;  %v269_v21 = vmul.f32 %v7158_v38, %v261_v62 }
 0x1df   :  { %v8057_v24 = vpop.permute.xlu1 %1583  ;;  %v314_v52 = vmul.f32 %v11878_v35, %v288_v37  ;;  %v315_v32 = vmul.f32 %v11879_v7, %v287_v18  ;;  %v11880_v37 = vrot.slane %v7750_v23, %v7705_v0  ;;  %v339_v51 = vsel %vm337_vm8, %v7238_v6, %v7333_v28 }
 0x1e0   :  { %v272_v18 = vmul.f32 %v7158_v38, %v264_v33  ;;  %v340_v36 = vsel %vm337_vm8, %v7222_v63, %v7238_v6  ;;  %v274_v45 = vadd.f32 %v270_v2, %v222_v26  ;;  %v275_v62 = vadd.f32 %v271_v34, %v223_v9  ;;  %v11914_v33 = vld [vmem:[#allocation19_spill] sm:$0xff] }
 0x1e1   :  { %2151 = vrot.lane.b32.xlu1 %v7769_v58, %s6940_s30  ;;  %v313_v56 = vmul.f32 %v11880_v37, %v289_v49  ;;  %v11881_v35 = vrot.slane %v7750_v23, %v7711_v48  ;;  %v8097_v49 = vld [vmem:[%s11468_s2 + $0x26] ss:$8 sm:$0xf]  ;;  %v322_v37 = vmul.f32 %v7285_v29, %v314_v52  ;;  %v323_v6 = vmul.f32 %v7285_v29, %v315_v32 }
 0x1e2   :  { %v341_v23 = vsel %vm337_vm8, %v7251_v11, %v7222_v63  ;;  %v273_v9 = vadd.f32 %v269_v21, %v221_v57  ;;  %v11882_v2 = vrot.slane %v7764_v60, %v7702_v12  ;;  %v11883_v52 = vrot.slane %v7764_v60, %v7708_v20 }
 0x1e3   :  { %v316_v38 = vmul.f32 %v11881_v35, %v286_v47  ;;  %v8099_v7 = vpop.permute.xlu1 %1629  ;;  %v338_v63 = vsel %vm337_vm8, %v7333_v28, %v7251_v11  ;;  %v8121_v47 = vpop.permute.xlu0 %1477  ;;  %v276_v35 = vadd.f32 %v272_v18, %v224_v41  ;;  %v321_v26 = vmul.f32 %v7285_v29, %v313_v56 }
 0x1e4   :  { %v366_v34 = vmul.f32 %v11882_v2, %v340_v36  ;;  %v367_v32 = vmul.f32 %v11883_v52, %v339_v51  ;;  %v11884_v36 = vrot.slane %v7764_v60, %v7705_v0  ;;  %v391_v11 = vsel %vm389_vm9, %v7264_v17, %v7351_v59  ;;  %v8151_v52 = vld [vmem:[%s11468_s2 + $0x27] ss:$8 sm:$0xf] }
 0x1e5   :  { %2155 = vrot.lane.b32.xlu1 %v7832_v4, %s6940_s30  ;;  %v324_v51 = vmul.f32 %v7285_v29, %v316_v38  ;;  %v392_v28 = vsel %vm389_vm9, %v7259_v16, %v7264_v17  ;;  %v326_v18 = vadd.f32 %v322_v37, %v274_v45  ;;  %v327_v56 = vadd.f32 %v323_v6, %v275_v62 }
 0x1e6   :  { %v365_v2 = vmul.f32 %v11884_v36, %v341_v23  ;;  %v11885_v29 = vrot.slane %v7764_v60, %v7711_v48  ;;  %v374_v17 = vmul.f32 %v7304_v43, %v366_v34  ;;  %v375_v45 = vmul.f32 %v7304_v43, %v367_v32 }
 0x1e7   :  { %v8141_v41 = vpop.permute.xlu1 %1631  ;;  %v393_v60 = vsel %vm389_vm9, %v7272_v25, %v7259_v16  ;;  %v8163_v37 = vpop.permute.xlu0 %1618  ;;  %v325_v6 = vadd.f32 %v321_v26, %v273_v9  ;;  %v11887_v34 = vrot.slane %v7784_v61, %v7708_v20  ;;  %v390_v32 = vsel %vm389_vm9, %v7351_v59, %v7272_v25 }
 0x1e8   :  { %v368_v38 = vmul.f32 %v11885_v29, %v338_v63  ;;  %v11886_v63 = vrot.slane %v7784_v61, %v7702_v12  ;;  %v328_v16 = vadd.f32 %v324_v51, %v276_v35  ;;  %v373_v23 = vmul.f32 %v7304_v43, %v365_v2 }
 0x1e9   :  { %2201 = vrot.lane.b32.xlu1 %v7723_v10, %s6942_s12  ;;  %v419_v29 = vmul.f32 %v11887_v34, %v391_v11  ;;  %v443_v25 = vsel %vm441_vm10, %v7287_v30, %v7370_v22  ;;  %v444_v59 = vsel %vm441_vm10, %v7279_v27, %v7287_v30  ;;  %v378_v35 = vadd.f32 %v374_v17, %v326_v18 }
 0x1ea   :  { %v418_v36 = vmul.f32 %v11886_v63, %v392_v28  ;;  %v376_v11 = vmul.f32 %v7304_v43, %v368_v38  ;;  %v11888_v63 = vrot.slane %v7784_v61, %v7705_v0  ;;  %v379_v51 = vadd.f32 %v375_v45, %v327_v56 }
 0x1eb   :  { %v8181_v28 = vpop.permute.xlu1 %1635  ;;  %v11889_v43 = vrot.slane %v7784_v61, %v7711_v48  ;;  %v427_v30 = vmul.f32 %v7320_v55, %v419_v29  ;;  %v445_v18 = vsel %vm441_vm10, %v7292_v31, %v7279_v27  ;;  %v377_v56 = vadd.f32 %v373_v23, %v325_v6  ;;  %v8223_v29 = vpop.permute.xlu0 %1529 }
 0x1ec   :  { %v417_v34 = vmul.f32 %v11888_v63, %v393_v60  ;;  %v5874_v60 = vld [vmem:[%s11468_s2 + $0x40] ss:$8 sm:$0xf]  ;;  %v426_v63 = vmul.f32 %v7320_v55, %v418_v36  ;;  %v11890_v17 = vrot.slane %v7797_v14, %v7702_v12  ;;  %v442_v36 = vsel %vm441_vm10, %v7370_v22, %v7292_v31 }
 0x1ed   :  { %2203 = vrot.lane.b32.xlu1 %v7769_v58, %s6942_s12  ;;  %v420_v2 = vmul.f32 %v11889_v43, %v390_v32  ;;  %v11891_v32 = vrot.slane %v7797_v14, %v7708_v20  ;;  %v380_v38 = vadd.f32 %v376_v11, %v328_v16  ;;  %v8230_v6 = vrot.slane %v5874_v60, %v7702_v12  ;;  %v11896_v16 = vld [vmem:[#allocation11_spill] sm:$0xff] }
 0x1ee   :  { %v470_v45 = vmul.f32 %v11890_v17, %v444_v59  ;;  %v425_v23 = vmul.f32 %v7320_v55, %v417_v34  ;;  %v8233_v59 = vrot.slane %v5874_v60, %v7708_v20  ;;  %v11895_v31 = vrot.slane %v7797_v14, %v7705_v0  ;;  %v11897_v34 = vld [vmem:[#allocation10_spill] sm:$0xff] }
 0x1ef   :  { %v471_v43 = vmul.f32 %v11891_v32, %v443_v25  ;;  %v8225_v27 = vpop.permute.xlu1 %1681  ;;  %11893 = vst [vmem:[#allocation124_spill] sm:$0xff] %v8230_v6  ;;  %v428_v22 = vmul.f32 %v7320_v55, %v420_v2  ;;  %v495_v11 = vsel %vm493_vm11, %v11896_v16, %v7387_v19  ;;  %v496_v17 = vsel %vm493_vm11, %v11897_v34, %v11896_v16  ;;  %v11901_v16 = vld [vmem:[#allocation12_spill] sm:$0xff] }
 0x1f0   :  { %11892 = vst [vmem:[#allocation123_spill] sm:$0xff] %v8225_v27  ;;  %11894 = vst [vmem:[#allocation125_spill] sm:$0xff] %v8233_v59  ;;  %v469_v25 = vmul.f32 %v11895_v31, %v445_v18  ;;  %v430_v32 = vadd.f32 %v426_v63, %v378_v35  ;;  %v431_v61 = vadd.f32 %v427_v30, %v379_v51  ;;  %v8258_v18 = vld [vmem:[%s11468_s2 + $0x41] ss:$8 sm:$0xf]  ;;  %vm857_vm5 = vcmp.lt.s32.totalorder %v7694_v1, 19 }
 0x1f1   :  { %2207 = vrot.lane.b32.xlu1 %v7832_v4, %s6942_s12  ;;  %v11898_v9 = vrot.slane %v7797_v14, %v7711_v48  ;;  %v8253_v2 = vrot.slane %v5874_v60, %v7705_v0  ;;  %v11900_v31 = vld [vmem:[#allocation16_spill] sm:$0xff]  ;;  %v497_v35 = vsel %vm493_vm11, %v11901_v16, %v11897_v34  ;;  %v8267_v14 = vrot.slane %v5874_v60, %v7711_v48  ;;  %v11905_v30 = vld [vmem:[#allocation114_spill] sm:$0xff]  ;;  %s12329_s12 = smov 112  }
 0x1f2   :  { %v478_v26 = vmul.f32 %v11900_v31, %v470_v45  ;;  %v479_v62 = vmul.f32 %v11900_v31, %v471_v43  ;;  %v429_v63 = vadd.f32 %v425_v23, %v377_v56  ;;  %v11907_v45 = vrot.slane %v11905_v30, %v7708_v20  ;;  %v11982_v27 = vld [vmem:[#allocation44_spill] sm:$0xff] }
 0x1f3   :  { %v472_v55 = vmul.f32 %v11898_v9, %v442_v36  ;;  %11899 = vst [vmem:[#allocation11_spill] sm:$0xff] %v8253_v2  ;;  %11902 = vst [vmem:[#allocation10_spill] sm:$0xff] %v8267_v14  ;;  %v8269_v9 = vpop.permute.xlu0 %1670  ;;  %v8271_v51 = vpop.permute.xlu1 %1683  ;;  %v11906_v36 = vrot.slane %v11905_v30, %v7702_v12  ;;  %v494_v34 = vsel %vm493_vm11, %v7387_v19, %v11901_v16  ;;  %v11909_v16 = vld [vmem:[#allocation29_spill] sm:$0xff]  ;;  %vm909_vm6 = vcmp.lt.s32.totalorder %v7694_v1, 18 }
 0x1f4   :  { %11903 = vst [vmem:[#allocation16_spill] sm:$0xff] %v8269_v9  ;;  %11904 = vst [vmem:[#allocation12_spill] sm:$0xff] %v8271_v51  ;;  %v523_v43 = vmul.f32 %v11907_v45, %v495_v11  ;;  %v432_v60 = vadd.f32 %v428_v22, %v380_v38  ;;  %v477_v21 = vmul.f32 %v11900_v31, %v469_v25  ;;  %v11911_v22 = vld [vmem:[#allocation13_spill] sm:$0xff]  ;;  %vm961_vm7 = vcmp.lt.s32.totalorder %v7694_v1, 17 }
 0x1f5   :  { %v522_v57 = vmul.f32 %v11906_v36, %v496_v17  ;;  %2253 = vrot.lane.b32.xlu1 %v7723_v10, %s6944_s3  ;;  %v480_v11 = vmul.f32 %v11900_v31, %v472_v55  ;;  %v11908_v17 = vrot.slane %v11905_v30, %v7705_v0  ;;  %v11910_v36 = vld [vmem:[#allocation14_spill] sm:$0xff]  ;;  %v482_v45 = vadd.f32 %v478_v26, %v430_v32 }
 0x1f6   :  { %v547_v38 = vsel %vm545_vm12, %v11910_v36, %v11909_v16  ;;  %v548_v25 = vsel %vm545_vm12, %v11911_v22, %v11910_v36  ;;  %v483_v56 = vadd.f32 %v479_v62, %v431_v61  ;;  %v11912_v23 = vrot.slane %v11905_v30, %v7711_v48  ;;  %v11915_v62 = vld [vmem:[#allocation15_spill] sm:$0xff]  ;;  %v11916_v30 = vld [vmem:[#allocation117_spill] sm:$0xff] }
 0x1f7   :  { %v521_v19 = vmul.f32 %v11908_v17, %v497_v35  ;;  %v8311_v35 = vld [vmem:[%s11468_s2 + $0x42] ss:$8 sm:$0xf]  ;;  %v8313_v17 = vpop.permute.xlu1 %1687  ;;  %v530_v42 = vmul.f32 %v11914_v33, %v522_v57  ;;  %v531_v36 = vmul.f32 %v11914_v33, %v523_v43  ;;  %v549_v26 = vsel %vm545_vm12, %v11915_v62, %v11911_v22  ;;  %v8335_v31 = vpop.permute.xlu0 %1581 }
 0x1f8   :  { %v524_v55 = vmul.f32 %v11912_v23, %v494_v34  ;;  %11913 = vst [vmem:[#allocation114_spill] sm:$0xff] %v8313_v17  ;;  %v481_v32 = vadd.f32 %v477_v21, %v429_v63  ;;  %v11917_v34 = vrot.slane %v11916_v30, %v7702_v12  ;;  %v11918_v57 = vrot.slane %v11916_v30, %v7708_v20 }
 0x1f9   :  { %2255 = vrot.lane.b32.xlu1 %v7769_v58, %s6944_s3  ;;  %v546_v22 = vsel %vm545_vm12, %v11909_v16, %v11915_v62  ;;  %v484_v61 = vadd.f32 %v480_v11, %v432_v60  ;;  %v529_v44 = vmul.f32 %v11914_v33, %v521_v19  ;;  %v11920_v16 = vld [vmem:[#allocation33_spill] sm:$0xff]  ;;  %v11921_v62 = vld [vmem:[#allocation18_spill] sm:$0xff]  ;;  %v534_v21 = vadd.f32 %v530_v42, %v482_v45 }
 0x1fa   :  { %v574_v23 = vmul.f32 %v11917_v34, %v548_v25  ;;  %v575_v43 = vmul.f32 %v11918_v57, %v547_v38  ;;  %v532_v38 = vmul.f32 %v11914_v33, %v524_v55  ;;  %v11919_v25 = vrot.slane %v11916_v30, %v7705_v0  ;;  %v11922_v11 = vld [vmem:[#allocation17_spill] sm:$0xff] }
 0x1fb   :  { %v599_v60 = vsel %vm597_vm13, %v11921_v62, %v11920_v16  ;;  %v600_v19 = vsel %vm597_vm13, %v11922_v11, %v11921_v62  ;;  %v8355_v57 = vpop.permute.xlu1 %1733  ;;  %v535_v63 = vadd.f32 %v531_v36, %v483_v56  ;;  %v11924_v33 = vrot.slane %v11916_v30, %v7711_v48  ;;  %v11925_v62 = vld [vmem:[#allocation23_spill] sm:$0xff]  ;;  %v11926_v56 = vld [vmem:[#allocation20_spill] sm:$0xff]  ;;  %v8377_v30 = vpop.permute.xlu0 %1722  ;;  %v11937_v36 = vld [vmem:[#allocation26_spill] sm:$0xff] }
 0x1fc   :  { %v573_v34 = vmul.f32 %v11919_v25, %v549_v26  ;;  %11923 = vst [vmem:[#allocation29_spill] sm:$0xff] %v8355_v57  ;;  %v8365_v25 = vld [vmem:[%s11468_s2 + $0x43] ss:$8 sm:$0xf]  ;;  %v582_v15 = vmul.f32 %v11925_v62, %v574_v23  ;;  %v583_v42 = vmul.f32 %v11925_v62, %v575_v43  ;;  %v601_v45 = vsel %vm597_vm13, %v11926_v56, %v11922_v11 }
 0x1fd   :  { %v576_v55 = vmul.f32 %v11924_v33, %v546_v22  ;;  %2259 = vrot.lane.b32.xlu1 %v7832_v4, %s6944_s3  ;;  %11927 = vst [vmem:[#allocation14_spill] sm:$0xff] %v8377_v30  ;;  %v533_v22 = vadd.f32 %v529_v44, %v481_v32  ;;  %v11928_v33 = vld [vmem:[#allocation118_spill] sm:$0xff]  ;;  %v598_v43 = vsel %vm597_vm13, %v11920_v16, %v11926_v56  ;;  %vm1013_vm8 = vcmp.lt.s32.totalorder %v7694_v1, 16 }
 0x1fe   :  { %v11929_v26 = vrot.slane %v11928_v33, %v7702_v12  ;;  %v11930_v23 = vrot.slane %v11928_v33, %v7708_v20  ;;  %v536_v11 = vadd.f32 %v532_v38, %v484_v61  ;;  %v581_v57 = vmul.f32 %v11925_v62, %v573_v34  ;;  %v11933_v16 = vld [vmem:[#allocation38_spill] sm:$0xff]  ;;  %v11935_v34 = vld [vmem:[#allocation21_spill] sm:$0xff] }
 0x1ff   :  { %v11934_v61 = vld [vmem:[#allocation22_spill] sm:$0xff]  ;;  %v586_v32 = vadd.f32 %v582_v15, %v534_v21  ;;  %v587_v44 = vadd.f32 %v583_v42, %v535_v63  ;;  %v11939_v42 = vld [vmem:[#allocation119_spill] sm:$0xff]  ;;  %vm1065_vm9 = vcmp.lt.s32.totalorder %v7694_v1, 15  ;;  %vm1117_vm10 = vcmp.lt.s32.totalorder %v7694_v1, 14 }
 0x200   :  { %v626_v40 = vmul.f32 %v11929_v26, %v600_v19  ;;  %v627_v8 = vmul.f32 %v11930_v23, %v599_v60  ;;  %v8395_v19 = vpop.permute.xlu1 %1735  ;;  %v584_v60 = vmul.f32 %v11925_v62, %v576_v55  ;;  %v11932_v26 = vrot.slane %v11928_v33, %v7705_v0 }
 0x201   :  { %11931 = vst [vmem:[#allocation13_spill] sm:$0xff] %v8395_v19  ;;  %v651_v38 = vsel %vm649_vm14, %v11934_v61, %v11933_v16  ;;  %v652_v56 = vsel %vm649_vm14, %v11935_v34, %v11934_v61  ;;  %2305 = vrot.lane.b32.xlu1 %v7723_v10, %s6946_s13  ;;  %v11936_v55 = vrot.slane %v11928_v33, %v7711_v48  ;;  %v11938_v19 = vld [vmem:[#allocation24_spill] sm:$0xff]  ;;  %vm1169_vm11 = vcmp.lt.s32.totalorder %v7694_v1, 13 }
 0x202   :  { %v625_v23 = vmul.f32 %v11932_v26, %v601_v45  ;;  %v8419_v26 = vld [vmem:[%s11468_s2 + $0x44] ss:$8 sm:$0xf]  ;;  %v634_v30 = vmul.f32 %v11937_v36, %v626_v40  ;;  %v635_v61 = vmul.f32 %v11937_v36, %v627_v8  ;;  %v653_v15 = vsel %vm649_vm14, %v11938_v19, %v11935_v34  ;;  %v8439_v40 = vpop.permute.xlu0 %1633 }
 0x203   :  { %v628_v62 = vmul.f32 %v11936_v55, %v598_v43  ;;  %v585_v63 = vadd.f32 %v581_v57, %v533_v22  ;;  %v11940_v33 = vrot.slane %v11939_v42, %v7702_v12  ;;  %v11941_v55 = vrot.slane %v11939_v42, %v7708_v20 }
 0x204   :  { %v650_v8 = vsel %vm649_vm14, %v11933_v16, %v11938_v19  ;;  %v8441_v34 = vpop.permute.xlu1 %1739  ;;  %v588_v17 = vadd.f32 %v584_v60, %v536_v11  ;;  %v633_v57 = vmul.f32 %v11937_v36, %v625_v23  ;;  %v11943_v16 = vrot.slane %v11939_v42, %v7705_v0  ;;  %v11944_v11 = vld [vmem:[#allocation43_spill] sm:$0xff] }
 0x205   :  { %v678_v43 = vmul.f32 %v11940_v33, %v652_v56  ;;  %v679_v45 = vmul.f32 %v11941_v55, %v651_v38  ;;  %11942 = vst [vmem:[#allocation19_spill] sm:$0xff] %v8441_v34  ;;  %2307 = vrot.lane.b32.xlu1 %v7769_v58, %s6946_s13  ;;  %v636_v19 = vmul.f32 %v11937_v36, %v628_v62  ;;  %v11945_v60 = vld [vmem:[#allocation27_spill] sm:$0xff]  ;;  %v11946_v33 = vld [vmem:[#allocation25_spill] sm:$0xff]  ;;  %vm1221_vm12 = vcmp.lt.s32.totalorder %v7694_v1, 3 }
 0x206   :  { %v677_v56 = vmul.f32 %v11943_v16, %v653_v15  ;;  %v703_v23 = vsel %vm701_vm15, %v11945_v60, %v11944_v11  ;;  %v704_v55 = vsel %vm701_vm15, %v11946_v33, %v11945_v60  ;;  %v638_v38 = vadd.f32 %v634_v30, %v586_v32  ;;  %v8471_v15 = vld [vmem:[%s11468_s2 + $0x45] ss:$8 sm:$0xf]  ;;  %v8481_v32 = vpop.permute.xlu0 %1774 }
 0x207   :  { %v639_v22 = vadd.f32 %v635_v61, %v587_v44  ;;  %v11947_v21 = vrot.slane %v11939_v42, %v7711_v48  ;;  %v11948_v16 = vld [vmem:[#allocation31_spill] sm:$0xff]  ;;  %v11949_v60 = vld [vmem:[#allocation28_spill] sm:$0xff]  ;;  %11950 = vst [vmem:[#allocation15_spill] sm:$0xff] %v8481_v32  ;;  %v11952_v42 = vrot.slane %v7933_v39, %v7702_v12  ;;  %v640_v44 = vadd.f32 %v636_v19, %v588_v17  ;;  %v11957_v19 = vld [vmem:[#allocation30_spill] sm:$0xff] }
 0x208   :  { %v686_v34 = vmul.f32 %v11948_v16, %v678_v43  ;;  %v687_v9 = vmul.f32 %v11948_v16, %v679_v45  ;;  %v705_v30 = vsel %vm701_vm15, %v11949_v60, %v11946_v33  ;;  %v8483_v61 = vpop.permute.xlu1 %1785  ;;  %v11953_v45 = vrot.slane %v7933_v39, %v7708_v20  ;;  %v11960_v32 = vld [vmem:[#allocation35_spill] sm:$0xff] }
 0x209   :  { %v680_v36 = vmul.f32 %v11947_v21, %v650_v8  ;;  %11951 = vst [vmem:[#allocation117_spill] sm:$0xff] %v8483_v61  ;;  %v637_v21 = vadd.f32 %v633_v57, %v585_v63  ;;  %v730_v8 = vmul.f32 %v11952_v42, %v704_v55  ;;  %v702_v33 = vsel %vm701_vm15, %v11944_v11, %v11949_v60  ;;  %v11955_v60 = vld [vmem:[#allocation48_spill] sm:$0xff] }
 0x20a   :  { %v731_v43 = vmul.f32 %v11953_v45, %v703_v23  ;;  %2311 = vrot.lane.b32.xlu1 %v7832_v4, %s6946_s13  ;;  %v685_v62 = vmul.f32 %v11948_v16, %v677_v56  ;;  %v11954_v55 = vrot.slane %v7933_v39, %v7705_v0  ;;  %v11956_v42 = vld [vmem:[#allocation32_spill] sm:$0xff]  ;;  %v690_v45 = vadd.f32 %v686_v34, %v638_v38 }
 0x20b   :  { %v688_v23 = vmul.f32 %v11948_v16, %v680_v36  ;;  %v755_v17 = vsel %vm753_vm0, %v11956_v42, %v11955_v60  ;;  %v756_v56 = vsel %vm753_vm0, %v11957_v19, %v11956_v42  ;;  %v691_v63 = vadd.f32 %v687_v9, %v639_v22  ;;  %v11961_v9 = vld [vmem:[#allocation34_spill] sm:$0xff] }
 0x20c   :  { %v729_v11 = vmul.f32 %v11954_v55, %v705_v30  ;;  %v11958_v57 = vrot.slane %v7933_v39, %v7711_v48  ;;  %v8523_v30 = vld [vmem:[%s11468_s2 + $0x46] ss:$8 sm:$0xf]  ;;  %v8525_v55 = vpop.permute.xlu1 %1787  ;;  %v738_v61 = vmul.f32 %v11960_v32, %v730_v8  ;;  %v739_v42 = vmul.f32 %v11960_v32, %v731_v43 }
 0x20d   :  { %11959 = vst [vmem:[#allocation33_spill] sm:$0xff] %v8525_v55  ;;  %v757_v39 = vsel %vm753_vm0, %v11961_v9, %v11957_v19  ;;  %v689_v22 = vadd.f32 %v685_v62, %v637_v21  ;;  %v11962_v38 = vrot.slane %v7995_v46, %v7702_v12  ;;  %v11963_v8 = vrot.slane %v7995_v46, %v7708_v20  ;;  %v8548_v19 = vpop.permute.xlu0 %1685 }
 0x20e   :  { %v732_v36 = vmul.f32 %v11958_v57, %v702_v33  ;;  %2357 = vrot.lane.b32.xlu1 %v7723_v10, %s6948_s15  ;;  %v754_v57 = vsel %vm753_vm0, %v11955_v60, %v11961_v9  ;;  %v692_v34 = vadd.f32 %v688_v23, %v640_v44  ;;  %v737_v62 = vmul.f32 %v11960_v32, %v729_v11  ;;  %v11965_v60 = vld [vmem:[#allocation53_spill] sm:$0xff]  ;;  %v11967_v44 = vld [vmem:[#allocation36_spill] sm:$0xff] }
 0x20f   :  { %v782_v33 = vmul.f32 %v11962_v38, %v756_v56  ;;  %v783_v43 = vmul.f32 %v11963_v8, %v755_v17  ;;  %v11964_v38 = vrot.slane %v7995_v46, %v7705_v0  ;;  %v11966_v9 = vld [vmem:[#allocation37_spill] sm:$0xff]  ;;  %v742_v21 = vadd.f32 %v738_v61, %v690_v45 }
 0x210   :  { %v740_v17 = vmul.f32 %v11960_v32, %v732_v36  ;;  %v807_v16 = vsel %vm805_vm4, %v11966_v9, %v11965_v60  ;;  %v808_v23 = vsel %vm805_vm4, %v11967_v44, %v11966_v9  ;;  %v8567_v11 = vpop.permute.xlu1 %1791  ;;  %v743_v56 = vadd.f32 %v739_v42, %v691_v63  ;;  %v11970_v9 = vld [vmem:[#allocation40_spill] sm:$0xff]  ;;  %v11971_v63 = vld [vmem:[#allocation39_spill] sm:$0xff] }
 0x211   :  { %v781_v8 = vmul.f32 %v11964_v38, %v757_v39  ;;  %11968 = vst [vmem:[#allocation18_spill] sm:$0xff] %v8567_v11  ;;  %v11969_v32 = vrot.slane %v7995_v46, %v7711_v48  ;;  %v8577_v38 = vld [vmem:[%s11468_s2 + $0x47] ss:$8 sm:$0xf]  ;;  %v790_v55 = vmul.f32 %v11970_v9, %v782_v33  ;;  %v791_v61 = vmul.f32 %v11970_v9, %v783_v43  ;;  %v8589_v42 = vpop.permute.xlu0 %1826 }
 0x212   :  { %2359 = vrot.lane.b32.xlu1 %v7769_v58, %s6948_s15  ;;  %v809_v46 = vsel %vm805_vm4, %v11971_v63, %v11967_v44  ;;  %11972 = vst [vmem:[#allocation17_spill] sm:$0xff] %v8589_v42  ;;  %v11974_v33 = vrot.slane %v8045_v53, %v7708_v20  ;;  %v806_v43 = vsel %vm805_vm4, %v11965_v60, %v11971_v63  ;;  %v11977_v60 = vld [vmem:[#allocation58_spill] sm:$0xff]  ;;  %v11981_v42 = vld [vmem:[#allocation45_spill] sm:$0xff]  ;;  %vm1273_vm13 = vcmp.lt.s32.totalorder %v7694_v1, 2 }
 0x213   :  { %v784_v36 = vmul.f32 %v11969_v32, %v754_v57  ;;  %v741_v57 = vadd.f32 %v737_v62, %v689_v22  ;;  %v11973_v32 = vrot.slane %v8045_v53, %v7702_v12  ;;  %v744_v44 = vadd.f32 %v740_v17, %v692_v34  ;;  %v11978_v63 = vld [vmem:[#allocation42_spill] sm:$0xff]  ;;  %v11979_v17 = vld [vmem:[#allocation41_spill] sm:$0xff] }
 0x214   :  { %v835_v11 = vmul.f32 %v11974_v33, %v807_v16  ;;  %v789_v45 = vmul.f32 %v11970_v9, %v781_v8  ;;  %v859_v34 = vsel %vm857_vm5, %v11978_v63, %v11977_v60  ;;  %v860_v8 = vsel %vm857_vm5, %v11979_v17, %v11978_v63 }
 0x215   :  { %v834_v39 = vmul.f32 %v11973_v32, %v808_v23  ;;  %v8607_v23 = vpop.permute.xlu1 %1837  ;;  %v792_v16 = vmul.f32 %v11970_v9, %v784_v36  ;;  %v11976_v32 = vrot.slane %v8045_v53, %v7705_v0  ;;  %v794_v62 = vadd.f32 %v790_v55, %v742_v21 }
 0x216   :  { %11975 = vst [vmem:[#allocation23_spill] sm:$0xff] %v8607_v23  ;;  %2363 = vrot.lane.b32.xlu1 %v7832_v4, %s6948_s15  ;;  %v795_v22 = vadd.f32 %v791_v61, %v743_v56  ;;  %v11980_v36 = vrot.slane %v8045_v53, %v7711_v48  ;;  %v843_v63 = vmul.f32 %v11981_v42, %v835_v11  ;;  %vm1325_vm14 = vcmp.lt.s32.totalorder %v7694_v1, 1 }
 0x217   :  { %v833_v33 = vmul.f32 %v11976_v32, %v809_v46  ;;  %v8631_v32 = vld [vmem:[%s11468_s2 + $0x61] ss:$8 sm:$0xf]  ;;  %v842_v23 = vmul.f32 %v11981_v42, %v834_v39  ;;  %v858_v55 = vsel %vm857_vm5, %v11977_v60, %v11982_v27  ;;  %v861_v53 = vsel %vm857_vm5, %v11982_v27, %v11979_v17 }
 0x218   :  { %v836_v9 = vmul.f32 %v11980_v36, %v806_v43  ;;  %v793_v21 = vadd.f32 %v789_v45, %v741_v57  ;;  %v11983_v56 = vrot.slane %v8097_v49, %v7702_v12  ;;  %v11984_v39 = vrot.slane %v8097_v49, %v7708_v20  ;;  %v8651_v36 = vpop.permute.xlu0 %1737  ;;  %v11987_v27 = vld [vmem:[#allocation47_spill] sm:$0xff]  ;;  %v11988_v45 = vld [vmem:[#allocation46_spill] sm:$0xff] }
 0x219   :  { %11985 = vst [vmem:[#allocation20_spill] sm:$0xff] %v8651_v36  ;;  %v8653_v60 = vpop.permute.xlu1 %1839  ;;  %v796_v46 = vadd.f32 %v792_v16, %v744_v44  ;;  %v841_v51 = vmul.f32 %v11981_v42, %v833_v33  ;;  %v912_v57 = vsel %vm909_vm6, %v11988_v45, %v11987_v27  ;;  %v11989_v44 = vrot.slane %v8097_v49, %v7705_v0 }
 0x21a   :  { %v886_v61 = vmul.f32 %v11983_v56, %v860_v8  ;;  %v887_v43 = vmul.f32 %v11984_v39, %v859_v34  ;;  %11986 = vst [vmem:[#allocation118_spill] sm:$0xff] %v8653_v60  ;;  %2409 = vrot.lane.b32.xlu1 %v7723_v10, %s6950_s16  ;;  %v844_v17 = vmul.f32 %v11981_v42, %v836_v9  ;;  %v11991_v56 = vld [vmem:[#allocation63_spill] sm:$0xff]  ;;  %v11992_v9 = vld [vmem:[#allocation50_spill] sm:$0xff]  ;;  %vm1377_vm15 = vcmp.lt.s32.totalorder %v7694_v1, 127 }
 0x21b   :  { %v885_v16 = vmul.f32 %v11989_v44, %v861_v53  ;;  %v11990_v33 = vrot.slane %v8097_v49, %v7711_v48  ;;  %v911_v39 = vsel %vm909_vm6, %v11987_v27, %v11991_v56  ;;  %v846_v11 = vadd.f32 %v842_v23, %v794_v62  ;;  %v11994_v44 = vld [vmem:[#allocation49_spill] sm:$0xff]  ;;  %v11999_v42 = vld [vmem:[#allocation51_spill] sm:$0xff] }
 0x21c   :  { %v847_v34 = vadd.f32 %v843_v63, %v795_v22  ;;  %v894_v36 = vmul.f32 %v11992_v9, %v886_v61  ;;  %v895_v53 = vmul.f32 %v11992_v9, %v887_v43  ;;  %v11993_v49 = vrot.slane %v8151_v52, %v7702_v12  ;;  %v8693_v22 = vld [vmem:[%s11468_s2 + $0x62] ss:$8 sm:$0xf]  ;;  %v8695_v23 = vpop.permute.xlu0 %1878 }
 0x21d   :  { %v888_v8 = vmul.f32 %v11990_v33, %v858_v55  ;;  %v913_v62 = vsel %vm909_vm6, %v11994_v44, %v11988_v45  ;;  %11995 = vst [vmem:[#allocation38_spill] sm:$0xff] %v8695_v23  ;;  %v8697_v63 = vpop.permute.xlu1 %1843  ;;  %v845_v61 = vadd.f32 %v841_v51, %v793_v21  ;;  %v11997_v43 = vrot.slane %v8151_v52, %v7708_v20  ;;  %v11998_v21 = vld [vmem:[#allocation52_spill] sm:$0xff] }
 0x21e   :  { %v938_v55 = vmul.f32 %v11993_v49, %v912_v57  ;;  %11996 = vst [vmem:[#allocation22_spill] sm:$0xff] %v8697_v63  ;;  %v910_v45 = vsel %vm909_vm6, %v11991_v56, %v11994_v44  ;;  %2411 = vrot.lane.b32.xlu1 %v7769_v58, %s6950_s16  ;;  %v848_v33 = vadd.f32 %v844_v17, %v796_v46  ;;  %v12001_v44 = vld [vmem:[#allocation68_spill] sm:$0xff]  ;;  %vm1429_vm0 = vcmp.lt.s32.totalorder %v7694_v1, 126 }
 0x21f   :  { %v939_v27 = vmul.f32 %v11997_v43, %v911_v39  ;;  %v893_v49 = vmul.f32 %v11992_v9, %v885_v16  ;;  %v896_v51 = vmul.f32 %v11992_v9, %v888_v8  ;;  %v964_v39 = vsel %vm961_vm7, %v11999_v42, %v11998_v21  ;;  %v12002_v9 = vld [vmem:[#allocation55_spill] sm:$0xff] }
 0x220   :  { %v12000_v43 = vrot.slane %v8151_v52, %v7705_v0  ;;  %v963_v57 = vsel %vm961_vm7, %v11998_v21, %v12001_v44  ;;  %v898_v16 = vadd.f32 %v894_v36, %v846_v11  ;;  %v899_v8 = vadd.f32 %v895_v53, %v847_v34  ;;  %v12005_v11 = vld [vmem:[#allocation54_spill] sm:$0xff] }
 0x221   :  { %v946_v60 = vmul.f32 %v12002_v9, %v938_v55  ;;  %v12003_v23 = vrot.slane %v8151_v52, %v7711_v48  ;;  %v8736_v21 = vpop.permute.xlu1 %1889  ;;  %v990_v46 = vmul.f32 %v8230_v6, %v964_v39  ;;  %v965_v36 = vsel %vm961_vm7, %v12005_v11, %v11999_v42  ;;  %v12006_v39 = vld [vmem:[#allocation57_spill] sm:$0xff] }
 0x222   :  { %v937_v56 = vmul.f32 %v12000_v43, %v913_v62  ;;  %v8734_v62 = vld [vmem:[%s11468_s2 + $0x63] ss:$8 sm:$0xf]  ;;  %12004 = vst [vmem:[#allocation21_spill] sm:$0xff] %v8736_v21  ;;  %v947_v43 = vmul.f32 %v12002_v9, %v939_v27  ;;  %2415 = vrot.lane.b32.xlu1 %v7832_v4, %s6950_s16  ;;  %v897_v34 = vadd.f32 %v893_v49, %v845_v61  ;;  %v8752_v27 = vpop.permute.xlu0 %1789  ;;  %vm1481_vm4 = vcmp.lt.s32.totalorder %v7694_v1, 125 }
 0x223   :  { %v940_v63 = vmul.f32 %v12003_v23, %v910_v45  ;;  %v900_v53 = vadd.f32 %v896_v51, %v848_v33  ;;  %v991_v55 = vmul.f32 %v8233_v59, %v963_v57  ;;  %v962_v42 = vsel %vm961_vm7, %v12001_v44, %v12005_v11  ;;  %v12007_v23 = vld [vmem:[#allocation56_spill] sm:$0xff]  ;;  %v12010_v59 = vld [vmem:[#allocation73_spill] sm:$0xff]  ;;  %v77_v21 = vld [vmem:[%s11470_s4 + $0x108] sm:$0xff] }
 0x224   :  { %v945_v45 = vmul.f32 %v12002_v9, %v937_v56  ;;  %v950_v33 = vadd.f32 %v946_v60, %v898_v16  ;;  %v989_v51 = vmul.f32 %v8253_v2, %v965_v36  ;;  %v1016_v56 = vsel %vm1013_vm8, %v12007_v23, %v12006_v39  ;;  %v12009_v44 = vld [vmem:[#allocation60_spill] sm:$0xff]  ;;  %v12015_v60 = vld [vmem:[#allocation61_spill] sm:$0xff] }
 0x225   :  { %v948_v49 = vmul.f32 %v12002_v9, %v940_v63  ;;  %v8769_v52 = vpop.permute.xlu1 %1891  ;;  %v951_v17 = vadd.f32 %v947_v43, %v899_v8  ;;  %v998_v11 = vmul.f32 %v12009_v44, %v990_v46  ;;  %v1015_v57 = vsel %vm1013_vm8, %v12006_v39, %v12010_v59  ;;  %v12011_v9 = vld [vmem:[#allocation59_spill] sm:$0xff]  ;;  %v12014_v39 = vld [vmem:[#allocation62_spill] sm:$0xff] }
 0x226   :  { %12008 = vst [vmem:[#allocation26_spill] sm:$0xff] %v8769_v52  ;;  %2461 = vrot.lane.b32.xlu1 %v7723_v10, %s6952_s17  ;;  %v999_v63 = vmul.f32 %v12009_v44, %v991_v55  ;;  %v992_v16 = vmul.f32 %v8267_v14, %v962_v42  ;;  %v1014_v46 = vsel %vm1013_vm8, %v12010_v59, %v12011_v9  ;;  %v8793_v43 = vld [vmem:[%s11468_s2 + $0x64] ss:$8 sm:$0xf]  ;;  %v8795_v10 = vpop.permute.xlu0 %1930  ;;  %vm1533_vm5 = vcmp.lt.s32.totalorder %v7694_v1, 115 }
 0x227   :  { %v1017_v8 = vsel %vm1013_vm8, %v12011_v9, %v12007_v23  ;;  %12012 = vst [vmem:[#allocation24_spill] sm:$0xff] %v8795_v10  ;;  %v949_v36 = vadd.f32 %v945_v45, %v897_v34  ;;  %v12013_v55 = vrot.slane %v8258_v18, %v7702_v12  ;;  %v1068_v59 = vsel %vm1065_vm9, %v12015_v60, %v12014_v39  ;;  %v12017_v34 = vld [vmem:[#allocation78_spill] sm:$0xff] }
 0x228   :  { %v952_v9 = vadd.f32 %v948_v49, %v900_v53  ;;  %v997_v61 = vmul.f32 %v12009_v44, %v989_v51  ;;  %v12016_v14 = vrot.slane %v8258_v18, %v7708_v20  ;;  %v1067_v45 = vsel %vm1065_vm9, %v12014_v39, %v12017_v34  ;;  %v8881_v10 = vld [vmem:[%s11468_s2 + $0x66] ss:$8 sm:$0xf] }
 0x229   :  { %v1042_v42 = vmul.f32 %v12013_v55, %v1016_v56  ;;  %v8814_v56 = vpop.permute.xlu1 %1895  ;;  %v12019_v55 = vrot.slane %v8258_v18, %v7705_v0  ;;  %v12020_v53 = vrot.slane %v8258_v18, %v7711_v48  ;;  %v1003_v39 = vadd.f32 %v999_v63, %v951_v17  ;;  %v12022_v18 = vld [vmem:[#allocation65_spill] sm:$0xff] }
 0x22a   :  { %v1043_v2 = vmul.f32 %v12016_v14, %v1015_v57  ;;  %12018 = vst [vmem:[#allocation119_spill] sm:$0xff] %v8814_v56  ;;  %2463 = vrot.lane.b32.xlu1 %v7769_v58, %s6952_s17  ;;  %v1002_v57 = vadd.f32 %v998_v11, %v950_v33  ;;  %v1000_v23 = vmul.f32 %v12009_v44, %v992_v16  ;;  %v12024_v14 = vld [vmem:[#allocation64_spill] sm:$0xff]  ;;  %v76_v56 = vld [vmem:[%s11470_s4 + $0x100] sm:$0xff]  ;;  %vm1585_vm6 = vcmp.lt.s32.totalorder %v7694_v1, 114 }
 0x22b   :  { %v1041_v6 = vmul.f32 %v12019_v55, %v1017_v8  ;;  %v1044_v49 = vmul.f32 %v12020_v53, %v1014_v46  ;;  %v12021_v8 = vrot.slane %v8311_v35, %v7702_v12  ;;  %v1050_v46 = vmul.f32 %v12022_v18, %v1042_v42  ;;  %v8853_v16 = vld [vmem:[%s11468_s2 + $0x65] ss:$8 sm:$0xf]  ;;  %v8855_v42 = vpop.permute.xlu0 %1841 }
 0x22c   :  { %v12023_v53 = vrot.slane %v8311_v35, %v7708_v20  ;;  %v1066_v58 = vsel %vm1065_vm9, %v12017_v34, %v12024_v14  ;;  %v1069_v17 = vsel %vm1065_vm9, %v12024_v14, %v12015_v60  ;;  %v1001_v33 = vadd.f32 %v997_v61, %v949_v36  ;;  %12025 = vst [vmem:[#allocation43_spill] sm:$0xff] %v8855_v42  ;;  %v12028_v36 = vld [vmem:[#allocation67_spill] sm:$0xff] }
 0x22d   :  { %v1094_v55 = vmul.f32 %v12021_v8, %v1068_v59  ;;  %v1051_v44 = vmul.f32 %v12022_v18, %v1043_v2  ;;  %v8857_v59 = vpop.permute.xlu1 %1941  ;;  %v1049_v60 = vmul.f32 %v12022_v18, %v1041_v6  ;;  %v1052_v61 = vmul.f32 %v12022_v18, %v1044_v49  ;;  %v12027_v2 = vld [vmem:[#allocation83_spill] sm:$0xff] }
 0x22e   :  { %v1095_v51 = vmul.f32 %v12023_v53, %v1067_v45  ;;  %12026 = vst [vmem:[#allocation27_spill] sm:$0xff] %v8857_v59  ;;  %v1119_v34 = vsel %vm1117_vm10, %v12028_v36, %v12027_v2  ;;  %v12029_v45 = vld [vmem:[#allocation66_spill] sm:$0xff]  ;;  %2467 = vrot.lane.b32.xlu1 %v7832_v4, %s6952_s17  ;;  %v1004_v8 = vadd.f32 %v1000_v23, %v952_v9 }
 0x22f   :  { %v1120_v14 = vsel %vm1117_vm10, %v12029_v45, %v12028_v36  ;;  %v12030_v53 = vld [vmem:[#allocation70_spill] sm:$0xff]  ;;  %v12031_v6 = vrot.slane %v8311_v35, %v7705_v0  ;;  %v12032_v18 = vrot.slane %v8311_v35, %v7711_v48  ;;  %v1054_v36 = vadd.f32 %v1050_v46, %v1002_v57  ;;  %v8896_v46 = vpop.permute.xlu0 %1982 }
 0x230   :  { %v1102_v63 = vmul.f32 %v12030_v53, %v1094_v55  ;;  %v1103_v59 = vmul.f32 %v12030_v53, %v1095_v51  ;;  %v1055_v9 = vadd.f32 %v1051_v44, %v1003_v39  ;;  %v12033_v55 = vrot.slane %v8365_v25, %v7702_v12  ;;  %12035 = vst [vmem:[#allocation25_spill] sm:$0xff] %v8896_v46  ;;  %v12037_v44 = vld [vmem:[#allocation69_spill] sm:$0xff] }
 0x231   :  { %v1093_v49 = vmul.f32 %v12031_v6, %v1069_v17  ;;  %v1096_v11 = vmul.f32 %v12032_v18, %v1066_v58  ;;  %v12034_v58 = vrot.slane %v8365_v25, %v7708_v20  ;;  %v8898_v51 = vpop.permute.xlu1 %1943  ;;  %v1053_v6 = vadd.f32 %v1049_v60, %v1001_v33  ;;  %v60_v60 = vld [vmem:[%s11470_s4 + $0x80] sm:$0xff]  ;;  %v12043_v33 = vld [vmem:[#allocation72_spill] sm:$0xff] }
 0x232   :  { %v1146_v35 = vmul.f32 %v12033_v55, %v1120_v14  ;;  %12036 = vst [vmem:[#allocation31_spill] sm:$0xff] %v8898_v51  ;;  %v1056_v18 = vadd.f32 %v1052_v61, %v1004_v8  ;;  %v6822_v14 = vld [vmem:[%s11466_s0] sm:$0xff]  ;;  %v61_v61 = vld [vmem:[%s11470_s4 + $0x88] sm:$0xff]  ;;  %v1107_v8 = vadd.f32 %v1103_v59, %v1055_v9  ;;  %v12045_v23 = vrot.slane %v8365_v25, %v7705_v0 }
 0x233   :  { %v1147_v17 = vmul.f32 %v12034_v58, %v1119_v34  ;;  %2513 = vrot.lane.b32.xlu1 %v6822_v14, %s6954_s18  ;;  %v1106_v34 = vadd.f32 %v1102_v63, %v1054_v36  ;;  %v1101_v55 = vmul.f32 %v12030_v53, %v1093_v49  ;;  %v1104_v58 = vmul.f32 %v12030_v53, %v1096_v11  ;;  %v44_v49 = vld [vmem:[%s11470_s4] sm:$0xff]  ;;  %v45_v59 = vld [vmem:[%s11470_s4 + $0x8] sm:$0xff] }
 0x234   :  { %v1118_v63 = vsel %vm1117_vm10, %v12027_v2, %v12037_v44  ;;  %v1121_v11 = vsel %vm1117_vm10, %v12037_v44, %v12029_v45  ;;  %v8926_v53 = vpack.c.bf16 %v61_v61, %v60_v60  ;;  %v12039_v36 = vld [vmem:[#allocation75_spill] sm:$0xff]  ;;  %v8945_v60 = vpack.c.bf16 %v45_v59, %v44_v49  ;;  %v8971_v2 = vpop.permute.xlu0 %1893 }
 0x235   :  { %v1154_v9 = vmul.f32 %v12039_v36, %v1146_v35  ;;  %v1155_v14 = vmul.f32 %v12039_v36, %v1147_v17  ;;  %v8941_v45 = vld [vmem:[%s11468_s2 + $0x67] ss:$8 sm:$0xf]  ;;  %v8943_v44 = vpop.permute.xlu1 %1947  ;;  %v1105_v59 = vadd.f32 %v1101_v55, %v1053_v6  ;;  %v8963_v57 = vadd.f32 %v1104_v58, %v1056_v18  ;;  %12047 = vst [vmem:[#allocation30_spill] sm:$0xff] %v8971_v2 }
 0x236   :  { %12038 = vst [vmem:[#allocation28_spill] sm:$0xff] %v8926_v53  ;;  %12040 = vst [vmem:[#allocation48_spill] sm:$0xff] %v8943_v44  ;;  %v12042_v61 = vld [vmem:[#allocation87_spill] sm:$0xff]  ;;  %6250 = vmatprep.subr.bf16.mxu1 %v8926_v53  ;;  %v12046_v4 = vrot.slane %v8365_v25, %v7711_v48  ;;  %v62_v44 = vld [vmem:[%s11470_s4 + $0x90] sm:$0xff]  ;;  %v12067_v2 = vrot.slane %v8471_v15, %v7702_v12  ;;  %vm1637_vm10 = vcmp.lt.s32.totalorder %v7694_v1, 113 }
 0x237   :  { %12041 = vst [vmem:[#allocation32_spill] sm:$0xff] %v8945_v60  ;;  %v1171_v39 = vsel %vm1169_vm11, %v12043_v33, %v12042_v61  ;;  %v12044_v35 = vld [vmem:[#allocation71_spill] sm:$0xff]  ;;  %6252 = vmatpush3.bf16.msra.mxu1 %v8945_v60  ;;  %v63_v6 = vld [vmem:[%s11470_s4 + $0x98] sm:$0xff]  ;;  %v12048_v18 = vld [vmem:[#allocation74_spill] sm:$0xff]  ;;  %v1158_v60 = vadd.f32 %v1154_v9, %v1106_v34  ;;  %v1159_v53 = vadd.f32 %v1155_v14, %v1107_v8 }
 0x238   :  { %v1172_v17 = vsel %vm1169_vm11, %v12044_v35, %v12043_v33  ;;  %v6823_v49 = vld [vmem:[%s11466_s0 + $0x8] sm:$0xff]  ;;  %v1145_v33 = vmul.f32 %v12045_v23, %v1121_v11  ;;  %v1148_v46 = vmul.f32 %v12046_v4, %v1118_v63  ;;  %v92_v23 = vld [vmem:[%s11470_s4 + $0x180] sm:$0xff]  ;;  %v1173_v25 = vsel %vm1169_vm11, %v12048_v18, %v12044_v35  ;;  %v46_v11 = vld [vmem:[%s11470_s4 + $0x10] sm:$0xff] }
 0x239   :  { %2515 = vrot.lane.b32.xlu1 %v6823_v49, %s6954_s18  ;;  %v8991_v58 = vpack.c.bf16 %v63_v6, %v62_v44  ;;  %v93_v63 = vld [vmem:[%s11470_s4 + $0x188] sm:$0xff]  ;;  %v47_v35 = vld [vmem:[%s11470_s4 + $0x18] sm:$0xff]  ;;  %v12050_v4 = vrot.slane %v8419_v26, %v7702_v12  ;;  %v12051_v44 = vrot.slane %v8419_v26, %v7708_v20  ;;  %v9008_v51 = vpop.permute.xlu1 %1993  ;;  %v9028_v9 = vpack.c.bf16 %v77_v21, %v76_v56  ;;  %v64_v21 = vld [vmem:[%s11470_s4 + $0xa0] sm:$0xff] }
 0x23a   :  { %12052 = vst [vmem:[#allocation34_spill] sm:$0xff] %v9008_v51  ;;  %v9019_v34 = vld [vmem:[%s11466_s0 + $0x18] sm:$0xff]  ;;  %v9026_v8 = vpack.c.bf16 %v47_v35, %v46_v11  ;;  %v1153_v14 = vmul.f32 %v12039_v36, %v1145_v33  ;;  %v65_v56 = vld [vmem:[%s11470_s4 + $0xa8] sm:$0xff]  ;;  %v48_v11 = vld [vmem:[%s11470_s4 + $0x20] sm:$0xff] }
 0x23b   :  { %12049 = vst [vmem:[#allocation35_spill] sm:$0xff] %v8991_v58  ;;  %v1198_v55 = vmul.f32 %v12050_v4, %v1172_v17  ;;  %v1199_v6 = vmul.f32 %v12051_v44, %v1171_v39  ;;  %6254 = vmatprep.subr.bf16.mxu1 %v8991_v58  ;;  %v9024_v39 = vpack.c.bf16 %v93_v63, %v92_v23  ;;  %12055 = vst [vmem:[#allocation36_spill] sm:$0xff] %v9028_v9  ;;  %v9039_v58 = vpop.permute.xlu0 %2034  ;;  %v95_v63 = vld [vmem:[%s11470_s4 + $0x198] sm:$0xff]  ;;  %v12061_v35 = vld [vmem:[#allocation80_spill] sm:$0xff] }
 0x23c   :  { %12054 = vst [vmem:[#allocation37_spill] sm:$0xff] %v9026_v8  ;;  %v1156_v17 = vmul.f32 %v12039_v36, %v1148_v46  ;;  %v1170_v4 = vsel %vm1169_vm11, %v12042_v61, %v12048_v18  ;;  %v12056_v44 = vrot.slane %v8419_v26, %v7705_v0  ;;  %12057 = vst [vmem:[#allocation40_spill] sm:$0xff] %v9039_v58  ;;  %v94_v46 = vld [vmem:[%s11470_s4 + $0x190] sm:$0xff]  ;;  %v12058_v36 = vld [vmem:[#allocation77_spill] sm:$0xff]  ;;  %6256 = vmatpush3.bf16.msra.mxu1 %v9026_v8 }
 0x23d   :  { %2519 = vrot.lane.b32.xlu1 %v9019_v34, %s6954_s18  ;;  %12053 = vst [vmem:[#allocation53_spill] sm:$0xff] %v9024_v39  ;;  %v12059_v61 = vld [vmem:[#allocation76_spill] sm:$0xff]  ;;  %6282 = vmatprep.subr.bf16.mxu0 %v9024_v39  ;;  %v1207_v23 = vmul.f32 %v12061_v35, %v1199_v6  ;;  %v9075_v39 = vpop.permute.xlu1 %1995  ;;  %v12064_v6 = vrot.slane %v8419_v26, %v7711_v48  ;;  %vm1689_vm11 = vcmp.lt.s32.totalorder %v7694_v1, 112 }
 0x23e   :  { %v1197_v51 = vmul.f32 %v12056_v44, %v1173_v25  ;;  %v1224_v33 = vsel %vm1221_vm12, %v12059_v61, %v12058_v36  ;;  %v9059_v18 = vld [vmem:[%s11468_s2 + $0x80] ss:$8 sm:$0xf]  ;;  %v9063_v25 = vpack.c.bf16 %v65_v56, %v64_v21  ;;  %v1206_v44 = vmul.f32 %v12061_v35, %v1198_v55  ;;  %12062 = vst [vmem:[#allocation58_spill] sm:$0xff] %v9075_v39 }
 0x23f   :  { %6284 = vmatpush3.bf16.msra.mxu0 %v9028_v9  ;;  %v9078_v21 = vpack.c.bf16 %v95_v63, %v94_v46  ;;  %v49_v56 = vld [vmem:[%s11470_s4 + $0x28] sm:$0xff]  ;;  %v78_v8 = vld [vmem:[%s11470_s4 + $0x110] sm:$0xff]  ;;  %v79_v55 = vld [vmem:[%s11470_s4 + $0x118] sm:$0xff]  ;;  %v1200_v58 = vmul.f32 %v12064_v6, %v1170_v4  ;;  %v1157_v9 = vadd.f32 %v1153_v14, %v1105_v59  ;;  %v1250_v42 = vmul.f32 %v12067_v2, %v1224_v33 }
 0x240   :  { %12060 = vst [vmem:[#allocation39_spill] sm:$0xff] %v9063_v25  ;;  %v12065_v39 = vld [vmem:[#allocation92_spill] sm:$0xff]  ;;  %6258 = vmatprep.subr.bf16.mxu1 %v9063_v25  ;;  %v9098_v63 = vpack.c.bf16 %v49_v56, %v48_v11  ;;  %v1205_v52 = vmul.f32 %v12061_v35, %v1197_v51  ;;  %v9105_v26 = vpack.c.bf16 %v79_v55, %v78_v8  ;;  %v96_v51 = vld [vmem:[%s11470_s4 + $0x1a0] sm:$0xff]  ;;  %v12071_v55 = vld [vmem:[#allocation79_spill] sm:$0xff] }
 0x241   :  { %12063 = vst [vmem:[#allocation42_spill] sm:$0xff] %v9078_v21  ;;  %v1223_v46 = vsel %vm1221_vm12, %v12058_v36, %v12065_v39  ;;  %2567 = vrot.lane.b32.xlu1 %v6823_v49, %s6955_s22  ;;  %6286 = vmatprep.subr.bf16.mxu0 %v9078_v21  ;;  %v66_v4 = vld [vmem:[%s11470_s4 + $0xb0] sm:$0xff]  ;;  %v67_v49 = vld [vmem:[%s11470_s4 + $0xb8] sm:$0xff]  ;;  %v1160_v59 = vadd.f32 %v1156_v17, %v8963_v57  ;;  %v97_v36 = vld [vmem:[%s11470_s4 + $0x1a8] sm:$0xff] }
 0x242   :  { %12066 = vst [vmem:[#allocation41_spill] sm:$0xff] %v9098_v63  ;;  %12068 = vst [vmem:[#allocation45_spill] sm:$0xff] %v9105_v26  ;;  %6260 = vmatpush3.bf16.msra.mxu1 %v9098_v63  ;;  %v9122_v14 = vpack.c.bf16 %v67_v49, %v66_v4  ;;  %v50_v33 = vld [vmem:[%s11470_s4 + $0x30] sm:$0xff]  ;;  %v1210_v11 = vadd.f32 %v1206_v44, %v1158_v60  ;;  %v1211_v57 = vadd.f32 %v1207_v23, %v1159_v53  ;;  %v9137_v4 = vpop.permute.xlu0 %1945  ;;  %v9139_v49 = vpop.permute.xlu1 %1999  ;;  %v51_v60 = vld [vmem:[%s11470_s4 + $0x38] sm:$0xff] }
 0x243   :  { %v12070_v17 = vrot.slane %v8471_v15, %v7708_v20  ;;  %v1225_v6 = vsel %vm1221_vm12, %v12071_v55, %v12059_v61  ;;  %12072 = vst [vmem:[#allocation47_spill] sm:$0xff] %v9139_v49  ;;  %6288 = vmatpush3.bf16.msra.mxu0 %v9105_v26  ;;  %v80_v53 = vld [vmem:[%s11470_s4 + $0x120] sm:$0xff]  ;;  %v81_v23 = vld [vmem:[%s11470_s4 + $0x128] sm:$0xff]  ;;  %v1208_v61 = vmul.f32 %v12061_v35, %v1200_v58  ;;  %v12074_v35 = vld [vmem:[#allocation85_spill] sm:$0xff] }
 0x244   :  { %12069 = vst [vmem:[#allocation44_spill] sm:$0xff] %v9122_v14  ;;  %v1222_v44 = vsel %vm1221_vm12, %v12065_v39, %v12071_v55  ;;  %6262 = vmatprep.subr.bf16.mxu1 %v9122_v14  ;;  %v9167_v58 = vadd.f32 %v1205_v52, %v1157_v9  ;;  %v1258_v8 = vmul.f32 %v12074_v35, %v1250_v42  ;;  %v68_v2 = vld [vmem:[%s11470_s4 + $0xc0] sm:$0xff]  ;;  %v98_v52 = vld [vmem:[%s11470_s4 + $0x1b0] sm:$0xff]  ;;  %v99_v39 = vld [vmem:[%s11470_s4 + $0x1b8] sm:$0xff]  ;;  %vm1741_vm12 = vcmp.lt.s32.totalorder %v7694_v1, 111 }
 0x245   :  { %v1251_v56 = vmul.f32 %v12070_v17, %v1223_v46  ;;  %v9160_v46 = vld [vmem:[%s11468_s2 + $0x81] ss:$8 sm:$0xf]  ;;  %2571 = vrot.lane.b32.xlu1 %v9019_v34, %s6955_s22  ;;  %v9165_v17 = vpack.c.bf16 %v97_v36, %v96_v51  ;;  %v12075_v42 = vrot.slane %v8471_v15, %v7705_v0  ;;  %v9187_v51 = vpack.c.bf16 %v51_v60, %v50_v33 }
 0x246   :  { %v69_v34 = vld [vmem:[%s11470_s4 + $0xc8] sm:$0xff]  ;;  %v9189_v36 = vpack.c.bf16 %v81_v23, %v80_v53  ;;  %v52_v14 = vld [vmem:[%s11470_s4 + $0x40] sm:$0xff]  ;;  %v12079_v33 = vrot.slane %v8471_v15, %v7711_v48  ;;  %v12081_v53 = vld [vmem:[#allocation81_spill] sm:$0xff]  ;;  %v9212_v63 = vpop.permute.xlu1 %2045 }
 0x247   :  { %12073 = vst [vmem:[#allocation46_spill] sm:$0xff] %v9165_v17  ;;  %v1249_v9 = vmul.f32 %v12075_v42, %v1225_v6  ;;  %6290 = vmatprep.subr.bf16.mxu0 %v9165_v17  ;;  %12076 = vst [vmem:[#allocation63_spill] sm:$0xff] %v9187_v51  ;;  %v9191_v55 = vpack.c.bf16 %v69_v34, %v68_v2  ;;  %v53_v6 = vld [vmem:[%s11470_s4 + $0x48] sm:$0xff]  ;;  %v1259_v42 = vmul.f32 %v12074_v35, %v1251_v56  ;;  %v12080_v2 = vld [vmem:[#allocation82_spill] sm:$0xff]  ;;  %v9210_v34 = vpop.permute.xlu0 %2086 }
 0x248   :  { %12077 = vst [vmem:[#allocation50_spill] sm:$0xff] %v9189_v36  ;;  %v1252_v60 = vmul.f32 %v12079_v33, %v1222_v44  ;;  %v1276_v23 = vsel %vm1273_vm13, %v12081_v53, %v12080_v2  ;;  %12082 = vst [vmem:[#allocation52_spill] sm:$0xff] %v9210_v34  ;;  %v9214_v17 = vpack.c.bf16 %v99_v39, %v98_v52  ;;  %v82_v25 = vld [vmem:[%s11470_s4 + $0x130] sm:$0xff]  ;;  %v83_v15 = vld [vmem:[%s11470_s4 + $0x138] sm:$0xff]  ;;  %6264 = vmatpush3.bf16.msra.mxu1 %v9187_v51 }
 0x249   :  { %12078 = vst [vmem:[#allocation49_spill] sm:$0xff] %v9191_v55  ;;  %12083 = vst [vmem:[#allocation51_spill] sm:$0xff] %v9212_v63  ;;  %v1212_v56 = vadd.f32 %v1208_v61, %v1160_v59  ;;  %v12085_v44 = vld [vmem:[#allocation98_spill] sm:$0xff]  ;;  %v9230_v39 = vpack.c.bf16 %v53_v6, %v52_v14  ;;  %6292 = vmatpush3.bf16.msra.mxu0 %v9189_v36  ;;  %6266 = vmatprep.subr.bf16.mxu1 %v9191_v55  ;;  %v71_v14 = vld [vmem:[%s11470_s4 + $0xd8] sm:$0xff] }
 0x24a   :  { %12084 = vst [vmem:[#allocation68_spill] sm:$0xff] %v9214_v17  ;;  %v1275_v33 = vsel %vm1273_vm13, %v12080_v2, %v12085_v44  ;;  %v6825_v26 = vld [vmem:[%s11473_s7] sm:$0xff]  ;;  %v9238_v61 = vpack.c.bf16 %v83_v15, %v82_v25  ;;  %v70_v2 = vld [vmem:[%s11470_s4 + $0xd0] sm:$0xff]  ;;  %v9249_v52 = vadd.f32 %v1258_v8, %v1210_v11  ;;  %v1257_v59 = vmul.f32 %v12074_v35, %v1249_v9  ;;  %v101_v51 = vld [vmem:[%s11470_s4 + $0x1c8] sm:$0xff] }
 0x24b   :  { %3579 = vperm.xlu1 %6726, %v6825_v26   ;;  %12086 = vst [vmem:[#allocation55_spill] sm:$0xff] %v9230_v39  ;;  %v100_v6 = vld [vmem:[%s11470_s4 + $0x1c0] sm:$0xff]  ;;  %v12088_v25 = vrot.slane %v8523_v30, %v7702_v12  ;;  %6294 = vmatprep.subr.bf16.mxu0 %v9214_v17  ;;  %v9256_v55 = vpack.c.bf16 %v71_v14, %v70_v2  ;;  %v54_v36 = vld [vmem:[%s11470_s4 + $0x50] sm:$0xff]  ;;  %v55_v8 = vld [vmem:[%s11470_s4 + $0x58] sm:$0xff]  ;;  %v9273_v14 = vpop.permute.xlu1 %2047 }
 0x24c   :  { %12087 = vst [vmem:[#allocation54_spill] sm:$0xff] %v9238_v61  ;;  %v9267_v11 = vadd.f32 %v1259_v42, %v1211_v57  ;;  %v1260_v9 = vmul.f32 %v12074_v35, %v1252_v60  ;;  %12091 = vst [vmem:[#allocation56_spill] sm:$0xff] %v9273_v14  ;;  %v84_v17 = vld [vmem:[%s11470_s4 + $0x140] sm:$0xff]  ;;  %v85_v21 = vld [vmem:[%s11470_s4 + $0x148] sm:$0xff]  ;;  %6268 = vmatpush3.bf16.msra.mxu1 %v9230_v39  ;;  %v9296_v60 = vpack.c.bf16 %v55_v8, %v54_v36 }
 0x24d   :  { %v1302_v15 = vmul.f32 %v12088_v25, %v1276_v23  ;;  %12089 = vst [vmem:[#allocation57_spill] sm:$0xff] %v9256_v55  ;;  %v12090_v23 = vrot.slane %v8523_v30, %v7708_v20  ;;  %v9275_v25 = vpack.c.bf16 %v101_v51, %v100_v6  ;;  %v12093_v57 = vld [vmem:[#allocation84_spill] sm:$0xff]  ;;  %6296 = vmatpush3.bf16.msra.mxu0 %v9238_v61  ;;  %v72_v36 = vld [vmem:[%s11470_s4 + $0xe0] sm:$0xff]  ;;  %v73_v8 = vld [vmem:[%s11470_s4 + $0xe8] sm:$0xff] }
 0x24e   :  { %v1277_v35 = vsel %vm1273_vm13, %v12093_v57, %v12081_v53  ;;  %v9293_v51 = vld [vmem:[%s11468_s2 + $0x82] ss:$8 sm:$0xf]  ;;  %12094 = vst [vmem:[#allocation73_spill] sm:$0xff] %v9296_v60  ;;  %v1274_v53 = vsel %vm1273_vm13, %v12085_v44, %v12093_v57  ;;  %6270 = vmatprep.subr.bf16.mxu1 %v9256_v55  ;;  %v9309_v42 = vpack.c.bf16 %v85_v21, %v84_v17  ;;  %vm1793_vm13 = vcmp.lt.s32.totalorder %v7694_v1, 110 }
 0x24f   :  { %v1303_v2 = vmul.f32 %v12090_v23, %v1275_v33  ;;  %12092 = vst [vmem:[#allocation60_spill] sm:$0xff] %v9275_v25  ;;  %v12095_v33 = vmov 3   ;;  %v9305_v23 = vpop.permute.xlu0 %1997  ;;  %v102_v44 = vld [vmem:[%s11470_s4 + $0x1d0] sm:$0xff]  ;;  %v9321_v57 = vadd.f32 %v1257_v59, %v9167_v58  ;;  %6298 = vmatprep.subr.bf16.mxu0 %v9275_v25  ;;  %v9326_v21 = vpack.c.bf16 %v73_v8, %v72_v36  ;;  %v103_v17 = vld [vmem:[%s11470_s4 + $0x1d8] sm:$0xff]  ;;  %v56_v55 = vld [vmem:[%s11470_s4 + $0x60] sm:$0xff]  ;;  %v9345_v61 = vpop.permute.xlu1 %2051 }
 0x250   :  { %6773 = vset.pattern.permute.xlu1 %v12095_v33  ;;  %12096 = vst [vmem:[#allocation59_spill] sm:$0xff] %v9305_v23  ;;  %12097 = vst [vmem:[#allocation62_spill] sm:$0xff] %v9309_v42  ;;  %v12098_v33 = vld [vmem:[#allocation90_spill] sm:$0xff]  ;;  %v57_v58 = vld [vmem:[%s11470_s4 + $0x68] sm:$0xff]  ;;  %v9347_v34 = vpack.c.bf16 %v103_v17, %v102_v44  ;;  %6272 = vmatpush3.bf16.msra.mxu1 %v9296_v60 }
 0x251   :  { %v1310_v6 = vmul.f32 %v12098_v33, %v1302_v15  ;;  %12099 = vst [vmem:[#allocation61_spill] sm:$0xff] %v9326_v21  ;;  %3587 = vperm.xlu1 %6773, %v6825_v26   ;;  %v1311_v59 = vmul.f32 %v12098_v33, %v1303_v2  ;;  %v12100_v15 = vrot.slane %v8523_v30, %v7705_v0  ;;  %v12101_v8 = vld [vmem:[#allocation88_spill] sm:$0xff]  ;;  %v12102_v39 = vld [vmem:[#allocation86_spill] sm:$0xff]  ;;  %12103 = vst [vmem:[#allocation78_spill] sm:$0xff] %v9345_v61 }
 0x252   :  { %v1328_v25 = vsel %vm1325_vm14, %v12102_v39, %v12101_v8  ;;  %12104 = vst [vmem:[#allocation65_spill] sm:$0xff] %v9347_v34  ;;  %v86_v63 = vld [vmem:[%s11470_s4 + $0x150] sm:$0xff]  ;;  %v87_v26 = vld [vmem:[%s11470_s4 + $0x158] sm:$0xff]  ;;  %v12106_v61 = vld [vmem:[#allocation107_spill] sm:$0xff]  ;;  %v9366_v17 = vpack.c.bf16 %v57_v58, %v56_v55  ;;  %6300 = vmatpush3.bf16.msra.mxu0 %v9309_v42  ;;  %v12111_v55 = vrot.slane %v8577_v38, %v7702_v12 }
 0x253   :  { %v1301_v36 = vmul.f32 %v12100_v15, %v1277_v35  ;;  %v74_v2 = vld [vmem:[%s11470_s4 + $0xf0] sm:$0xff]  ;;  %v1264_v35 = vadd.f32 %v1260_v9, %v1212_v56  ;;  %v12105_v15 = vrot.slane %v8523_v30, %v7711_v48  ;;  %v1327_v44 = vsel %vm1325_vm14, %v12101_v8, %v12106_v61  ;;  %v75_v49 = vld [vmem:[%s11470_s4 + $0xf8] sm:$0xff]  ;;  %v104_v56 = vld [vmem:[%s11470_s4 + $0x1e0] sm:$0xff]  ;;  %v9385_v8 = vpop.permute.xlu0 %2138  ;;  %6274 = vmatprep.subr.bf16.mxu1 %v9326_v21 }
 0x254   :  { %12107 = vst [vmem:[#allocation64_spill] sm:$0xff] %v9366_v17  ;;  %v105_v30 = vld [vmem:[%s11470_s4 + $0x1e8] sm:$0xff]  ;;  %v12108_v9 = vld [vmem:[#allocation89_spill] sm:$0xff]  ;;  %12109 = vst [vmem:[#allocation83_spill] sm:$0xff] %v9385_v8  ;;  %v1354_v23 = vmul.f32 %v12111_v55, %v1328_v25  ;;  %6302 = vmatprep.subr.bf16.mxu0 %v9347_v34  ;;  %v1314_v25 = vadd.f32 %v1310_v6, %v9249_v52  ;;  %v1315_v55 = vadd.f32 %v1311_v59, %v9267_v11 }
 0x255   :  { %v1304_v14 = vmul.f32 %v12105_v15, %v1274_v53  ;;  %v1329_v53 = vsel %vm1325_vm14, %v12108_v9, %v12102_v39  ;;  %v9388_v15 = vpack.c.bf16 %v87_v26, %v86_v63  ;;  %v58_v60 = vld [vmem:[%s11470_s4 + $0x70] sm:$0xff]  ;;  %v59_v39 = vld [vmem:[%s11470_s4 + $0x78] sm:$0xff]  ;;  %v9402_v63 = vpack.c.bf16 %v75_v49, %v74_v2  ;;  %v88_v58 = vld [vmem:[%s11470_s4 + $0x160] sm:$0xff]  ;;  %6276 = vmatpush3.bf16.msra.mxu1 %v9366_v17 }
 0x256   :  { %v9404_v26 = vpack.c.bf16 %v105_v30, %v104_v56  ;;  %v89_v42 = vld [vmem:[%s11470_s4 + $0x168] sm:$0xff]  ;;  %v1309_v21 = vmul.f32 %v12098_v33, %v1301_v36  ;;  %v12114_v49 = vrot.slane %v8577_v38, %v7708_v20  ;;  %v9418_v56 = vpop.permute.xlu1 %2097  ;;  %v12116_v30 = vmov 4   ;;  %v12119_v59 = vld [vmem:[#allocation121_spill] sm:$0xff] }
 0x257   :  { %12110 = vst [vmem:[#allocation67_spill] sm:$0xff] %v9388_v15  ;;  %12112 = vst [vmem:[#allocation66_spill] sm:$0xff] %v9402_v63  ;;  %6775 = vset.pattern.permute.xlu1 %v12116_v30  ;;  %v1312_v34 = vmul.f32 %v12098_v33, %v1304_v14  ;;  %v1326_v8 = vsel %vm1325_vm14, %v12106_v61, %v12108_v9  ;;  %v12117_v52 = vrot.slane %v8577_v38, %v7705_v0  ;;  %v12120_v36 = vld [vmem:[#allocation93_spill] sm:$0xff]  ;;  %v12121_v14 = vld [vmem:[#allocation91_spill] sm:$0xff]  ;;  %v9482_v17 = vpop.permute.xlu0 %2049 }
 0x258   :  { %12113 = vst [vmem:[#allocation70_spill] sm:$0xff] %v9404_v26  ;;  %v1355_v2 = vmul.f32 %v12114_v49, %v1327_v44  ;;  %12115 = vst [vmem:[#allocation69_spill] sm:$0xff] %v9418_v56  ;;  %v9430_v6 = vpack.c.bf16 %v59_v39, %v58_v60  ;;  %v1379_v44 = vsel %vm1377_vm15, %v12120_v36, %v12119_v59  ;;  %6304 = vmatpush3.bf16.msra.mxu0 %v9388_v15  ;;  %v106_v60 = vld [vmem:[%s11470_s4 + $0x1f0] sm:$0xff]  ;;  %v107_v9 = vld [vmem:[%s11470_s4 + $0x1f8] sm:$0xff] }
 0x259   :  { %v1353_v11 = vmul.f32 %v12117_v52, %v1329_v53  ;;  %v1380_v33 = vsel %vm1377_vm15, %v12121_v14, %v12120_v36  ;;  %6278 = vmatprep.subr.bf16.mxu1 %v9402_v63  ;;  %v9443_v61 = vpack.c.bf16 %v89_v42, %v88_v58  ;;  %v12123_v53 = vld [vmem:[#allocation95_spill] sm:$0xff]  ;;  %6306 = vmatprep.subr.bf16.mxu0 %v9404_v26  ;;  %v90_v52 = vld [vmem:[%s11470_s4 + $0x170] sm:$0xff]  ;;  %v12126_v63 = vld [vmem:[#allocation94_spill] sm:$0xff] }
 0x25a   :  { %12118 = vst [vmem:[#allocation75_spill] sm:$0xff] %v9430_v6  ;;  %v1362_v39 = vmul.f32 %v12123_v53, %v1354_v23  ;;  %v9459_v42 = vld [vmem:[%s11468_s2 + $0x83] ss:$8 sm:$0xf]  ;;  %v9462_v58 = vpack.c.bf16 %v107_v9, %v106_v60  ;;  %v1363_v36 = vmul.f32 %v12123_v53, %v1355_v2  ;;  %v12125_v30 = vrot.slane %v8577_v38, %v7711_v48  ;;  %v9484_v26 = vpop.permute.xlu1 %2099 }
 0x25b   :  { %12122 = vst [vmem:[#allocation87_spill] sm:$0xff] %v9443_v61  ;;  %v91_v23 = vld [vmem:[%s11470_s4 + $0x178] sm:$0xff]  ;;  %v1378_v60 = vsel %vm1377_vm15, %v12119_v59, %v12126_v63  ;;  %v1381_v9 = vsel %vm1377_vm15, %v12126_v63, %v12121_v14  ;;  %v1313_v2 = vadd.f32 %v1309_v21, %v9321_v57  ;;  %v1361_v15 = vmul.f32 %v12123_v53, %v1353_v11  ;;  %v12130_v21 = vld [vmem:[#allocation8_spill] sm:$0xff] }
 0x25c   :  { %12124 = vst [vmem:[#allocation72_spill] sm:$0xff] %v9462_v58  ;;  %v1356_v49 = vmul.f32 %v12125_v30, %v1326_v8  ;;  %v12127_v38 = vrot.slane %v8631_v32, %v7705_v0  ;;  %v12128_v59 = vrot.slane %v8631_v32, %v7702_v12  ;;  %6280 = vmatpush3.bf16.msra.mxu1 %v9430_v6  ;;  %v12135_v63 = vld [vmem:[#allocation100_spill] sm:$0xff] }
 0x25d   :  { %v1316_v56 = vadd.f32 %v1312_v34, %v1264_v35  ;;  %6308 = vmatpush3.bf16.msra.mxu0 %v9443_v61  ;;  %v9499_v57 = vpack.c.bf16 %v91_v23, %v90_v52  ;;  %5913 = vmatprep.subr.msk.mxu1 %vm2733_vm2, %v12130_v21  ;;  %v12131_v11 = vrot.slane %v8631_v32, %v7708_v20  ;;  %v12133_v35 = vld [vmem:[#allocation97_spill] sm:$0xff] }
 0x25e   :  { %v1405_v8 = vmul.f32 %v12127_v38, %v1380_v33  ;;  %v1406_v30 = vmul.f32 %v12128_v59, %v1379_v44  ;;  %v12132_v44 = vrot.slane %v8631_v32, %v7711_v48  ;;  %v1431_v33 = vsel %vm1429_vm0, %v12133_v35, %v8013_v5  ;;  %v12134_v38 = vld [vmem:[#allocation96_spill] sm:$0xff]  ;;  %6310 = vmatprep.subr.bf16.mxu0 %v9462_v58 }
 0x25f   :  { %12129 = vst [vmem:[#allocation71_spill] sm:$0xff] %v9499_v57  ;;  %v1407_v14 = vmul.f32 %v12131_v11, %v1378_v60  ;;  %v1432_v52 = vsel %vm1429_vm0, %v12134_v38, %v12133_v35  ;;  %v1366_v23 = vadd.f32 %v1362_v39, %v1314_v25  ;;  %v1367_v59 = vadd.f32 %v1363_v36, %v1315_v55  ;;  %v9523_v11 = vpop.permute.xlu1 %2103  ;;  %v9532_v25 = vld [vmem:[%s11468_s2 + $0x84] ss:$8 sm:$0xf] }
 0x260   :  { %v1408_v34 = vmul.f32 %v12132_v44, %v1381_v9  ;;  %v1364_v60 = vmul.f32 %v12123_v53, %v1356_v49  ;;  %v9521_v9 = vpop.permute.xlu0 %2190  ;;  %v1365_v44 = vadd.f32 %v1361_v15, %v1313_v2  ;;  %v1413_v21 = vmul.f32 %v12135_v63, %v1405_v8  ;;  %v12138_v49 = vld [vmem:[#allocation99_spill] sm:$0xff] }
 0x261   :  { %v1414_v6 = vmul.f32 %v12135_v63, %v1406_v30  ;;  %v12136_v55 = vrot.slane %v8693_v22, %v7705_v0  ;;  %v12137_v39 = vrot.slane %v8693_v22, %v7702_v12  ;;  %v1430_v36 = vsel %vm1429_vm0, %v8013_v5, %v12138_v49  ;;  %6312 = vmatpush3.bf16.msra.mxu0 %v9499_v57 }
 0x262   :  { %v1433_v2 = vsel %vm1429_vm0, %v12138_v49, %v12134_v38  ;;  %v1415_v8 = vmul.f32 %v12135_v63, %v1407_v14  ;;  %v1416_v30 = vmul.f32 %v12135_v63, %v1408_v34  ;;  %v1368_v38 = vadd.f32 %v1364_v60, %v1316_v56  ;;  %v9579_v14 = vld [vmem:[%s11468_s2 + $0x85] ss:$8 sm:$0xf] }
 0x263   :  { %v1457_v53 = vmul.f32 %v12136_v55, %v1432_v52  ;;  %v1458_v15 = vmul.f32 %v12137_v39, %v1431_v33  ;;  %v12139_v52 = vld [vmem:[#allocation112_spill] sm:$0xff]  ;;  %v12140_v55 = vld [vmem:[#allocation101_spill] sm:$0xff]  ;;  %v9568_v49 = vpop.permute.xlu1 %2149  ;;  %v1417_v35 = vadd.f32 %v1413_v21, %v1365_v44  ;;  %v1418_v32 = vadd.f32 %v1414_v6, %v1366_v23  ;;  %v12144_v63 = vld [vmem:[#allocation115_spill] sm:$0xff] }
 0x264   :  { %v1483_v33 = vsel %vm1481_vm4, %v12139_v52, %v8121_v47  ;;  %v1484_v5 = vsel %vm1481_vm4, %v12140_v55, %v12139_v52  ;;  %v12141_v39 = vld [vmem:[#allocation9_spill] sm:$0xff]  ;;  %v12142_v52 = vrot.slane %v8693_v22, %v7708_v20  ;;  %v12143_v56 = vrot.slane %v8693_v22, %v7711_v48 }
 0x265   :  { %5916 = vmatprep.subr.msk.mxu0 %vm2733_vm2, %v12141_v39  ;;  %v1465_v39 = vmul.f32 %v12144_v63, %v1457_v53  ;;  %v1466_v34 = vmul.f32 %v12144_v63, %v1458_v15  ;;  %v12145_v6 = vrot.slane %v8734_v62, %v7705_v0  ;;  %v12146_v23 = vrot.slane %v8734_v62, %v7702_v12  ;;  %v12147_v15 = vld [vmem:[#allocation113_spill] sm:$0xff] }
 0x266   :  { %v1459_v57 = vmul.f32 %v12142_v52, %v1430_v36  ;;  %v1460_v60 = vmul.f32 %v12143_v56, %v1433_v2  ;;  %v9589_v36 = vpop.permute.xlu0 %2101  ;;  %v1419_v22 = vadd.f32 %v1415_v8, %v1367_v59  ;;  %v1420_v2 = vadd.f32 %v1416_v30, %v1368_v38 }
 0x267   :  { %v1509_v21 = vmul.f32 %v12145_v6, %v1484_v5  ;;  %v1510_v44 = vmul.f32 %v12146_v23, %v1483_v33  ;;  %v1482_v5 = vsel %vm1481_vm4, %v8121_v47, %v12147_v15  ;;  %v1485_v33 = vsel %vm1481_vm4, %v12147_v15, %v12140_v55  ;;  %v9608_v30 = vpop.permute.xlu1 %2151  ;;  %v12148_v6 = vld [vmem:[#allocation120_spill] sm:$0xff] }
 0x268   :  { %v1467_v38 = vmul.f32 %v12144_v63, %v1459_v57  ;;  %v1468_v56 = vmul.f32 %v12144_v63, %v1460_v60  ;;  %v1535_v47 = vsel %vm1533_vm5, %v12148_v6, %v8223_v29  ;;  %v12149_v23 = vld [vmem:[#allocation116_spill] sm:$0xff]  ;;  %v1469_v15 = vadd.f32 %v1465_v39, %v1417_v35 }
 0x269   :  { %v1536_v55 = vsel %vm1533_vm5, %v12149_v23, %v12148_v6  ;;  %v1470_v59 = vadd.f32 %v1466_v34, %v1418_v32  ;;  %v1517_v8 = vmul.f32 %v7948_v50, %v1509_v21  ;;  %v1518_v53 = vmul.f32 %v7948_v50, %v1510_v44  ;;  %v9625_v57 = vld [vmem:[%s11468_s2 + $0x86] ss:$8 sm:$0xf] }
 0x26a   :  { %v9627_v63 = vpop.permute.xlu0 %2242  ;;  %v12150_v60 = vrot.slane %v8734_v62, %v7708_v20  ;;  %v12151_v6 = vrot.slane %v8734_v62, %v7711_v48  ;;  %v12152_v32 = vld [vmem:[#allocation122_spill] sm:$0xff]  ;;  %v12153_v21 = vrot.slane %v8793_v43, %v7705_v0  ;;  %v1472_v58 = vadd.f32 %v1468_v56, %v1420_v2 }
 0x26b   :  { %v1534_v39 = vsel %vm1533_vm5, %v8223_v29, %v12152_v32  ;;  %v1537_v34 = vsel %vm1533_vm5, %v12152_v32, %v12149_v23  ;;  %v9653_v29 = vpop.permute.xlu1 %2155  ;;  %v1588_v2 = vsel %vm1585_vm6, %v7969_v13, %v8015_v3  ;;  %v1522_v56 = vadd.f32 %v1518_v53, %v1470_v59 }
 0x26c   :  { %v1511_v52 = vmul.f32 %v12150_v60, %v1482_v5  ;;  %v1512_v35 = vmul.f32 %v12151_v6, %v1485_v33  ;;  %v1561_v44 = vmul.f32 %v12153_v21, %v1536_v55  ;;  %v12154_v5 = vrot.slane %v8793_v43, %v7702_v12 }
 0x26d   :  { %v1471_v6 = vadd.f32 %v1467_v38, %v1419_v22  ;;  %v12156_v21 = vrot.slane %v8793_v43, %v7711_v48  ;;  %v1587_v22 = vsel %vm1585_vm6, %v8015_v3, %v8335_v31  ;;  %v1521_v38 = vadd.f32 %v1517_v8, %v1469_v15  ;;  %v9685_v3 = vld [vmem:[%s11468_s2 + $0x87] ss:$8 sm:$0xf] }
 0x26e   :  { %v1562_v60 = vmul.f32 %v12154_v5, %v1535_v47  ;;  %v12155_v47 = vrot.slane %v8793_v43, %v7708_v20  ;;  %v1519_v55 = vmul.f32 %v7948_v50, %v1511_v52  ;;  %v9687_v53 = vpop.permute.xlu0 %2153  ;;  %v12158_v8 = vrot.slane %v8853_v16, %v7702_v12 }
 0x26f   :  { %v1564_v5 = vmul.f32 %v12156_v21, %v1537_v34  ;;  %v9689_v52 = vpop.permute.xlu1 %2201  ;;  %v12160_v34 = vrot.slane %v8853_v16, %v7711_v48  ;;  %vm1845_vm0 = vcmp.lt.s32.totalorder %v7694_v1, 109  ;;  %vm1897_vm4 = vcmp.lt.s32.totalorder %v7694_v1, 99 }
 0x270   :  { %v1563_v32 = vmul.f32 %v12155_v47, %v1534_v39  ;;  %v1520_v39 = vmul.f32 %v7948_v50, %v1512_v35  ;;  %v1569_v47 = vmul.f32 %v8055_v54, %v1561_v44  ;;  %v1570_v43 = vmul.f32 %v8055_v54, %v1562_v60 }
 0x271   :  { %v12157_v50 = vrot.slane %v8853_v16, %v7705_v0  ;;  %v1614_v15 = vmul.f32 %v12158_v8, %v1587_v22  ;;  %v1586_v35 = vsel %vm1585_vm6, %v8335_v31, %v8057_v24  ;;  %v1589_v44 = vsel %vm1585_vm6, %v8057_v24, %v7969_v13 }
 0x272   :  { %v1571_v60 = vmul.f32 %v8055_v54, %v1563_v32  ;;  %v1572_v21 = vmul.f32 %v8055_v54, %v1564_v5  ;;  %v1640_v22 = vsel %vm1637_vm10, %v8099_v7, %v8141_v41  ;;  %v1523_v31 = vadd.f32 %v1519_v55, %v1471_v6  ;;  %v9731_v6 = vpop.permute.xlu0 %2294  ;;  %v12169_v54 = vld [vmem:[#allocation114_spill] sm:$0xff] }
 0x273   :  { %v1613_v59 = vmul.f32 %v12157_v50, %v1588_v2  ;;  %v1639_v2 = vsel %vm1637_vm10, %v8141_v41, %v8439_v40  ;;  %v1524_v50 = vadd.f32 %v1520_v39, %v1472_v58  ;;  %v1573_v24 = vadd.f32 %v1569_v47, %v1521_v38  ;;  %v9729_v58 = vld [vmem:[%s11468_s2 + $0xa0] ss:$8 sm:$0xf]  ;;  %12161 = vst [vmem:[#allocation74_spill] sm:$0xff] %v9731_v6  ;;  %v9733_v55 = vpop.permute.xlu1 %2203 }
 0x274   :  { %v1574_v32 = vadd.f32 %v1570_v43, %v1522_v56  ;;  %v12159_v5 = vrot.slane %v8853_v16, %v7708_v20  ;;  %v1616_v41 = vmul.f32 %v12160_v34, %v1589_v44  ;;  %v1622_v56 = vmul.f32 %v8163_v37, %v1614_v15 }
 0x275   :  { %v1621_v38 = vmul.f32 %v8163_v37, %v1613_v59  ;;  %v12162_v39 = vrot.slane %v8881_v10, %v7705_v0  ;;  %v12163_v16 = vrot.slane %v8881_v10, %v7702_v12  ;;  %v1575_v34 = vadd.f32 %v1571_v60, %v1523_v31 }
 0x276   :  { %v1615_v8 = vmul.f32 %v12159_v5, %v1586_v35  ;;  %v1576_v35 = vadd.f32 %v1572_v21, %v1524_v50  ;;  %v1638_v15 = vsel %vm1637_vm10, %v8439_v40, %v8181_v28  ;;  %v1624_v31 = vmul.f32 %v8163_v37, %v1616_v41  ;;  %v12164_v50 = vld [vmem:[#allocation12_spill] sm:$0xff]  ;;  %v12165_v5 = vld [vmem:[#allocation123_spill] sm:$0xff] }
 0x277   :  { %v1665_v47 = vmul.f32 %v12162_v39, %v1640_v22  ;;  %v1666_v43 = vmul.f32 %v12163_v16, %v1639_v2  ;;  %v1641_v2 = vsel %vm1637_vm10, %v8181_v28, %v8099_v7  ;;  %v1691_v40 = vsel %vm1689_vm11, %v12164_v50, %v8548_v19  ;;  %v9770_v28 = vpop.permute.xlu1 %2207  ;;  %v12166_v21 = vld [vmem:[#allocation16_spill] sm:$0xff] }
 0x278   :  { %v1623_v22 = vmul.f32 %v8163_v37, %v1615_v8  ;;  %v1692_v7 = vsel %vm1689_vm11, %v12165_v5, %v12164_v50  ;;  %v1625_v39 = vadd.f32 %v1621_v38, %v1573_v24  ;;  %v1626_v16 = vadd.f32 %v1622_v56, %v1574_v32  ;;  %v9777_v37 = vld [vmem:[%s11468_s2 + $0xa1] ss:$8 sm:$0xf]  ;;  %v9793_v38 = vpop.permute.xlu0 %2205 }
 0x279   :  { %v1673_v60 = vmul.f32 %v12166_v21, %v1665_v47  ;;  %v1674_v8 = vmul.f32 %v12166_v21, %v1666_v43  ;;  %v12167_v41 = vrot.slane %v8881_v10, %v7708_v20  ;;  %v12168_v50 = vrot.slane %v8881_v10, %v7711_v48 }
 0x27a   :  { %v1690_v24 = vsel %vm1689_vm11, %v8548_v19, %v12169_v54  ;;  %v1693_v32 = vsel %vm1689_vm11, %v12169_v54, %v12165_v5  ;;  %v12170_v56 = vrot.slane %v8941_v45, %v7705_v0  ;;  %v12171_v10 = vrot.slane %v8941_v45, %v7702_v12 }
 0x27b   :  { %v1667_v59 = vmul.f32 %v12167_v41, %v1638_v15  ;;  %v1668_v44 = vmul.f32 %v12168_v50, %v1641_v2  ;;  %v1627_v2 = vadd.f32 %v1623_v22, %v1575_v34  ;;  %v1628_v41 = vadd.f32 %v1624_v31, %v1576_v35  ;;  %v12174_v34 = vld [vmem:[#allocation20_spill] sm:$0xff]  ;;  %v12175_v35 = vld [vmem:[#allocation13_spill] sm:$0xff] }
 0x27c   :  { %v1717_v47 = vmul.f32 %v12170_v56, %v1692_v7  ;;  %v1718_v43 = vmul.f32 %v12171_v10, %v1691_v40  ;;  %v9810_v7 = vpop.permute.xlu1 %2253  ;;  %v12172_v40 = vrot.slane %v8941_v45, %v7708_v20  ;;  %v12173_v56 = vrot.slane %v8941_v45, %v7711_v48  ;;  %v12176_v31 = vld [vmem:[#allocation29_spill] sm:$0xff]  ;;  %v12178_v45 = vld [vmem:[#allocation14_spill] sm:$0xff] }
 0x27d   :  { %v1743_v22 = vsel %vm1741_vm12, %v12175_v35, %v12174_v34  ;;  %v1744_v5 = vsel %vm1741_vm12, %v12176_v31, %v12175_v35  ;;  %v1677_v54 = vadd.f32 %v1673_v60, %v1625_v39  ;;  %v1678_v19 = vadd.f32 %v1674_v8, %v1626_v16  ;;  %v9839_v60 = vld [vmem:[%s11468_s2 + $0xa2] ss:$8 sm:$0xf] }
 0x27e   :  { %v1719_v50 = vmul.f32 %v12172_v40, %v1690_v24  ;;  %v1720_v10 = vmul.f32 %v12173_v56, %v1693_v32  ;;  %v1675_v15 = vmul.f32 %v12166_v21, %v1667_v59  ;;  %v1676_v24 = vmul.f32 %v12166_v21, %v1668_v44  ;;  %v9828_v40 = vpop.permute.xlu0 %2346  ;;  %12179 = vst [vmem:[#allocation76_spill] sm:$0xff] %v9839_v60  ;;  %v12182_v16 = vld [vmem:[#allocation19_spill] sm:$0xff] }
 0x27f   :  { %12177 = vst [vmem:[#allocation77_spill] sm:$0xff] %v9828_v40  ;;  %v1725_v32 = vmul.f32 %v12178_v45, %v1717_v47  ;;  %v1726_v56 = vmul.f32 %v12178_v45, %v1718_v43  ;;  %v12180_v44 = vrot.slane %v9059_v18, %v7705_v0  ;;  %v12181_v21 = vrot.slane %v9059_v18, %v7702_v12 }
 0x280   :  { %v1742_v8 = vsel %vm1741_vm12, %v12174_v34, %v12182_v16  ;;  %v1745_v47 = vsel %vm1741_vm12, %v12182_v16, %v12176_v31  ;;  %v9855_v43 = vpop.permute.xlu1 %2255  ;;  %v1727_v35 = vmul.f32 %v12178_v45, %v1719_v50  ;;  %v1679_v23 = vadd.f32 %v1675_v15, %v1627_v2  ;;  %v9881_v15 = vld [vmem:[%s11468_s2 + $0xa3] ss:$8 sm:$0xf] }
 0x281   :  { %v1769_v59 = vmul.f32 %v12180_v44, %v1744_v5  ;;  %v1770_v39 = vmul.f32 %v12181_v21, %v1743_v22  ;;  %v1728_v5 = vmul.f32 %v12178_v45, %v1720_v10  ;;  %v12183_v44 = vld [vmem:[#allocation33_spill] sm:$0xff]  ;;  %v1680_v31 = vadd.f32 %v1676_v24, %v1628_v41  ;;  %12187 = vst [vmem:[#allocation80_spill] sm:$0xff] %v9881_v15  ;;  %v12188_v2 = vld [vmem:[#allocation15_spill] sm:$0xff] }
 0x282   :  { %v1795_v22 = vsel %vm1793_vm13, %v12183_v44, %v8752_v27  ;;  %v12184_v21 = vld [vmem:[#allocation117_spill] sm:$0xff]  ;;  %v1729_v10 = vadd.f32 %v1725_v32, %v1677_v54  ;;  %v1730_v45 = vadd.f32 %v1726_v56, %v1678_v19  ;;  %v12185_v13 = vrot.slane %v9059_v18, %v7708_v20  ;;  %v9891_v56 = vpop.permute.xlu0 %2257 }
 0x283   :  { %v1796_v34 = vsel %vm1793_vm13, %v12184_v21, %v12183_v44  ;;  %v12186_v62 = vrot.slane %v9059_v18, %v7711_v48  ;;  %v1777_v41 = vmul.f32 %v12188_v2, %v1769_v59  ;;  %v1778_v24 = vmul.f32 %v12188_v2, %v1770_v39  ;;  %v12194_v39 = vld [vmem:[#allocation23_spill] sm:$0xff] }
 0x284   :  { %v1771_v33 = vmul.f32 %v12185_v13, %v1742_v8  ;;  %v12189_v19 = vrot.slane %v9160_v46, %v7705_v0  ;;  %v12190_v13 = vrot.slane %v9160_v46, %v7702_v12  ;;  %v9893_v18 = vpop.permute.xlu1 %2259  ;;  %v1732_v8 = vadd.f32 %v1728_v5, %v1680_v31 }
 0x285   :  { %v1772_v44 = vmul.f32 %v12186_v62, %v1745_v47  ;;  %v1731_v62 = vadd.f32 %v1727_v35, %v1679_v23  ;;  %vm1949_vm5 = vcmp.lt.s32.totalorder %v7694_v1, 98  ;;  %v12191_v47 = vld [vmem:[#allocation18_spill] sm:$0xff]  ;;  %v1782_v59 = vadd.f32 %v1778_v24, %v1730_v45  ;;  %v12195_v23 = vld [vmem:[#allocation17_spill] sm:$0xff] }
 0x286   :  { %v1821_v54 = vmul.f32 %v12189_v19, %v1796_v34  ;;  %v1822_v32 = vmul.f32 %v12190_v13, %v1795_v22  ;;  %v1794_v34 = vsel %vm1793_vm13, %v8752_v27, %v12191_v47  ;;  %v1797_v22 = vsel %vm1793_vm13, %v12191_v47, %v12184_v21  ;;  %v12192_v19 = vld [vmem:[#allocation43_spill] sm:$0xff]  ;;  %v12193_v13 = vld [vmem:[#allocation118_spill] sm:$0xff]  ;;  %v9924_v16 = vpop.permute.xlu0 %2398 }
 0x287   :  { %v1779_v5 = vmul.f32 %v12188_v2, %v1771_v33  ;;  %v1780_v31 = vmul.f32 %v12188_v2, %v1772_v44  ;;  %v1847_v27 = vsel %vm1845_vm0, %v12193_v13, %v12192_v19  ;;  %v1848_v21 = vsel %vm1845_vm0, %v12194_v39, %v12193_v13  ;;  %12196 = vst [vmem:[#allocation92_spill] sm:$0xff] %v9924_v16  ;;  %v9931_v44 = vld [vmem:[%s11468_s2 + $0xa4] ss:$8 sm:$0xf] }
 0x288   :  { %v1781_v47 = vadd.f32 %v1777_v41, %v1729_v10  ;;  %v1829_v50 = vmul.f32 %v12195_v23, %v1821_v54  ;;  %v1830_v35 = vmul.f32 %v12195_v23, %v1822_v32  ;;  %v9926_v33 = vpop.permute.xlu1 %2305  ;;  %12197 = vst [vmem:[#allocation79_spill] sm:$0xff] %v9931_v44  ;;  %v12198_v2 = vrot.slane %v9160_v46, %v7708_v20  ;;  %v12200_v41 = vld [vmem:[#allocation22_spill] sm:$0xff] }
 0x289   :  { %v12199_v10 = vrot.slane %v9160_v46, %v7711_v48  ;;  %v1846_v24 = vsel %vm1845_vm0, %v12192_v19, %v12200_v41  ;;  %v1849_v54 = vsel %vm1845_vm0, %v12200_v41, %v12194_v39  ;;  %v12201_v32 = vrot.slane %v9293_v51, %v7705_v0  ;;  %v12205_v46 = vld [vmem:[#allocation30_spill] sm:$0xff] }
 0x28a   :  { %v1823_v61 = vmul.f32 %v12198_v2, %v1794_v34  ;;  %v12202_v34 = vrot.slane %v9293_v51, %v7702_v12  ;;  %v1783_v19 = vadd.f32 %v1779_v5, %v1731_v62  ;;  %vm2001_vm6 = vcmp.lt.s32.totalorder %v7694_v1, 97  ;;  %v9982_v16 = vpop.permute.xlu0 %2309 }
 0x28b   :  { %v1824_v45 = vmul.f32 %v12199_v10, %v1797_v22  ;;  %v1873_v13 = vmul.f32 %v12201_v32, %v1848_v21  ;;  %v1784_v10 = vadd.f32 %v1780_v31, %v1732_v8  ;;  %v12203_v41 = vrot.slane %v9293_v51, %v7708_v20  ;;  %v12206_v22 = vld [vmem:[#allocation26_spill] sm:$0xff]  ;;  %v12207_v8 = vld [vmem:[#allocation21_spill] sm:$0xff] }
 0x28c   :  { %v1874_v2 = vmul.f32 %v12202_v34, %v1847_v27  ;;  %v12204_v32 = vrot.slane %v9293_v51, %v7711_v48  ;;  %v1899_v62 = vsel %vm1897_vm4, %v12206_v22, %v12205_v46  ;;  %v1900_v5 = vsel %vm1897_vm4, %v12207_v8, %v12206_v22  ;;  %v9976_v31 = vpop.permute.xlu1 %2307  ;;  %v12208_v51 = vld [vmem:[#allocation38_spill] sm:$0xff] }
 0x28d   :  { %v1875_v27 = vmul.f32 %v12203_v41, %v1846_v24  ;;  %v1833_v21 = vadd.f32 %v1829_v50, %v1781_v47  ;;  %v1834_v39 = vadd.f32 %v1830_v35, %v1782_v59  ;;  %v1831_v24 = vmul.f32 %v12195_v23, %v1823_v61  ;;  %v9991_v50 = vld [vmem:[%s11468_s2 + $0xa5] ss:$8 sm:$0xf] }
 0x28e   :  { %v1876_v34 = vmul.f32 %v12204_v32, %v1849_v54  ;;  %v1832_v41 = vmul.f32 %v12195_v23, %v1824_v45  ;;  %v1881_v54 = vmul.f32 %v12208_v51, %v1873_v13  ;;  %v1882_v32 = vmul.f32 %v12208_v51, %v1874_v2  ;;  %v12211_v47 = vld [vmem:[#allocation119_spill] sm:$0xff]  ;;  %v10030_v60 = vpop.permute.xlu0 %2450 }
 0x28f   :  { %v12209_v61 = vrot.slane %v9459_v42, %v7705_v0  ;;  %v12210_v23 = vrot.slane %v9459_v42, %v7702_v12  ;;  %v1898_v45 = vsel %vm1897_vm4, %v12205_v46, %v12211_v47  ;;  %v1901_v13 = vsel %vm1897_vm4, %v12211_v47, %v12207_v8  ;;  %12216 = vst [vmem:[#allocation85_spill] sm:$0xff] %v10030_v60  ;;  %v12235_v60 = vld [vmem:[#allocation78_spill] sm:$0xff] }
 0x290   :  { %v1883_v2 = vmul.f32 %v12208_v51, %v1875_v27  ;;  %v1884_v22 = vmul.f32 %v12208_v51, %v1876_v34  ;;  %vm2053_vm13 = vcmp.lt.s32.totalorder %v7694_v1, 96  ;;  %v10018_v46 = vpop.permute.xlu1 %2311  ;;  %v1835_v40 = vadd.f32 %v1831_v24, %v1783_v19  ;;  %v10035_v19 = vld [vmem:[%s11468_s2 + $0xa6] ss:$8 sm:$0xf] }
 0x291   :  { %v1925_v59 = vmul.f32 %v12209_v61, %v1900_v5  ;;  %v1926_v35 = vmul.f32 %v12210_v23, %v1899_v62  ;;  %v12212_v5 = vld [vmem:[#allocation31_spill] sm:$0xff]  ;;  %v1836_v8 = vadd.f32 %v1832_v41, %v1784_v10  ;;  %v1885_v51 = vadd.f32 %v1881_v54, %v1833_v21  ;;  %v12217_v10 = vld [vmem:[#allocation24_spill] sm:$0xff] }
 0x292   :  { %v1951_v61 = vsel %vm1949_vm5, %v12212_v5, %v9137_v4  ;;  %v12213_v62 = vld [vmem:[#allocation27_spill] sm:$0xff]  ;;  %v1886_v47 = vadd.f32 %v1882_v32, %v1834_v39  ;;  %v12214_v44 = vrot.slane %v9459_v42, %v7708_v20  ;;  %v12218_v39 = vrot.slane %v9532_v25, %v7705_v0 }
 0x293   :  { %v1952_v23 = vsel %vm1949_vm5, %v12213_v62, %v12212_v5  ;;  %v12215_v5 = vrot.slane %v9459_v42, %v7711_v48  ;;  %v1933_v24 = vmul.f32 %v12217_v10, %v1925_v59  ;;  %v1934_v21 = vmul.f32 %v12217_v10, %v1926_v35  ;;  %v12220_v35 = vld [vmem:[#allocation48_spill] sm:$0xff] }
 0x294   :  { %v1927_v6 = vmul.f32 %v12214_v44, %v1898_v45  ;;  %v1977_v41 = vmul.f32 %v12218_v39, %v1952_v23  ;;  %v12219_v44 = vrot.slane %v9532_v25, %v7702_v12  ;;  %vm2105_vm0 = vcmp.lt.s32.totalorder %v7694_v1, 95  ;;  %v10046_v45 = vpop.permute.xlu1 %2357  ;;  %v12222_v39 = vld [vmem:[#allocation58_spill] sm:$0xff] }
 0x295   :  { %v1928_v15 = vmul.f32 %v12215_v5, %v1901_v13  ;;  %v1887_v54 = vadd.f32 %v1883_v2, %v1835_v40  ;;  %v1888_v32 = vadd.f32 %v1884_v22, %v1836_v8  ;;  %v1950_v23 = vsel %vm1949_vm5, %v9137_v4, %v12220_v35  ;;  %v12221_v5 = vld [vmem:[#allocation59_spill] sm:$0xff]  ;;  %v12224_v13 = vld [vmem:[#allocation25_spill] sm:$0xff] }
 0x296   :  { %v1978_v42 = vmul.f32 %v12219_v44, %v1951_v61  ;;  %v1953_v61 = vsel %vm1949_vm5, %v12220_v35, %v12213_v62  ;;  %v1935_v2 = vmul.f32 %v12217_v10, %v1927_v6  ;;  %v2003_v4 = vsel %vm2001_vm6, %v12222_v39, %v12221_v5  ;;  %v12223_v44 = vld [vmem:[#allocation34_spill] sm:$0xff] }
 0x297   :  { %v1936_v8 = vmul.f32 %v12217_v10, %v1928_v15  ;;  %v2004_v62 = vsel %vm2001_vm6, %v12223_v44, %v12222_v39  ;;  %v1937_v35 = vadd.f32 %v1933_v24, %v1885_v51  ;;  %v1938_v59 = vadd.f32 %v1934_v21, %v1886_v47  ;;  %v10079_v6 = vld [vmem:[%s11468_s2 + $0xa7] ss:$8 sm:$0xf]  ;;  %v10095_v24 = vpop.permute.xlu0 %2361 }
 0x298   :  { %v1985_v40 = vmul.f32 %v12224_v13, %v1977_v41  ;;  %v1986_v22 = vmul.f32 %v12224_v13, %v1978_v42  ;;  %v12225_v15 = vrot.slane %v9532_v25, %v7708_v20  ;;  %v12226_v34 = vrot.slane %v9532_v25, %v7711_v48  ;;  %v12227_v39 = vld [vmem:[#allocation47_spill] sm:$0xff]  ;;  %v10097_v21 = vpop.permute.xlu1 %2359 }
 0x299   :  { %v2002_v51 = vsel %vm2001_vm6, %v12221_v5, %v12227_v39  ;;  %v2005_v47 = vsel %vm2001_vm6, %v12227_v39, %v12223_v44  ;;  %v12228_v41 = vrot.slane %v9579_v14, %v7705_v0  ;;  %v12229_v25 = vrot.slane %v9579_v14, %v7702_v12 }
 0x29a   :  { %v1979_v10 = vmul.f32 %v12225_v15, %v1950_v23  ;;  %v1980_v27 = vmul.f32 %v12226_v34, %v1953_v61  ;;  %vm2157_vm4 = vcmp.lt.s32.totalorder %v7694_v1, 94  ;;  %v1939_v5 = vadd.f32 %v1935_v2, %v1887_v54  ;;  %v12232_v23 = vld [vmem:[#allocation56_spill] sm:$0xff] }
 0x29b   :  { %v2029_v42 = vmul.f32 %v12228_v41, %v2004_v62  ;;  %v2030_v34 = vmul.f32 %v12229_v25, %v2003_v4  ;;  %v1940_v44 = vadd.f32 %v1936_v8, %v1888_v32  ;;  %v12230_v39 = vrot.slane %v9579_v14, %v7708_v20  ;;  %v12233_v32 = vld [vmem:[#allocation51_spill] sm:$0xff] }
 0x29c   :  { %v12231_v41 = vrot.slane %v9579_v14, %v7711_v48  ;;  %v2055_v54 = vsel %vm2053_vm13, %v12232_v23, %v9482_v17  ;;  %v2056_v2 = vsel %vm2053_vm13, %v12233_v32, %v12232_v23  ;;  %v1989_v8 = vadd.f32 %v1985_v40, %v1937_v35  ;;  %v10131_v14 = vpop.permute.xlu1 %2363 }
 0x29d   :  { %v2031_v4 = vmul.f32 %v12230_v39, %v2002_v51  ;;  %v1990_v61 = vadd.f32 %v1986_v22, %v1938_v59  ;;  %v1987_v62 = vmul.f32 %v12224_v13, %v1979_v10  ;;  %v1988_v51 = vmul.f32 %v12224_v13, %v1980_v27  ;;  %v12234_v39 = vld [vmem:[#allocation40_spill] sm:$0xff] }
 0x29e   :  { %v2032_v25 = vmul.f32 %v12231_v41, %v2005_v47  ;;  %vm2209_vm5 = vcmp.lt.s32.totalorder %v7694_v1, 93  ;;  %v10133_v47 = vpop.permute.xlu0 %2502  ;;  %v2037_v41 = vmul.f32 %v12234_v39, %v2029_v42  ;;  %v2038_v15 = vmul.f32 %v12234_v39, %v2030_v34 }
 0x29f   :  { %v2054_v40 = vsel %vm2053_vm13, %v9482_v17, %v12235_v60  ;;  %v2057_v27 = vsel %vm2053_vm13, %v12235_v60, %v12233_v32  ;;  %v12236_v13 = vrot.slane %v9625_v57, %v7705_v0  ;;  %v12237_v22 = vrot.slane %v9625_v57, %v7702_v12  ;;  %v12238_v17 = vld [vmem:[#allocation69_spill] sm:$0xff] }
 0x2a0   :  { %v2107_v10 = vsel %vm2105_vm0, %v9484_v26, %v9589_v36  ;;  %v2108_v42 = vsel %vm2105_vm0, %v12238_v17, %v9484_v26  ;;  %v2039_v60 = vmul.f32 %v12234_v39, %v2031_v4  ;;  %v2040_v34 = vmul.f32 %v12234_v39, %v2032_v25 }
 0x2a1   :  { %v2081_v59 = vmul.f32 %v12236_v13, %v2056_v2  ;;  %v2082_v35 = vmul.f32 %v12237_v22, %v2055_v54  ;;  %v2106_v23 = vsel %vm2105_vm0, %v9589_v36, %v9523_v11  ;;  %v2109_v54 = vsel %vm2105_vm0, %v9523_v11, %v12238_v17  ;;  %v10175_v13 = vpop.permute.xlu1 %2409 }
 0x2a2   :  { %v12239_v32 = vrot.slane %v9625_v57, %v7708_v20  ;;  %v12240_v26 = vrot.slane %v9625_v57, %v7711_v48  ;;  %v1991_v39 = vadd.f32 %v1987_v62, %v1939_v5  ;;  %v1992_v22 = vadd.f32 %v1988_v51, %v1940_v44  ;;  %v12243_v57 = vld [vmem:[#allocation52_spill] sm:$0xff]  ;;  %v10196_v62 = vpop.permute.xlu0 %2413 }
 0x2a3   :  { %v12241_v11 = vrot.slane %v9685_v3, %v7705_v0  ;;  %vm2261_vm6 = vcmp.lt.s32.totalorder %v7694_v1, 83  ;;  %v12244_v25 = vrot.slane %v9685_v3, %v7708_v20  ;;  %v12245_v5 = vrot.slane %v9685_v3, %v7711_v48 }
 0x2a4   :  { %v2083_v2 = vmul.f32 %v12239_v32, %v2054_v40  ;;  %v2084_v4 = vmul.f32 %v12240_v26, %v2057_v27  ;;  %v12242_v40 = vrot.slane %v9685_v3, %v7702_v12  ;;  %v2089_v27 = vmul.f32 %v12243_v57, %v2081_v59 }
 0x2a5   :  { %v2133_v17 = vmul.f32 %v12241_v11, %v2108_v42  ;;  %v2090_v26 = vmul.f32 %v12243_v57, %v2082_v35  ;;  %v2135_v36 = vmul.f32 %v12244_v25, %v2106_v23  ;;  %v2136_v44 = vmul.f32 %v12245_v5, %v2109_v54 }
 0x2a6   :  { %v2134_v32 = vmul.f32 %v12242_v40, %v2107_v10  ;;  %v2041_v51 = vadd.f32 %v2037_v41, %v1989_v8  ;;  %v2042_v42 = vadd.f32 %v2038_v15, %v1990_v61  ;;  %v2043_v11 = vadd.f32 %v2039_v60, %v1991_v39  ;;  %v10209_v8 = vpop.permute.xlu1 %2411  ;;  %v12246_v61 = vld [vmem:[#allocation83_spill] sm:$0xff] }
 0x2a7   :  { %v2044_v10 = vadd.f32 %v2040_v34, %v1992_v22  ;;  %vm2313_vm13 = vcmp.lt.s32.totalorder %v7694_v1, 82  ;;  %v2091_v59 = vmul.f32 %v12243_v57, %v2083_v2  ;;  %v2092_v35 = vmul.f32 %v12243_v57, %v2084_v4 }
 0x2a8   :  { %v2159_v23 = vsel %vm2157_vm4, %v9608_v30, %v9687_v53  ;;  %v2160_v3 = vsel %vm2157_vm4, %v9568_v49, %v9608_v30  ;;  %v2141_v15 = vmul.f32 %v12246_v61, %v2133_v17  ;;  %v2142_v41 = vmul.f32 %v12246_v61, %v2134_v32  ;;  %v10224_v30 = vld [vmem:[%s11468_s2 + $0xc0] ss:$8 sm:$0xf] }
 0x2a9   :  { %v2158_v60 = vsel %vm2157_vm4, %v9687_v53, %v9653_v29  ;;  %v2161_v34 = vsel %vm2157_vm4, %v9653_v29, %v9568_v49  ;;  %v2093_v54 = vadd.f32 %v2089_v27, %v2041_v51  ;;  %v2094_v2 = vadd.f32 %v2090_v26, %v2042_v42  ;;  %v10248_v27 = vpop.permute.xlu0 %2554 }
 0x2aa   :  { %v2143_v4 = vmul.f32 %v12246_v61, %v2135_v36  ;;  %v2144_v25 = vmul.f32 %v12246_v61, %v2136_v44  ;;  %v12247_v39 = vrot.slane %v9729_v58, %v7705_v0  ;;  %v12248_v22 = vrot.slane %v9729_v58, %v7702_v12  ;;  %v10250_v26 = vpop.permute.xlu1 %2415 }
 0x2ab   :  { %v2211_v49 = vsel %vm2209_vm5, %v9733_v55, %v9793_v38  ;;  %v2212_v29 = vsel %vm2209_vm5, %v9689_v52, %v9733_v55  ;;  %v12249_v36 = vrot.slane %v9729_v58, %v7708_v20  ;;  %v12250_v32 = vrot.slane %v9729_v58, %v7711_v48 }
 0x2ac   :  { %v2185_v53 = vmul.f32 %v12247_v39, %v2160_v3  ;;  %v2186_v17 = vmul.f32 %v12248_v22, %v2159_v23  ;;  %v2584_v5 = vrot.slane %v10224_v30, %v7705_v0  ;;  %v2588_v44 = vrot.slane %v10224_v30, %v7702_v12 }
 0x2ad   :  { %v2187_v40 = vmul.f32 %v12249_v36, %v2158_v60  ;;  %v2188_v57 = vmul.f32 %v12250_v32, %v2161_v34  ;;  %v2095_v51 = vadd.f32 %v2091_v59, %v2043_v11  ;;  %v2096_v55 = vadd.f32 %v2092_v35, %v2044_v10 }
 0x2ae   :  { %v2145_v42 = vadd.f32 %v2141_v15, %v2093_v54  ;;  %v2146_v23 = vadd.f32 %v2142_v41, %v2094_v2  ;;  %vm2365_vm0 = vcmp.lt.s32.totalorder %v7694_v1, 81  ;;  %v12251_v58 = vrot.slane %v9777_v37, %v7705_v0 }
 0x2af   :  { %v12252_v61 = vrot.slane %v9777_v37, %v7702_v12  ;;  %v2210_v34 = vsel %vm2209_vm5, %v9793_v38, %v9770_v28  ;;  %v2213_v11 = vsel %vm2209_vm5, %v9770_v28, %v9689_v52  ;;  %v2147_v10 = vadd.f32 %v2143_v4, %v2095_v51  ;;  %v10283_v28 = vpop.permute.xlu1 %2461 }
 0x2b0   :  { %v2237_v3 = vmul.f32 %v12251_v58, %v2212_v29  ;;  %v2148_v59 = vadd.f32 %v2144_v25, %v2096_v55  ;;  %v2193_v35 = vmul.f32 %v9521_v9, %v2185_v53  ;;  %v2194_v15 = vmul.f32 %v9521_v9, %v2186_v17 }
 0x2b1   :  { %v2238_v60 = vmul.f32 %v12252_v61, %v2211_v49  ;;  %v2195_v41 = vmul.f32 %v9521_v9, %v2187_v40  ;;  %v2196_v54 = vmul.f32 %v9521_v9, %v2188_v57  ;;  %v2263_v38 = vsel %vm2261_vm6, %v9855_v43, %v9891_v56  ;;  %v12255_v49 = vld [vmem:[#allocation76_spill] sm:$0xff] }
 0x2b2   :  { %v2264_v52 = vsel %vm2261_vm6, %v9810_v7, %v9855_v43  ;;  %v12253_v2 = vrot.slane %v9777_v37, %v7708_v20  ;;  %v12254_v25 = vrot.slane %v9777_v37, %v7711_v48  ;;  %v2262_v39 = vsel %vm2261_vm6, %v9891_v56, %v9893_v18  ;;  %v10310_v56 = vpop.permute.xlu0 %2465 }
 0x2b3   :  { %v2265_v43 = vsel %vm2261_vm6, %v9893_v18, %v9810_v7  ;;  %v2245_v53 = vmul.f32 %v9627_v63, %v2237_v3  ;;  %v2246_v22 = vmul.f32 %v9627_v63, %v2238_v60  ;;  %v2315_v37 = vsel %vm2313_vm13, %v9976_v31, %v9982_v16  ;;  %v2464_v61 = vpop.permute.xlu1 %2463 }
 0x2b4   :  { %v2239_v4 = vmul.f32 %v12253_v2, %v2210_v34  ;;  %v2240_v9 = vmul.f32 %v12254_v25, %v2213_v11  ;;  %v2316_v17 = vsel %vm2313_vm13, %v9926_v33, %v9976_v31  ;;  %vm2417_vm4 = vcmp.lt.s32.totalorder %v7694_v1, 80  ;;  %v12260_v34 = vld [vmem:[#allocation80_spill] sm:$0xff] }
 0x2b5   :  { %v12256_v7 = vrot.slane %v12255_v49, %v7705_v0  ;;  %v12257_v29 = vrot.slane %v12255_v49, %v7702_v12  ;;  %v2314_v40 = vsel %vm2313_vm13, %v9982_v16, %v10018_v46  ;;  %v2317_v31 = vsel %vm2313_vm13, %v10018_v46, %v9926_v33 }
 0x2b6   :  { %v2197_v32 = vadd.f32 %v2193_v35, %v2145_v42  ;;  %v2198_v57 = vadd.f32 %v2194_v15, %v2146_v23  ;;  %v12258_v51 = vrot.slane %v12255_v49, %v7708_v20  ;;  %v12259_v58 = vrot.slane %v12255_v49, %v7711_v48 }
 0x2b7   :  { %v2289_v18 = vmul.f32 %v12256_v7, %v2264_v52  ;;  %v2290_v36 = vmul.f32 %v12257_v29, %v2263_v38  ;;  %vm2469_vm5 = vcmp.lt.s32.totalorder %v7694_v1, 79  ;;  %v2247_v16 = vmul.f32 %v9627_v63, %v2239_v4  ;;  %v10347_v4 = vpop.permute.xlu0 %2606 }
 0x2b8   :  { %v2291_v55 = vmul.f32 %v12258_v51, %v2262_v39  ;;  %v2292_v3 = vmul.f32 %v12259_v58, %v2265_v43  ;;  %v2248_v60 = vmul.f32 %v9627_v63, %v2240_v9  ;;  %v12261_v33 = vrot.slane %v12260_v34, %v7705_v0  ;;  %v12265_v9 = vld [vmem:[#allocation74_spill] sm:$0xff] }
 0x2b9   :  { %v12262_v42 = vrot.slane %v12260_v34, %v7702_v12  ;;  %v2199_v11 = vadd.f32 %v2195_v41, %v2147_v10  ;;  %v2200_v35 = vadd.f32 %v2196_v54, %v2148_v59  ;;  %v12263_v15 = vrot.slane %v12260_v34, %v7708_v20 }
 0x2ba   :  { %v2341_v46 = vmul.f32 %v12261_v33, %v2316_v17  ;;  %v12264_v52 = vrot.slane %v12260_v34, %v7711_v48  ;;  %vm2521_vm6 = vcmp.lt.s32.totalorder %v7694_v1, 78  ;;  %v2249_v63 = vadd.f32 %v2245_v53, %v2197_v32  ;;  %v2468_v53 = vpop.permute.xlu1 %2467  ;;  %v12266_v17 = vld [vmem:[#allocation77_spill] sm:$0xff] }
 0x2bb   :  { %v2342_v23 = vmul.f32 %v12262_v42, %v2315_v37  ;;  %v2343_v38 = vmul.f32 %v12263_v15, %v2314_v40  ;;  %v2250_v25 = vadd.f32 %v2246_v22, %v2198_v57  ;;  %v2297_v39 = vmul.f32 %v12265_v9, %v2289_v18  ;;  %v12267_v40 = vld [vmem:[#allocation79_spill] sm:$0xff]  ;;  %v2518_v34 = vpop.permute.xlu0 %2517 }
 0x2bc   :  { %v2344_v2 = vmul.f32 %v12264_v52, %v2317_v31  ;;  %v2298_v43 = vmul.f32 %v12265_v9, %v2290_v36  ;;  %v2299_v10 = vmul.f32 %v12265_v9, %v2291_v55  ;;  %v2300_v59 = vmul.f32 %v12265_v9, %v2292_v3 }
 0x2bd   :  { %v2367_v41 = vsel %vm2365_vm0, %v10097_v21, %v10095_v24  ;;  %v2368_v54 = vsel %vm2365_vm0, %v10046_v45, %v10097_v21  ;;  %v2251_v22 = vadd.f32 %v2247_v16, %v2199_v11  ;;  %v2252_v37 = vadd.f32 %v2248_v60, %v2200_v35 }
 0x2be   :  { %v2349_v49 = vmul.f32 %v12266_v17, %v2341_v46  ;;  %v2350_v7 = vmul.f32 %v12266_v17, %v2342_v23  ;;  %v2351_v18 = vmul.f32 %v12266_v17, %v2343_v38  ;;  %v2352_v29 = vmul.f32 %v12266_v17, %v2344_v2  ;;  %v12272_v2 = vld [vmem:[#allocation92_spill] sm:$0xff] }
 0x2bf   :  { %v2366_v36 = vsel %vm2365_vm0, %v10095_v24, %v10131_v14  ;;  %v2369_v21 = vsel %vm2365_vm0, %v10131_v14, %v10046_v45  ;;  %v12268_v31 = vrot.slane %v12267_v40, %v7705_v0  ;;  %v12269_v57 = vrot.slane %v12267_v40, %v7702_v12  ;;  %v2514_v45 = vpop.permute.xlu1 %2513 }
 0x2c0   :  { %v2592_v55 = vrot.slane %v10224_v30, %v7708_v20  ;;  %v2596_v58 = vrot.slane %v10224_v30, %v7711_v48  ;;  %v2301_v24 = vadd.f32 %v2297_v39, %v2249_v63  ;;  %v2302_v3 = vadd.f32 %v2298_v43, %v2250_v25 }
 0x2c1   :  { %v2393_v32 = vmul.f32 %v12268_v31, %v2368_v54  ;;  %v2394_v51 = vmul.f32 %v12269_v57, %v2367_v41  ;;  %v2303_v16 = vadd.f32 %v2299_v10, %v2251_v22  ;;  %v2304_v60 = vadd.f32 %v2300_v59, %v2252_v37 }
 0x2c2   :  { %v12270_v14 = vrot.slane %v12267_v40, %v7708_v20  ;;  %v12271_v46 = vrot.slane %v12267_v40, %v7711_v48  ;;  %v2419_v23 = vsel %vm2417_vm4, %v10209_v8, %v10196_v62  ;;  %v2420_v11 = vsel %vm2417_vm4, %v10175_v13, %v10209_v8 }
 0x2c3   :  { %v2353_v35 = vadd.f32 %v2349_v49, %v2301_v24  ;;  %v2354_v15 = vadd.f32 %v2350_v7, %v2302_v3  ;;  %v2355_v38 = vadd.f32 %v2351_v18, %v2303_v16  ;;  %v2356_v52 = vadd.f32 %v2352_v29, %v2304_v60  ;;  %v2516_v22 = vpop.permute.xlu1 %2515  ;;  %v12279_v24 = vld [vmem:[#allocation85_spill] sm:$0xff] }
 0x2c4   :  { %v2395_v33 = vmul.f32 %v12270_v14, %v2366_v36  ;;  %v2396_v42 = vmul.f32 %v12271_v46, %v2369_v21  ;;  %vm2573_vm13 = vcmp.lt.s32.totalorder %v7694_v1, 77  ;;  %v2401_v63 = vmul.f32 %v12272_v2, %v2393_v32  ;;  %v2566_v36 = vpop.permute.xlu0 %2565 }
 0x2c5   :  { %v2402_v25 = vmul.f32 %v12272_v2, %v2394_v51  ;;  %v2471_v9 = vsel %vm2469_vm5, %v2464_v61, %v10310_v56  ;;  %v2472_v39 = vsel %vm2469_vm5, %v10283_v28, %v2464_v61  ;;  %v12273_v8 = vrot.slane %v9991_v50, %v7705_v0 }
 0x2c6   :  { %v12274_v10 = vrot.slane %v9991_v50, %v7702_v12  ;;  %v2418_v41 = vsel %vm2417_vm4, %v10196_v62, %v10250_v26  ;;  %v2421_v54 = vsel %vm2417_vm4, %v10250_v26, %v10175_v13  ;;  %v2403_v61 = vmul.f32 %v12272_v2, %v2395_v33 }
 0x2c7   :  { %v2445_v43 = vmul.f32 %v12273_v8, %v2420_v11  ;;  %v2404_v37 = vmul.f32 %v12272_v2, %v2396_v42  ;;  %v2523_v17 = vsel %vm2521_vm6, %v2516_v22, %v2518_v34  ;;  %v2524_v49 = vsel %vm2521_vm6, %v2514_v45, %v2516_v22  ;;  %v2520_v14 = vpop.permute.xlu1 %2519 }
 0x2c8   :  { %v2446_v59 = vmul.f32 %v12274_v10, %v2419_v23  ;;  %v12275_v7 = vrot.slane %v10035_v19, %v7705_v0  ;;  %v12276_v18 = vrot.slane %v10035_v19, %v7702_v12  ;;  %v2470_v13 = vsel %vm2469_vm5, %v10310_v56, %v2468_v53  ;;  %v2570_v10 = vpop.permute.xlu0 %2569 }
 0x2c9   :  { %v2473_v26 = vsel %vm2469_vm5, %v2468_v53, %v10283_v28  ;;  %v2405_v21 = vadd.f32 %v2401_v63, %v2353_v35  ;;  %v2406_v40 = vadd.f32 %v2402_v25, %v2354_v15  ;;  %v12277_v31 = vrot.slane %v9991_v50, %v7708_v20 }
 0x2ca   :  { %v2497_v62 = vmul.f32 %v12275_v7, %v2472_v39  ;;  %v2498_v29 = vmul.f32 %v12276_v18, %v2471_v9  ;;  %v12278_v57 = vrot.slane %v9991_v50, %v7711_v48  ;;  %v2453_v3 = vmul.f32 %v12279_v24, %v2445_v43 }
 0x2cb   :  { %v2447_v32 = vmul.f32 %v12277_v31, %v2418_v41  ;;  %v2454_v16 = vmul.f32 %v12279_v24, %v2446_v59  ;;  %v12280_v56 = vrot.slane %v10079_v6, %v7705_v0  ;;  %v12281_v28 = vrot.slane %v10079_v6, %v7702_v12  ;;  %v2568_v59 = vpop.permute.xlu1 %2567 }
 0x2cc   :  { %v2448_v51 = vmul.f32 %v12278_v57, %v2421_v54  ;;  %v12282_v33 = vrot.slane %v10035_v19, %v7708_v20  ;;  %v12283_v50 = vrot.slane %v10035_v19, %v7711_v48  ;;  %v2522_v23 = vsel %vm2521_vm6, %v2518_v34, %v2520_v14  ;;  %v2620_v57 = vpop.permute.xlu0 %2619 }
 0x2cd   :  { %v2549_v60 = vmul.f32 %v12280_v56, %v2524_v49  ;;  %v2550_v53 = vmul.f32 %v12281_v28, %v2523_v17  ;;  %v2525_v11 = vsel %vm2521_vm6, %v2520_v14, %v2514_v45  ;;  %v2407_v35 = vadd.f32 %v2403_v61, %v2355_v38 }
 0x2ce   :  { %v2499_v46 = vmul.f32 %v12282_v33, %v2470_v13  ;;  %v2500_v42 = vmul.f32 %v12283_v50, %v2473_v26  ;;  %v2408_v15 = vadd.f32 %v2404_v37, %v2356_v52  ;;  %v2505_v2 = vmul.f32 %v10133_v47, %v2497_v62 }
 0x2cf   :  { %v2506_v63 = vmul.f32 %v10133_v47, %v2498_v29  ;;  %v2455_v25 = vmul.f32 %v12279_v24, %v2447_v32  ;;  %v2456_v9 = vmul.f32 %v12279_v24, %v2448_v51  ;;  %v12284_v19 = vrot.slane %v10079_v6, %v7708_v20 }
 0x2d0   :  { %v12285_v34 = vrot.slane %v10079_v6, %v7711_v48  ;;  %v2457_v43 = vadd.f32 %v2453_v3, %v2405_v21  ;;  %v2458_v45 = vadd.f32 %v2454_v16, %v2406_v40  ;;  %v2557_v38 = vmul.f32 %v10248_v27, %v2549_v60  ;;  %v2572_v40 = vpop.permute.xlu1 %2571 }
 0x2d1   :  { %v2551_v39 = vmul.f32 %v12284_v19, %v2522_v23  ;;  %v2558_v52 = vmul.f32 %v10248_v27, %v2550_v53  ;;  %v2507_v41 = vmul.f32 %v10133_v47, %v2499_v46  ;;  %v2508_v54 = vmul.f32 %v10133_v47, %v2500_v42  ;;  %v12286_v46 = vld [vmem:[#allocation102_spill] sm:$0xff]  ;;  %v12287_v42 = vld [vmem:[#allocation104_spill] sm:$0xff] }
 0x2d2   :  { %v2552_v8 = vmul.f32 %v12285_v34, %v2525_v11  ;;  %v2575_v22 = vsel %vm2573_vm13, %v2568_v59, %v2570_v10  ;;  %v2576_v61 = vsel %vm2573_vm13, %v2566_v36, %v2568_v59  ;;  %v2509_v6 = vadd.f32 %v2505_v2, %v2457_v43 }
 0x2d3   :  { %v2510_v37 = vadd.f32 %v2506_v63, %v2458_v45  ;;  %v2601_v17 = vmul.f32 %v2584_v5, %v2576_v61  ;;  %v2602_v49 = vmul.f32 %v2588_v44, %v2575_v22  ;;  %v2459_v7 = vadd.f32 %v2455_v25, %v2407_v35  ;;  %v12288_v35 = vld [vmem:[#allocation103_spill] sm:$0xff] }
 0x2d4   :  { %v2460_v62 = vadd.f32 %v2456_v9, %v2408_v15  ;;  %v2559_v47 = vmul.f32 %v10248_v27, %v2551_v39  ;;  %v2560_v18 = vmul.f32 %v10248_v27, %v2552_v8  ;;  %v2561_v29 = vadd.f32 %v2557_v38, %v2509_v6 }
 0x2d5   :  { %v2562_v13 = vadd.f32 %v2558_v52, %v2510_v37  ;;  %v2609_v26 = vmul.f32 %v10347_v4, %v2601_v17  ;;  %v2610_v21 = vmul.f32 %v10347_v4, %v2602_v49  ;;  %v2511_v31 = vadd.f32 %v2507_v41, %v2459_v7 }
 0x2d6   :  { %v2512_v32 = vadd.f32 %v2508_v54, %v2460_v62  ;;  %v2574_v5 = vsel %vm2573_vm13, %v2570_v10, %v2572_v40  ;;  %v2577_v44 = vsel %vm2573_vm13, %v2572_v40, %v2566_v36  ;;  %v12290_v62 = vld [vmem:[#allocation6_spill] sm:$0xff]  ;;  %vm3986_vm0 = vcmask 588800  }
 0x2d7   :  { %v2613_v51 = vadd.f32 %v2609_v26, %v2561_v29  ;;  %v2614_v24 = vadd.f32 %v2610_v21, %v2562_v13  ;;  %v2603_v27 = vmul.f32 %v2592_v55, %v2574_v5  ;;  %v2604_v3 = vmul.f32 %v2596_v58, %v2577_v44  ;;  %v12293_v29 = vld [vmem:[#allocation7_spill] sm:$0xff]  ;;  %v12294_v13 = vld [vmem:[#allocation53_spill] sm:$0xff] }
 0x2d8   :  { %v2563_v16 = vadd.f32 %v2559_v47, %v2511_v31  ;;  %v2564_v56 = vadd.f32 %v2560_v18, %v2512_v32  ;;  %v12291_v47 = vmov 0.0   ;;  %v12292_v18 = vld [vmem:[#allocation28_spill] sm:$0xff] }
 0x2d9   :  { %v2611_v60 = vmul.f32 %v10347_v4, %v2603_v27  ;;  %v2612_v28 = vmul.f32 %v10347_v4, %v2604_v3  ;;  %v2622_v53 = vadd.f32 %v2620_v57, %v2613_v51  ;;  %v2623_v14 = vadd.f32 %v2620_v57, %v2614_v24  ;;  %v12289_v4 = vld [vmem:[#allocation105_spill] sm:$0xff] }
 0x2db   :  { %v2615_v36 = vadd.f32 %v2611_v60, %v2563_v16  ;;  %v2616_v33 = vadd.f32 %v2612_v28, %v2564_v56  ;;  %v10504_v50 = vadd.f32 %v12286_v46, %v2622_v53  ;;  %v10507_v23 = vadd.f32 %v12287_v42, %v2623_v14  ;;  %v12295_v42 = vld [vmem:[#allocation32_spill] sm:$0xff] }
 0x2dd   :  { %v2624_v55 = vadd.f32 %v2620_v57, %v2615_v36  ;;  %v2625_v11 = vadd.f32 %v2620_v57, %v2616_v33  ;;  %v2894_v30 = vrot.slane %v10507_v23, 4  ;;  %v2888_v58 = vrot.slane %v10504_v50, 4 }
 0x2de   :  { %v3202_v26 = vmul.f32 %v10507_v23, %v10507_v23 }
 0x2df   :  { %v10512_v15 = vadd.f32 %v12288_v35, %v2624_v55  ;;  %v10515_v2 = vadd.f32 %v12289_v4, %v2625_v11  ;;  %v2895_v63 = vadd.f32 %v2894_v30, %v10507_v23  ;;  %v2889_v25 = vadd.f32 %v2888_v58, %v10504_v50  ;;  %v12296_v55 = vld [vmem:[#allocation36_spill] sm:$0xff]  ;;  %v12297_v11 = vld [vmem:[#allocation35_spill] sm:$0xff]  ;;  %v12298_v30 = vld [vmem:[#allocation42_spill] sm:$0xff] }
 0x2e0   :  { %v3211_v40 = vrot.slane %v3202_v26, 4  ;;  %v12299_v58 = vld [vmem:[#allocation37_spill] sm:$0xff]  ;;  %v12301_v4 = vld [vmem:[#allocation39_spill] sm:$0xff] }
 0x2e1   :  { %v2896_v9 = vrot.slane %v2895_v63, 2  ;;  %v2890_v19 = vrot.slane %v2889_v25, 2  ;;  %v2906_v39 = vrot.slane %v10515_v2, 4  ;;  %v2900_v34 = vrot.slane %v10512_v15, 4  ;;  %v12300_v35 = vld [vmem:[#allocation45_spill] sm:$0xff] }
 0x2e2   :  { %v3204_v21 = vmul.f32 %v10515_v2, %v10515_v2  ;;  %v3212_v32 = vadd.f32 %v3211_v40, %v3202_v26  ;;  %v12316_v26 = vld [vmem:[#allocation67_spill] sm:$0xff]  ;;  %v12318_v40 = vld [vmem:[#allocation70_spill] sm:$0xff] }
 0x2e3   :  { %v2897_v8 = vadd.f32 %v2896_v9, %v2895_v63  ;;  %v2891_v43 = vadd.f32 %v2890_v19, %v2889_v25  ;;  %v2907_v45 = vadd.f32 %v2906_v39, %v10515_v2  ;;  %v2901_v38 = vadd.f32 %v2900_v34, %v10512_v15  ;;  %v12302_v63 = vld [vmem:[#allocation46_spill] sm:$0xff]  ;;  %v12303_v19 = vld [vmem:[#allocation41_spill] sm:$0xff]  ;;  %v12305_v34 = vld [vmem:[#allocation44_spill] sm:$0xff] }
 0x2e4   :  { %v3223_v31 = vrot.slane %v3204_v21, 4  ;;  %v3213_v44 = vrot.slane %v3212_v32, 2  ;;  %v3201_v25 = vmul.f32 %v10504_v50, %v10504_v50  ;;  %v3203_v9 = vmul.f32 %v10512_v15, %v10512_v15  ;;  %v12304_v39 = vld [vmem:[#allocation50_spill] sm:$0xff] }
 0x2e5   :  { %v2898_v52 = vrot.slane %v2897_v8, 1  ;;  %v2892_v10 = vrot.slane %v2891_v43, 1  ;;  %v2908_v59 = vrot.slane %v2907_v45, 2  ;;  %v2902_v41 = vrot.slane %v2901_v38, 2 }
 0x2e6   :  { %v3224_v5 = vadd.f32 %v3223_v31, %v3204_v21  ;;  %v3214_v3 = vadd.f32 %v3213_v44, %v3212_v32  ;;  %v12317_v21 = vld [vmem:[#allocation61_spill] sm:$0xff]  ;;  %v12320_v44 = vld [vmem:[#allocation87_spill] sm:$0xff] }
 0x2e7   :  { %v2899_v54 = vadd.f32 %v2898_v52, %v2897_v8  ;;  %v2893_v22 = vadd.f32 %v2892_v10, %v2891_v43  ;;  %v2909_v61 = vadd.f32 %v2908_v59, %v2907_v45  ;;  %v2903_v6 = vadd.f32 %v2902_v41, %v2901_v38  ;;  %v12306_v8 = vld [vmem:[#allocation68_spill] sm:$0xff]  ;;  %v12307_v38 = vld [vmem:[#allocation63_spill] sm:$0xff]  ;;  %v12308_v52 = vld [vmem:[#allocation54_spill] sm:$0xff] }
 0x2e8   :  { %v3225_v57 = vrot.slane %v3224_v5, 2  ;;  %v3215_v53 = vrot.slane %v3214_v3, 1  ;;  %v3205_v43 = vrot.slane %v3201_v25, 4  ;;  %v3217_v45 = vrot.slane %v3203_v9, 4  ;;  %v12309_v10 = vld [vmem:[#allocation49_spill] sm:$0xff]  ;;  %v12310_v59 = vld [vmem:[#allocation60_spill] sm:$0xff] }
 0x2e9   :  { %2976 = vmatprep.mubr.f32.mxu1 %v2899_v54  ;;  %v2910_v37 = vrot.slane %v2909_v61, 1  ;;  %v2904_v17 = vrot.slane %v2903_v6, 1 }
 0x2ea   :  { %2977 = vmatmul.mubr.f32.vlgmr.msra.gmra.mrb[2].mxu1 %v2893_v22  ;;  %v3226_v16 = vadd.f32 %v3225_v57, %v3224_v5  ;;  %v3216_v33 = vadd.f32 %v3215_v53, %v3214_v3  ;;  %v3206_v41 = vadd.f32 %v3205_v43, %v3201_v25  ;;  %v3218_v54 = vadd.f32 %v3217_v45, %v3203_v9  ;;  %v12311_v22 = vld [vmem:[#allocation55_spill] sm:$0xff]  ;;  %v12319_v5 = vld [vmem:[#allocation64_spill] sm:$0xff]  ;;  %v12321_v57 = vld [vmem:[#allocation66_spill] sm:$0xff] }
 0x2eb   :  { %v2911_v49 = vadd.f32 %v2910_v37, %v2909_v61  ;;  %v2905_v7 = vadd.f32 %v2904_v17, %v2903_v6  ;;  %5914 = vmatpush1.msk.msra.mxu1 %vm2733_vm2, %v12290_v62  ;;  %3119 = vmatprep.mubr.f32.mxu1 %v12291_v47  ;;  %v12312_v61 = vld [vmem:[#allocation62_spill] sm:$0xff]  ;;  %v12313_v6 = vld [vmem:[#allocation57_spill] sm:$0xff]  ;;  %v12323_v3 = vld [vmem:[#allocation75_spill] sm:$0xff] }
 0x2ec   :  { %6314 = vmatprep.subr.bf16.mxu1 %v12292_v18  ;;  %v3227_v14 = vrot.slane %v3226_v16, 1  ;;  %v12314_v37 = vld [vmem:[#allocation65_spill] sm:$0xff]  ;;  %v3207_v17 = vrot.slane %v3206_v41, 2 }
 0x2ed   :  { %3046 = vmatprep.mubr.f32.mxu0 %v2911_v49  ;;  %v3219_v49 = vrot.slane %v3218_v54, 2  ;;  %v12326_v53 = vld [vmem:[#allocation9_spill] sm:$0xff] }
 0x2ee   :  { %3047 = vmatmul.mubr.f32.vlgmr.msra.gmra.mrb[4].mxu0 %v2905_v7  ;;  %v3228_v46 = vadd.f32 %v3227_v14, %v3226_v16  ;;  %v12315_v7 = vld [vmem:[#allocation73_spill] sm:$0xff]  ;;  %v3208_v31 = vadd.f32 %v3207_v17, %v3206_v41  ;;  %v12324_v16 = vld [vmem:[#allocation71_spill] sm:$0xff] }
 0x2ef   :  { %5917 = vmatpush1.msk.msra.mxu0 %vm2733_vm2, %v12293_v29  ;;  %3190 = vmatprep.mubr.f32.mxu0 %v12291_v47  ;;  %v3220_v32 = vadd.f32 %v3219_v49, %v3218_v54 }
 0x2f0   :  { %6346 = vmatprep.subr.bf16.mxu0 %v12294_v13 }
 0x3bd   :  { %v5996_v51 = vpop.f32.mrb[2].mxu1 }
 0x3be   :  { %v5997_v24 = vpop.f32.mrb[3].mxu1 }
 0x3bf   :  { %v5998_v27 = vadd.f32 %v5997_v24, %v5996_v51  ;;  %v12322_v51 = vld [vmem:[#allocation72_spill] sm:$0xff]  ;;  %v3209_v24 = vrot.slane %v3208_v31, 1 }
 0x3c1   :  { %v6031_v56 = vpop.f32.mrb[4].mxu0 }
 0x3c2   :  { %v6032_v60 = vpop.f32.mrb[5].mxu0 }
 0x3c3   :  { %v6033_v28 = vadd.f32 %v6032_v60, %v6031_v56  ;;  %v3210_v56 = vadd.f32 %v3209_v24, %v3208_v31 }
 0x3c5   :  { %v3049_v36 = vadd.f32 %v6033_v28, %v5998_v27  ;;  %v3221_v27 = vrot.slane %v3220_v32, 1  ;;  %v12325_v28 = vld [vmem:[#allocation8_spill] sm:$0xff] }
 0x3c7   :  { %5915 = vmatmul.mubr.msk.f32.vlgmr.msra.gmra.mrb[4].mxu1 %vm2729_vm3, %v3049_v36  ;;  %5918 = vmatmul.mubr.msk.f32.vlgmr.msra.gmra.mrb[6].mxu0 %vm2729_vm3, %v3049_v36  ;;  %v3222_v60 = vadd.f32 %v3221_v27, %v3220_v32 }
 0x3c8   :  { %6316 = vmatpush3.bf16.msra.mxu1 %v12295_v42  ;;  %6348 = vmatpush3.bf16.msra.mxu0 %v12296_v55 }
 0x3c9   :  { %3293 = vmatprep.mubr.f32.mxu1 %v3216_v33  ;;  %3363 = vmatprep.mubr.f32.mxu0 %v3228_v46 }
 0x3ca   :  { %6318 = vmatprep.subr.bf16.mxu1 %v12297_v11  ;;  %6350 = vmatprep.subr.bf16.mxu0 %v12298_v30 }
 0x3cc   :  { %6320 = vmatpush3.bf16.msra.mxu1 %v12299_v58  ;;  %6352 = vmatpush3.bf16.msra.mxu0 %v12300_v35 }
 0x3cd   :  { %6322 = vmatprep.subr.bf16.mxu1 %v12301_v4  ;;  %6354 = vmatprep.subr.bf16.mxu0 %v12302_v63 }
 0x3d0   :  { %6324 = vmatpush3.bf16.msra.mxu1 %v12303_v19  ;;  %6356 = vmatpush3.bf16.msra.mxu0 %v12304_v39 }
 0x3d1   :  { %6326 = vmatprep.subr.bf16.mxu1 %v12305_v34  ;;  %6358 = vmatprep.subr.bf16.mxu0 %v12306_v8 }
 0x3d4   :  { %6328 = vmatpush3.bf16.msra.mxu1 %v12307_v38  ;;  %6360 = vmatpush3.bf16.msra.mxu0 %v12308_v52 }
 0x3d5   :  { %6330 = vmatprep.subr.bf16.mxu1 %v12309_v10  ;;  %6362 = vmatprep.subr.bf16.mxu0 %v12310_v59 }
 0x3d8   :  { %6332 = vmatpush3.bf16.msra.mxu1 %v12311_v22  ;;  %6364 = vmatpush3.bf16.msra.mxu0 %v12312_v61 }
 0x3d9   :  { %6334 = vmatprep.subr.bf16.mxu1 %v12313_v6  ;;  %6366 = vmatprep.subr.bf16.mxu0 %v12314_v37 }
 0x3dc   :  { %6336 = vmatpush3.bf16.msra.mxu1 %v12315_v7  ;;  %6368 = vmatpush3.bf16.msra.mxu0 %v12316_v26 }
 0x3dd   :  { %6338 = vmatprep.subr.bf16.mxu1 %v12317_v21  ;;  %6370 = vmatprep.subr.bf16.mxu0 %v12318_v40 }
 0x3e0   :  { %6340 = vmatpush3.bf16.msra.mxu1 %v12319_v5  ;;  %6372 = vmatpush3.bf16.msra.mxu0 %v12320_v44 }
 0x3e1   :  { %6342 = vmatprep.subr.bf16.mxu1 %v12321_v57  ;;  %6374 = vmatprep.subr.bf16.mxu0 %v12322_v51 }
 0x3e4   :  { %6344 = vmatpush3.bf16.msra.mxu1 %v12323_v3  ;;  %6376 = vmatpush3.bf16.msra.mxu0 %v12324_v16 }
 0x3e5   :  { %5919 = vmatprep.subr.msk.mxu1 %vm2733_vm2, %v12325_v28  ;;  %5922 = vmatprep.subr.msk.mxu0 %vm2733_vm2, %v12326_v53 }
 0x3e7   :  { %3294 = vmatmul.mubr.f32.vlgmr.msra.gmra.mrb[6].mxu1 %v3210_v56  ;;  %3364 = vmatmul.mubr.f32.vlgmr.msra.gmra.mrb[8].mxu0 %v3222_v60 }
 0x3e8   :  { %5920 = vmatpush1.msk.msra.mxu1 %vm2733_vm2, %v12290_v62  ;;  %3436 = vmatprep.mubr.f32.mxu1 %v12291_v47 }
 0x3e9   :  { %5923 = vmatpush1.msk.msra.mxu0 %vm2733_vm2, %v12293_v29  ;;  %3507 = vmatprep.mubr.f32.mxu0 %v12291_v47 }
 0x49a   :  { %v3121_v14 = vpop.f32.mrb[4].mxu1  ;;  %v3192_v36 = vpop.f32.mrb[6].mxu0 }
 0x49b   :  { %v3123_v33 = vpop.f32.mrb[5].mxu1  ;;  %v3194_v46 = vpop.f32.mrb[7].mxu0  ;;  %v3197_v49 = vmul.f32 0.0009765625, %v3121_v14  ;;  %v3199_v31 = vmul.f32 0.0009765625, %v3192_v36 }
 0x49c   :  { %v3198_v32 = vmul.f32 0.0009765625, %v3123_v33  ;;  %v3200_v24 = vmul.f32 0.0009765625, %v3194_v46 }
 0x49d   :  { %v3518_v60 = vmul.f32 %v3197_v49, %v3197_v49  ;;  %v3520_v29 = vmul.f32 %v3199_v31, %v3199_v31 }
 0x4ba   :  { %v6066_v25 = vpop.f32.mrb[6].mxu1  ;;  %v6101_v9 = vpop.f32.mrb[8].mxu0 }
 0x4bb   :  { %v6067_v43 = vpop.f32.mrb[7].mxu1  ;;  %v6102_v45 = vpop.f32.mrb[9].mxu0 }
 0x4bc   :  { %v6068_v41 = vadd.f32 %v6067_v43, %v6066_v25  ;;  %v6103_v54 = vadd.f32 %v6102_v45, %v6101_v9  ;;  %v3519_v45 = vmul.f32 %v3198_v32, %v3198_v32 }
 0x4be   :  { %v3366_v17 = vadd.f32 %v6103_v54, %v6068_v41  ;;  %v3521_v41 = vmul.f32 %v3200_v24, %v3200_v24 }
 0x4c0   :  { %5921 = vmatmul.mubr.msk.f32.vlgmr.msra.gmra.mrb[8].mxu1 %vm2729_vm3, %v3366_v17  ;;  %5924 = vmatmul.mubr.msk.f32.vlgmr.msra.gmra.mrb[10].mxu0 %vm2729_vm3, %v3366_v17 }
 0x4c1   :  { %4057 = vmatprep.mubr.f32.mxu1 %v12291_v47  ;;  %4134 = vmatprep.mubr.f32.mxu0 %v12291_v47 }
 0x593   :  { %v3438_v27 = vpop.f32.mrb[8].mxu1  ;;  %v3509_v56 = vpop.f32.mrb[10].mxu0 }
 0x594   :  { %v3514_v62 = vmul.f32 0.0009765625, %v3438_v27  ;;  %v3516_v25 = vmul.f32 0.0009765625, %v3509_v56  ;;  %v3440_v9 = vpop.f32.mrb[9].mxu1  ;;  %v3511_v43 = vpop.f32.mrb[11].mxu0  ;;  %v3541_v27 = vrot.slane %v3197_v49, %v7705_v0  ;;  %v3549_v56 = vrot.slane %v3199_v31, %v7705_v0 }
 0x595   :  { %v3515_v54 = vmul.f32 0.0009765625, %v3440_v9  ;;  %v3517_v17 = vmul.f32 0.0009765625, %v3511_v43 }
 0x596   :  { %v3522_v53 = vsub.f32 %v3514_v62, %v3518_v60  ;;  %v3524_v16 = vsub.f32 %v3516_v25, %v3520_v29  ;;  %v3545_v62 = vrot.slane %v3198_v32, %v7705_v0  ;;  %v3580_v60 = vpop.permute.xlu1 %3579 }
 0x597   :  { %v3523_v28 = vsub.f32 %v3515_v54, %v3519_v45  ;;  %v3525_v3 = vsub.f32 %v3517_v17, %v3521_v41 }
 0x598   :  { %v3526_v14 = vmax.f32 %v3522_v53, 0.0  ;;  %v3528_v36 = vmax.f32 %v3524_v16, 0.0  ;;  %v3553_v16 = vrot.slane %v3200_v24, %v7705_v0 }
 0x599   :  { %v3527_v33 = vmax.f32 %v3523_v28, 0.0  ;;  %v3529_v46 = vmax.f32 %v3525_v3, 0.0  ;;  %v3554_v3 = vsub.f32 %v10504_v50, %v3541_v27  ;;  %v12331_v27 = vmov 5  }
 0x59a   :  { %v3530_v51 = vadd.f32 1e-05, %v3526_v14  ;;  %v3532_v44 = vadd.f32 1e-05, %v3528_v36  ;;  %v3557_v32 = vsub.f32 %v10515_v2, %v3553_v16  ;;  %v3588_v9 = vpop.permute.xlu1 %3587 }
 0x59b   :  { %v3531_v57 = vadd.f32 1e-05, %v3527_v33  ;;  %v3533_v5 = vadd.f32 1e-05, %v3529_v46  ;;  %v109_v33 = vld [vmem:[%s11473_s7 + $0x8] sm:$0xff]  ;;  %v6826_v46 = vld [vmem:[%s11473_s7] sm:$0xff] }
 0x59c   :  { %6785 = vrsqrt.f32 %v3530_v51  ;;  %v3555_v51 = vsub.f32 %v10507_v23, %v3545_v62  ;;  %v12333_v62 = vmov 6  }
 0x59d   :  { %6787 = vrsqrt.f32 %v3532_v44  ;;  %v3556_v44 = vsub.f32 %v10512_v15, %v3549_v56  ;;  %v12332_v56 = vmov 7  }
 0x59e   :  { %6789 = vrsqrt.f32 %v3531_v57 }
 0x59f   :  { %6791 = vrsqrt.f32 %v3533_v5 }
 0x5a6   :  { %v6786_v29 = vpop.eup %6785 }
 0x5a7   :  { %v6788_v28 = vpop.eup %6787  ;;  %v3561_v53 = vrot.slane %v6786_v29, %v7705_v0  ;;  %v12334_v29 = vmov 8  }
 0x5a8   :  { %v6790_v25 = vpop.eup %6789  ;;  %v3569_v5 = vrot.slane %v6788_v28, %v7705_v0 }
 0x5a9   :  { %v6792_v57 = vpop.eup %6791  ;;  %v3565_v49 = vrot.slane %v6790_v25, %v7705_v0  ;;  %v3574_v31 = vmul.f32 %v3561_v53, %v3554_v3  ;;  %v5925_v3 = vld [vmem:[%s11468_s2 + $0x41] ss:$8 sm:$0xf] }
 0x5aa   :  { %v3573_v24 = vrot.slane %v6792_v57, %v7705_v0  ;;  %v3576_v43 = vmul.f32 %v3569_v5, %v3556_v44  ;;  %v3637_v44 = vrot.slane %v5925_v3, %v7702_v12 }
 0x5ab   :  { %v3575_v50 = vmul.f32 %v3565_v49, %v3555_v51  ;;  %v3582_v45 = vmul.f32 %v3580_v60, %v3574_v31  ;;  %v3641_v49 = vrot.slane %v5925_v3, %v7708_v20  ;;  %v12335_v31 = vld [vmem:[#allocation124_spill] sm:$0xff] }
 0x5ac   :  { %v3577_v41 = vmul.f32 %v3573_v24, %v3557_v32  ;;  %v3584_v17 = vmul.f32 %v3580_v60, %v3576_v43  ;;  %v3633_v43 = vrot.slane %v5925_v3, %v7705_v0 }
 0x5ad   :  { %v3583_v54 = vmul.f32 %v3580_v60, %v3575_v50  ;;  %v10597_v15 = vadd.f32 %v3588_v9, %v3582_v45  ;;  %v3645_v50 = vrot.slane %v5925_v3, %v7711_v48 }
 0x5ae   :  { %v3585_v14 = vmul.f32 %v3580_v60, %v3577_v41  ;;  %v10603_v23 = vadd.f32 %v3588_v9, %v3584_v17 }
 0x5af   :  { %v10599_v36 = vadd.f32 %v3588_v9, %v3583_v54  ;;  %3596 = vrot.lane.b32.xlu0 %v10597_v15, %s6893_s25 }
 0x5b0   :  { %v10607_v2 = vadd.f32 %v3588_v9, %v3585_v14 }
 0x5b1   :  { %3598 = vrot.lane.b32.xlu1 %v10599_v36, %s6893_s25 }
 0x5b3   :  { %3600 = vrot.lane.b32.xlu0 %v10603_v23, %s6893_s25 }
 0x5b5   :  { %3602 = vrot.lane.b32.xlu1 %v10607_v2, %s6893_s25 }
 0x5b7   :  { %3616 = vrot.lane.b32.xlu0 %v10597_v15, %s6895_s26 }
 0x5b9   :  { %3618 = vrot.lane.b32.xlu1 %v10599_v36, %s6895_s26 }
 0x5bb   :  { %3620 = vrot.lane.b32.xlu0 %v10603_v23, %s6895_s26 }
 0x5bd   :  { %3622 = vrot.lane.b32.xlu1 %v10607_v2, %s6895_s26 }
 0x5bf   :  { %3658 = vrot.lane.b32.xlu0 %v10597_v15, %s6897_s27 }
 0x5c1   :  { %3660 = vrot.lane.b32.xlu1 %v10599_v36, %s6897_s27 }
 0x5c3   :  { %3662 = vrot.lane.b32.xlu0 %v10603_v23, %s6897_s27 }
 0x5c5   :  { %3664 = vrot.lane.b32.xlu1 %v10607_v2, %s6897_s27 }
 0x5c7   :  { %3700 = vrot.lane.b32.xlu0 %v10597_v15, %s6908_s14 }
 0x5c9   :  { %3702 = vrot.lane.b32.xlu1 %v10599_v36, %s6908_s14 }
 0x5cb   :  { %3704 = vrot.lane.b32.xlu0 %v10603_v23, %s6908_s14 }
 0x5cd   :  { %3706 = vrot.lane.b32.xlu1 %v10607_v2, %s6908_s14 }
 0x5cf   :  { %3773 = vrot.lane.b32.xlu0 %v10597_v15, %s12327_s23 }
 0x5d1   :  { %3775 = vrot.lane.b32.xlu1 %v10599_v36, %s12327_s23 }
 0x5d3   :  { %3777 = vrot.lane.b32.xlu0 %v10603_v23, %s12327_s23 }
 0x5d5   :  { %3779 = vrot.lane.b32.xlu1 %v10607_v2, %s12327_s23 }
 0x5d7   :  { %3815 = vrot.lane.b32.xlu0 %v10597_v15, %s12328_s24 }
 0x5d9   :  { %3817 = vrot.lane.b32.xlu1 %v10599_v36, %s12328_s24 }
 0x5db   :  { %3819 = vrot.lane.b32.xlu0 %v10603_v23, %s12328_s24 }
 0x5dd   :  { %3821 = vrot.lane.b32.xlu1 %v10607_v2, %s12328_s24 }
 0x5df   :  { %3857 = vrot.lane.b32.xlu0 %v10597_v15, %s12329_s12 }
 0x5e1   :  { %3859 = vrot.lane.b32.xlu1 %v10599_v36, %s12329_s12 }
 0x5e3   :  { %3861 = vrot.lane.b32.xlu0 %v10603_v23, %s12329_s12 }
 0x5e5   :  { %3863 = vrot.lane.b32.xlu1 %v10607_v2, %s12329_s12 }
 0x5e7   :  { %3899 = vrot.lane.b32.xlu0 %v10597_v15, %s12330_s5 }
 0x5e9   :  { %3901 = vrot.lane.b32.xlu1 %v10599_v36, %s12330_s5 }
 0x5eb   :  { %3903 = vrot.lane.b32.xlu0 %v10603_v23, %s12330_s5 }
 0x5ed   :  { %3905 = vrot.lane.b32.xlu1 %v10607_v2, %s12330_s5 }
 0x5ef   :  { %3978 = vperm.xlu0 %6774, %v6826_v46  }
 0x5f1   :  { %3983 = vperm.xlu1 %6775, %v109_v33  }
 0x5f3   :  { %6777 = vset.pattern.permute.xlu0 %v12331_v27 }
 0x5f4   :  { %4902 = vperm.xlu0 %6777, %v109_v33  }
 0x5f5   :  { %6776 = vset.pattern.permute.xlu1 %v12331_v27 }
 0x5f6   :  { %4898 = vperm.xlu1 %6776, %v6826_v46  }
 0x5f8   :  { %6779 = vset.pattern.permute.xlu0 %v12332_v56 }
 0x5fa   :  { %6778 = vset.pattern.permute.xlu1 %v12333_v62  ;;  %v12336_v62 = vld [vmem:[#allocation11_spill] sm:$0xff] }
 0x5fb   :  { %4914 = vperm.xlu1 %6778, %v6826_v46  }
 0x5ff   :  { %4918 = vperm.xlu1 %6778, %v109_v33  }
 0x603   :  { %6780 = vset.pattern.permute.xlu1 %v12334_v29 }
 0x621   :  { %v3597_v60 = vpop.permute.xlu0 %3596 }
 0x623   :  { %v3599_v16 = vpop.permute.xlu1 %3598 }
 0x624   :  { %v3606_v5 = vsel %vm961_vm7, %v3597_v60, %v3599_v16 }
 0x625   :  { %v3601_v28 = vpop.permute.xlu0 %3600  ;;  %v3609_v32 = vmul.f32 %v3606_v5, %v12335_v31 }
 0x626   :  { %v3605_v17 = vsel %vm961_vm7, %v3599_v16, %v3601_v28 }
 0x627   :  { %v3603_v53 = vpop.permute.xlu1 %3602 }
 0x628   :  { %v3604_v45 = vsel %vm961_vm7, %v3601_v28, %v3603_v53  ;;  %v3607_v41 = vsel %vm961_vm7, %v3603_v53, %v3597_v60 }
 0x629   :  { %v3617_v25 = vpop.permute.xlu0 %3616  ;;  %v3608_v3 = vmul.f32 %v3607_v41, %v12336_v62 }
 0x62b   :  { %v3619_v57 = vpop.permute.xlu1 %3618 }
 0x62c   :  { %v3626_v51 = vsel %vm1013_vm8, %v3617_v25, %v3619_v57 }
 0x62d   :  { %v3651_v9 = vmul.f32 %v3637_v44, %v3626_v51  ;;  %v3621_v24 = vpop.permute.xlu0 %3620  ;;  %v12337_v44 = vld [vmem:[#allocation10_spill] sm:$0xff]  ;;  %v12338_v51 = vld [vmem:[#allocation125_spill] sm:$0xff] }
 0x62e   :  { %v3625_v54 = vsel %vm1013_vm8, %v3619_v57, %v3621_v24  ;;  %v3611_v5 = vmul.f32 %v3604_v45, %v12337_v44  ;;  %v3610_v31 = vmul.f32 %v3605_v17, %v12338_v51 }
 0x62f   :  { %v3623_v14 = vpop.permute.xlu1 %3622  ;;  %v6377_v33 = vpack.c.bf16 %v3651_v9, %v3609_v32  ;;  %v3652_v46 = vmul.f32 %v3641_v49, %v3625_v54 }
 0x630   :  { %v3624_v27 = vsel %vm1013_vm8, %v3621_v24, %v3623_v14  ;;  %v3627_v56 = vsel %vm1013_vm8, %v3623_v14, %v3617_v25  ;;  %v5926_v25 = vld [vmem:[%s11468_s2 + $0x42] ss:$8 sm:$0xf]  ;;  %v5927_v24 = vld [vmem:[%s11468_s2 + $0x47] ss:$8 sm:$0xf] }
 0x631   :  { %v3650_v60 = vmul.f32 %v3633_v43, %v3627_v56  ;;  %v3653_v53 = vmul.f32 %v3645_v50, %v3624_v27  ;;  %6378 = vmatprep.subr.bf16.mxu1 %v6377_v33  ;;  %v3659_v57 = vpop.permute.xlu0 %3658  ;;  %v6395_v49 = vpack.c.bf16 %v3652_v46, %v3610_v31  ;;  %v3679_v50 = vrot.slane %v5926_v25, %v7702_v12 }
 0x632   :  { %v3721_v41 = vrot.slane %v5927_v24, %v7702_v12  ;;  %v3675_v14 = vrot.slane %v5926_v25, %v7705_v0  ;;  %v3687_v33 = vrot.slane %v5926_v25, %v7711_v48  ;;  %v3725_v27 = vrot.slane %v5927_v24, %v7708_v20 }
 0x633   :  { %v6379_v16 = vpack.c.bf16 %v3650_v60, %v3608_v3  ;;  %v3661_v28 = vpop.permute.xlu1 %3660  ;;  %v6393_v32 = vpack.c.bf16 %v3653_v53, %v3611_v5  ;;  %v3717_v44 = vrot.slane %v5927_v24, %v7705_v0  ;;  %v3729_v5 = vrot.slane %v5927_v24, %v7711_v48  ;;  %v5929_v24 = vld [vmem:[%s11468_s2 + $0x61] ss:$8 sm:$0xf] }
 0x634   :  { %v3668_v54 = vsel %vm1065_vm9, %v3659_v57, %v3661_v28  ;;  %v3683_v60 = vrot.slane %v5926_v25, %v7708_v20 }
 0x635   :  { %6380 = vmatpush1.bf16.msra.mxu1 %v6379_v16  ;;  %6394 = vmatprep.subr.bf16.mxu0 %v6393_v32  ;;  %v3663_v9 = vpop.permute.xlu0 %3662  ;;  %v3693_v56 = vmul.f32 %v3679_v50, %v3668_v54 }
 0x636   :  { %6396 = vmatpush1.bf16.msra.mxu0 %v6395_v49  ;;  %v3667_v16 = vsel %vm1065_vm9, %v3661_v28, %v3663_v9 }
 0x637   :  { %v3665_v43 = vpop.permute.xlu1 %3664 }
 0x638   :  { %v3666_v53 = vsel %vm1065_vm9, %v3663_v9, %v3665_v43  ;;  %v3669_v51 = vsel %vm1065_vm9, %v3665_v43, %v3659_v57  ;;  %v5928_v57 = vld [vmem:[%s11468_s2 + $0x60] ss:$8 sm:$0xf] }
 0x639   :  { %v3701_v45 = vpop.permute.xlu0 %3700  ;;  %v3692_v43 = vmul.f32 %v3675_v14, %v3669_v51  ;;  %v3695_v54 = vmul.f32 %v3687_v33, %v3666_v53  ;;  %v3748_v29 = vrot.slane %v5928_v57, %v7705_v0  ;;  %v3756_v33 = vrot.slane %v5928_v57, %v7708_v20 }
 0x63a   :  { %v3760_v53 = vrot.slane %v5928_v57, %v7711_v48 }
 0x63b   :  { %v3703_v17 = vpop.permute.xlu1 %3702 }
 0x63c   :  { %v3710_v46 = vsel %vm1325_vm14, %v3701_v45, %v3703_v17 }
 0x63d   :  { %v3735_v62 = vmul.f32 %v3721_v41, %v3710_v46  ;;  %v3705_v3 = vpop.permute.xlu0 %3704  ;;  %v3694_v46 = vmul.f32 %v3683_v60, %v3667_v16  ;;  %v3802_v60 = vrot.slane %v5929_v24, %v7711_v48 }
 0x63e   :  { %v3709_v31 = vsel %vm1325_vm14, %v3703_v17, %v3705_v3 }
 0x63f   :  { %v3707_v32 = vpop.permute.xlu1 %3706  ;;  %v6381_v49 = vpack.c.bf16 %v3735_v62, %v3693_v56  ;;  %v3736_v50 = vmul.f32 %v3725_v27, %v3709_v31  ;;  %v3790_v56 = vrot.slane %v5929_v24, %v7705_v0 }
 0x640   :  { %v3708_v25 = vsel %vm1325_vm14, %v3705_v3, %v3707_v32  ;;  %v3711_v41 = vsel %vm1325_vm14, %v3707_v32, %v3701_v45  ;;  %v3794_v3 = vrot.slane %v5929_v24, %v7702_v12  ;;  %v3752_v45 = vrot.slane %v5928_v57, %v7702_v12 }
 0x641   :  { %v3734_v28 = vmul.f32 %v3717_v44, %v3711_v41  ;;  %v3737_v9 = vmul.f32 %v3729_v5, %v3708_v25  ;;  %6382 = vmatprep.subr.bf16.mxu1 %v6381_v49  ;;  %v3774_v17 = vpop.permute.xlu0 %3773  ;;  %v6399_v32 = vpack.c.bf16 %v3736_v50, %v3694_v46  ;;  %v3798_v5 = vrot.slane %v5929_v24, %v7708_v20 }
 0x642   :  { %v3766_v25 = vmul.f32 %v3752_v45, %v10599_v36  ;;  %v3765_v41 = vmul.f32 %v3748_v29, %v10597_v15  ;;  %v5931_v29 = vld [vmem:[%s11468_s2 + $0x67] ss:$8 sm:$0xf] }
 0x643   :  { %v6383_v27 = vpack.c.bf16 %v3734_v28, %v3692_v43  ;;  %v3776_v62 = vpop.permute.xlu1 %3775  ;;  %v6397_v31 = vpack.c.bf16 %v3737_v9, %v3695_v54  ;;  %v3767_v43 = vmul.f32 %v3756_v33, %v10603_v23  ;;  %v3878_v33 = vrot.slane %v5931_v29, %v7702_v12 }
 0x644   :  { %v3783_v14 = vsel %vm1377_vm15, %v3774_v17, %v3776_v62 }
 0x645   :  { %6384 = vmatpush1.bf16.msra.mxu1 %v6383_v27  ;;  %6398 = vmatprep.subr.bf16.mxu0 %v6397_v31  ;;  %v3778_v44 = vpop.permute.xlu0 %3777  ;;  %v3807_v51 = vmul.f32 %v3790_v56, %v3783_v14  ;;  %v3768_v56 = vmul.f32 %v3760_v53, %v10607_v2  ;;  %v3874_v2 = vrot.slane %v5931_v29, %v7705_v0 }
 0x646   :  { %v3782_v16 = vsel %vm1377_vm15, %v3776_v62, %v3778_v44  ;;  %6400 = vmatpush1.bf16.msra.mxu0 %v6399_v32 }
 0x647   :  { %v3808_v49 = vmul.f32 %v3794_v3, %v3782_v16  ;;  %v3780_v50 = vpop.permute.xlu1 %3779  ;;  %v6387_v27 = vpack.c.bf16 %v3807_v51, %v3765_v41 }
 0x648   :  { %v3781_v54 = vsel %vm1377_vm15, %v3778_v44, %v3780_v50  ;;  %v3784_v24 = vsel %vm1377_vm15, %v3780_v50, %v3774_v17  ;;  %v5930_v17 = vld [vmem:[%s11468_s2 + $0x66] ss:$8 sm:$0xf]  ;;  %v3882_v50 = vrot.slane %v5931_v29, %v7708_v20 }
 0x649   :  { %v3809_v57 = vmul.f32 %v3798_v5, %v3781_v54  ;;  %v3810_v28 = vmul.f32 %v3802_v60, %v3784_v24  ;;  %v3816_v9 = vpop.permute.xlu0 %3815  ;;  %v6385_v46 = vpack.c.bf16 %v3808_v49, %v3766_v25  ;;  %v3832_v45 = vrot.slane %v5930_v17, %v7705_v0 }
 0x64a   :  { %v3836_v32 = vrot.slane %v5930_v17, %v7702_v12  ;;  %v3840_v5 = vrot.slane %v5930_v17, %v7708_v20  ;;  %v3844_v60 = vrot.slane %v5930_v17, %v7711_v48  ;;  %v3886_v25 = vrot.slane %v5931_v29, %v7711_v48 }
 0x64b   :  { %v6403_v62 = vpack.c.bf16 %v3809_v57, %v3767_v43  ;;  %v3818_v31 = vpop.permute.xlu1 %3817  ;;  %6386 = vmatprep.subr.bf16.mxu1 %v6385_v46  ;;  %v6401_v36 = vpack.c.bf16 %v3810_v28, %v3768_v56 }
 0x64c   :  { %6388 = vmatpush1.bf16.msra.mxu1 %v6387_v27  ;;  %v3825_v51 = vsel %vm1637_vm10, %v3816_v9, %v3818_v31 }
 0x64d   :  { %6402 = vmatprep.subr.bf16.mxu0 %v6401_v36  ;;  %v3820_v15 = vpop.permute.xlu0 %3819  ;;  %v3849_v46 = vmul.f32 %v3832_v45, %v3825_v51 }
 0x64e   :  { %6404 = vmatpush1.bf16.msra.mxu0 %v6403_v62  ;;  %v3824_v44 = vsel %vm1637_vm10, %v3818_v31, %v3820_v15 }
 0x64f   :  { %v3822_v23 = vpop.permute.xlu1 %3821  ;;  %v3850_v24 = vmul.f32 %v3836_v32, %v3824_v44 }
 0x650   :  { %v3823_v16 = vsel %vm1637_vm10, %v3820_v15, %v3822_v23  ;;  %v3826_v41 = vsel %vm1637_vm10, %v3822_v23, %v3816_v9  ;;  %v5932_v9 = vld [vmem:[%s11468_s2 + $0x80] ss:$8 sm:$0xf] }
 0x651   :  { %v3858_v3 = vpop.permute.xlu0 %3857  ;;  %v3851_v56 = vmul.f32 %v3840_v5, %v3823_v16  ;;  %v3852_v31 = vmul.f32 %v3844_v60, %v3826_v41  ;;  %v3924_v5 = vrot.slane %v5932_v9, %v7708_v20  ;;  %v3928_v60 = vrot.slane %v5932_v9, %v7711_v48  ;;  %v3594_v41 = vld [vmem:[%s11474_s8] sm:$0xff] }
 0x653   :  { %v3860_v14 = vpop.permute.xlu1 %3859 }
 0x654   :  { %v3867_v53 = vsel %vm1689_vm11, %v3858_v3, %v3860_v14 }
 0x655   :  { %v3862_v49 = vpop.permute.xlu0 %3861  ;;  %v3891_v43 = vmul.f32 %v3874_v2, %v3867_v53 }
 0x656   :  { %v3866_v54 = vsel %vm1689_vm11, %v3860_v14, %v3862_v49  ;;  %v3920_v14 = vrot.slane %v5932_v9, %v7702_v12 }
 0x657   :  { %v3892_v57 = vmul.f32 %v3878_v33, %v3866_v54  ;;  %v3864_v28 = vpop.permute.xlu1 %3863  ;;  %v6391_v17 = vpack.c.bf16 %v3891_v43, %v3849_v46  ;;  %v3916_v33 = vrot.slane %v5932_v9, %v7705_v0  ;;  %v12341_v46 = vld [vmem:[#allocation87_spill] sm:$0xff] }
 0x658   :  { %v3865_v27 = vsel %vm1689_vm11, %v3862_v49, %v3864_v28  ;;  %v3868_v62 = vsel %vm1689_vm11, %v3864_v28, %v3858_v3  ;;  %v12340_v28 = vld [vmem:[#allocation66_spill] sm:$0xff] }
 0x659   :  { %v3893_v36 = vmul.f32 %v3882_v50, %v3865_v27  ;;  %v3894_v15 = vmul.f32 %v3886_v25, %v3868_v62  ;;  %v3900_v29 = vpop.permute.xlu0 %3899  ;;  %v6389_v23 = vpack.c.bf16 %v3892_v57, %v3850_v24  ;;  %v3595_v24 = vld [vmem:[%s11474_s8 + $0x8] sm:$0xff]  ;;  %v12339_v57 = vld [vmem:[#allocation64_spill] sm:$0xff] }
 0x65a   :  { %v12343_v27 = vld [vmem:[#allocation75_spill] sm:$0xff]  ;;  %v12344_v62 = vld [vmem:[#allocation8_spill] sm:$0xff] }
 0x65b   :  { %v6407_v2 = vpack.c.bf16 %v3893_v36, %v3851_v56  ;;  %v3902_v32 = vpop.permute.xlu1 %3901  ;;  %6390 = vmatprep.subr.bf16.mxu1 %v6389_v23  ;;  %v6405_v45 = vpack.c.bf16 %v3894_v15, %v3852_v31  ;;  %v12342_v56 = vld [vmem:[#allocation72_spill] sm:$0xff]  ;;  %v12345_v31 = vld [vmem:[#allocation71_spill] sm:$0xff]  ;;  %v12346_v36 = vld [vmem:[#allocation9_spill] sm:$0xff] }
 0x65c   :  { %6392 = vmatpush1.bf16.msra.mxu1 %v6391_v17  ;;  %v3909_v3 = vsel %vm1741_vm12, %v3900_v29, %v3902_v32 }
 0x65d   :  { %6406 = vmatprep.subr.bf16.mxu0 %v6405_v45  ;;  %v3904_v44 = vpop.permute.xlu0 %3903  ;;  %v3933_v49 = vmul.f32 %v3916_v33, %v3909_v3 }
 0x65e   :  { %v3908_v53 = vsel %vm1741_vm12, %v3902_v32, %v3904_v44  ;;  %6408 = vmatpush1.bf16.msra.mxu0 %v6407_v2 }
 0x65f   :  { %v3934_v51 = vmul.f32 %v3920_v14, %v3908_v53  ;;  %v3906_v16 = vpop.permute.xlu1 %3905 }
 0x660   :  { %v3907_v50 = vsel %vm1741_vm12, %v3904_v44, %v3906_v16  ;;  %v3910_v25 = vsel %vm1741_vm12, %v3906_v16, %v3900_v29 }
 0x661   :  { %v3935_v43 = vmul.f32 %v3924_v5, %v3907_v50  ;;  %v3936_v54 = vmul.f32 %v3928_v60, %v3910_v25  ;;  %4009 = vmatprep.subr.mxu1 %v3934_v51 }
 0x662   :  { %4010 = vmatpush1.msra.mxu1 %v3933_v49 }
 0x663   :  { %4086 = vmatprep.subr.mxu0 %v3936_v54  ;;  %5933 = vmatmul.mubr.msk.f32.vlgmr.msra.gmra.mrb[10].mxu1 %vm3986_vm0, %v3594_v41 }
 0x664   :  { %4087 = vmatpush1.msra.mxu0 %v3935_v43  ;;  %4063 = vmatprep.mubr.f32.mxu1 %v12291_v47 }
 0x665   :  { %5935 = vmatmul.mubr.msk.f32.vlgmr.msra.gmra.mrb[12].mxu0 %vm3986_vm0, %v3594_v41  ;;  %6410 = vmatprep.subr.bf16.mxu1 %v12292_v18 }
 0x666   :  { %4140 = vmatprep.mubr.f32.mxu0 %v12291_v47  ;;  %6412 = vmatpush3.bf16.msra.mxu1 %v12295_v42 }
 0x667   :  { %5934 = vmatmul.mubr.msk.f32.gmra.mrb[12].mxu1 %vm3986_vm0, %v3595_v24  ;;  %6442 = vmatprep.subr.bf16.mxu0 %v12294_v13 }
 0x668   :  { %6444 = vmatpush3.bf16.msra.mxu0 %v12296_v55  ;;  %6414 = vmatprep.subr.bf16.mxu1 %v12297_v11 }
 0x669   :  { %5936 = vmatmul.mubr.msk.f32.gmra.mrb[14].mxu0 %vm3986_vm0, %v3595_v24  ;;  %6446 = vmatprep.subr.bf16.mxu0 %v12298_v30 }
 0x66a   :  { %6416 = vmatpush3.bf16.msra.mxu1 %v12299_v58 }
 0x66b   :  { %6418 = vmatprep.subr.bf16.mxu1 %v12301_v4 }
 0x66c   :  { %6448 = vmatpush3.bf16.msra.mxu0 %v12300_v35 }
 0x66d   :  { %6450 = vmatprep.subr.bf16.mxu0 %v12302_v63 }
 0x66e   :  { %6420 = vmatpush3.bf16.msra.mxu1 %v12303_v19  ;;  %v3979_v15 = vpop.permute.xlu0 %3978 }
 0x66f   :  { %6422 = vmatprep.subr.bf16.mxu1 %v12305_v34 }
 0x670   :  { %6452 = vmatpush3.bf16.msra.mxu0 %v12304_v39  ;;  %v3984_v32 = vpop.permute.xlu1 %3983 }
 0x671   :  { %6454 = vmatprep.subr.bf16.mxu0 %v12306_v8 }
 0x672   :  { %6424 = vmatpush3.bf16.msra.mxu1 %v12307_v38 }
 0x673   :  { %6426 = vmatprep.subr.bf16.mxu1 %v12309_v10 }
 0x674   :  { %6456 = vmatpush3.bf16.msra.mxu0 %v12308_v52 }
 0x675   :  { %6458 = vmatprep.subr.bf16.mxu0 %v12310_v59 }
 0x676   :  { %6428 = vmatpush3.bf16.msra.mxu1 %v12311_v22 }
 0x677   :  { %6430 = vmatprep.subr.bf16.mxu1 %v12313_v6 }
 0x678   :  { %6460 = vmatpush3.bf16.msra.mxu0 %v12312_v61 }
 0x679   :  { %6462 = vmatprep.subr.bf16.mxu0 %v12314_v37 }
 0x67a   :  { %6432 = vmatpush3.bf16.msra.mxu1 %v12315_v7 }
 0x67b   :  { %6434 = vmatprep.subr.bf16.mxu1 %v12317_v21 }
 0x67c   :  { %6464 = vmatpush3.bf16.msra.mxu0 %v12316_v26 }
 0x67d   :  { %6466 = vmatprep.subr.bf16.mxu0 %v12318_v40 }
 0x67e   :  { %6436 = vmatpush3.bf16.msra.mxu1 %v12339_v57 }
 0x67f   :  { %6438 = vmatprep.subr.bf16.mxu1 %v12340_v28 }
 0x680   :  { %6468 = vmatpush3.bf16.msra.mxu0 %v12341_v46 }
 0x681   :  { %6470 = vmatprep.subr.bf16.mxu0 %v12342_v56 }
 0x682   :  { %6440 = vmatpush3.bf16.msra.mxu1 %v12343_v27 }
 0x683   :  { %5937 = vmatprep.subr.msk.mxu1 %vm2733_vm2, %v12344_v62 }
 0x684   :  { %6472 = vmatpush3.bf16.msra.mxu0 %v12345_v31 }
 0x685   :  { %5940 = vmatprep.subr.msk.mxu0 %vm2733_vm2, %v12346_v36 }
 0x736   :  { %v4059_v29 = vpop.f32.mrb[10].mxu1 }
 0x737   :  { %v4060_v9 = vadd.f32 %v4059_v29, %v3979_v15  ;;  %v4061_v23 = vpop.f32.mrb[11].mxu1 }
 0x738   :  { %v4062_v17 = vadd.f32 %v4061_v23, %v3979_v15  ;;  %v4136_v2 = vpop.f32.mrb[12].mxu0 }
 0x739   :  { %v4155_v45 = vmul.f32 0.70710677, %v4060_v9  ;;  %v4137_v14 = vadd.f32 %v4136_v2, %v3979_v15  ;;  %v4138_v33 = vpop.f32.mrb[13].mxu0 }
 0x73a   :  { %v4156_v3 = vmul.f32 0.70710677, %v4062_v17  ;;  %v4139_v44 = vadd.f32 %v4138_v33, %v3979_v15  ;;  %v4065_v5 = vpop.f32.mrb[12].mxu1 }
 0x73b   :  { %6793 = verf.f32 %v4155_v45  ;;  %v4157_v60 = vmul.f32 0.70710677, %v4137_v14  ;;  %v4066_v53 = vadd.f32 %v4065_v5, %v3984_v32  ;;  %v4067_v51 = vpop.f32.mrb[13].mxu1  ;;  %v4149_v48 = vmul.f32 0.5, %v4137_v14 }
 0x73c   :  { %6795 = verf.f32 %v4156_v3  ;;  %v4158_v16 = vmul.f32 0.70710677, %v4139_v44  ;;  %v4068_v49 = vadd.f32 %v4067_v51, %v3984_v32  ;;  %v4142_v50 = vpop.f32.mrb[14].mxu0  ;;  %v4147_v51 = vmul.f32 0.5, %v4060_v9 }
 0x73d   :  { %6797 = verf.f32 %v4157_v60  ;;  %v4159_v25 = vmul.f32 0.70710677, %v4066_v53  ;;  %v4143_v41 = vadd.f32 %v4142_v50, %v3984_v32  ;;  %v4144_v43 = vpop.f32.mrb[15].mxu0  ;;  %v4148_v60 = vmul.f32 0.5, %v4062_v17 }
 0x73e   :  { %6799 = verf.f32 %v4158_v16  ;;  %v4160_v54 = vmul.f32 0.70710677, %v4068_v49  ;;  %v4145_v24 = vadd.f32 %v4144_v43, %v3984_v32  ;;  %v4151_v12 = vmul.f32 0.5, %v4066_v53 }
 0x73f   :  { %6801 = verf.f32 %v4159_v25  ;;  %v4161_v29 = vmul.f32 0.70710677, %v4143_v41  ;;  %v4150_v43 = vmul.f32 0.5, %v4139_v44  ;;  %v4152_v20 = vmul.f32 0.5, %v4068_v49 }
 0x740   :  { %6803 = verf.f32 %v4160_v54  ;;  %v4162_v15 = vmul.f32 0.70710677, %v4145_v24  ;;  %v4154_v14 = vmul.f32 0.5, %v4145_v24 }
 0x741   :  { %6805 = verf.f32 %v4161_v29 }
 0x742   :  { %6807 = verf.f32 %v4162_v15 }
 0x745   :  { %v6794_v23 = vpop.eup %6793 }
 0x746   :  { %v6796_v2 = vpop.eup %6795  ;;  %v4171_v3 = vadd.f32 1.0, %v6794_v23  ;;  %v4153_v23 = vmul.f32 0.5, %v4143_v41 }
 0x747   :  { %v6798_v45 = vpop.eup %6797  ;;  %v4172_v1 = vadd.f32 1.0, %v6796_v2 }
 0x748   :  { %v6800_v33 = vpop.eup %6799  ;;  %v4173_v16 = vadd.f32 1.0, %v6798_v45  ;;  %v10856_v0 = vmul.f32 %v4171_v3, %v4147_v51 }
 0x749   :  { %v6802_v5 = vpop.eup %6801  ;;  %v4174_v54 = vadd.f32 1.0, %v6800_v33  ;;  %v10860_v9 = vmul.f32 %v4172_v1, %v4148_v60 }
 0x74a   :  { %v6804_v50 = vpop.eup %6803  ;;  %v4175_v32 = vadd.f32 1.0, %v6802_v5  ;;  %v10864_v53 = vmul.f32 %v4173_v16, %v4149_v48 }
 0x74b   :  { %v6806_v25 = vpop.eup %6805  ;;  %v4176_v29 = vadd.f32 1.0, %v6804_v50  ;;  %v10870_v45 = vmul.f32 %v4174_v54, %v4150_v43 }
 0x74c   :  { %v6808_v15 = vpop.eup %6807  ;;  %v10858_v36 = vmul.f32 %v4175_v32, %v4151_v12  ;;  %v4177_v62 = vadd.f32 1.0, %v6806_v25 }
 0x74d   :  { %v10862_v17 = vmul.f32 %v4176_v29, %v4152_v20  ;;  %v4178_v2 = vadd.f32 1.0, %v6808_v15 }
 0x74e   :  { %v4187_v44 = vadd.f32 %v10858_v36, %v10856_v0  ;;  %v10868_v49 = vmul.f32 %v4177_v62, %v4153_v23 }
 0x74f   :  { %v4194_v12 = vadd.f32 %v10862_v17, %v10860_v9  ;;  %v10874_v41 = vmul.f32 %v4178_v2, %v4154_v14 }
 0x750   :  { %v4188_v1 = vrot.slane %v4187_v44, 4  ;;  %v4201_v20 = vadd.f32 %v10868_v49, %v10864_v53 }
 0x751   :  { %v4208_v48 = vadd.f32 %v10874_v41, %v10870_v45  ;;  %v4195_v24 = vrot.slane %v4194_v12, 4 }
 0x752   :  { %v4189_v33 = vadd.f32 %v4188_v1, %v4187_v44  ;;  %v4202_v3 = vrot.slane %v4201_v20, 4  ;;  %v12347_v1 = vld [vmem:[#allocation6_spill] sm:$0xff] }
 0x753   :  { %v4196_v5 = vadd.f32 %v4195_v24, %v4194_v12  ;;  %v4209_v62 = vrot.slane %v4208_v48, 4 }
 0x754   :  { %v4190_v51 = vrot.slane %v4189_v33, 2  ;;  %v4203_v60 = vadd.f32 %v4202_v3, %v4201_v20  ;;  %v12348_v20 = vld [vmem:[#allocation7_spill] sm:$0xff] }
 0x755   :  { %v4197_v50 = vrot.slane %v4196_v5, 2  ;;  %v4210_v16 = vadd.f32 %v4209_v62, %v4208_v48  ;;  %v4507_v48 = vmul.f32 %v10870_v45, %v10870_v45 }
 0x756   :  { %v4191_v32 = vadd.f32 %v4190_v51, %v4189_v33  ;;  %v4204_v25 = vrot.slane %v4203_v60, 2 }
 0x757   :  { %v4198_v43 = vadd.f32 %v4197_v50, %v4196_v5  ;;  %v4211_v54 = vrot.slane %v4210_v16, 2 }
 0x758   :  { %v4205_v29 = vadd.f32 %v4204_v25, %v4203_v60  ;;  %v4192_v15 = vrot.slane %v4191_v32, 1 }
 0x759   :  { %v4199_v23 = vrot.slane %v4198_v43, 1  ;;  %v4212_v14 = vadd.f32 %v4211_v54, %v4210_v16 }
 0x75a   :  { %v4206_v2 = vrot.slane %v4205_v29, 1  ;;  %v4193_v56 = vadd.f32 %v4192_v15, %v4191_v32 }
 0x75b   :  { %v4200_v31 = vadd.f32 %v4199_v23, %v4198_v43  ;;  %v4213_v27 = vrot.slane %v4212_v14, 1 }
 0x75c   :  { %v4207_v12 = vadd.f32 %v4206_v2, %v4205_v29 }
 0x75d   :  { %4279 = vmatprep.mubr.f32.mxu1 %v4200_v31  ;;  %v4214_v44 = vadd.f32 %v4213_v27, %v4212_v14  ;;  %v4511_v27 = vmul.f32 %v10874_v41, %v10874_v41  ;;  %v4505_v31 = vmul.f32 %v10860_v9, %v10860_v9 }
 0x75e   :  { %4280 = vmatmul.mubr.f32.vlgmr.msra.gmra.mrb[14].mxu1 %v4193_v56  ;;  %v4509_v56 = vmul.f32 %v10862_v17, %v10862_v17 }
 0x75f   :  { %4349 = vmatprep.mubr.f32.mxu0 %v4214_v44  ;;  %5938 = vmatpush1.msk.msra.mxu1 %vm2733_vm2, %v12347_v1  ;;  %v4533_v33 = vadd.f32 %v4511_v27, %v4507_v48  ;;  %v4504_v27 = vmul.f32 %v10856_v0, %v10856_v0 }
 0x760   :  { %4350 = vmatmul.mubr.f32.vlgmr.msra.gmra.mrb[16].mxu0 %v4207_v12  ;;  %4422 = vmatprep.mubr.f32.mxu1 %v12291_v47  ;;  %v4519_v24 = vadd.f32 %v4509_v56, %v4505_v31  ;;  %v4508_v12 = vmul.f32 %v10858_v36, %v10858_v36  ;;  %v4510_v56 = vmul.f32 %v10868_v49, %v10868_v49 }
 0x761   :  { %5941 = vmatpush1.msk.msra.mxu0 %vm2733_vm2, %v12348_v20  ;;  %4493 = vmatprep.mubr.f32.mxu0 %v12291_v47  ;;  %v4534_v5 = vrot.slane %v4533_v33, 4 }
 0x762   :  { %6474 = vmatprep.subr.bf16.mxu1 %v12292_v18  ;;  %6506 = vmatprep.subr.bf16.mxu0 %v12294_v13  ;;  %v4520_v3 = vrot.slane %v4519_v24, 4 }
 0x763   :  { %v4535_v18 = vadd.f32 %v4534_v5, %v4533_v33 }
 0x764   :  { %v4521_v62 = vadd.f32 %v4520_v3, %v4519_v24 }
 0x765   :  { %v4536_v13 = vrot.slane %v4535_v18, 2 }
 0x766   :  { %v4522_v51 = vrot.slane %v4521_v62, 2 }
 0x767   :  { %v4537_v16 = vadd.f32 %v4536_v13, %v4535_v18 }
 0x768   :  { %v4523_v50 = vadd.f32 %v4522_v51, %v4521_v62 }
 0x769   :  { %v4538_v23 = vrot.slane %v4537_v16, 1 }
 0x76a   :  { %v4524_v15 = vrot.slane %v4523_v50, 1 }
 0x76b   :  { %v4539_v44 = vadd.f32 %v4538_v23, %v4537_v16 }
 0x76c   :  { %v4525_v2 = vadd.f32 %v4524_v15, %v4523_v50 }
 0x831   :  { %v6136_v60 = vpop.f32.mrb[14].mxu1 }
 0x832   :  { %v6137_v32 = vpop.f32.mrb[15].mxu1 }
 0x833   :  { %v6138_v25 = vadd.f32 %v6137_v32, %v6136_v60  ;;  %v6171_v43 = vpop.f32.mrb[16].mxu0 }
 0x834   :  { %v6172_v54 = vpop.f32.mrb[17].mxu0 }
 0x835   :  { %v6173_v29 = vadd.f32 %v6172_v54, %v6171_v43 }
 0x837   :  { %v4352_v14 = vadd.f32 %v6173_v29, %v6138_v25 }
 0x839   :  { %5939 = vmatmul.mubr.msk.f32.vlgmr.msra.gmra.mrb[16].mxu1 %vm2729_vm3, %v4352_v14  ;;  %5942 = vmatmul.mubr.msk.f32.vlgmr.msra.gmra.mrb[18].mxu0 %vm2729_vm3, %v4352_v14 }
 0x83a   :  { %6476 = vmatpush3.bf16.msra.mxu1 %v12295_v42  ;;  %6508 = vmatpush3.bf16.msra.mxu0 %v12296_v55  ;;  %v4506_v42 = vmul.f32 %v10864_v53, %v10864_v53  ;;  %v4512_v55 = vadd.f32 %v4508_v12, %v4504_v27 }
 0x83b   :  { %4604 = vmatprep.mubr.f32.mxu1 %v4525_v2  ;;  %4674 = vmatprep.mubr.f32.mxu0 %v4539_v44 }
 0x83c   :  { %6478 = vmatprep.subr.bf16.mxu1 %v12297_v11  ;;  %6510 = vmatprep.subr.bf16.mxu0 %v12298_v30  ;;  %v4526_v31 = vadd.f32 %v4510_v56, %v4506_v42  ;;  %v4513_v11 = vrot.slane %v4512_v55, 4 }
 0x83e   :  { %6480 = vmatpush3.bf16.msra.mxu1 %v12299_v58  ;;  %6512 = vmatpush3.bf16.msra.mxu0 %v12300_v35  ;;  %v4527_v30 = vrot.slane %v4526_v31, 4  ;;  %v4514_v58 = vadd.f32 %v4513_v11, %v4512_v55 }
 0x83f   :  { %6482 = vmatprep.subr.bf16.mxu1 %v12301_v4  ;;  %6514 = vmatprep.subr.bf16.mxu0 %v12302_v63 }
 0x840   :  { %v4528_v35 = vadd.f32 %v4527_v30, %v4526_v31  ;;  %v4515_v4 = vrot.slane %v4514_v58, 2  ;;  %v10948_v30 = vpop.permute.xlu1 %4898 }
 0x842   :  { %6484 = vmatpush3.bf16.msra.mxu1 %v12303_v19  ;;  %6516 = vmatpush3.bf16.msra.mxu0 %v12304_v39  ;;  %v4529_v63 = vrot.slane %v4528_v35, 2  ;;  %v4516_v19 = vadd.f32 %v4515_v4, %v4514_v58  ;;  %v12354_v58 = vld [vmem:[#allocation109_spill] sm:$0xff] }
 0x843   :  { %6486 = vmatprep.subr.bf16.mxu1 %v12305_v34  ;;  %6518 = vmatprep.subr.bf16.mxu0 %v12306_v8  ;;  %v12349_v34 = vld [vmem:[#allocation72_spill] sm:$0xff] }
 0x844   :  { %v4530_v39 = vadd.f32 %v4529_v63, %v4528_v35  ;;  %v4517_v8 = vrot.slane %v4516_v19, 1 }
 0x846   :  { %6488 = vmatpush3.bf16.msra.mxu1 %v12307_v38  ;;  %6520 = vmatpush3.bf16.msra.mxu0 %v12308_v52  ;;  %v4531_v38 = vrot.slane %v4530_v39, 1  ;;  %v12350_v52 = vld [vmem:[#allocation75_spill] sm:$0xff] }
 0x847   :  { %6490 = vmatprep.subr.bf16.mxu1 %v12309_v10  ;;  %6522 = vmatprep.subr.bf16.mxu0 %v12310_v59  ;;  %v12351_v10 = vld [vmem:[#allocation71_spill] sm:$0xff]  ;;  %v4518_v59 = vadd.f32 %v4517_v8, %v4516_v19 }
 0x84a   :  { %6492 = vmatpush3.bf16.msra.mxu1 %v12311_v22  ;;  %6524 = vmatpush3.bf16.msra.mxu0 %v12312_v61  ;;  %v4532_v22 = vadd.f32 %v4531_v38, %v4530_v39  ;;  %v12352_v61 = vld [vmem:[#allocation8_spill] sm:$0xff]  ;;  %v10956_v38 = vpop.permute.xlu1 %4914 }
 0x84b   :  { %6494 = vmatprep.subr.bf16.mxu1 %v12313_v6  ;;  %6526 = vmatprep.subr.bf16.mxu0 %v12314_v37  ;;  %v12353_v6 = vld [vmem:[#allocation9_spill] sm:$0xff] }
 0x84e   :  { %6496 = vmatpush3.bf16.msra.mxu1 %v12315_v7  ;;  %6528 = vmatpush3.bf16.msra.mxu0 %v12316_v26 }
 0x84f   :  { %6498 = vmatprep.subr.bf16.mxu1 %v12317_v21  ;;  %6530 = vmatprep.subr.bf16.mxu0 %v12318_v40 }
 0x852   :  { %6500 = vmatpush3.bf16.msra.mxu1 %v12339_v57  ;;  %6532 = vmatpush3.bf16.msra.mxu0 %v12341_v46 }
 0x853   :  { %6502 = vmatprep.subr.bf16.mxu1 %v12340_v28  ;;  %6534 = vmatprep.subr.bf16.mxu0 %v12349_v34 }
 0x856   :  { %6504 = vmatpush3.bf16.msra.mxu1 %v12350_v52  ;;  %6536 = vmatpush3.bf16.msra.mxu0 %v12351_v10  ;;  %v10961_v52 = vld [vmem:[%s11468_s2 + $0x60] ss:$8 sm:$0xf] }
 0x857   :  { %5943 = vmatprep.subr.msk.mxu1 %vm2733_vm2, %v12352_v61  ;;  %5946 = vmatprep.subr.msk.mxu0 %vm2733_vm2, %v12353_v6 }
 0x859   :  { %4605 = vmatmul.mubr.f32.vlgmr.msra.gmra.mrb[18].mxu1 %v4518_v59  ;;  %4675 = vmatmul.mubr.f32.vlgmr.msra.gmra.mrb[20].mxu0 %v4532_v22 }
 0x85a   :  { %5944 = vmatpush1.msk.msra.mxu1 %vm2733_vm2, %v12347_v1  ;;  %4747 = vmatprep.mubr.f32.mxu1 %v12291_v47 }
 0x85b   :  { %5947 = vmatpush1.msk.msra.mxu0 %vm2733_vm2, %v12348_v20  ;;  %4818 = vmatprep.mubr.f32.mxu0 %v12291_v47  ;;  %vm5541_vm2 = vcmask 130048  }
 0x90c   :  { %v4424_v37 = vpop.f32.mrb[16].mxu1  ;;  %v4495_v7 = vpop.f32.mrb[18].mxu0 }
 0x90d   :  { %v4426_v26 = vpop.f32.mrb[17].mxu1  ;;  %v4497_v21 = vpop.f32.mrb[19].mxu0  ;;  %v4500_v1 = vmul.f32 0.00024414063, %v4424_v37  ;;  %v4502_v3 = vmul.f32 0.00024414063, %v4495_v7 }
 0x90e   :  { %v4501_v20 = vmul.f32 0.00024414063, %v4426_v26  ;;  %v4503_v5 = vmul.f32 0.00024414063, %v4497_v21  ;;  %v10971_v21 = vpop.permute.xlu0 %4902 }
 0x90f   :  { %v4829_v51 = vmul.f32 %v4500_v1, %v4500_v1  ;;  %v4831_v13 = vmul.f32 %v4502_v3, %v4502_v3  ;;  %v4852_v35 = vrot.slane %v4500_v1, %v12354_v58  ;;  %v4860_v4 = vrot.slane %v4502_v3, %v12354_v58 }
 0x910   :  { %v4830_v25 = vmul.f32 %v4501_v20, %v4501_v20  ;;  %v4832_v43 = vmul.f32 %v4503_v5, %v4503_v5  ;;  %v4856_v63 = vrot.slane %v4501_v20, %v12354_v58  ;;  %v4864_v19 = vrot.slane %v4503_v5, %v12354_v58  ;;  %v4919_v5 = vpop.permute.xlu1 %4918 }
 0x911   :  { %v4865_v34 = vsub.f32 %v10856_v0, %v4852_v35  ;;  %v4869_v8 = vsub.f32 %v10858_v36, %v4852_v35  ;;  %v4867_v59 = vsub.f32 %v10864_v53, %v4860_v4  ;;  %v4871_v22 = vsub.f32 %v10868_v49, %v4860_v4 }
 0x912   :  { %v4866_v61 = vsub.f32 %v10860_v9, %v4856_v63  ;;  %v4870_v0 = vsub.f32 %v10862_v17, %v4856_v63  ;;  %v4868_v36 = vsub.f32 %v10870_v45, %v4864_v19  ;;  %v4872_v7 = vsub.f32 %v10874_v41, %v4864_v19 }
 0x913   :  { %v5184_v9 = vrot.slane %v10961_v52, %v12354_v58 }
 0x92c   :  { %v6206_v40 = vpop.f32.mrb[18].mxu1  ;;  %v6241_v57 = vpop.f32.mrb[20].mxu0 }
 0x92d   :  { %v6207_v28 = vpop.f32.mrb[19].mxu1  ;;  %v6242_v46 = vpop.f32.mrb[21].mxu0 }
 0x92e   :  { %v6208_v48 = vadd.f32 %v6207_v28, %v6206_v40  ;;  %v6243_v24 = vadd.f32 %v6242_v46, %v6241_v57 }
 0x930   :  { %v4677_v33 = vadd.f32 %v6243_v24, %v6208_v48  ;;  %v12355_v48 = vld [vmem:[#allocation110_spill] sm:$0xff] }
 0x931   :  { %v5192_v45 = vrot.slane %v10961_v52, %v12355_v48 }
 0x932   :  { %5945 = vmatmul.mubr.msk.f32.vlgmr.msra.gmra.mrb[20].mxu1 %vm2729_vm3, %v4677_v33  ;;  %5948 = vmatmul.mubr.msk.f32.vlgmr.msra.gmra.mrb[22].mxu0 %vm2729_vm3, %v4677_v33 }
 0xa05   :  { %v4749_v62 = vpop.f32.mrb[20].mxu1  ;;  %v4820_v18 = vpop.f32.mrb[22].mxu0 }
 0xa06   :  { %v4825_v60 = vmul.f32 0.00024414063, %v4749_v62  ;;  %v4827_v50 = vmul.f32 0.00024414063, %v4820_v18  ;;  %v4751_v16 = vpop.f32.mrb[21].mxu1  ;;  %v4822_v32 = vpop.f32.mrb[23].mxu0 }
 0xa07   :  { %v4826_v54 = vmul.f32 0.00024414063, %v4751_v16  ;;  %v4828_v29 = vmul.f32 0.00024414063, %v4822_v32 }
 0xa08   :  { %v4833_v15 = vsub.f32 %v4825_v60, %v4829_v51  ;;  %v4835_v23 = vsub.f32 %v4827_v50, %v4831_v13 }
 0xa09   :  { %v4834_v14 = vsub.f32 %v4826_v54, %v4830_v25  ;;  %v4836_v2 = vsub.f32 %v4828_v29, %v4832_v43 }
 0xa0a   :  { %v4837_v44 = vmax.f32 %v4833_v15, 0.0  ;;  %v4839_v12 = vmax.f32 %v4835_v23, 0.0 }
 0xa0b   :  { %v4838_v56 = vmax.f32 %v4834_v14, 0.0  ;;  %v4840_v27 = vmax.f32 %v4836_v2, 0.0 }
 0xa0c   :  { %v4841_v42 = vadd.f32 1e-05, %v4837_v44  ;;  %v4843_v55 = vadd.f32 1e-05, %v4839_v12 }
 0xa0d   :  { %v4842_v31 = vadd.f32 1e-05, %v4838_v56  ;;  %v4844_v11 = vadd.f32 1e-05, %v4840_v27 }
 0xa0e   :  { %6809 = vrsqrt.f32 %v4841_v42 }
 0xa0f   :  { %6811 = vrsqrt.f32 %v4843_v55 }
 0xa10   :  { %6813 = vrsqrt.f32 %v4842_v31  ;;  %v4930_v31 = vld [vmem:[%s11475_s9 + $0x8] sm:$0xff] }
 0xa11   :  { %6815 = vrsqrt.f32 %v4844_v11  ;;  %5958 = vmatprep.mubr.msk.f32.mxu1 %vm5541_vm2, %v4930_v31  ;;  %5959 = vmatprep.mubr.msk.f32.mxu0 %vm5541_vm2, %v4930_v31 }
 0xa18   :  { %v6810_v39 = vpop.eup %6809 }
 0xa19   :  { %v6812_v10 = vpop.eup %6811  ;;  %v4876_v6 = vrot.slane %v6810_v39, %v12354_v58  ;;  %v6827_v39 = vld [vmem:[%s11473_s7] sm:$0xff] }
 0xa1a   :  { %v6814_v37 = vpop.eup %6813  ;;  %v4884_v26 = vrot.slane %v6812_v10, %v12354_v58 }
 0xa1b   :  { %v6816_v40 = vpop.eup %6815  ;;  %v4880_v53 = vrot.slane %v6814_v37, %v12354_v58  ;;  %v4889_v57 = vmul.f32 %v4876_v6, %v4865_v34  ;;  %v4893_v49 = vmul.f32 %v4876_v6, %v4869_v8 }
 0xa1c   :  { %v4888_v28 = vrot.slane %v6816_v40, %v12354_v58  ;;  %v4891_v46 = vmul.f32 %v4884_v26, %v4867_v59  ;;  %v4895_v17 = vmul.f32 %v4884_v26, %v4871_v22 }
 0xa1d   :  { %v4890_v41 = vmul.f32 %v4880_v53, %v4866_v61  ;;  %v4905_v24 = vmul.f32 %v10948_v30, %v4889_v57  ;;  %v4894_v33 = vmul.f32 %v4880_v53, %v4870_v0  ;;  %v4909_v1 = vmul.f32 %v10971_v21, %v4893_v49 }
 0xa1e   :  { %v4892_v3 = vmul.f32 %v4888_v28, %v4868_v36  ;;  %v4907_v20 = vmul.f32 %v10948_v30, %v4891_v46  ;;  %v4896_v62 = vmul.f32 %v4888_v28, %v4872_v7  ;;  %v4911_v18 = vmul.f32 %v10971_v21, %v4895_v17 }
 0xa1f   :  { %v4921_v51 = vadd.f32 %v10956_v38, %v4905_v24  ;;  %v4925_v13 = vadd.f32 %v4919_v5, %v4909_v1  ;;  %v4906_v15 = vmul.f32 %v10948_v30, %v4890_v41  ;;  %v4910_v23 = vmul.f32 %v10971_v21, %v4894_v33  ;;  %v5949_v41 = vld [vmem:[%s11468_s2 + $0x40] ss:$8 sm:$0xf] }
 0xa20   :  { %v4923_v60 = vadd.f32 %v10956_v38, %v4907_v20  ;;  %v4927_v50 = vadd.f32 %v4919_v5, %v4911_v18  ;;  %v4908_v14 = vmul.f32 %v10948_v30, %v4892_v3  ;;  %v4912_v44 = vmul.f32 %v10971_v21, %v4896_v62  ;;  %v12360_v1 = vld [vmem:[#allocation108_spill] sm:$0xff] }
 0xa21   :  { %4933 = vrot.lane.b32.xlu1 %v4925_v13, %s6893_s25  ;;  %4931 = vrot.lane.b32.xlu0 %v4921_v51, %s6893_s25  ;;  %v10987_v16 = vmul.f32 %v5184_v9, %v4921_v51  ;;  %v10989_v32 = vmul.f32 %v5184_v9, %v4925_v13  ;;  %v11033_v2 = vadd.f32 %v10956_v38, %v4906_v15 }
 0xa22   :  { %v10991_v25 = vmul.f32 %v5192_v45, %v4923_v60  ;;  %v10993_v43 = vmul.f32 %v5192_v45, %v4927_v50  ;;  %v11036_v12 = vadd.f32 %v4919_v5, %v4910_v23  ;;  %v11043_v56 = vadd.f32 %v10956_v38, %v4908_v14 }
 0xa23   :  { %v11045_v27 = vadd.f32 %v4919_v5, %v4912_v44  ;;  %v12356_v38 = vmov 8   ;;  %v4964_v3 = vrot.slane %v5949_v41, %v12360_v1  ;;  %v4968_v20 = vrot.slane %v5949_v41, %v12355_v48  ;;  %v5950_v44 = vld [vmem:[%s11468_s2 + $0x41] ss:$8 sm:$0xf] }
 0xa24   :  { %v4960_v18 = vrot.slane %v5949_v41, %v12354_v58 }
 0xa25   :  { %4941 = vrot.lane.b32.xlu1 %v4927_v50, %s6893_s25  ;;  %4939 = vrot.lane.b32.xlu0 %v4923_v60, %s6893_s25 }
 0xa29   :  { %4995 = vrot.lane.b32.xlu1 %v4925_v13, %s6895_s26  ;;  %4993 = vrot.lane.b32.xlu0 %v4921_v51, %s6895_s26 }
 0xa2d   :  { %5003 = vrot.lane.b32.xlu1 %v4927_v50, %s6895_s26  ;;  %5001 = vrot.lane.b32.xlu0 %v4923_v60, %s6895_s26 }
 0xa31   :  { %5057 = vrot.lane.b32.xlu1 %v4925_v13, %s6897_s27  ;;  %5055 = vrot.lane.b32.xlu0 %v4921_v51, %s6897_s27 }
 0xa35   :  { %5065 = vrot.lane.b32.xlu1 %v4927_v50, %s6897_s27  ;;  %5063 = vrot.lane.b32.xlu0 %v4923_v60, %s6897_s27 }
 0xa39   :  { %5119 = vrot.lane.b32.xlu1 %v4925_v13, %s6908_s14  ;;  %5117 = vrot.lane.b32.xlu0 %v4921_v51, %s6908_s14 }
 0xa3d   :  { %5127 = vrot.lane.b32.xlu1 %v4927_v50, %s6908_s14  ;;  %5125 = vrot.lane.b32.xlu0 %v4923_v60, %s6908_s14 }
 0xa41   :  { %5219 = vrot.lane.b32.xlu1 %v4925_v13, %s12327_s23  ;;  %5217 = vrot.lane.b32.xlu0 %v4921_v51, %s12327_s23 }
 0xa45   :  { %5227 = vrot.lane.b32.xlu1 %v4927_v50, %s12327_s23  ;;  %5225 = vrot.lane.b32.xlu0 %v4923_v60, %s12327_s23 }
 0xa49   :  { %5281 = vrot.lane.b32.xlu1 %v4925_v13, %s12328_s24  ;;  %5279 = vrot.lane.b32.xlu0 %v4921_v51, %s12328_s24 }
 0xa4d   :  { %5289 = vrot.lane.b32.xlu1 %v4927_v50, %s12328_s24  ;;  %5287 = vrot.lane.b32.xlu0 %v4923_v60, %s12328_s24 }
 0xa51   :  { %5343 = vrot.lane.b32.xlu1 %v4925_v13, %s12329_s12  ;;  %5341 = vrot.lane.b32.xlu0 %v4921_v51, %s12329_s12 }
 0xa55   :  { %5351 = vrot.lane.b32.xlu1 %v4927_v50, %s12329_s12  ;;  %5349 = vrot.lane.b32.xlu0 %v4923_v60, %s12329_s12 }
 0xa59   :  { %5405 = vrot.lane.b32.xlu1 %v4925_v13, %s12330_s5  ;;  %5403 = vrot.lane.b32.xlu0 %v4921_v51, %s12330_s5  ;;  %v12361_v51 = vld [vmem:[#allocation111_spill] sm:$0xff] }
 0xa5a   :  { %v4972_v13 = vrot.slane %v5949_v41, %v12361_v51 }
 0xa5d   :  { %5413 = vrot.lane.b32.xlu1 %v4927_v50, %s12330_s5  ;;  %5411 = vrot.lane.b32.xlu0 %v4923_v60, %s12330_s5  ;;  %v6829_v60 = vld [vmem:[%s11466_s0] sm:$0xff] }
 0xa61   :  { %4937 = vrot.lane.b32.xlu1 %v11036_v12, %s6893_s25  ;;  %4935 = vrot.lane.b32.xlu0 %v11033_v2, %s6893_s25 }
 0xa65   :  { %4945 = vrot.lane.b32.xlu1 %v11045_v27, %s6893_s25  ;;  %4943 = vrot.lane.b32.xlu0 %v11043_v56, %s6893_s25 }
 0xa69   :  { %4999 = vrot.lane.b32.xlu1 %v11036_v12, %s6895_s26  ;;  %4997 = vrot.lane.b32.xlu0 %v11033_v2, %s6895_s26 }
 0xa6d   :  { %5007 = vrot.lane.b32.xlu1 %v11045_v27, %s6895_s26  ;;  %5005 = vrot.lane.b32.xlu0 %v11043_v56, %s6895_s26 }
 0xa71   :  { %5061 = vrot.lane.b32.xlu1 %v11036_v12, %s6897_s27  ;;  %5059 = vrot.lane.b32.xlu0 %v11033_v2, %s6897_s27 }
 0xa75   :  { %5069 = vrot.lane.b32.xlu1 %v11045_v27, %s6897_s27  ;;  %5067 = vrot.lane.b32.xlu0 %v11043_v56, %s6897_s27 }
 0xa79   :  { %5123 = vrot.lane.b32.xlu1 %v11036_v12, %s6908_s14  ;;  %5121 = vrot.lane.b32.xlu0 %v11033_v2, %s6908_s14 }
 0xa7d   :  { %5131 = vrot.lane.b32.xlu1 %v11045_v27, %s6908_s14  ;;  %5129 = vrot.lane.b32.xlu0 %v11043_v56, %s6908_s14 }
 0xa81   :  { %5223 = vrot.lane.b32.xlu1 %v11036_v12, %s12327_s23  ;;  %5221 = vrot.lane.b32.xlu0 %v11033_v2, %s12327_s23 }
 0xa85   :  { %5231 = vrot.lane.b32.xlu1 %v11045_v27, %s12327_s23  ;;  %5229 = vrot.lane.b32.xlu0 %v11043_v56, %s12327_s23 }
 0xa89   :  { %5285 = vrot.lane.b32.xlu1 %v11036_v12, %s12328_s24  ;;  %5283 = vrot.lane.b32.xlu0 %v11033_v2, %s12328_s24 }
 0xa8d   :  { %5293 = vrot.lane.b32.xlu1 %v11045_v27, %s12328_s24  ;;  %5291 = vrot.lane.b32.xlu0 %v11043_v56, %s12328_s24 }
 0xa91   :  { %5347 = vrot.lane.b32.xlu1 %v11036_v12, %s12329_s12  ;;  %5345 = vrot.lane.b32.xlu0 %v11033_v2, %s12329_s12 }
 0xa93   :  { %v11095_v42 = vpop.permute.xlu1 %4933  ;;  %v11097_v55 = vpop.permute.xlu0 %4931 }
 0xa95   :  { %5355 = vrot.lane.b32.xlu1 %v11045_v27, %s12329_s12  ;;  %5353 = vrot.lane.b32.xlu0 %v11043_v56, %s12329_s12 }
 0xa97   :  { %v4942_v11 = vpop.permute.xlu1 %4941  ;;  %v4940_v30 = vpop.permute.xlu0 %4939 }
 0xa99   :  { %5409 = vrot.lane.b32.xlu1 %v11036_v12, %s12330_s5  ;;  %5407 = vrot.lane.b32.xlu0 %v11033_v2, %s12330_s5 }
 0xa9b   :  { %v11110_v35 = vpop.permute.xlu1 %4995  ;;  %v11112_v4 = vpop.permute.xlu0 %4993 }
 0xa9d   :  { %5417 = vrot.lane.b32.xlu1 %v11045_v27, %s12330_s5  ;;  %5415 = vrot.lane.b32.xlu0 %v11043_v56, %s12330_s5 }
 0xa9f   :  { %v11118_v63 = vpop.permute.xlu1 %5003  ;;  %v11120_v19 = vpop.permute.xlu0 %5001 }
 0xaa1   :  { %5689 = vperm.xlu1 %6780, %v6827_v39   ;;  %5538 = vperm.xlu0 %6779, %v6827_v39  }
 0xaa3   :  { %v11125_v34 = vpop.permute.xlu1 %5057  ;;  %v11127_v8 = vpop.permute.xlu0 %5055 }
 0xaa5   :  { %6781 = vset.pattern.permute.xlu0 %v12356_v38 }
 0xaa7   :  { %v11130_v10 = vpop.permute.xlu1 %5065  ;;  %v11132_v59 = vpop.permute.xlu0 %5063 }
 0xaab   :  { %v11134_v22 = vpop.permute.xlu1 %5119  ;;  %v11136_v61 = vpop.permute.xlu0 %5117 }
 0xaaf   :  { %v11138_v6 = vpop.permute.xlu1 %5127  ;;  %v11140_v37 = vpop.permute.xlu0 %5125 }
 0xab3   :  { %v11142_v0 = vpop.permute.xlu1 %5219  ;;  %v11144_v36 = vpop.permute.xlu0 %5217 }
 0xab7   :  { %v11146_v7 = vpop.permute.xlu1 %5227  ;;  %v11148_v26 = vpop.permute.xlu0 %5225 }
 0xabb   :  { %v11150_v21 = vpop.permute.xlu1 %5281  ;;  %v11152_v40 = vpop.permute.xlu0 %5279 }
 0xabf   :  { %v11154_v53 = vpop.permute.xlu1 %5289  ;;  %v11156_v57 = vpop.permute.xlu0 %5287 }
 0xac3   :  { %v11158_v49 = vpop.permute.xlu1 %5343  ;;  %v11160_v9 = vpop.permute.xlu0 %5341 }
 0xac7   :  { %v11162_v28 = vpop.permute.xlu1 %5351  ;;  %v11164_v46 = vpop.permute.xlu0 %5349 }
 0xacb   :  { %v11166_v17 = vpop.permute.xlu1 %5405  ;;  %v11168_v45 = vpop.permute.xlu0 %5403 }
 0xacc   :  { %12357 = vst [vmem:[#allocation82_spill] sm:$0xff] %v11166_v17  ;;  %12358 = vst [vmem:[#allocation81_spill] sm:$0xff] %v11168_v45 }
 0xacf   :  { %v11173_v24 = vpop.permute.xlu1 %5413  ;;  %v11175_v33 = vpop.permute.xlu0 %5411 }
 0xad0   :  { %12359 = vst [vmem:[#allocation98_spill] sm:$0xff] %v11175_v33  ;;  %v5030_v33 = vrot.slane %v5950_v44, %v12355_v48 }
 0xad3   :  { %v4938_v5 = vpop.permute.xlu1 %4937  ;;  %v4936_v62 = vpop.permute.xlu0 %4935 }
 0xad4   :  { %v4950_v50 = vsel %vm961_vm7, %v4938_v5, %v4942_v11  ;;  %v4952_v15 = vsel %vm961_vm7, %v11095_v42, %v4938_v5  ;;  %v4949_v23 = vsel %vm961_vm7, %v4936_v62, %v4940_v30  ;;  %v4951_v14 = vsel %vm961_vm7, %v11097_v55, %v4936_v62 }
 0xad5   :  { %v4982_v31 = vmul.f32 %v4964_v3, %v4952_v15  ;;  %v4983_v39 = vmul.f32 %v4968_v20, %v4950_v50  ;;  %v4978_v38 = vmul.f32 %v4964_v3, %v4951_v14  ;;  %v4979_v41 = vmul.f32 %v4968_v20, %v4949_v23 }
 0xad6   :  { %v5026_v5 = vrot.slane %v5950_v44, %v12360_v1 }
 0xad7   :  { %v6575_v29 = vpack.c.bf16 %v4983_v39, %v4979_v41  ;;  %v4946_v54 = vpop.permute.xlu1 %4945  ;;  %v4944_v47 = vpop.permute.xlu0 %4943  ;;  %v6537_v45 = vpack.c.bf16 %v4982_v31, %v4978_v38  ;;  %v5022_v41 = vrot.slane %v5950_v44, %v12354_v58 }
 0xad8   :  { %v4948_v17 = vsel %vm961_vm7, %v4942_v11, %v4946_v54  ;;  %v4954_v62 = vsel %vm961_vm7, %v4946_v54, %v11095_v42  ;;  %v4947_v50 = vsel %vm961_vm7, %v4940_v30, %v4944_v47  ;;  %v4953_v3 = vsel %vm961_vm7, %v4944_v47, %v11097_v55 }
 0xad9   :  { %v4981_v20 = vmul.f32 %v4960_v18, %v4954_v62  ;;  %v4984_v15 = vmul.f32 %v4972_v13, %v4948_v17  ;;  %v4977_v23 = vmul.f32 %v4960_v18, %v4953_v3  ;;  %v4980_v14 = vmul.f32 %v4972_v13, %v4947_v50  ;;  %6538 = vmatprep.subr.bf16.mxu1 %v6537_v45  ;;  %v5951_v17 = vld [vmem:[%s11468_s2 + $0x42] ss:$8 sm:$0xf] }
 0xada   :  { %v5034_v54 = vrot.slane %v5950_v44, %v12361_v51 }
 0xadb   :  { %v6539_v31 = vpack.c.bf16 %v4981_v20, %v4977_v23  ;;  %v5000_v39 = vpop.permute.xlu1 %4999  ;;  %v4998_v38 = vpop.permute.xlu0 %4997  ;;  %v6573_v11 = vpack.c.bf16 %v4984_v15, %v4980_v14  ;;  %v5088_v15 = vrot.slane %v5951_v17, %v12360_v1  ;;  %v5092_v23 = vrot.slane %v5951_v17, %v12355_v48 }
 0xadc   :  { %v5012_v42 = vsel %vm1013_vm8, %v5000_v39, %v11118_v63  ;;  %v5014_v47 = vsel %vm1013_vm8, %v11110_v35, %v5000_v39  ;;  %v5011_v55 = vsel %vm1013_vm8, %v4998_v38, %v11120_v19  ;;  %v5013_v30 = vsel %vm1013_vm8, %v11112_v4, %v4998_v38 }
 0xadd   :  { %v5044_v45 = vmul.f32 %v5026_v5, %v5014_v47  ;;  %v5045_v18 = vmul.f32 %v5030_v33, %v5012_v42  ;;  %v5040_v13 = vmul.f32 %v5026_v5, %v5013_v30  ;;  %v5041_v44 = vmul.f32 %v5030_v33, %v5011_v55  ;;  %6540 = vmatpush1.bf16.msra.mxu1 %v6539_v31 }
 0xade   :  { %6574 = vmatprep.subr.bf16.mxu0 %v6573_v11  ;;  %v5084_v30 = vrot.slane %v5951_v17, %v12354_v58 }
 0xadf   :  { %v6579_v62 = vpack.c.bf16 %v5045_v18, %v5041_v44  ;;  %6576 = vmatpush1.bf16.msra.mxu0 %v6575_v29  ;;  %v5008_v50 = vpop.permute.xlu1 %5007  ;;  %v5006_v3 = vpop.permute.xlu0 %5005  ;;  %v6541_v20 = vpack.c.bf16 %v5044_v45, %v5040_v13 }
 0xae0   :  { %v5010_v14 = vsel %vm1013_vm8, %v11118_v63, %v5008_v50  ;;  %v5016_v5 = vsel %vm1013_vm8, %v5008_v50, %v11110_v35  ;;  %v5009_v33 = vsel %vm1013_vm8, %v11120_v19, %v5006_v3  ;;  %v5015_v29 = vsel %vm1013_vm8, %v5006_v3, %v11112_v4 }
 0xae1   :  { %v5043_v31 = vmul.f32 %v5022_v41, %v5016_v5  ;;  %v5046_v39 = vmul.f32 %v5034_v54, %v5010_v14  ;;  %v5039_v38 = vmul.f32 %v5022_v41, %v5015_v29  ;;  %v5042_v11 = vmul.f32 %v5034_v54, %v5009_v33  ;;  %6542 = vmatprep.subr.bf16.mxu1 %v6541_v20 }
 0xae2   :  { %v5096_v35 = vrot.slane %v5951_v17, %v12361_v51  ;;  %v5952_v17 = vld [vmem:[%s11468_s2 + $0x47] ss:$8 sm:$0xf] }
 0xae3   :  { %v6543_v42 = vpack.c.bf16 %v5043_v31, %v5039_v38  ;;  %v5062_v47 = vpop.permute.xlu1 %5061  ;;  %v5060_v63 = vpop.permute.xlu0 %5059  ;;  %v6577_v55 = vpack.c.bf16 %v5046_v39, %v5042_v11  ;;  %v5150_v5 = vrot.slane %v5952_v17, %v12360_v1  ;;  %v5154_v33 = vrot.slane %v5952_v17, %v12355_v48 }
 0xae4   :  { %v5074_v19 = vsel %vm1065_vm9, %v5062_v47, %v11130_v10  ;;  %v5076_v4 = vsel %vm1065_vm9, %v11125_v34, %v5062_v47  ;;  %v5073_v41 = vsel %vm1065_vm9, %v5060_v63, %v11132_v59  ;;  %v5075_v54 = vsel %vm1065_vm9, %v11127_v8, %v5060_v63 }
 0xae5   :  { %v5106_v45 = vmul.f32 %v5088_v15, %v5076_v4  ;;  %v5107_v18 = vmul.f32 %v5092_v23, %v5074_v19  ;;  %v5102_v13 = vmul.f32 %v5088_v15, %v5075_v54  ;;  %v5103_v44 = vmul.f32 %v5092_v23, %v5073_v41  ;;  %6544 = vmatpush1.bf16.msra.mxu1 %v6543_v42  ;;  %v5954_v4 = vld [vmem:[%s11468_s2 + $0x61] ss:$8 sm:$0xf] }
 0xae6   :  { %6578 = vmatprep.subr.bf16.mxu0 %v6577_v55  ;;  %v5146_v55 = vrot.slane %v5952_v17, %v12354_v58 }
 0xae7   :  { %v6583_v50 = vpack.c.bf16 %v5107_v18, %v5103_v44  ;;  %6580 = vmatpush1.bf16.msra.mxu0 %v6579_v62  ;;  %v5070_v3 = vpop.permute.xlu1 %5069  ;;  %v5068_v20 = vpop.permute.xlu0 %5067  ;;  %v6545_v14 = vpack.c.bf16 %v5106_v45, %v5102_v13  ;;  %v5196_v13 = vrot.slane %v10961_v52, %v12361_v51 }
 0xae8   :  { %v5072_v29 = vsel %vm1065_vm9, %v11130_v10, %v5070_v3  ;;  %v5078_v15 = vsel %vm1065_vm9, %v5070_v3, %v11125_v34  ;;  %v5071_v23 = vsel %vm1065_vm9, %v11132_v59, %v5068_v20  ;;  %v5077_v62 = vsel %vm1065_vm9, %v5068_v20, %v11127_v8 }
 0xae9   :  { %v5105_v31 = vmul.f32 %v5084_v30, %v5078_v15  ;;  %v5108_v39 = vmul.f32 %v5096_v35, %v5072_v29  ;;  %v5101_v38 = vmul.f32 %v5084_v30, %v5077_v62  ;;  %v5104_v11 = vmul.f32 %v5096_v35, %v5071_v23  ;;  %6546 = vmatprep.subr.bf16.mxu1 %v6545_v14 }
 0xaea   :  { %v5188_v10 = vrot.slane %v10961_v52, %v12360_v1  ;;  %v5158_v59 = vrot.slane %v5952_v17, %v12361_v51  ;;  %v5250_v29 = vrot.slane %v5954_v4, %v12360_v1 }
 0xaeb   :  { %v6547_v42 = vpack.c.bf16 %v5105_v31, %v5101_v38  ;;  %v5124_v47 = vpop.permute.xlu1 %5123  ;;  %v5122_v63 = vpop.permute.xlu0 %5121  ;;  %v6581_v34 = vpack.c.bf16 %v5108_v39, %v5104_v11  ;;  %v5204_v31 = vmul.f32 %v5196_v13, %v11043_v56 }
 0xaec   :  { %v5136_v8 = vsel %vm1325_vm14, %v5124_v47, %v11138_v6  ;;  %v5138_v30 = vsel %vm1325_vm14, %v11134_v22, %v5124_v47  ;;  %v5135_v35 = vsel %vm1325_vm14, %v5122_v63, %v11140_v37  ;;  %v5137_v19 = vsel %vm1325_vm14, %v11136_v61, %v5122_v63 }
 0xaed   :  { %v5168_v41 = vmul.f32 %v5150_v5, %v5138_v30  ;;  %v5169_v54 = vmul.f32 %v5154_v33, %v5136_v8  ;;  %v5164_v17 = vmul.f32 %v5150_v5, %v5137_v19  ;;  %v5165_v45 = vmul.f32 %v5154_v33, %v5135_v35  ;;  %6548 = vmatpush1.bf16.msra.mxu1 %v6547_v42 }
 0xaee   :  { %6582 = vmatprep.subr.bf16.mxu0 %v6581_v34  ;;  %v5202_v18 = vmul.f32 %v5188_v10, %v11033_v2  ;;  %v5206_v15 = vmul.f32 %v5188_v10, %v11036_v12 }
 0xaef   :  { %v6587_v44 = vpack.c.bf16 %v5169_v54, %v5165_v45  ;;  %6584 = vmatpush1.bf16.msra.mxu0 %v6583_v50  ;;  %v5132_v3 = vpop.permute.xlu1 %5131  ;;  %v5130_v20 = vpop.permute.xlu0 %5129  ;;  %v6549_v14 = vpack.c.bf16 %v5168_v41, %v5164_v17 }
 0xaf0   :  { %v5134_v5 = vsel %vm1325_vm14, %v11138_v6, %v5132_v3  ;;  %v5140_v2 = vsel %vm1325_vm14, %v5132_v3, %v11134_v22  ;;  %v5133_v52 = vsel %vm1325_vm14, %v11140_v37, %v5130_v20  ;;  %v5139_v50 = vsel %vm1325_vm14, %v5130_v20, %v11136_v61  ;;  %v5955_v61 = vld [vmem:[%s11468_s2 + $0x66] ss:$8 sm:$0xf] }
 0xaf1   :  { %v5167_v33 = vmul.f32 %v5146_v55, %v5140_v2  ;;  %v5170_v23 = vmul.f32 %v5158_v59, %v5134_v5  ;;  %v5163_v62 = vmul.f32 %v5146_v55, %v5139_v50  ;;  %v5166_v12 = vmul.f32 %v5158_v59, %v5133_v52  ;;  %6550 = vmatprep.subr.bf16.mxu1 %v6549_v14 }
 0xaf2   :  { %v5208_v6 = vmul.f32 %v5196_v13, %v11045_v27  ;;  %v5246_v22 = vrot.slane %v5954_v4, %v12354_v58  ;;  %v6553_v37 = vpack.c.bf16 %v5206_v15, %v5202_v18  ;;  %v5254_v55 = vrot.slane %v5954_v4, %v12355_v48 }
 0xaf3   :  { %v6551_v39 = vpack.c.bf16 %v5167_v33, %v5163_v62  ;;  %v5224_v38 = vpop.permute.xlu1 %5223  ;;  %v5222_v11 = vpop.permute.xlu0 %5221  ;;  %v6585_v10 = vpack.c.bf16 %v5170_v23, %v5166_v12  ;;  %v5258_v59 = vrot.slane %v5954_v4, %v12361_v51  ;;  %v5308_v30 = vrot.slane %v5955_v61, %v12354_v58 }
 0xaf4   :  { %v5236_v42 = vsel %vm1377_vm15, %v5224_v38, %v11146_v7  ;;  %v5238_v56 = vsel %vm1377_vm15, %v11142_v0, %v5224_v38  ;;  %v5235_v27 = vsel %vm1377_vm15, %v5222_v11, %v11148_v26  ;;  %v5237_v47 = vsel %vm1377_vm15, %v11144_v36, %v5222_v11 }
 0xaf5   :  { %v5268_v63 = vmul.f32 %v5250_v29, %v5236_v42  ;;  %v5264_v34 = vmul.f32 %v5250_v29, %v5235_v27  ;;  %6552 = vmatpush1.bf16.msra.mxu1 %v6551_v39  ;;  %6586 = vmatprep.subr.bf16.mxu0 %v6585_v10  ;;  %v6589_v8 = vpack.c.bf16 %v5208_v6, %v5204_v31 }
 0xaf6   :  { %6554 = vmatprep.subr.bf16.mxu1 %v6553_v37  ;;  %v5267_v35 = vmul.f32 %v5246_v22, %v5238_v56  ;;  %v5263_v19 = vmul.f32 %v5246_v22, %v5237_v47  ;;  %6588 = vmatpush1.bf16.msra.mxu0 %v6587_v44  ;;  %v5312_v45 = vrot.slane %v5955_v61, %v12360_v1 }
 0xaf7   :  { %v5232_v41 = vpop.permute.xlu1 %5231  ;;  %v5230_v54 = vpop.permute.xlu0 %5229  ;;  %v6557_v17 = vpack.c.bf16 %v5268_v63, %v5264_v34  ;;  %6590 = vmatprep.subr.bf16.mxu0 %v6589_v8  ;;  %v5320_v50 = vrot.slane %v5955_v61, %v12361_v51 }
 0xaf8   :  { %v5234_v18 = vsel %vm1377_vm15, %v11146_v7, %v5232_v41  ;;  %v5240_v4 = vsel %vm1377_vm15, %v5232_v41, %v11142_v0  ;;  %v5233_v13 = vsel %vm1377_vm15, %v11148_v26, %v5230_v54  ;;  %v5239_v44 = vsel %vm1377_vm15, %v5230_v54, %v11144_v36  ;;  %v5957_v41 = vld [vmem:[%s11468_s2 + $0x80] ss:$8 sm:$0xf] }
 0xaf9   :  { %v5269_v3 = vmul.f32 %v5254_v55, %v5234_v18  ;;  %v5270_v20 = vmul.f32 %v5258_v59, %v5240_v4  ;;  %v5265_v14 = vmul.f32 %v5254_v55, %v5233_v13  ;;  %v5266_v29 = vmul.f32 %v5258_v59, %v5239_v44 }
 0xafa   :  { %v12363_v7 = vpack.c.bf16 %v10989_v32, %v10987_v16  ;;  %v5316_v0 = vrot.slane %v5955_v61, %v12355_v48  ;;  %v6559_v15 = vpack.c.bf16 %v5267_v35, %v5263_v19  ;;  %v12364_v26 = vpack.c.bf16 %v10993_v43, %v10991_v25  ;;  %v5956_v43 = vld [vmem:[%s11468_s2 + $0x67] ss:$8 sm:$0xf] }
 0xafb   :  { %v6595_v5 = vpack.c.bf16 %v5269_v3, %v5265_v14  ;;  %v5286_v2 = vpop.permute.xlu1 %5285  ;;  %v5284_v52 = vpop.permute.xlu0 %5283  ;;  %v6593_v36 = vpack.c.bf16 %v5270_v20, %v5266_v29  ;;  %v5370_v11 = vrot.slane %v5956_v43, %v12354_v58  ;;  %v5374_v10 = vrot.slane %v5956_v43, %v12360_v1 }
 0xafc   :  { %6556 = vmatpush1.bf16.msra.mxu1 %v12363_v7  ;;  %6592 = vmatpush1.bf16.msra.mxu0 %v12364_v26  ;;  %v5298_v33 = vsel %vm1637_vm10, %v5286_v2, %v11154_v53  ;;  %v5300_v16 = vsel %vm1637_vm10, %v11150_v21, %v5286_v2  ;;  %v5297_v32 = vsel %vm1637_vm10, %v5284_v52, %v11156_v57 }
 0xafd   :  { %6558 = vmatprep.subr.bf16.mxu1 %v6557_v17  ;;  %v5299_v25 = vsel %vm1637_vm10, %v11152_v40, %v5284_v52  ;;  %v5329_v23 = vmul.f32 %v5308_v30, %v5300_v16  ;;  %v5330_v62 = vmul.f32 %v5312_v45, %v5298_v33  ;;  %v5326_v31 = vmul.f32 %v5312_v45, %v5297_v32  ;;  %v12365_v33 = vld [vmem:[#allocation82_spill] sm:$0xff] }
 0xafe   :  { %v5325_v12 = vmul.f32 %v5308_v30, %v5299_v25  ;;  %6594 = vmatprep.subr.bf16.mxu0 %v6593_v36  ;;  %v5382_v30 = vrot.slane %v5956_v43, %v12361_v51  ;;  %v5432_v20 = vrot.slane %v5957_v41, %v12354_v58  ;;  %v5436_v14 = vrot.slane %v5957_v41, %v12360_v1  ;;  %v12366_v16 = vld [vmem:[#allocation98_spill] sm:$0xff]  ;;  %v12367_v25 = vld [vmem:[#allocation81_spill] sm:$0xff] }
 0xaff   :  { %v5294_v39 = vpop.permute.xlu1 %5293  ;;  %v5292_v22 = vpop.permute.xlu0 %5291  ;;  %v6561_v38 = vpack.c.bf16 %v5330_v62, %v5326_v31 }
 0xb00   :  { %6560 = vmatpush1.bf16.msra.mxu1 %v6559_v15  ;;  %v6563_v6 = vpack.c.bf16 %v5329_v23, %v5325_v12  ;;  %6596 = vmatpush1.bf16.msra.mxu0 %v6595_v5  ;;  %v5296_v37 = vsel %vm1637_vm10, %v11154_v53, %v5294_v39  ;;  %v5302_v61 = vsel %vm1637_vm10, %v5294_v39, %v11150_v21 }
 0xb01   :  { %v5295_v42 = vsel %vm1637_vm10, %v11156_v57, %v5292_v22  ;;  %v5301_v56 = vsel %vm1637_vm10, %v5292_v22, %v11152_v40  ;;  %v5331_v27 = vmul.f32 %v5316_v0, %v5296_v37  ;;  %v5332_v47 = vmul.f32 %v5320_v50, %v5302_v61  ;;  %6562 = vmatprep.subr.bf16.mxu1 %v6561_v38 }
 0xb02   :  { %v5327_v63 = vmul.f32 %v5316_v0, %v5295_v42  ;;  %v5328_v34 = vmul.f32 %v5320_v50, %v5301_v56  ;;  %v5378_v21 = vrot.slane %v5956_v43, %v12355_v48  ;;  %v5444_v50 = vrot.slane %v5957_v41, %v12361_v51 }
 0xb03   :  { %v5348_v53 = vpop.permute.xlu1 %5347  ;;  %v5346_v59 = vpop.permute.xlu0 %5345 }
 0xb04   :  { %6564 = vmatpush1.bf16.msra.mxu1 %v6563_v6  ;;  %v6599_v55 = vpack.c.bf16 %v5331_v27, %v5327_v63  ;;  %v6597_v8 = vpack.c.bf16 %v5332_v47, %v5328_v34  ;;  %v5360_v57 = vsel %vm1689_vm11, %v5348_v53, %v11162_v28  ;;  %v5362_v40 = vsel %vm1689_vm11, %v11158_v49, %v5348_v53  ;;  %v6828_v63 = vld [vmem:[%s11466_s0 + $0x8] sm:$0xff]  ;;  %v6830_v34 = vld [vmem:[%s11466_s0 + $0x18] sm:$0xff]  ;;  %v6831_v53 = vld [vmem:[%s11466_s0 + $0x10] sm:$0xff]  ;;  %s6956_s0 = smov [#allocation3]  }
 0xb05   :  { %v5359_v35 = vsel %vm1689_vm11, %v5346_v59, %v11164_v46  ;;  %v5361_v19 = vsel %vm1689_vm11, %v11160_v9, %v5346_v59  ;;  %v5391_v54 = vmul.f32 %v5370_v11, %v5362_v40  ;;  %v5392_v17 = vmul.f32 %v5374_v10, %v5360_v57  ;;  %v5687_v59 = vld [vmem:[%s11476_s10] sm:$0xff]  ;;  %s5851_s7 = sshll.u32 %s6956_s0, 4  ;;  %s5852_s7 = int_to_ptr.vmem [resolvable:$true] %s5851_s7 }
 0xb06   :  { %v5387_v45 = vmul.f32 %v5370_v11, %v5361_v19  ;;  %v5388_v18 = vmul.f32 %v5374_v10, %v5359_v35  ;;  %6598 = vmatprep.subr.bf16.mxu0 %v6597_v8  ;;  %s6832_s10 = scalar_lea.vmem %s5852_s7, 512  ;;  %p6837_p1 = scmp.lt.s32.totalorder %s5852_s7, %s5852_s7 }
 0xb07   :  { %6600 = vmatpush1.bf16.msra.mxu0 %v6599_v55  ;;  %v5356_v13 = vpop.permute.xlu1 %5355  ;;  %v5354_v44 = vpop.permute.xlu0 %5353  ;;  %v12368_v55 = vmov 0.0   ;;  %p6833_p0 = scmp.ne.s32.totalorder %s5852_s7, %s6832_s10  ;;  %p6838_p2 = scmp.lt.s32.totalorder %s6832_s10, %s6832_s10 }
 0xb08   :  { %v6567_v4 = vpack.c.bf16 %v5391_v54, %v5387_v45  ;;  %v6565_v3 = vpack.c.bf16 %v5392_v17, %v5388_v18  ;;  %v5358_v29 = vsel %vm1689_vm11, %v11162_v28, %v5356_v13  ;;  %v5364_v7 = vsel %vm1689_vm11, %v5356_v13, %v11158_v49 }
 0xb09   :  { %v5357_v0 = vsel %vm1689_vm11, %v11164_v46, %v5354_v44  ;;  %v5363_v15 = vsel %vm1689_vm11, %v5354_v44, %v11160_v9  ;;  %v5393_v5 = vmul.f32 %v5378_v21, %v5358_v29  ;;  %v5394_v58 = vmul.f32 %v5382_v30, %v5364_v7  ;;  %p6839_p3 = por %p6838_p2, %p6837_p1 }
 0xb0a   :  { %v5389_v26 = vmul.f32 %v5378_v21, %v5357_v0  ;;  %v5390_v1 = vmul.f32 %v5382_v30, %v5363_v15  ;;  %6566 = vmatprep.subr.bf16.mxu1 %v6565_v3  ;;  %v5440_v49 = vrot.slane %v5957_v41, %v12355_v48 }
 0xb0b   :  { %6568 = vmatpush1.bf16.msra.mxu1 %v6567_v4  ;;  %v5410_v28 = vpop.permute.xlu1 %5409  ;;  %v5408_v52 = vpop.permute.xlu0 %5407  ;;  %p6840_p4 = pnand %p6839_p3, %p6833_p0 }
 0xb0c   :  { %v6603_v2 = vpack.c.bf16 %v5393_v5, %v5389_v26  ;;  %v6601_v36 = vpack.c.bf16 %v5394_v58, %v5390_v1  ;;  %v5422_v46 = vsel %vm1741_vm12, %v5410_v28, %v11173_v24  ;;  %v5424_v9 = vsel %vm1741_vm12, %v12365_v33, %v5410_v28 }
 0xb0d   :  { %v5421_v32 = vsel %vm1741_vm12, %v5408_v52, %v12366_v16  ;;  %v5423_v43 = vsel %vm1741_vm12, %v12367_v25, %v5408_v52  ;;  %v5453_v23 = vmul.f32 %v5432_v20, %v5424_v9  ;;  %v5454_v48 = vmul.f32 %v5436_v14, %v5422_v46 }
 0xb0e   :  { %v5449_v62 = vmul.f32 %v5432_v20, %v5423_v43  ;;  %v5450_v51 = vmul.f32 %v5436_v14, %v5421_v32  ;;  %6602 = vmatprep.subr.bf16.mxu0 %v6601_v36 }
 0xb0f   :  { %6604 = vmatpush1.bf16.msra.mxu0 %v6603_v2  ;;  %v5418_v31 = vpop.permute.xlu1 %5417  ;;  %v5416_v6 = vpop.permute.xlu0 %5415 }
 0xb10   :  { %v6571_v12 = vpack.c.bf16 %v5453_v23, %v5449_v62  ;;  %v6569_v39 = vpack.c.bf16 %v5454_v48, %v5450_v51  ;;  %v5420_v22 = vsel %vm1741_vm12, %v11173_v24, %v5418_v31  ;;  %v5426_v38 = vsel %vm1741_vm12, %v5418_v31, %v12365_v33  ;;  %v4929_v24 = vld [vmem:[%s11475_s9] sm:$0xff] }
 0xb11   :  { %v5419_v11 = vsel %vm1741_vm12, %v12366_v16, %v5416_v6  ;;  %v5425_v10 = vsel %vm1741_vm12, %v5416_v6, %v12367_v25  ;;  %v5455_v37 = vmul.f32 %v5440_v49, %v5420_v22  ;;  %v5456_v61 = vmul.f32 %v5444_v50, %v5426_v38 }
 0xb12   :  { %v5451_v42 = vmul.f32 %v5440_v49, %v5419_v11  ;;  %v5452_v56 = vmul.f32 %v5444_v50, %v5425_v10  ;;  %6570 = vmatprep.subr.bf16.mxu1 %v6569_v39 }
 0xb13   :  { %6572 = vmatpush1.bf16.msra.mxu1 %v6571_v12 }
 0xb14   :  { %v6607_v27 = vpack.c.bf16 %v5455_v37, %v5451_v42  ;;  %v6605_v47 = vpack.c.bf16 %v5456_v61, %v5452_v56  ;;  %5695 = vmatprep.subr.mxu1 %v6828_v63 }
 0xb16   :  { %5610 = vmatmul.mubr.f32.vlgmr.msra.gmra.mrb[22].mxu1 %v4929_v24  ;;  %6606 = vmatprep.subr.bf16.mxu0 %v6605_v47 }
 0xb17   :  { %6608 = vmatpush1.bf16.msra.mxu0 %v6607_v27  ;;  %5696 = vmatpush1.msra.mxu1 %v6829_v60 }
 0xb18   :  { %5766 = vmatprep.subr.mxu0 %v6830_v34  ;;  %5759 = vmatprep.mubr.f32.mxu1 %v12368_v55 }
 0xb1a   :  { %5681 = vmatmul.mubr.f32.vlgmr.msra.gmra.mrb[24].mxu0 %v4929_v24 }
 0xb1b   :  { %5767 = vmatpush1.msra.mxu0 %v6831_v53  ;;  %5830 = vmatprep.mubr.f32.mxu0 %v12368_v55 }
 0xb1e   :  { %5960 = vmatmul.mubr.msk.f32.vlgmr.msra.gmra.mrb[22].mxu1 %vm2637_vm1, %v5687_v59 }
 0xb20   :  { %v5690_v8 = vpop.permute.xlu1 %5689  ;;  %v5539_v21 = vpop.permute.xlu0 %5538 }
 0xb21   :  { %v6609_v30 = vadd.f32 %v5690_v8, %v5539_v21 }
 0xb22   :  { %5961 = vmatmul.mubr.msk.f32.vlgmr.msra.gmra.mrb[24].mxu0 %vm2637_vm1, %v5687_v59 }
 0xbf1   :  { %v5761_v57 = vpop.f32.mrb[22].mxu1 }
 0xbf2   :  { %v6610_v40 = vadd.f32 %v6609_v30, %v5761_v57  ;;  %v5763_v35 = vpop.f32.mrb[23].mxu1 }
 0xbf3   :  { %v6612_v19 = vadd.f32 %v6609_v30, %v5763_v35 }
 0xbf4   :  { %5841 = vst [vmem:[#allocation3] sm:$0xff] %v6610_v40 }
 0xbf5   :  { %5842 = vst [vmem:[#allocation3 + $0x8] sm:$0xff] %v6612_v19  ;;  %v5832_v41 = vpop.f32.mrb[24].mxu0 }
 0xbf6   :  { %v6614_v54 = vadd.f32 %v6609_v30, %v5832_v41  ;;  %v5834_v17 = vpop.f32.mrb[25].mxu0 }
 0xbf7   :  { %v6616_v45 = vadd.f32 %v6609_v30, %v5834_v17 }
 0xbf8   :  { %5843 = vst [vmem:[#allocation3 + $0x10] sm:$0xff] %v6614_v54 }
 0xbf9   :  { %5844 = vst [vmem:[#allocation3 + $0x18] sm:$0xff] %v6616_v45 }
 0xbfa   :  { %6843 = shalt.err (!%p6840_p4)
}
 0xbfb   :  { %s6844_s12 = scalar_lea.hbm %s11477_s11, 512 }
 0xbfc   :  { %p6845_p5 = scmp.ne.s32.totalorder %s11477_s11, %s6844_s12  ;;  %p6848_p6 = scmp.lt.u32.totalorder %s6844_s12, %s11477_s11 }
 0xbfe   :  { %p6850_p7 = pnand %p6848_p6, %p6845_p5 }
 0xc00   :  { %6853 = shalt.err (!%p6850_p7)
}
 0xc01   :  { %5854 = dma.vmem_to_hbm [thread:$0]  %s5852_s7, 512, %s11477_s11, [#allocation4]  }
 0xc02   :  { %6854 = dma.done.wait [#allocation4], 512  }
 0xc03   :  { %6855 = vsyncadd [#allocation4], 4294966784 }
 0xc04   :  { %5858 = vsyncpa [#allocation4], 1 }

</bundles_post_ra>
